<compile_context>
chip_gen: v7x
topology: tpu7x:2x2x1
jax: 0.10.0
libtpu: 0.0.40
codegen_flags: <defaults>
</compile_context>

<pallas_src>
import math

import jax
import jax.numpy as jnp
from jax.experimental import pallas as pl
from jax.experimental.pallas import tpu as pltpu

_INV_SQRT2 = 1.0 / math.sqrt(2.0)


# ------------------------------ GELU helpers -----------------------------------

def _erf_poly(v):
    """erf via Abramowitz & Stegun 7.1.26 (|error| <= 1.5e-7), mul/add/exp/where only."""
    a1, a2, a3, a4, a5 = (0.254829592, -0.284496736, 1.421413741,
                          -1.453152027, 1.061405429)
    p = 0.3275911
    ax = jnp.abs(v)
    t = 1.0 / (1.0 + p * ax)
    poly = ((((a5 * t + a4) * t + a3) * t + a2) * t + a1) * t
    e = 1.0 - poly * jnp.exp(-ax * ax)
    return jnp.where(v < 0.0, -e, e)


def _gelu_kernel(v):
    # nn.GELU() default = exact erf GELU (polynomial erf, error << bf16 noise)
    return 0.5 * v * (1.0 + _erf_poly(v * _INV_SQRT2))


def _gelu_exact(v):
    # plain-JAX reference (outside the kernel)
    return 0.5 * v * (1.0 + jax.lax.erf(v * _INV_SQRT2))


# --------------------------- VMEM budget helpers --------------------------------

def _round_up(n, m):
    return (n + m - 1) // m * m


def _padded_vmem_bytes(shape, dtype):
    """Rough lane/sublane-padded VMEM footprint of one buffer."""
    item = jnp.dtype(dtype).itemsize
    sublane = 8 * (4 // item) if item <= 4 else 8
    dims = list(shape)
    if len(dims) < 2:
        dims = [1] * (2 - len(dims)) + dims
    dims[-1] = _round_up(dims[-1], 128)
    dims[-2] = _round_up(dims[-2], sublane)
    n = 1
    for d in dims:
        n *= d
    return n * item


# ----------------------------- fused forward kernel -----------------------------

def _build_forward(B, H, W, in_ch, num_ch, out_ch, n_blocks):
    """Builds the fused pallas_call for the whole MapFeatureExtractor forward.

    Inputs (per wrapper): x_col (B, H*W, 9*in_ch) bf16; conv_first weight (9*in_ch, C) bf16;
    per block [w1|w2_h] (3, 3C, 2C) bf16, b1 (1,C) f32, w2_x (3, 3C, C) bf16, b2 (1,C) f32;
    trunk weight (3, 3C, Co) bf16, trunk bias (1, Co) f32.
    Output: (B, out_ch, H*W) f32 (NCHW with HW flattened -> lane-dense stores).
    """
    assert H >= 2 and W >= 2
    # NOTE: W a multiple of 8 (16 for bf16) keeps the (H,W,.)->(H*W,.) reshapes copy-free.
    C, Co = num_ch, out_ch
    K3 = 3 * C        # kw-merged contraction depth for residual/trunk convs
    K9 = 9 * in_ch    # fully merged contraction depth for conv_first

    def kernel(*refs):
        xcol_ref, wf_ref, bf_ref = refs[0], refs[1], refs[2]
        blk = [refs[3 + 4 * i: 3 + 4 * i + 4] for i in range(n_blocks)]
        i0 = 3 + 4 * n_blocks
        wt_ref, bt_ref, out_ref = refs[i0], refs[i0 + 1], refs[i0 + 2]
        acc_ref, ph_ref, fea_ref, h_ref = refs[i0 + 3:i0 + 7]

        # ---- halo zeroing, once per invocation: the interior is fully overwritten by
        #      every slab build and the halo regions below are never written. ----
        ph_ref[0] = jnp.zeros((W, K3), jnp.bfloat16)
        ph_ref[H + 1] = jnp.zeros((W, K3), jnp.bfloat16)
        ph_ref[1:H + 1, 0:1, C:2 * C] = jnp.zeros((H, 1, C), jnp.bfloat16)           # w-1 @ w=0
        ph_ref[1:H + 1, W - 1:W, 2 * C:3 * C] = jnp.zeros((H, 1, C), jnp.bfloat16)   # w+1 @ w=W-1

        def build_slab(src):
            """Zero-padded, kw-merged im2col slab of src (H, W, C), stored in bf16.

            slab[r, w, :] = [src[r-1, w] | src[r-1, w-1] | src[r-1, w+1]] (C lanes each);
            the unshifted tap sits at lane offset 0 (no lane rotate for its store)."""
            s = src.astype(jnp.bfloat16)                          # cast ONCE
            ph_ref[1:H + 1, :, 0:C] = s                           # center tap
            ph_ref[1:H + 1, 1:W, C:2 * C] = s[:, 0:W - 1, :]      # w-1 tap
            ph_ref[1:H + 1, 0:W - 1, 2 * C:3 * C] = s[:, 1:W, :]  # w+1 tap

        def conv_slab(w_ref):
            """3x3 conv of the current slab: 3 MXU matmuls (one per kh), K = 3*C."""
            acc = None
            for kh in range(3):
                lhs = ph_ref[kh:kh + H, :, :].reshape(H * W, K3)
                part = jnp.dot(lhs, w_ref[kh], preferred_element_type=jnp.float32)
                acc = part if acc is None else acc + part
            return acc                                            # (H*W, n_out) f32

        # conv_first: im2col pre-built lane-merged in the wrapper -> single matmul.
        fea = jnp.dot(xcol_ref[0], wf_ref[...],
                      preferred_element_type=jnp.float32) + bf_ref[...]
        fea_ref[...] = fea.reshape(H, W, C)
        h_ref[...] = _gelu_kernel(fea).reshape(H, W, C)

        # Residual blocks: conv1 and the h-half of conv2 share the slab of h, so their
        # weights are N-concatenated -> one matmul set with N = 2*C.
        for (w12_ref, b1_ref, w2x_ref, b2_ref) in blk:
            build_slab(h_ref[...])
            acc_ref[...] = conv_slab(w12_ref)      # [:, :C] = conv1(h), [:, C:] = conv2_h(h)
            x1 = _gelu_kernel(acc_ref[:, 0:C] + b1_ref[...])
            build_slab(x1.reshape(H, W, C))
            y2 = conv_slab(w2x_ref)                # conv2_x1(x1)
            h_new = (acc_ref[:, C:2 * C] + y2 + b2_ref[...]
                     + h_ref[...].reshape(H * W, C))
            h_ref[...] = h_new.reshape(H, W, C)

        # trunk conv (+ skip from fea when channel counts match)
        build_slab(h_ref[...])
        y = conv_slab(wt_ref) + bt_ref[...]
        if C == Co:
            y = y + fea_ref[...].reshape(H * W, C)
        # Lane-dense store: (Co, H*W) -> unmasked 128-lane stores; already NCHW layout.
        out_ref[0] = y.T.astype(out_ref.dtype)

    def _const_spec(shape):
        zeros = (0,) * len(shape)
        return pl.BlockSpec(shape, lambda b, _z=zeros: _z)

    in_specs = [pl.BlockSpec((1, H * W, K9), lambda b: (b, 0, 0)),
                _const_spec((K9, C)),            # conv_first weight
                _const_spec((1, C))]             # conv_first bias
    for _ in range(n_blocks):
        in_specs += [_const_spec((3, K3, 2 * C)),   # [w1 | w2_h] merged on N
                     _const_spec((1, C)),           # b1
                     _const_spec((3, K3, C)),       # w2_x
                     _const_spec((1, C))]           # b2
    in_specs += [_const_spec((3, K3, Co)),          # trunk weight
                 _const_spec((1, Co))]              # trunk bias

    out_spec = pl.BlockSpec((1, Co, H * W), lambda b: (b, 0, 0))

    scratch_blocks = [((H * W, 2 * C), jnp.float32),       # conv1|conv2_h accumulator (N=2C)
                      ((H + 2, W, K3), jnp.bfloat16),      # kw-merged zero-halo im2col slab
                      ((H, W, C), jnp.float32),            # fea (trunk skip)
                      ((H, W, C), jnp.float32)]            # h (running feature map)
    scratch = [pltpu.VMEM(s, d) for s, d in scratch_blocks]

    # Explicit scoped-VMEM budget: lane-padded scratch + 2x (double-buffered) I/O blocks.
    io_blocks = [((1, H * W, K9), jnp.bfloat16), ((K9, C), jnp.bfloat16), ((1, C), jnp.float32)]
    for _ in range(n_blocks):
        io_blocks += [((3, K3, 2 * C), jnp.bfloat16), ((1, C), jnp.float32),
                      ((3, K3, C), jnp.bfloat16), ((1, C), jnp.float32)]
    io_blocks += [((3, K3, Co), jnp.bfloat16), ((1, Co), jnp.float32),
                  ((1, Co, H * W), jnp.float32)]
    need = (sum(2 * _padded_vmem_bytes(s, d) for s, d in io_blocks)
            + sum(_padded_vmem_bytes(s, d) for s, d in scratch_blocks))
    if need > 48 * 1024 * 1024:
        # TODO(synk): spatial row tiling (1px halo per conv) needed for this size.
        raise ValueError(f"fused MapFeatureExtractor kernel needs ~{need>>20} MiB VMEM; "
                         "spatial tiling required for this H x W.")
    vmem_limit = min(64 * 1024 * 1024, max(32 * 1024 * 1024, int(need * 1.5)))

    return pl.pallas_call(
        kernel,
        grid=(B,),
        in_specs=in_specs,
        out_specs=out_spec,
        out_shape=jax.ShapeDtypeStruct((B, Co, H * W), jnp.float32),
        scratch_shapes=scratch,
        compiler_params=pltpu.CompilerParams(
            dimension_semantics=("parallel",),
            vmem_limit_bytes=vmem_limit),
    )


# ----------------------- parameter init (deterministic) -----------------------

def _conv_init(key, cin, cout):
    # PyTorch Conv2d default init: U(-1/sqrt(fan_in), 1/sqrt(fan_in)), fan_in = cin*3*3
    kw, kb = jax.random.split(key)
    bound = 1.0 / math.sqrt(cin * 9)
    w = jax.random.uniform(kw, (3, 3, cin, cout), jnp.float32, -bound, bound)  # HWIO
    b = jax.random.uniform(kb, (cout,), jnp.float32, -bound, bound)
    return w, b


def init_params(key, in_channels, out_channels, num_channels, num_res_blocks):
    keys = jax.random.split(key, 2 + 2 * num_res_blocks)
    params = {"conv_first": _conv_init(keys[0], in_channels, num_channels)}
    blocks = []
    for i in range(num_res_blocks):
        c1 = _conv_init(keys[1 + 2 * i], num_channels, num_channels)
        c2 = _conv_init(keys[2 + 2 * i], 2 * num_channels, num_channels)
        blocks.append((c1, c2))
    params["rcb"] = blocks
    params["trunk"] = _conv_init(keys[-1], num_channels, out_channels)
    return params


# ------------------------------ forward wrapper --------------------------------

def _prep_w_slab(w):
    """(3,3,cin,cout) HWIO -> (3, 3*cin, cout) bf16 with kw taps reordered to
    (center, w-1, w+1) so the unshifted tap sits at slab lane offset 0."""
    w = jnp.stack([w[:, 1], w[:, 0], w[:, 2]], axis=1)
    return w.reshape(3, 3 * w.shape[2], w.shape[3]).astype(jnp.bfloat16)


def _prep_b(b):
    return b.reshape(1, -1).astype(jnp.float32)


def map_feature_extractor(x_nchw, params, num_channels, out_channels):
    """Forward of MapFeatureExtractor (transpose_conv=False). NCHW in -> NCHW out."""
    B, in_ch, H, W = x_nchw.shape
    C = num_channels

    # Layout plumbing in the wrapper: NCHW -> NHWC, then the conv_first im2col as
    # (B, H*W, 9*in_ch) bf16 so the tiny in_ch never sits alone on the lane axis.
    x = jnp.transpose(x_nchw, (0, 2, 3, 1)).astype(jnp.float32)
    xp = jnp.pad(x, ((0, 0), (1, 1), (1, 1), (0, 0)))
    taps = [xp[:, kh:kh + H, kw:kw + W, :] for kh in range(3) for kw in range(3)]
    x_col = jnp.concatenate(taps, axis=-1).reshape(B, H * W, 9 * in_ch).astype(jnp.bfloat16)

    wf, bf = params["conv_first"]
    args = [x_col, wf.reshape(9 * in_ch, C).astype(jnp.bfloat16), _prep_b(bf)]
    for (w1, b1), (w2, b2) in params["rcb"]:
        w2_h, w2_x = w2[:, :, :C, :], w2[:, :, C:, :]
        w12 = jnp.concatenate([w1, w2_h], axis=-1)     # N-merged: conv1 | conv2 h-half
        args += [_prep_w_slab(w12), _prep_b(b1), _prep_w_slab(w2_x), _prep_b(b2)]
    wt, bt = params["trunk"]
    args += [_prep_w_slab(wt), _prep_b(bt)]

    fwd = _build_forward(B, H, W, in_ch, C, out_channels, len(params["rcb"]))
    out = fwd(*args)                                   # (B, out_ch, H*W)
    return out.reshape(B, out_channels, H, W)          # NCHW, matches the module


# --------------------------- plain-JAX reference -------------------------------

def _conv_ref(x, w, b):
    y = jax.lax.conv_general_dilated(
        x, w, window_strides=(1, 1), padding="SAME",
        dimension_numbers=("NHWC", "HWIO", "NHWC"))
    return y + b


def reference_forward(x_nchw, params, num_channels, out_channels):
    x = jnp.transpose(x_nchw, (0, 2, 3, 1))
    wf, bf = params["conv_first"]
    fea = _conv_ref(x, wf, bf)
    h = _gelu_exact(fea)
    for (w1, b1), (w2, b2) in params["rcb"]:
        x1 = _gelu_exact(_conv_ref(h, w1, b1))
        h = _conv_ref(jnp.concatenate([h, x1], axis=-1), w2, b2) + h
    wt, bt = params["trunk"]
    out = _conv_ref(h, wt, bt)
    if num_channels == out_channels:
        out = out + fea
    return jnp.transpose(out, (0, 3, 1, 2))


if __name__ == "__main__":
    B, Cin, H, W = 2, 4, 16, 16
    num_channels = 32
    out_channels = 32
    num_res_blocks = 2

    key = jax.random.PRNGKey(0)
    kx, kp = jax.random.split(key)
    x = jax.random.normal(kx, (B, Cin, H, W), jnp.float32)       # NCHW like PyTorch
    params = init_params(kp, Cin, out_channels, num_channels, num_res_blocks)

    out = map_feature_extractor(x, params, num_channels, out_channels)
    out = jax.block_until_ready(out)

    ref = reference_forward(x, params, num_channels, out_channels)
    assert out.shape == (B, out_channels, H, W)
    # bf16 MXU operands (f32 accumulation) -> tolerance appropriate for bf16 compute.
    assert jnp.allclose(out, ref, atol=2e-2, rtol=2e-2), "mismatch vs JAX reference"

    print("KERNEL_OK")
</pallas_src>

<mosaic_0001>
module attributes {stable_mosaic.version = 11 : i64} {
  func.func @kernel(%arg0: i32, %arg1: memref<1x256x36xbf16, #tpu.memory_space<vmem>>, %arg2: memref<36x32xbf16, #tpu.memory_space<vmem>>, %arg3: memref<1x32xf32, #tpu.memory_space<vmem>>, %arg4: memref<3x96x64xbf16, #tpu.memory_space<vmem>>, %arg5: memref<1x32xf32, #tpu.memory_space<vmem>>, %arg6: memref<3x96x32xbf16, #tpu.memory_space<vmem>>, %arg7: memref<1x32xf32, #tpu.memory_space<vmem>>, %arg8: memref<3x96x64xbf16, #tpu.memory_space<vmem>>, %arg9: memref<1x32xf32, #tpu.memory_space<vmem>>, %arg10: memref<3x96x32xbf16, #tpu.memory_space<vmem>>, %arg11: memref<1x32xf32, #tpu.memory_space<vmem>>, %arg12: memref<3x96x32xbf16, #tpu.memory_space<vmem>>, %arg13: memref<1x32xf32, #tpu.memory_space<vmem>>, %arg14: memref<1x32x256xf32, #tpu.memory_space<vmem>>, %arg15: memref<256x64xf32, #tpu.memory_space<vmem>>, %arg16: memref<18x16x96xbf16, #tpu.memory_space<vmem>>, %arg17: memref<16x16x32xf32, #tpu.memory_space<vmem>>, %arg18: memref<16x16x32xf32, #tpu.memory_space<vmem>>) attributes {dimension_semantics = [#tpu.dimension_semantics<parallel>], iteration_bounds = array<i64: 2>, scalar_prefetch = 0 : i64, scratch_operands = 4 : i64, tpu.core_type = #tpu.core_type<tc>, window_params = [{transform_indices = @transform_0, window_bounds = array<i64: 1, 256, 36>}, {pipeline_mode = #tpu.pipeline_mode<synchronous>, transform_indices = @transform_1, window_bounds = array<i64: 36, 32>}, {pipeline_mode = #tpu.pipeline_mode<synchronous>, transform_indices = @transform_2, window_bounds = array<i64: 1, 32>}, {pipeline_mode = #tpu.pipeline_mode<synchronous>, transform_indices = @transform_3, window_bounds = array<i64: 3, 96, 64>}, {pipeline_mode = #tpu.pipeline_mode<synchronous>, transform_indices = @transform_4, window_bounds = array<i64: 1, 32>}, {pipeline_mode = #tpu.pipeline_mode<synchronous>, transform_indices = @transform_5, window_bounds = array<i64: 3, 96, 32>}, {pipeline_mode = #tpu.pipeline_mode<synchronous>, transform_indices = @transform_6, window_bounds = array<i64: 1, 32>}, {pipeline_mode = #tpu.pipeline_mode<synchronous>, transform_indices = @transform_7, window_bounds = array<i64: 3, 96, 64>}, {pipeline_mode = #tpu.pipeline_mode<synchronous>, transform_indices = @transform_8, window_bounds = array<i64: 1, 32>}, {pipeline_mode = #tpu.pipeline_mode<synchronous>, transform_indices = @transform_9, window_bounds = array<i64: 3, 96, 32>}, {pipeline_mode = #tpu.pipeline_mode<synchronous>, transform_indices = @transform_10, window_bounds = array<i64: 1, 32>}, {pipeline_mode = #tpu.pipeline_mode<synchronous>, transform_indices = @transform_11, window_bounds = array<i64: 3, 96, 32>}, {pipeline_mode = #tpu.pipeline_mode<synchronous>, transform_indices = @transform_12, window_bounds = array<i64: 1, 32>}, {transform_indices = @transform_13, window_bounds = array<i64: 1, 32, 256>}]} {
    %cst = arith.constant 0.000000e+00 : bf16
    %0 = vector.broadcast %cst : bf16 to vector<16x96xbf16>
    %c0 = arith.constant 0 : index
    %c0_0 = arith.constant 0 : index
    %c0_1 = arith.constant 0 : index
    %1 = vector.load %arg16[%c0, %c0_0, %c0_1] : memref<18x16x96xbf16, #tpu.memory_space<vmem>>, vector<1x16x96xbf16>
    %2 = vector.shape_cast %1 : vector<1x16x96xbf16> to vector<16x96xbf16>
    %3 = vector.shape_cast %0 : vector<16x96xbf16> to vector<1x16x96xbf16>
    tpu.vector_store %arg16[%c0, %c0_0, %c0_1], %3 {strides = array<i32>} : memref<18x16x96xbf16, #tpu.memory_space<vmem>>, vector<1x16x96xbf16>,
    %cst_2 = arith.constant 0.000000e+00 : bf16
    %4 = vector.broadcast %cst_2 : bf16 to vector<16x96xbf16>
    %c17 = arith.constant 17 : index
    %c0_3 = arith.constant 0 : index
    %c0_4 = arith.constant 0 : index
    %5 = vector.load %arg16[%c17, %c0_3, %c0_4] : memref<18x16x96xbf16, #tpu.memory_space<vmem>>, vector<1x16x96xbf16>
    %6 = vector.shape_cast %5 : vector<1x16x96xbf16> to vector<16x96xbf16>
    %7 = vector.shape_cast %4 : vector<16x96xbf16> to vector<1x16x96xbf16>
    tpu.vector_store %arg16[%c17, %c0_3, %c0_4], %7 {strides = array<i32>} : memref<18x16x96xbf16, #tpu.memory_space<vmem>>, vector<1x16x96xbf16>,
    %cst_5 = arith.constant 0.000000e+00 : bf16
    %8 = vector.broadcast %cst_5 : bf16 to vector<16x1x32xbf16>
    %c1 = arith.constant 1 : index
    %c0_6 = arith.constant 0 : index
    %c32 = arith.constant 32 : index
    %9 = vector.load %arg16[%c1, %c0_6, %c32] : memref<18x16x96xbf16, #tpu.memory_space<vmem>>, vector<16x1x32xbf16>
    tpu.vector_store %arg16[%c1, %c0_6, %c32], %8 {strides = array<i32>} : memref<18x16x96xbf16, #tpu.memory_space<vmem>>, vector<16x1x32xbf16>,
    %cst_7 = arith.constant 0.000000e+00 : bf16
    %10 = vector.broadcast %cst_7 : bf16 to vector<16x1x32xbf16>
    %c1_8 = arith.constant 1 : index
    %c15 = arith.constant 15 : index
    %c64 = arith.constant 64 : index
    %11 = vector.load %arg16[%c1_8, %c15, %c64] : memref<18x16x96xbf16, #tpu.memory_space<vmem>>, vector<16x1x32xbf16>
    tpu.vector_store %arg16[%c1_8, %c15, %c64], %10 {strides = array<i32>} : memref<18x16x96xbf16, #tpu.memory_space<vmem>>, vector<16x1x32xbf16>,
    %c0_9 = arith.constant 0 : index
    %c0_10 = arith.constant 0 : index
    %c0_11 = arith.constant 0 : index
    %12 = vector.load %arg1[%c0_9, %c0_10, %c0_11] : memref<1x256x36xbf16, #tpu.memory_space<vmem>>, vector<1x256x36xbf16>
    %13 = vector.shape_cast %12 : vector<1x256x36xbf16> to vector<256x36xbf16>
    %c0_12 = arith.constant 0 : index
    %c0_13 = arith.constant 0 : index
    %14 = vector.load %arg2[%c0_12, %c0_13] : memref<36x32xbf16, #tpu.memory_space<vmem>>, vector<36x32xbf16>
    %cst_14 = arith.constant dense<0.000000e+00> : vector<256x32xf32>
    %15 = tpu.matmul %13, %14, %cst_14 {dimension_numbers = #tpu.dot_dimension_numbers<[1], [0], [0], [1], [0, 0, 1, 1], [], []>} : vector<256x36xbf16>, vector<36x32xbf16>, vector<256x32xf32> -> vector<256x32xf32>
    %c0_15 = arith.constant 0 : index
    %c0_16 = arith.constant 0 : index
    %16 = vector.load %arg3[%c0_15, %c0_16] : memref<1x32xf32, #tpu.memory_space<vmem>>, vector<1x32xf32>
    %17 = vector.broadcast %16 : vector<1x32xf32> to vector<256x32xf32>
    %18 = arith.addf %15, %17 : vector<256x32xf32>
    %19 = vector.shape_cast %18 : vector<256x32xf32> to vector<16x16x32xf32>
    %c0_17 = arith.constant 0 : index
    %c0_18 = arith.constant 0 : index
    %c0_19 = arith.constant 0 : index
    %20 = vector.load %arg17[%c0_17, %c0_18, %c0_19] : memref<16x16x32xf32, #tpu.memory_space<vmem>>, vector<16x16x32xf32>
    tpu.vector_store %arg17[%c0_17, %c0_18, %c0_19], %19 {strides = array<i32>} : memref<16x16x32xf32, #tpu.memory_space<vmem>>, vector<16x16x32xf32>,
    %cst_20 = arith.constant 5.000000e-01 : f32
    %21 = vector.broadcast %cst_20 : f32 to vector<256x32xf32>
    %22 = arith.mulf %21, %18 : vector<256x32xf32>
    %cst_21 = arith.constant 0.707106769 : f32
    %23 = vector.broadcast %cst_21 : f32 to vector<256x32xf32>
    %24 = arith.mulf %18, %23 : vector<256x32xf32>
    %25 = math.absf %24 : vector<256x32xf32>
    %cst_22 = arith.constant 0.327591091 : f32
    %26 = vector.broadcast %cst_22 : f32 to vector<256x32xf32>
    %27 = arith.mulf %26, %25 : vector<256x32xf32>
    %cst_23 = arith.constant 1.000000e+00 : f32
    %28 = vector.broadcast %cst_23 : f32 to vector<256x32xf32>
    %29 = arith.addf %28, %27 : vector<256x32xf32>
    %cst_24 = arith.constant 1.000000e+00 : f32
    %30 = vector.broadcast %cst_24 : f32 to vector<256x32xf32>
    %31 = arith.divf %30, %29 : vector<256x32xf32>
    %cst_25 = arith.constant 1.06140542 : f32
    %32 = vector.broadcast %cst_25 : f32 to vector<256x32xf32>
    %33 = arith.mulf %32, %31 : vector<256x32xf32>
    %cst_26 = arith.constant -1.45315206 : f32
    %34 = vector.broadcast %cst_26 : f32 to vector<256x32xf32>
    %35 = arith.addf %33, %34 : vector<256x32xf32>
    %36 = arith.mulf %35, %31 : vector<256x32xf32>
    %cst_27 = arith.constant 1.42141378 : f32
    %37 = vector.broadcast %cst_27 : f32 to vector<256x32xf32>
    %38 = arith.addf %36, %37 : vector<256x32xf32>
    %39 = arith.mulf %38, %31 : vector<256x32xf32>
    %cst_28 = arith.constant -0.284496725 : f32
    %40 = vector.broadcast %cst_28 : f32 to vector<256x32xf32>
    %41 = arith.addf %39, %40 : vector<256x32xf32>
    %42 = arith.mulf %41, %31 : vector<256x32xf32>
    %cst_29 = arith.constant 0.254829586 : f32
    %43 = vector.broadcast %cst_29 : f32 to vector<256x32xf32>
    %44 = arith.addf %42, %43 : vector<256x32xf32>
    %45 = arith.mulf %44, %31 : vector<256x32xf32>
    %cst_30 = arith.constant 0.000000e+00 : f32
    %46 = vector.broadcast %cst_30 : f32 to vector<256x32xf32>
    %47 = arith.subf %46, %25 : vector<256x32xf32>
    %48 = arith.mulf %47, %25 : vector<256x32xf32>
    %49 = math.exp %48 : vector<256x32xf32>
    %50 = arith.mulf %45, %49 : vector<256x32xf32>
    %cst_31 = arith.constant 1.000000e+00 : f32
    %51 = vector.broadcast %cst_31 : f32 to vector<256x32xf32>
    %52 = arith.subf %51, %50 : vector<256x32xf32>
    %cst_32 = arith.constant 0.000000e+00 : f32
    %53 = vector.broadcast %cst_32 : f32 to vector<256x32xf32>
    %54 = arith.cmpf olt, %24, %53 : vector<256x32xf32>
    %cst_33 = arith.constant 0.000000e+00 : f32
    %55 = vector.broadcast %cst_33 : f32 to vector<256x32xf32>
    %56 = arith.subf %55, %52 : vector<256x32xf32>
    %57 = arith.select %54, %56, %52 : vector<256x32xi1>, vector<256x32xf32>
    %cst_34 = arith.constant 1.000000e+00 : f32
    %58 = vector.broadcast %cst_34 : f32 to vector<256x32xf32>
    %59 = arith.addf %58, %57 : vector<256x32xf32>
    %60 = arith.mulf %22, %59 : vector<256x32xf32>
    %61 = vector.shape_cast %60 : vector<256x32xf32> to vector<16x16x32xf32>
    %c0_35 = arith.constant 0 : index
    %c0_36 = arith.constant 0 : index
    %c0_37 = arith.constant 0 : index
    %62 = vector.load %arg18[%c0_35, %c0_36, %c0_37] : memref<16x16x32xf32, #tpu.memory_space<vmem>>, vector<16x16x32xf32>
    tpu.vector_store %arg18[%c0_35, %c0_36, %c0_37], %61 {strides = array<i32>} : memref<16x16x32xf32, #tpu.memory_space<vmem>>, vector<16x16x32xf32>,
    %c0_38 = arith.constant 0 : index
    %c0_39 = arith.constant 0 : index
    %c0_40 = arith.constant 0 : index
    %63 = vector.load %arg18[%c0_38, %c0_39, %c0_40] : memref<16x16x32xf32, #tpu.memory_space<vmem>>, vector<16x16x32xf32>
    %64 = arith.truncf %63 : vector<16x16x32xf32> to vector<16x16x32xbf16>
    %c1_41 = arith.constant 1 : index
    %c0_42 = arith.constant 0 : index
    %c0_43 = arith.constant 0 : index
    %65 = vector.load %arg16[%c1_41, %c0_42, %c0_43] : memref<18x16x96xbf16, #tpu.memory_space<vmem>>, vector<16x16x32xbf16>
    tpu.vector_store %arg16[%c1_41, %c0_42, %c0_43], %64 {strides = array<i32>} : memref<18x16x96xbf16, #tpu.memory_space<vmem>>, vector<16x16x32xbf16>,
    %66 = vector.extract_strided_slice %64 {offsets = [0, 0, 0], sizes = [16, 15, 32], strides = [1, 1, 1]} : vector<16x16x32xbf16> to vector<16x15x32xbf16>
    %c1_44 = arith.constant 1 : index
    %c1_45 = arith.constant 1 : index
    %c32_46 = arith.constant 32 : index
    %67 = vector.load %arg16[%c1_44, %c1_45, %c32_46] : memref<18x16x96xbf16, #tpu.memory_space<vmem>>, vector<16x15x32xbf16>
    tpu.vector_store %arg16[%c1_44, %c1_45, %c32_46], %66 {strides = array<i32>} : memref<18x16x96xbf16, #tpu.memory_space<vmem>>, vector<16x15x32xbf16>,
    %68 = vector.extract_strided_slice %64 {offsets = [0, 1, 0], sizes = [16, 15, 32], strides = [1, 1, 1]} : vector<16x16x32xbf16> to vector<16x15x32xbf16>
    %c1_47 = arith.constant 1 : index
    %c0_48 = arith.constant 0 : index
    %c64_49 = arith.constant 64 : index
    %69 = vector.load %arg16[%c1_47, %c0_48, %c64_49] : memref<18x16x96xbf16, #tpu.memory_space<vmem>>, vector<16x15x32xbf16>
    tpu.vector_store %arg16[%c1_47, %c0_48, %c64_49], %68 {strides = array<i32>} : memref<18x16x96xbf16, #tpu.memory_space<vmem>>, vector<16x15x32xbf16>,
    %c0_50 = arith.constant 0 : index
    %c0_51 = arith.constant 0 : index
    %c0_52 = arith.constant 0 : index
    %70 = vector.load %arg16[%c0_50, %c0_51, %c0_52] : memref<18x16x96xbf16, #tpu.memory_space<vmem>>, vector<16x16x96xbf16>
    %71 = vector.shape_cast %70 : vector<16x16x96xbf16> to vector<256x96xbf16>
    %c0_53 = arith.constant 0 : index
    %c0_54 = arith.constant 0 : index
    %c0_55 = arith.constant 0 : index
    %72 = vector.load %arg4[%c0_53, %c0_54, %c0_55] : memref<3x96x64xbf16, #tpu.memory_space<vmem>>, vector<1x96x64xbf16>
    %73 = vector.shape_cast %72 : vector<1x96x64xbf16> to vector<96x64xbf16>
    %cst_56 = arith.constant dense<0.000000e+00> : vector<256x64xf32>
    %74 = tpu.matmul %71, %73, %cst_56 {dimension_numbers = #tpu.dot_dimension_numbers<[1], [0], [0], [1], [0, 0, 1, 1], [], []>} : vector<256x96xbf16>, vector<96x64xbf16>, vector<256x64xf32> -> vector<256x64xf32>
    %c1_57 = arith.constant 1 : index
    %c0_58 = arith.constant 0 : index
    %c0_59 = arith.constant 0 : index
    %75 = vector.load %arg16[%c1_57, %c0_58, %c0_59] : memref<18x16x96xbf16, #tpu.memory_space<vmem>>, vector<16x16x96xbf16>
    %76 = vector.shape_cast %75 : vector<16x16x96xbf16> to vector<256x96xbf16>
    %c1_60 = arith.constant 1 : index
    %c0_61 = arith.constant 0 : index
    %c0_62 = arith.constant 0 : index
    %77 = vector.load %arg4[%c1_60, %c0_61, %c0_62] : memref<3x96x64xbf16, #tpu.memory_space<vmem>>, vector<1x96x64xbf16>
    %78 = vector.shape_cast %77 : vector<1x96x64xbf16> to vector<96x64xbf16>
    %cst_63 = arith.constant dense<0.000000e+00> : vector<256x64xf32>
    %79 = tpu.matmul %76, %78, %cst_63 {dimension_numbers = #tpu.dot_dimension_numbers<[1], [0], [0], [1], [0, 0, 1, 1], [], []>} : vector<256x96xbf16>, vector<96x64xbf16>, vector<256x64xf32> -> vector<256x64xf32>
    %80 = arith.addf %74, %79 : vector<256x64xf32>
    %c2 = arith.constant 2 : index
    %c0_64 = arith.constant 0 : index
    %c0_65 = arith.constant 0 : index
    %81 = vector.load %arg16[%c2, %c0_64, %c0_65] : memref<18x16x96xbf16, #tpu.memory_space<vmem>>, vector<16x16x96xbf16>
    %82 = vector.shape_cast %81 : vector<16x16x96xbf16> to vector<256x96xbf16>
    %c2_66 = arith.constant 2 : index
    %c0_67 = arith.constant 0 : index
    %c0_68 = arith.constant 0 : index
    %83 = vector.load %arg4[%c2_66, %c0_67, %c0_68] : memref<3x96x64xbf16, #tpu.memory_space<vmem>>, vector<1x96x64xbf16>
    %84 = vector.shape_cast %83 : vector<1x96x64xbf16> to vector<96x64xbf16>
    %cst_69 = arith.constant dense<0.000000e+00> : vector<256x64xf32>
    %85 = tpu.matmul %82, %84, %cst_69 {dimension_numbers = #tpu.dot_dimension_numbers<[1], [0], [0], [1], [0, 0, 1, 1], [], []>} : vector<256x96xbf16>, vector<96x64xbf16>, vector<256x64xf32> -> vector<256x64xf32>
    %86 = arith.addf %80, %85 : vector<256x64xf32>
    %c0_70 = arith.constant 0 : index
    %c0_71 = arith.constant 0 : index
    %87 = vector.load %arg15[%c0_70, %c0_71] : memref<256x64xf32, #tpu.memory_space<vmem>>, vector<256x64xf32>
    tpu.vector_store %arg15[%c0_70, %c0_71], %86 {strides = array<i32>} : memref<256x64xf32, #tpu.memory_space<vmem>>, vector<256x64xf32>,
    %c0_72 = arith.constant 0 : index
    %c0_73 = arith.constant 0 : index
    %88 = vector.load %arg15[%c0_72, %c0_73] : memref<256x64xf32, #tpu.memory_space<vmem>>, vector<256x32xf32>
    %c0_74 = arith.constant 0 : index
    %c0_75 = arith.constant 0 : index
    %89 = vector.load %arg5[%c0_74, %c0_75] : memref<1x32xf32, #tpu.memory_space<vmem>>, vector<1x32xf32>
    %90 = vector.broadcast %89 : vector<1x32xf32> to vector<256x32xf32>
    %91 = arith.addf %88, %90 : vector<256x32xf32>
    %cst_76 = arith.constant 5.000000e-01 : f32
    %92 = vector.broadcast %cst_76 : f32 to vector<256x32xf32>
    %93 = arith.mulf %92, %91 : vector<256x32xf32>
    %cst_77 = arith.constant 0.707106769 : f32
    %94 = vector.broadcast %cst_77 : f32 to vector<256x32xf32>
    %95 = arith.mulf %91, %94 : vector<256x32xf32>
    %96 = math.absf %95 : vector<256x32xf32>
    %cst_78 = arith.constant 0.327591091 : f32
    %97 = vector.broadcast %cst_78 : f32 to vector<256x32xf32>
    %98 = arith.mulf %97, %96 : vector<256x32xf32>
    %cst_79 = arith.constant 1.000000e+00 : f32
    %99 = vector.broadcast %cst_79 : f32 to vector<256x32xf32>
    %100 = arith.addf %99, %98 : vector<256x32xf32>
    %cst_80 = arith.constant 1.000000e+00 : f32
    %101 = vector.broadcast %cst_80 : f32 to vector<256x32xf32>
    %102 = arith.divf %101, %100 : vector<256x32xf32>
    %cst_81 = arith.constant 1.06140542 : f32
    %103 = vector.broadcast %cst_81 : f32 to vector<256x32xf32>
    %104 = arith.mulf %103, %102 : vector<256x32xf32>
    %cst_82 = arith.constant -1.45315206 : f32
    %105 = vector.broadcast %cst_82 : f32 to vector<256x32xf32>
    %106 = arith.addf %104, %105 : vector<256x32xf32>
    %107 = arith.mulf %106, %102 : vector<256x32xf32>
    %cst_83 = arith.constant 1.42141378 : f32
    %108 = vector.broadcast %cst_83 : f32 to vector<256x32xf32>
    %109 = arith.addf %107, %108 : vector<256x32xf32>
    %110 = arith.mulf %109, %102 : vector<256x32xf32>
    %cst_84 = arith.constant -0.284496725 : f32
    %111 = vector.broadcast %cst_84 : f32 to vector<256x32xf32>
    %112 = arith.addf %110, %111 : vector<256x32xf32>
    %113 = arith.mulf %112, %102 : vector<256x32xf32>
    %cst_85 = arith.constant 0.254829586 : f32
    %114 = vector.broadcast %cst_85 : f32 to vector<256x32xf32>
    %115 = arith.addf %113, %114 : vector<256x32xf32>
    %116 = arith.mulf %115, %102 : vector<256x32xf32>
    %cst_86 = arith.constant 0.000000e+00 : f32
    %117 = vector.broadcast %cst_86 : f32 to vector<256x32xf32>
    %118 = arith.subf %117, %96 : vector<256x32xf32>
    %119 = arith.mulf %118, %96 : vector<256x32xf32>
    %120 = math.exp %119 : vector<256x32xf32>
    %121 = arith.mulf %116, %120 : vector<256x32xf32>
    %cst_87 = arith.constant 1.000000e+00 : f32
    %122 = vector.broadcast %cst_87 : f32 to vector<256x32xf32>
    %123 = arith.subf %122, %121 : vector<256x32xf32>
    %cst_88 = arith.constant 0.000000e+00 : f32
    %124 = vector.broadcast %cst_88 : f32 to vector<256x32xf32>
    %125 = arith.cmpf olt, %95, %124 : vector<256x32xf32>
    %cst_89 = arith.constant 0.000000e+00 : f32
    %126 = vector.broadcast %cst_89 : f32 to vector<256x32xf32>
    %127 = arith.subf %126, %123 : vector<256x32xf32>
    %128 = arith.select %125, %127, %123 : vector<256x32xi1>, vector<256x32xf32>
    %cst_90 = arith.constant 1.000000e+00 : f32
    %129 = vector.broadcast %cst_90 : f32 to vector<256x32xf32>
    %130 = arith.addf %129, %128 : vector<256x32xf32>
    %131 = arith.mulf %93, %130 : vector<256x32xf32>
    %132 = vector.shape_cast %131 : vector<256x32xf32> to vector<16x16x32xf32>
    %133 = arith.truncf %132 : vector<16x16x32xf32> to vector<16x16x32xbf16>
    %c1_91 = arith.constant 1 : index
    %c0_92 = arith.constant 0 : index
    %c0_93 = arith.constant 0 : index
    %134 = vector.load %arg16[%c1_91, %c0_92, %c0_93] : memref<18x16x96xbf16, #tpu.memory_space<vmem>>, vector<16x16x32xbf16>
    tpu.vector_store %arg16[%c1_91, %c0_92, %c0_93], %133 {strides = array<i32>} : memref<18x16x96xbf16, #tpu.memory_space<vmem>>, vector<16x16x32xbf16>,
    %135 = vector.extract_strided_slice %133 {offsets = [0, 0, 0], sizes = [16, 15, 32], strides = [1, 1, 1]} : vector<16x16x32xbf16> to vector<16x15x32xbf16>
    %c1_94 = arith.constant 1 : index
    %c1_95 = arith.constant 1 : index
    %c32_96 = arith.constant 32 : index
    %136 = vector.load %arg16[%c1_94, %c1_95, %c32_96] : memref<18x16x96xbf16, #tpu.memory_space<vmem>>, vector<16x15x32xbf16>
    tpu.vector_store %arg16[%c1_94, %c1_95, %c32_96], %135 {strides = array<i32>} : memref<18x16x96xbf16, #tpu.memory_space<vmem>>, vector<16x15x32xbf16>,
    %137 = vector.extract_strided_slice %133 {offsets = [0, 1, 0], sizes = [16, 15, 32], strides = [1, 1, 1]} : vector<16x16x32xbf16> to vector<16x15x32xbf16>
    %c1_97 = arith.constant 1 : index
    %c0_98 = arith.constant 0 : index
    %c64_99 = arith.constant 64 : index
    %138 = vector.load %arg16[%c1_97, %c0_98, %c64_99] : memref<18x16x96xbf16, #tpu.memory_space<vmem>>, vector<16x15x32xbf16>
    tpu.vector_store %arg16[%c1_97, %c0_98, %c64_99], %137 {strides = array<i32>} : memref<18x16x96xbf16, #tpu.memory_space<vmem>>, vector<16x15x32xbf16>,
    %c0_100 = arith.constant 0 : index
    %c0_101 = arith.constant 0 : index
    %c0_102 = arith.constant 0 : index
    %139 = vector.load %arg16[%c0_100, %c0_101, %c0_102] : memref<18x16x96xbf16, #tpu.memory_space<vmem>>, vector<16x16x96xbf16>
    %140 = vector.shape_cast %139 : vector<16x16x96xbf16> to vector<256x96xbf16>
    %c0_103 = arith.constant 0 : index
    %c0_104 = arith.constant 0 : index
    %c0_105 = arith.constant 0 : index
    %141 = vector.load %arg6[%c0_103, %c0_104, %c0_105] : memref<3x96x32xbf16, #tpu.memory_space<vmem>>, vector<1x96x32xbf16>
    %142 = vector.shape_cast %141 : vector<1x96x32xbf16> to vector<96x32xbf16>
    %cst_106 = arith.constant dense<0.000000e+00> : vector<256x32xf32>
    %143 = tpu.matmul %140, %142, %cst_106 {dimension_numbers = #tpu.dot_dimension_numbers<[1], [0], [0], [1], [0, 0, 1, 1], [], []>} : vector<256x96xbf16>, vector<96x32xbf16>, vector<256x32xf32> -> vector<256x32xf32>
    %c1_107 = arith.constant 1 : index
    %c0_108 = arith.constant 0 : index
    %c0_109 = arith.constant 0 : index
    %144 = vector.load %arg16[%c1_107, %c0_108, %c0_109] : memref<18x16x96xbf16, #tpu.memory_space<vmem>>, vector<16x16x96xbf16>
    %145 = vector.shape_cast %144 : vector<16x16x96xbf16> to vector<256x96xbf16>
    %c1_110 = arith.constant 1 : index
    %c0_111 = arith.constant 0 : index
    %c0_112 = arith.constant 0 : index
    %146 = vector.load %arg6[%c1_110, %c0_111, %c0_112] : memref<3x96x32xbf16, #tpu.memory_space<vmem>>, vector<1x96x32xbf16>
    %147 = vector.shape_cast %146 : vector<1x96x32xbf16> to vector<96x32xbf16>
    %cst_113 = arith.constant dense<0.000000e+00> : vector<256x32xf32>
    %148 = tpu.matmul %145, %147, %cst_113 {dimension_numbers = #tpu.dot_dimension_numbers<[1], [0], [0], [1], [0, 0, 1, 1], [], []>} : vector<256x96xbf16>, vector<96x32xbf16>, vector<256x32xf32> -> vector<256x32xf32>
    %149 = arith.addf %143, %148 : vector<256x32xf32>
    %c2_114 = arith.constant 2 : index
    %c0_115 = arith.constant 0 : index
    %c0_116 = arith.constant 0 : index
    %150 = vector.load %arg16[%c2_114, %c0_115, %c0_116] : memref<18x16x96xbf16, #tpu.memory_space<vmem>>, vector<16x16x96xbf16>
    %151 = vector.shape_cast %150 : vector<16x16x96xbf16> to vector<256x96xbf16>
    %c2_117 = arith.constant 2 : index
    %c0_118 = arith.constant 0 : index
    %c0_119 = arith.constant 0 : index
    %152 = vector.load %arg6[%c2_117, %c0_118, %c0_119] : memref<3x96x32xbf16, #tpu.memory_space<vmem>>, vector<1x96x32xbf16>
    %153 = vector.shape_cast %152 : vector<1x96x32xbf16> to vector<96x32xbf16>
    %cst_120 = arith.constant dense<0.000000e+00> : vector<256x32xf32>
    %154 = tpu.matmul %151, %153, %cst_120 {dimension_numbers = #tpu.dot_dimension_numbers<[1], [0], [0], [1], [0, 0, 1, 1], [], []>} : vector<256x96xbf16>, vector<96x32xbf16>, vector<256x32xf32> -> vector<256x32xf32>
    %155 = arith.addf %149, %154 : vector<256x32xf32>
    %c0_121 = arith.constant 0 : index
    %c32_122 = arith.constant 32 : index
    %156 = vector.load %arg15[%c0_121, %c32_122] : memref<256x64xf32, #tpu.memory_space<vmem>>, vector<256x32xf32>
    %157 = arith.addf %156, %155 : vector<256x32xf32>
    %c0_123 = arith.constant 0 : index
    %c0_124 = arith.constant 0 : index
    %158 = vector.load %arg7[%c0_123, %c0_124] : memref<1x32xf32, #tpu.memory_space<vmem>>, vector<1x32xf32>
    %159 = vector.broadcast %158 : vector<1x32xf32> to vector<256x32xf32>
    %160 = arith.addf %157, %159 : vector<256x32xf32>
    %c0_125 = arith.constant 0 : index
    %c0_126 = arith.constant 0 : index
    %c0_127 = arith.constant 0 : index
    %161 = vector.load %arg18[%c0_125, %c0_126, %c0_127] : memref<16x16x32xf32, #tpu.memory_space<vmem>>, vector<16x16x32xf32>
    %162 = vector.shape_cast %161 : vector<16x16x32xf32> to vector<256x32xf32>
    %163 = arith.addf %160, %162 : vector<256x32xf32>
    %164 = vector.shape_cast %163 : vector<256x32xf32> to vector<16x16x32xf32>
    %c0_128 = arith.constant 0 : index
    %c0_129 = arith.constant 0 : index
    %c0_130 = arith.constant 0 : index
    %165 = vector.load %arg18[%c0_128, %c0_129, %c0_130] : memref<16x16x32xf32, #tpu.memory_space<vmem>>, vector<16x16x32xf32>
    tpu.vector_store %arg18[%c0_128, %c0_129, %c0_130], %164 {strides = array<i32>} : memref<16x16x32xf32, #tpu.memory_space<vmem>>, vector<16x16x32xf32>,
    %c0_131 = arith.constant 0 : index
    %c0_132 = arith.constant 0 : index
    %c0_133 = arith.constant 0 : index
    %166 = vector.load %arg18[%c0_131, %c0_132, %c0_133] : memref<16x16x32xf32, #tpu.memory_space<vmem>>, vector<16x16x32xf32>
    %167 = arith.truncf %166 : vector<16x16x32xf32> to vector<16x16x32xbf16>
    %c1_134 = arith.constant 1 : index
    %c0_135 = arith.constant 0 : index
    %c0_136 = arith.constant 0 : index
    %168 = vector.load %arg16[%c1_134, %c0_135, %c0_136] : memref<18x16x96xbf16, #tpu.memory_space<vmem>>, vector<16x16x32xbf16>
    tpu.vector_store %arg16[%c1_134, %c0_135, %c0_136], %167 {strides = array<i32>} : memref<18x16x96xbf16, #tpu.memory_space<vmem>>, vector<16x16x32xbf16>,
    %169 = vector.extract_strided_slice %167 {offsets = [0, 0, 0], sizes = [16, 15, 32], strides = [1, 1, 1]} : vector<16x16x32xbf16> to vector<16x15x32xbf16>
    %c1_137 = arith.constant 1 : index
    %c1_138 = arith.constant 1 : index
    %c32_139 = arith.constant 32 : index
    %170 = vector.load %arg16[%c1_137, %c1_138, %c32_139] : memref<18x16x96xbf16, #tpu.memory_space<vmem>>, vector<16x15x32xbf16>
    tpu.vector_store %arg16[%c1_137, %c1_138, %c32_139], %169 {strides = array<i32>} : memref<18x16x96xbf16, #tpu.memory_space<vmem>>, vector<16x15x32xbf16>,
    %171 = vector.extract_strided_slice %167 {offsets = [0, 1, 0], sizes = [16, 15, 32], strides = [1, 1, 1]} : vector<16x16x32xbf16> to vector<16x15x32xbf16>
    %c1_140 = arith.constant 1 : index
    %c0_141 = arith.constant 0 : index
    %c64_142 = arith.constant 64 : index
    %172 = vector.load %arg16[%c1_140, %c0_141, %c64_142] : memref<18x16x96xbf16, #tpu.memory_space<vmem>>, vector<16x15x32xbf16>
    tpu.vector_store %arg16[%c1_140, %c0_141, %c64_142], %171 {strides = array<i32>} : memref<18x16x96xbf16, #tpu.memory_space<vmem>>, vector<16x15x32xbf16>,
    %c0_143 = arith.constant 0 : index
    %c0_144 = arith.constant 0 : index
    %c0_145 = arith.constant 0 : index
    %173 = vector.load %arg16[%c0_143, %c0_144, %c0_145] : memref<18x16x96xbf16, #tpu.memory_space<vmem>>, vector<16x16x96xbf16>
    %174 = vector.shape_cast %173 : vector<16x16x96xbf16> to vector<256x96xbf16>
    %c0_146 = arith.constant 0 : index
    %c0_147 = arith.constant 0 : index
    %c0_148 = arith.constant 0 : index
    %175 = vector.load %arg8[%c0_146, %c0_147, %c0_148] : memref<3x96x64xbf16, #tpu.memory_space<vmem>>, vector<1x96x64xbf16>
    %176 = vector.shape_cast %175 : vector<1x96x64xbf16> to vector<96x64xbf16>
    %cst_149 = arith.constant dense<0.000000e+00> : vector<256x64xf32>
    %177 = tpu.matmul %174, %176, %cst_149 {dimension_numbers = #tpu.dot_dimension_numbers<[1], [0], [0], [1], [0, 0, 1, 1], [], []>} : vector<256x96xbf16>, vector<96x64xbf16>, vector<256x64xf32> -> vector<256x64xf32>
    %c1_150 = arith.constant 1 : index
    %c0_151 = arith.constant 0 : index
    %c0_152 = arith.constant 0 : index
    %178 = vector.load %arg16[%c1_150, %c0_151, %c0_152] : memref<18x16x96xbf16, #tpu.memory_space<vmem>>, vector<16x16x96xbf16>
    %179 = vector.shape_cast %178 : vector<16x16x96xbf16> to vector<256x96xbf16>
    %c1_153 = arith.constant 1 : index
    %c0_154 = arith.constant 0 : index
    %c0_155 = arith.constant 0 : index
    %180 = vector.load %arg8[%c1_153, %c0_154, %c0_155] : memref<3x96x64xbf16, #tpu.memory_space<vmem>>, vector<1x96x64xbf16>
    %181 = vector.shape_cast %180 : vector<1x96x64xbf16> to vector<96x64xbf16>
    %cst_156 = arith.constant dense<0.000000e+00> : vector<256x64xf32>
    %182 = tpu.matmul %179, %181, %cst_156 {dimension_numbers = #tpu.dot_dimension_numbers<[1], [0], [0], [1], [0, 0, 1, 1], [], []>} : vector<256x96xbf16>, vector<96x64xbf16>, vector<256x64xf32> -> vector<256x64xf32>
    %183 = arith.addf %177, %182 : vector<256x64xf32>
    %c2_157 = arith.constant 2 : index
    %c0_158 = arith.constant 0 : index
    %c0_159 = arith.constant 0 : index
    %184 = vector.load %arg16[%c2_157, %c0_158, %c0_159] : memref<18x16x96xbf16, #tpu.memory_space<vmem>>, vector<16x16x96xbf16>
    %185 = vector.shape_cast %184 : vector<16x16x96xbf16> to vector<256x96xbf16>
    %c2_160 = arith.constant 2 : index
    %c0_161 = arith.constant 0 : index
    %c0_162 = arith.constant 0 : index
    %186 = vector.load %arg8[%c2_160, %c0_161, %c0_162] : memref<3x96x64xbf16, #tpu.memory_space<vmem>>, vector<1x96x64xbf16>
    %187 = vector.shape_cast %186 : vector<1x96x64xbf16> to vector<96x64xbf16>
    %cst_163 = arith.constant dense<0.000000e+00> : vector<256x64xf32>
    %188 = tpu.matmul %185, %187, %cst_163 {dimension_numbers = #tpu.dot_dimension_numbers<[1], [0], [0], [1], [0, 0, 1, 1], [], []>} : vector<256x96xbf16>, vector<96x64xbf16>, vector<256x64xf32> -> vector<256x64xf32>
    %189 = arith.addf %183, %188 : vector<256x64xf32>
    %c0_164 = arith.constant 0 : index
    %c0_165 = arith.constant 0 : index
    %190 = vector.load %arg15[%c0_164, %c0_165] : memref<256x64xf32, #tpu.memory_space<vmem>>, vector<256x64xf32>
    tpu.vector_store %arg15[%c0_164, %c0_165], %189 {strides = array<i32>} : memref<256x64xf32, #tpu.memory_space<vmem>>, vector<256x64xf32>,
    %c0_166 = arith.constant 0 : index
    %c0_167 = arith.constant 0 : index
    %191 = vector.load %arg15[%c0_166, %c0_167] : memref<256x64xf32, #tpu.memory_space<vmem>>, vector<256x32xf32>
    %c0_168 = arith.constant 0 : index
    %c0_169 = arith.constant 0 : index
    %192 = vector.load %arg9[%c0_168, %c0_169] : memref<1x32xf32, #tpu.memory_space<vmem>>, vector<1x32xf32>
    %193 = vector.broadcast %192 : vector<1x32xf32> to vector<256x32xf32>
    %194 = arith.addf %191, %193 : vector<256x32xf32>
    %cst_170 = arith.constant 5.000000e-01 : f32
    %195 = vector.broadcast %cst_170 : f32 to vector<256x32xf32>
    %196 = arith.mulf %195, %194 : vector<256x32xf32>
    %cst_171 = arith.constant 0.707106769 : f32
    %197 = vector.broadcast %cst_171 : f32 to vector<256x32xf32>
    %198 = arith.mulf %194, %197 : vector<256x32xf32>
    %199 = math.absf %198 : vector<256x32xf32>
    %cst_172 = arith.constant 0.327591091 : f32
    %200 = vector.broadcast %cst_172 : f32 to vector<256x32xf32>
    %201 = arith.mulf %200, %199 : vector<256x32xf32>
    %cst_173 = arith.constant 1.000000e+00 : f32
    %202 = vector.broadcast %cst_173 : f32 to vector<256x32xf32>
    %203 = arith.addf %202, %201 : vector<256x32xf32>
    %cst_174 = arith.constant 1.000000e+00 : f32
    %204 = vector.broadcast %cst_174 : f32 to vector<256x32xf32>
    %205 = arith.divf %204, %203 : vector<256x32xf32>
    %cst_175 = arith.constant 1.06140542 : f32
    %206 = vector.broadcast %cst_175 : f32 to vector<256x32xf32>
    %207 = arith.mulf %206, %205 : vector<256x32xf32>
    %cst_176 = arith.constant -1.45315206 : f32
    %208 = vector.broadcast %cst_176 : f32 to vector<256x32xf32>
    %209 = arith.addf %207, %208 : vector<256x32xf32>
    %210 = arith.mulf %209, %205 : vector<256x32xf32>
    %cst_177 = arith.constant 1.42141378 : f32
    %211 = vector.broadcast %cst_177 : f32 to vector<256x32xf32>
    %212 = arith.addf %210, %211 : vector<256x32xf32>
    %213 = arith.mulf %212, %205 : vector<256x32xf32>
    %cst_178 = arith.constant -0.284496725 : f32
    %214 = vector.broadcast %cst_178 : f32 to vector<256x32xf32>
    %215 = arith.addf %213, %214 : vector<256x32xf32>
    %216 = arith.mulf %215, %205 : vector<256x32xf32>
    %cst_179 = arith.constant 0.254829586 : f32
    %217 = vector.broadcast %cst_179 : f32 to vector<256x32xf32>
    %218 = arith.addf %216, %217 : vector<256x32xf32>
    %219 = arith.mulf %218, %205 : vector<256x32xf32>
    %cst_180 = arith.constant 0.000000e+00 : f32
    %220 = vector.broadcast %cst_180 : f32 to vector<256x32xf32>
    %221 = arith.subf %220, %199 : vector<256x32xf32>
    %222 = arith.mulf %221, %199 : vector<256x32xf32>
    %223 = math.exp %222 : vector<256x32xf32>
    %224 = arith.mulf %219, %223 : vector<256x32xf32>
    %cst_181 = arith.constant 1.000000e+00 : f32
    %225 = vector.broadcast %cst_181 : f32 to vector<256x32xf32>
    %226 = arith.subf %225, %224 : vector<256x32xf32>
    %cst_182 = arith.constant 0.000000e+00 : f32
    %227 = vector.broadcast %cst_182 : f32 to vector<256x32xf32>
    %228 = arith.cmpf olt, %198, %227 : vector<256x32xf32>
    %cst_183 = arith.constant 0.000000e+00 : f32
    %229 = vector.broadcast %cst_183 : f32 to vector<256x32xf32>
    %230 = arith.subf %229, %226 : vector<256x32xf32>
    %231 = arith.select %228, %230, %226 : vector<256x32xi1>, vector<256x32xf32>
    %cst_184 = arith.constant 1.000000e+00 : f32
    %232 = vector.broadcast %cst_184 : f32 to vector<256x32xf32>
    %233 = arith.addf %232, %231 : vector<256x32xf32>
    %234 = arith.mulf %196, %233 : vector<256x32xf32>
    %235 = vector.shape_cast %234 : vector<256x32xf32> to vector<16x16x32xf32>
    %236 = arith.truncf %235 : vector<16x16x32xf32> to vector<16x16x32xbf16>
    %c1_185 = arith.constant 1 : index
    %c0_186 = arith.constant 0 : index
    %c0_187 = arith.constant 0 : index
    %237 = vector.load %arg16[%c1_185, %c0_186, %c0_187] : memref<18x16x96xbf16, #tpu.memory_space<vmem>>, vector<16x16x32xbf16>
    tpu.vector_store %arg16[%c1_185, %c0_186, %c0_187], %236 {strides = array<i32>} : memref<18x16x96xbf16, #tpu.memory_space<vmem>>, vector<16x16x32xbf16>,
    %238 = vector.extract_strided_slice %236 {offsets = [0, 0, 0], sizes = [16, 15, 32], strides = [1, 1, 1]} : vector<16x16x32xbf16> to vector<16x15x32xbf16>
    %c1_188 = arith.constant 1 : index
    %c1_189 = arith.constant 1 : index
    %c32_190 = arith.constant 32 : index
    %239 = vector.load %arg16[%c1_188, %c1_189, %c32_190] : memref<18x16x96xbf16, #tpu.memory_space<vmem>>, vector<16x15x32xbf16>
    tpu.vector_store %arg16[%c1_188, %c1_189, %c32_190], %238 {strides = array<i32>} : memref<18x16x96xbf16, #tpu.memory_space<vmem>>, vector<16x15x32xbf16>,
    %240 = vector.extract_strided_slice %236 {offsets = [0, 1, 0], sizes = [16, 15, 32], strides = [1, 1, 1]} : vector<16x16x32xbf16> to vector<16x15x32xbf16>
    %c1_191 = arith.constant 1 : index
    %c0_192 = arith.constant 0 : index
    %c64_193 = arith.constant 64 : index
    %241 = vector.load %arg16[%c1_191, %c0_192, %c64_193] : memref<18x16x96xbf16, #tpu.memory_space<vmem>>, vector<16x15x32xbf16>
    tpu.vector_store %arg16[%c1_191, %c0_192, %c64_193], %240 {strides = array<i32>} : memref<18x16x96xbf16, #tpu.memory_space<vmem>>, vector<16x15x32xbf16>,
    %c0_194 = arith.constant 0 : index
    %c0_195 = arith.constant 0 : index
    %c0_196 = arith.constant 0 : index
    %242 = vector.load %arg16[%c0_194, %c0_195, %c0_196] : memref<18x16x96xbf16, #tpu.memory_space<vmem>>, vector<16x16x96xbf16>
    %243 = vector.shape_cast %242 : vector<16x16x96xbf16> to vector<256x96xbf16>
    %c0_197 = arith.constant 0 : index
    %c0_198 = arith.constant 0 : index
    %c0_199 = arith.constant 0 : index
    %244 = vector.load %arg10[%c0_197, %c0_198, %c0_199] : memref<3x96x32xbf16, #tpu.memory_space<vmem>>, vector<1x96x32xbf16>
    %245 = vector.shape_cast %244 : vector<1x96x32xbf16> to vector<96x32xbf16>
    %cst_200 = arith.constant dense<0.000000e+00> : vector<256x32xf32>
    %246 = tpu.matmul %243, %245, %cst_200 {dimension_numbers = #tpu.dot_dimension_numbers<[1], [0], [0], [1], [0, 0, 1, 1], [], []>} : vector<256x96xbf16>, vector<96x32xbf16>, vector<256x32xf32> -> vector<256x32xf32>
    %c1_201 = arith.constant 1 : index
    %c0_202 = arith.constant 0 : index
    %c0_203 = arith.constant 0 : index
    %247 = vector.load %arg16[%c1_201, %c0_202, %c0_203] : memref<18x16x96xbf16, #tpu.memory_space<vmem>>, vector<16x16x96xbf16>
    %248 = vector.shape_cast %247 : vector<16x16x96xbf16> to vector<256x96xbf16>
    %c1_204 = arith.constant 1 : index
    %c0_205 = arith.constant 0 : index
    %c0_206 = arith.constant 0 : index
    %249 = vector.load %arg10[%c1_204, %c0_205, %c0_206] : memref<3x96x32xbf16, #tpu.memory_space<vmem>>, vector<1x96x32xbf16>
    %250 = vector.shape_cast %249 : vector<1x96x32xbf16> to vector<96x32xbf16>
    %cst_207 = arith.constant dense<0.000000e+00> : vector<256x32xf32>
    %251 = tpu.matmul %248, %250, %cst_207 {dimension_numbers = #tpu.dot_dimension_numbers<[1], [0], [0], [1], [0, 0, 1, 1], [], []>} : vector<256x96xbf16>, vector<96x32xbf16>, vector<256x32xf32> -> vector<256x32xf32>
    %252 = arith.addf %246, %251 : vector<256x32xf32>
    %c2_208 = arith.constant 2 : index
    %c0_209 = arith.constant 0 : index
    %c0_210 = arith.constant 0 : index
    %253 = vector.load %arg16[%c2_208, %c0_209, %c0_210] : memref<18x16x96xbf16, #tpu.memory_space<vmem>>, vector<16x16x96xbf16>
    %254 = vector.shape_cast %253 : vector<16x16x96xbf16> to vector<256x96xbf16>
    %c2_211 = arith.constant 2 : index
    %c0_212 = arith.constant 0 : index
    %c0_213 = arith.constant 0 : index
    %255 = vector.load %arg10[%c2_211, %c0_212, %c0_213] : memref<3x96x32xbf16, #tpu.memory_space<vmem>>, vector<1x96x32xbf16>
    %256 = vector.shape_cast %255 : vector<1x96x32xbf16> to vector<96x32xbf16>
    %cst_214 = arith.constant dense<0.000000e+00> : vector<256x32xf32>
    %257 = tpu.matmul %254, %256, %cst_214 {dimension_numbers = #tpu.dot_dimension_numbers<[1], [0], [0], [1], [0, 0, 1, 1], [], []>} : vector<256x96xbf16>, vector<96x32xbf16>, vector<256x32xf32> -> vector<256x32xf32>
    %258 = arith.addf %252, %257 : vector<256x32xf32>
    %c0_215 = arith.constant 0 : index
    %c32_216 = arith.constant 32 : index
    %259 = vector.load %arg15[%c0_215, %c32_216] : memref<256x64xf32, #tpu.memory_space<vmem>>, vector<256x32xf32>
    %260 = arith.addf %259, %258 : vector<256x32xf32>
    %c0_217 = arith.constant 0 : index
    %c0_218 = arith.constant 0 : index
    %261 = vector.load %arg11[%c0_217, %c0_218] : memref<1x32xf32, #tpu.memory_space<vmem>>, vector<1x32xf32>
    %262 = vector.broadcast %261 : vector<1x32xf32> to vector<256x32xf32>
    %263 = arith.addf %260, %262 : vector<256x32xf32>
    %c0_219 = arith.constant 0 : index
    %c0_220 = arith.constant 0 : index
    %c0_221 = arith.constant 0 : index
    %264 = vector.load %arg18[%c0_219, %c0_220, %c0_221] : memref<16x16x32xf32, #tpu.memory_space<vmem>>, vector<16x16x32xf32>
    %265 = vector.shape_cast %264 : vector<16x16x32xf32> to vector<256x32xf32>
    %266 = arith.addf %263, %265 : vector<256x32xf32>
    %267 = vector.shape_cast %266 : vector<256x32xf32> to vector<16x16x32xf32>
    %c0_222 = arith.constant 0 : index
    %c0_223 = arith.constant 0 : index
    %c0_224 = arith.constant 0 : index
    %268 = vector.load %arg18[%c0_222, %c0_223, %c0_224] : memref<16x16x32xf32, #tpu.memory_space<vmem>>, vector<16x16x32xf32>
    tpu.vector_store %arg18[%c0_222, %c0_223, %c0_224], %267 {strides = array<i32>} : memref<16x16x32xf32, #tpu.memory_space<vmem>>, vector<16x16x32xf32>,
    %c0_225 = arith.constant 0 : index
    %c0_226 = arith.constant 0 : index
    %c0_227 = arith.constant 0 : index
    %269 = vector.load %arg18[%c0_225, %c0_226, %c0_227] : memref<16x16x32xf32, #tpu.memory_space<vmem>>, vector<16x16x32xf32>
    %270 = arith.truncf %269 : vector<16x16x32xf32> to vector<16x16x32xbf16>
    %c1_228 = arith.constant 1 : index
    %c0_229 = arith.constant 0 : index
    %c0_230 = arith.constant 0 : index
    %271 = vector.load %arg16[%c1_228, %c0_229, %c0_230] : memref<18x16x96xbf16, #tpu.memory_space<vmem>>, vector<16x16x32xbf16>
    tpu.vector_store %arg16[%c1_228, %c0_229, %c0_230], %270 {strides = array<i32>} : memref<18x16x96xbf16, #tpu.memory_space<vmem>>, vector<16x16x32xbf16>,
    %272 = vector.extract_strided_slice %270 {offsets = [0, 0, 0], sizes = [16, 15, 32], strides = [1, 1, 1]} : vector<16x16x32xbf16> to vector<16x15x32xbf16>
    %c1_231 = arith.constant 1 : index
    %c1_232 = arith.constant 1 : index
    %c32_233 = arith.constant 32 : index
    %273 = vector.load %arg16[%c1_231, %c1_232, %c32_233] : memref<18x16x96xbf16, #tpu.memory_space<vmem>>, vector<16x15x32xbf16>
    tpu.vector_store %arg16[%c1_231, %c1_232, %c32_233], %272 {strides = array<i32>} : memref<18x16x96xbf16, #tpu.memory_space<vmem>>, vector<16x15x32xbf16>,
    %274 = vector.extract_strided_slice %270 {offsets = [0, 1, 0], sizes = [16, 15, 32], strides = [1, 1, 1]} : vector<16x16x32xbf16> to vector<16x15x32xbf16>
    %c1_234 = arith.constant 1 : index
    %c0_235 = arith.constant 0 : index
    %c64_236 = arith.constant 64 : index
    %275 = vector.load %arg16[%c1_234, %c0_235, %c64_236] : memref<18x16x96xbf16, #tpu.memory_space<vmem>>, vector<16x15x32xbf16>
    tpu.vector_store %arg16[%c1_234, %c0_235, %c64_236], %274 {strides = array<i32>} : memref<18x16x96xbf16, #tpu.memory_space<vmem>>, vector<16x15x32xbf16>,
    %c0_237 = arith.constant 0 : index
    %c0_238 = arith.constant 0 : index
    %c0_239 = arith.constant 0 : index
    %276 = vector.load %arg16[%c0_237, %c0_238, %c0_239] : memref<18x16x96xbf16, #tpu.memory_space<vmem>>, vector<16x16x96xbf16>
    %277 = vector.shape_cast %276 : vector<16x16x96xbf16> to vector<256x96xbf16>
    %c0_240 = arith.constant 0 : index
    %c0_241 = arith.constant 0 : index
    %c0_242 = arith.constant 0 : index
    %278 = vector.load %arg12[%c0_240, %c0_241, %c0_242] : memref<3x96x32xbf16, #tpu.memory_space<vmem>>, vector<1x96x32xbf16>
    %279 = vector.shape_cast %278 : vector<1x96x32xbf16> to vector<96x32xbf16>
    %cst_243 = arith.constant dense<0.000000e+00> : vector<256x32xf32>
    %280 = tpu.matmul %277, %279, %cst_243 {dimension_numbers = #tpu.dot_dimension_numbers<[1], [0], [0], [1], [0, 0, 1, 1], [], []>} : vector<256x96xbf16>, vector<96x32xbf16>, vector<256x32xf32> -> vector<256x32xf32>
    %c1_244 = arith.constant 1 : index
    %c0_245 = arith.constant 0 : index
    %c0_246 = arith.constant 0 : index
    %281 = vector.load %arg16[%c1_244, %c0_245, %c0_246] : memref<18x16x96xbf16, #tpu.memory_space<vmem>>, vector<16x16x96xbf16>
    %282 = vector.shape_cast %281 : vector<16x16x96xbf16> to vector<256x96xbf16>
    %c1_247 = arith.constant 1 : index
    %c0_248 = arith.constant 0 : index
    %c0_249 = arith.constant 0 : index
    %283 = vector.load %arg12[%c1_247, %c0_248, %c0_249] : memref<3x96x32xbf16, #tpu.memory_space<vmem>>, vector<1x96x32xbf16>
    %284 = vector.shape_cast %283 : vector<1x96x32xbf16> to vector<96x32xbf16>
    %cst_250 = arith.constant dense<0.000000e+00> : vector<256x32xf32>
    %285 = tpu.matmul %282, %284, %cst_250 {dimension_numbers = #tpu.dot_dimension_numbers<[1], [0], [0], [1], [0, 0, 1, 1], [], []>} : vector<256x96xbf16>, vector<96x32xbf16>, vector<256x32xf32> -> vector<256x32xf32>
    %286 = arith.addf %280, %285 : vector<256x32xf32>
    %c2_251 = arith.constant 2 : index
    %c0_252 = arith.constant 0 : index
    %c0_253 = arith.constant 0 : index
    %287 = vector.load %arg16[%c2_251, %c0_252, %c0_253] : memref<18x16x96xbf16, #tpu.memory_space<vmem>>, vector<16x16x96xbf16>
    %288 = vector.shape_cast %287 : vector<16x16x96xbf16> to vector<256x96xbf16>
    %c2_254 = arith.constant 2 : index
    %c0_255 = arith.constant 0 : index
    %c0_256 = arith.constant 0 : index
    %289 = vector.load %arg12[%c2_254, %c0_255, %c0_256] : memref<3x96x32xbf16, #tpu.memory_space<vmem>>, vector<1x96x32xbf16>
    %290 = vector.shape_cast %289 : vector<1x96x32xbf16> to vector<96x32xbf16>
    %cst_257 = arith.constant dense<0.000000e+00> : vector<256x32xf32>
    %291 = tpu.matmul %288, %290, %cst_257 {dimension_numbers = #tpu.dot_dimension_numbers<[1], [0], [0], [1], [0, 0, 1, 1], [], []>} : vector<256x96xbf16>, vector<96x32xbf16>, vector<256x32xf32> -> vector<256x32xf32>
    %292 = arith.addf %286, %291 : vector<256x32xf32>
    %c0_258 = arith.constant 0 : index
    %c0_259 = arith.constant 0 : index
    %293 = vector.load %arg13[%c0_258, %c0_259] : memref<1x32xf32, #tpu.memory_space<vmem>>, vector<1x32xf32>
    %294 = vector.broadcast %293 : vector<1x32xf32> to vector<256x32xf32>
    %295 = arith.addf %292, %294 : vector<256x32xf32>
    %c0_260 = arith.constant 0 : index
    %c0_261 = arith.constant 0 : index
    %c0_262 = arith.constant 0 : index
    %296 = vector.load %arg17[%c0_260, %c0_261, %c0_262] : memref<16x16x32xf32, #tpu.memory_space<vmem>>, vector<16x16x32xf32>
    %297 = vector.shape_cast %296 : vector<16x16x32xf32> to vector<256x32xf32>
    %298 = arith.addf %295, %297 : vector<256x32xf32>
    %299 = tpu.transpose %298, [1, 0] : vector<256x32xf32> -> vector<32x256xf32>
    %c0_263 = arith.constant 0 : index
    %c0_264 = arith.constant 0 : index
    %c0_265 = arith.constant 0 : index
    %300 = vector.load %arg14[%c0_263, %c0_264, %c0_265] : memref<1x32x256xf32, #tpu.memory_space<vmem>>, vector<1x32x256xf32>
    %301 = vector.shape_cast %300 : vector<1x32x256xf32> to vector<32x256xf32>
    %302 = vector.shape_cast %299 : vector<32x256xf32> to vector<1x32x256xf32>
    tpu.vector_store %arg14[%c0_263, %c0_264, %c0_265], %302 {strides = array<i32>} : memref<1x32x256xf32, #tpu.memory_space<vmem>>, vector<1x32x256xf32>,
    return
  }
  func.func @transform_0(%arg0: i32) -> (i32, i32, i32) {
    %c0_i32 = arith.constant 0 : i32
    %c0_i32_0 = arith.constant 0 : i32
    %c0_i32_1 = arith.constant 0 : i32
    return %arg0, %c0_i32, %c0_i32_0 : i32, i32, i32
  }
  func.func @transform_1(%arg0: i32) -> (i32, i32) {
    %c0_i32 = arith.constant 0 : i32
    %c0_i32_0 = arith.constant 0 : i32
    %c0_i32_1 = arith.constant 0 : i32
    return %c0_i32, %c0_i32_0 : i32, i32
  }
  func.func @transform_2(%arg0: i32) -> (i32, i32) {
    %c0_i32 = arith.constant 0 : i32
    %c0_i32_0 = arith.constant 0 : i32
    %c0_i32_1 = arith.constant 0 : i32
    return %c0_i32, %c0_i32_0 : i32, i32
  }
  func.func @transform_3(%arg0: i32) -> (i32, i32, i32) {
    %c0_i32 = arith.constant 0 : i32
    %c0_i32_0 = arith.constant 0 : i32
    %c0_i32_1 = arith.constant 0 : i32
    %c0_i32_2 = arith.constant 0 : i32
    return %c0_i32, %c0_i32_0, %c0_i32_1 : i32, i32, i32
  }
  func.func @transform_4(%arg0: i32) -> (i32, i32) {
    %c0_i32 = arith.constant 0 : i32
    %c0_i32_0 = arith.constant 0 : i32
    %c0_i32_1 = arith.constant 0 : i32
    return %c0_i32, %c0_i32_0 : i32, i32
  }
  func.func @transform_5(%arg0: i32) -> (i32, i32, i32) {
    %c0_i32 = arith.constant 0 : i32
    %c0_i32_0 = arith.constant 0 : i32
    %c0_i32_1 = arith.constant 0 : i32
    %c0_i32_2 = arith.constant 0 : i32
    return %c0_i32, %c0_i32_0, %c0_i32_1 : i32, i32, i32
  }
  func.func @transform_6(%arg0: i32) -> (i32, i32) {
    %c0_i32 = arith.constant 0 : i32
    %c0_i32_0 = arith.constant 0 : i32
    %c0_i32_1 = arith.constant 0 : i32
    return %c0_i32, %c0_i32_0 : i32, i32
  }
  func.func @transform_7(%arg0: i32) -> (i32, i32, i32) {
    %c0_i32 = arith.constant 0 : i32
    %c0_i32_0 = arith.constant 0 : i32
    %c0_i32_1 = arith.constant 0 : i32
    %c0_i32_2 = arith.constant 0 : i32
    return %c0_i32, %c0_i32_0, %c0_i32_1 : i32, i32, i32
  }
  func.func @transform_8(%arg0: i32) -> (i32, i32) {
    %c0_i32 = arith.constant 0 : i32
    %c0_i32_0 = arith.constant 0 : i32
    %c0_i32_1 = arith.constant 0 : i32
    return %c0_i32, %c0_i32_0 : i32, i32
  }
  func.func @transform_9(%arg0: i32) -> (i32, i32, i32) {
    %c0_i32 = arith.constant 0 : i32
    %c0_i32_0 = arith.constant 0 : i32
    %c0_i32_1 = arith.constant 0 : i32
    %c0_i32_2 = arith.constant 0 : i32
    return %c0_i32, %c0_i32_0, %c0_i32_1 : i32, i32, i32
  }
  func.func @transform_10(%arg0: i32) -> (i32, i32) {
    %c0_i32 = arith.constant 0 : i32
    %c0_i32_0 = arith.constant 0 : i32
    %c0_i32_1 = arith.constant 0 : i32
    return %c0_i32, %c0_i32_0 : i32, i32
  }
  func.func @transform_11(%arg0: i32) -> (i32, i32, i32) {
    %c0_i32 = arith.constant 0 : i32
    %c0_i32_0 = arith.constant 0 : i32
    %c0_i32_1 = arith.constant 0 : i32
    %c0_i32_2 = arith.constant 0 : i32
    return %c0_i32, %c0_i32_0, %c0_i32_1 : i32, i32, i32
  }
  func.func @transform_12(%arg0: i32) -> (i32, i32) {
    %c0_i32 = arith.constant 0 : i32
    %c0_i32_0 = arith.constant 0 : i32
    %c0_i32_1 = arith.constant 0 : i32
    return %c0_i32, %c0_i32_0 : i32, i32
  }
  func.func @transform_13(%arg0: i32) -> (i32, i32, i32) {
    %c0_i32 = arith.constant 0 : i32
    %c0_i32_0 = arith.constant 0 : i32
    %c0_i32_1 = arith.constant 0 : i32
    return %arg0, %c0_i32, %c0_i32_0 : i32, i32, i32
  }
}

</mosaic_0001>

<bundles_post_ra>
// kernel: tpu_custom_call.1
= control target key start
LH: loop header
LB: loop body
LE: loop exit
PB: predicated region body
PF: predicated region fallthrough
CT: control target
= control target key end

     0   :  { %s19161_s0 = inlined_call_operand.vmem [shape: bf16[2,256,36], index: 0, kind: input, shape index: {}]   ;;  %s19162_s1 = inlined_call_operand.vmem [shape: bf16[36,32], index: 1, kind: input, shape index: {}]   ;;  %s19163_s2 = inlined_call_operand.vmem [shape: f32[1,32], index: 2, kind: input, shape index: {}]   ;;  %s19164_s3 = inlined_call_operand.vmem [shape: bf16[3,96,64], index: 3, kind: input, shape index: {}]   ;;  %s19165_s4 = inlined_call_operand.vmem [shape: f32[1,32], index: 4, kind: input, shape index: {}]   ;;  %s19166_s5 = inlined_call_operand.vmem [shape: bf16[3,96,32], index: 5, kind: input, shape index: {}]   ;;  %s19167_s6 = inlined_call_operand.vmem [shape: f32[1,32], index: 6, kind: input, shape index: {}]   ;;  %s19168_s7 = inlined_call_operand.vmem [shape: bf16[3,96,64], index: 7, kind: input, shape index: {}]   ;;  %s19169_s8 = inlined_call_operand.vmem [shape: f32[1,32], index: 8, kind: input, shape index: {}]   ;;  %s19170_s9 = inlined_call_operand.vmem [shape: bf16[3,96,32], index: 9, kind: input, shape index: {}]   ;;  %s19171_s10 = inlined_call_operand.vmem [shape: f32[1,32], index: 10, kind: input, shape index: {}]   ;;  %s19172_s11 = inlined_call_operand.vmem [shape: bf16[3,96,32], index: 11, kind: input, shape index: {}]   ;;  %s19173_s12 = inlined_call_operand.vmem [shape: f32[1,32], index: 12, kind: input, shape index: {}]   ;;  %s19174_s13 = inlined_call_operand.hbm [shape: f32[2,32,256], index: 13, kind: output, shape index: {}]  }
   0x1   :  { %19179 = sst [smem:[#allocation14_spill]] %s19161_s0 }
   0x2   :  { %19180 = sst [smem:[#allocation15_spill]] %s19162_s1 }
   0x3   :  { %18 = vsyncpa [#allocation7], 0 }
   0x4   :  { %20 = vsyncpa [#allocation7 + $0x1], 0  ;;  %s13948_s25 = smov 0   ;;  %s13950_s26 = smov 0  }
   0x5   :  { %s13952_s27 = smov 0   ;;  %s13954_s28 = smov 0  }
   0x6 LB: > { %s13969_s29 = sadd.s32 4294967295, %s13869_s28   ;;  %s11393_s30 = sadd.s32 4294967294, %s13869_s28   ;;  %s13869_s28 = sphi %s13954_s28, %s19208_s28   ;;  %s13865_s27 = sphi %s13952_s27, %s19207_s27   ;;  %s13861_s26 = sphi %s13950_s26, %s19206_s26   ;;  %s13857_s25 = sphi %s13948_s25, %s19205_s25  }
   0x7   : > { %s13973_s14 = sadd.s32 1, %s13869_s28   ;;  %s311_s15 = sadd.s32 1, %s13865_s27 }
   0x8   : > { %s308_s16 = ssub.s32 %s13869_s28, %s13973_s14  ;;  %p321_p0 = scmp.ne.s32.totalorder %s13865_s27, %s13861_s26 }
   0x9   : > { %p309_p1 = scmp.eq.s32.totalorder %s308_s16, 0  ;;  %p322_p2 = scmp.eq.s32.totalorder %s13969_s29, 1 }
   0xa   : > { %p327_p3 = scmp.ne.s32.totalorder %s13861_s26, %s13857_s25  ;;  %p328_p4 = scmp.eq.s32.totalorder %s11393_s30, 1 }
   0xb   : > { %s13984_s17 = scalar_select %p309_p1, %s13865_s27, %s311_s15  }
   0xc   : > { %p13986_p5 = por %p322_p2, %p321_p0  ;;  %p13990_p6 = por %p328_p4, %p327_p3 }
   0xd   : > { %19181 = sst [smem:[#allocation9_spill]] %s13984_s17  ;;  %p11396_p7 = scmp.ge.s32.totalorder %s13869_s28, 1 }
   0xe   : > { %p390_p8 = scmp.lt.s32.totalorder %s13869_s28, 3 }
  0x10   : > { %p391_p9 = pnand %p11396_p7, %p390_p8 }
  0x12   : > { %394 = sbr.rel (%p391_p9) target bundleno = 3905 (0xf41), region = 72 }
  0x19   : > { %s19184_s1 = sld [smem:[#allocation15_spill]]  ;;  %p434_p10 = scmp.lt.s32.totalorder %s13969_s29, 1  ;;  %vm735_vm0 = vcmask 1041408   ;;  %vm686_vm1 = vcmask 293888   ;;  %v14047_v20 = vld [vmem:[%s19163_s2] ss:$0 sm:$0xff] }
  0x1a   : > { %s19185_s0 = sld [smem:[#allocation14_spill]]  ;;  %vm900_vm2 = vcmask 261120   ;;  %s13874_s22 = smov 96  }
  0x1b   : > { %s435_s15 = scalar_select %p434_p10, %s13969_s29, 1 }
  0x1c   : > { %s431_s24 = sand.u32 1, %s13861_s26   ;;  %s11897_s20 = sshll.u32 %s13969_s29, 10 }
  0x1d   : > { %s11896_s16 = sshll.u32 %s435_s15, 7  ;;  %s19175_s15 = smov 64  }
  0x1e   : > { %s19118_s21 = scalar_lea.hbm %s19174_s13, %s11897_s20  ;;  %s19120_s23 = scalar_lea.sflag [#allocation7], %s431_s24 }
  0x1f   : > { %v13311_v0 = vld [vmem:[%s19184_s1] sm:$0xff]   ;;  %v13312_v1 = vld [vmem:[%s19184_s1 + $0x8] sm:$0xff]   ;;  %v13313_v2 = vld [vmem:[%s19184_s1 + $0x10] ss:$0 sps:$4 sm:$0x33]   ;;  %s13875_s29 = smov [#allocation6]  }
  0x20   : > { %12247 = vmatprep.subr.bf16.mxu0 %v13311_v0  ;;  %s14010_s17 = scalar_lea.vmem %s19185_s0, %s11896_s16  ;;  %v737_v4 = vsel %vm735_vm0, %v13313_v2, 0  ;;  %s19203_s16 = smov 64  }
  0x21   : > { %12248 = vmatpush3.bf16.msra.mxu0 %v13311_v0  ;;  %v13314_v3 = vld [vmem:[%s14010_s17] sm:$0xff]   ;;  %v13315_v5 = vld [vmem:[%s14010_s17 + $0x8] sm:$0xff]   ;;  %v13316_v6 = vld [vmem:[%s14010_s17 + $0x10] sm:$0xff]  }
  0x22   : > { %12249 = vmatprep.subr.bf16.mxu0 %v13312_v1  ;;  %12253 = vmatprep.mubr.msk.bf16.mxu0 %vm686_vm1, %v13314_v3  ;;  %v13317_v7 = vld [vmem:[%s14010_s17 + $0x18] sm:$0xff]   ;;  %v13318_v8 = vld [vmem:[%s14010_s17 + $0x20] sm:$0xff]   ;;  %v13319_v9 = vld [vmem:[%s14010_s17 + $0x28] sm:$0xff]  }
  0x23   : > { %v13320_v10 = vld [vmem:[%s14010_s17 + $0x30] sm:$0xff]   ;;  %v13321_v11 = vld [vmem:[%s14010_s17 + $0x38] sm:$0xff]   ;;  %v13322_v12 = vld [vmem:[%s14010_s17 + $0x40] sm:$0xff]  }
  0x24   : > { %v13323_v13 = vld [vmem:[%s14010_s17 + $0x48] sm:$0xff]   ;;  %v13324_v14 = vld [vmem:[%s14010_s17 + $0x50] sm:$0xff]   ;;  %v13325_v15 = vld [vmem:[%s14010_s17 + $0x58] sm:$0xff]  }
  0x25   : > { %12250 = vmatpush3.bf16.msra.mxu0 %v13312_v1  ;;  %v13326_v16 = vld [vmem:[%s14010_s17 + $0x60] sm:$0xff]   ;;  %v13327_v17 = vld [vmem:[%s14010_s17 + $0x68] sm:$0xff]   ;;  %v13328_v18 = vld [vmem:[%s14010_s17 + $0x70] sm:$0xff]  }
  0x26   : > { %13265 = vmatprep.subr.msk.bf16.mxu0 %vm735_vm0, %v13313_v2  ;;  %v13329_v19 = vld [vmem:[%s14010_s17 + $0x78] sm:$0xff]   ;;  %s19177_s17 = smov 32  }
  0x29   : > { %12252 = vmatpush3.bf16.msra.mxu0 %v737_v4 }
  0x2c   : > { %12254 = vmatmul.mubr.msk.bf16.vlgmr.msra.gmra.mrb[0].mxu0 %vm686_vm1, %v13315_v5 }
  0x2d   : > { %12257 = vmatprep.mubr.msk.bf16.mxu0 %vm686_vm1, %v13316_v6 }
  0x34   : > { %12258 = vmatmul.mubr.msk.bf16.gmra.mrb[4].mxu0 %vm686_vm1, %v13317_v7 }
  0x35   : > { %12261 = vmatprep.mubr.msk.bf16.mxu0 %vm686_vm1, %v13318_v8 }
  0x3c   : > { %12262 = vmatmul.mubr.msk.bf16.gmra.mrb[8].mxu0 %vm686_vm1, %v13319_v9 }
  0x3d   : > { %12265 = vmatprep.mubr.msk.bf16.mxu0 %vm686_vm1, %v13320_v10 }
  0x44   : > { %12266 = vmatmul.mubr.msk.bf16.gmra.mrb[12].mxu0 %vm686_vm1, %v13321_v11 }
  0x45   : > { %12269 = vmatprep.mubr.msk.bf16.mxu0 %vm686_vm1, %v13322_v12 }
  0x4c   : > { %12270 = vmatmul.mubr.msk.bf16.gmra.mrb[16].mxu0 %vm686_vm1, %v13323_v13 }
  0x4d   : > { %12273 = vmatprep.mubr.msk.bf16.mxu0 %vm686_vm1, %v13324_v14 }
  0x54   : > { %12274 = vmatmul.mubr.msk.bf16.gmra.mrb[20].mxu0 %vm686_vm1, %v13325_v15 }
  0x55   : > { %12277 = vmatprep.mubr.msk.bf16.mxu0 %vm686_vm1, %v13326_v16 }
  0x5c   : > { %12278 = vmatmul.mubr.msk.bf16.gmra.mrb[24].mxu0 %vm686_vm1, %v13327_v17 }
  0x5d   : > { %12281 = vmatprep.mubr.msk.bf16.mxu0 %vm686_vm1, %v13328_v18 }
  0x64   : > { %12282 = vmatmul.mubr.msk.bf16.gmra.mrb[28].mxu0 %vm686_vm1, %v13329_v19 }
  0xff   : > { %v12255_v21 = vpop.f32.mrb[0].mxu0 }
 0x100   : > { %v782_v22 = vadd.f32 %v12255_v21, %v14047_v20  ;;  %v773_v23 = vpop.f32.mrb[1].mxu0 }
 0x101   : > { %v14051_v24 = vadd.f32 %v14047_v20, %v773_v23  ;;  %v12256_v25 = vpop.f32.mrb[2].mxu0 }
 0x102   : > { %903 = vst.msk [vmem:[#allocation4 + $0x10] sm:$0xff] %vm900_vm2, %v782_v22  ;;  %v14054_v26 = vmul.f32 0.70710677, %v782_v22  ;;  %v14057_v27 = vadd.f32 %v12256_v25, %v14047_v20  ;;  %v776_v28 = vpop.f32.mrb[3].mxu0  ;;  %v14113_v7 = vmul.f32 0.5, %v782_v22 }
 0x103   : > { %901 = vst.msk [vmem:[#allocation4] sm:$0xff] %vm900_vm2, %v14051_v24  ;;  %v14062_v29 = vmul.f32 0.70710677, %v14051_v24  ;;  %v14065_v30 = vadd.f32 %v14047_v20, %v776_v28 }
 0x104   : > { %v999_v31 = vand.u32 2147483647, %v14054_v26  ;;  %904 = vst.msk [vmem:[#allocation4 + $0x18] sm:$0xff] %vm900_vm2, %v14057_v27  ;;  %v14071_v32 = vmul.f32 0.70710677, %v14057_v27  ;;  %vm1639_vm3 = vcmp.lt.f32.partialorder %v14054_v26, 0.0 }
 0x105   : > { %v997_v33 = vand.u32 2147483647, %v14062_v29  ;;  %902 = vst.msk [vmem:[#allocation4 + $0x8] sm:$0xff] %vm900_vm2, %v14065_v30  ;;  %v14077_v34 = vmul.f32 0.70710677, %v14065_v30  ;;  %vm1637_vm4 = vcmp.lt.f32.partialorder %v14062_v29, 0.0 }
 0x106   : > { %v1031_v35 = vmul.f32 0.3275911, %v999_v31  ;;  %v1447_v36 = vsub.f32 0.0, %v999_v31  ;;  %v1000_v37 = vand.u32 2147483647, %v14071_v32  ;;  %vm1640_vm5 = vcmp.lt.f32.partialorder %v14071_v32, 0.0 }
 0x107   : > { %v1029_v38 = vmul.f32 0.3275911, %v997_v33  ;;  %v1445_v39 = vsub.f32 0.0, %v997_v33  ;;  %v998_v40 = vand.u32 2147483647, %v14077_v34  ;;  %v12259_v45 = vpop.f32.mrb[4].mxu0 }
 0x108   : > { %v1063_v41 = vadd.f32 1.0, %v1031_v35  ;;  %v1479_v42 = vmul.f32 %v1447_v36, %v999_v31  ;;  %v1032_v43 = vmul.f32 0.3275911, %v1000_v37  ;;  %v1448_v44 = vsub.f32 0.0, %v1000_v37  ;;  %v789_v50 = vpop.f32.mrb[5].mxu0 }
 0x109   : > { %v1061_v46 = vadd.f32 1.0, %v1029_v38  ;;  %v1477_v47 = vmul.f32 %v1445_v39, %v997_v33  ;;  %v1030_v48 = vmul.f32 0.3275911, %v998_v40  ;;  %v1446_v49 = vsub.f32 0.0, %v998_v40  ;;  %v12260_v53 = vpop.f32.mrb[6].mxu0 }
 0x10a   : > { %13420 = vrcp.f32 %v1063_v41  ;;  %v1064_v51 = vadd.f32 1.0, %v1032_v43  ;;  %v1480_v52 = vmul.f32 %v1448_v44, %v1000_v37  ;;  %v1513_v54 = vmul.f32 1.442695, %v1479_v42  ;;  %v792_v55 = vpop.f32.mrb[7].mxu0 }
 0x10b   : > { %13422 = vrcp.f32 %v1061_v46  ;;  %v1062_v56 = vadd.f32 1.0, %v1030_v48  ;;  %v1478_v57 = vmul.f32 %v1446_v49, %v998_v40  ;;  %v14082_v58 = vadd.f32 %v12259_v45, %v14047_v20 }
 0x10c   : > { %v14085_v59 = vadd.f32 %v14047_v20, %v789_v50  ;;  %v1509_v60 = vmul.f32 1.442695, %v1477_v47  ;;  %v14088_v61 = vadd.f32 %v12260_v53, %v14047_v20  ;;  %v14091_v62 = vadd.f32 %v14047_v20, %v792_v55 }
 0x10d   : > { %13424 = vrcp.f32 %v1064_v51  ;;  %v1515_v63 = vmul.f32 1.442695, %v1480_v52  ;;  %907 = vst.msk [vmem:[#allocation4 + $0x30] sm:$0xff] %vm900_vm2, %v14082_v58  ;;  %v14096_v0 = vmul.f32 0.70710677, %v14082_v58  ;;  %v14134_v43 = vmul.f32 0.5, %v14051_v24 }
 0x10e   : > { %905 = vst.msk [vmem:[#allocation4 + $0x20] sm:$0xff] %vm900_vm2, %v14085_v59  ;;  %13426 = vpow2.f32 %v1513_v54  ;;  %v14101_v1 = vmul.f32 0.70710677, %v14085_v59  ;;  %908 = vst.msk [vmem:[#allocation4 + $0x38] sm:$0xff] %vm900_vm2, %v14088_v61  ;;  %v14106_v2 = vmul.f32 0.70710677, %v14088_v61 }
 0x10f   : > { %906 = vst.msk [vmem:[#allocation4 + $0x28] sm:$0xff] %vm900_vm2, %v14091_v62  ;;  %v12263_v3 = vpop.f32.mrb[8].mxu0  ;;  %13428 = vrcp.f32 %v1062_v56  ;;  %v1511_v4 = vmul.f32 1.442695, %v1478_v57  ;;  %vm1638_vm6 = vcmp.lt.f32.partialorder %v14077_v34, 0.0  ;;  %vm1643_vm7 = vcmp.lt.f32.partialorder %v14096_v0, 0.0 }
 0x110   : > { %v1003_v5 = vand.u32 2147483647, %v14096_v0  ;;  %v14111_v6 = vpop.f32.mrb[9].mxu0  ;;  %13430 = vpow2.f32 %v1509_v60  ;;  %v1001_v8 = vand.u32 2147483647, %v14101_v1  ;;  %v14148_v55 = vadd.f32 %v12263_v3, %v14047_v20 }
 0x111   : > { %v1004_v9 = vand.u32 2147483647, %v14106_v2  ;;  %v14117_v10 = vpop.f32.mrb[10].mxu0  ;;  %13432 = vpow2.f32 %v1515_v63  ;;  %v14120_v13 = vmul.f32 0.70710677, %v14091_v62  ;;  %vm1641_vm8 = vcmp.lt.f32.partialorder %v14101_v1, 0.0 }
 0x112   : > { %v1035_v11 = vmul.f32 0.3275911, %v1003_v5  ;;  %v1451_v12 = vsub.f32 0.0, %v1003_v5  ;;  %v1033_v14 = vmul.f32 0.3275911, %v1001_v8  ;;  %v1449_v15 = vsub.f32 0.0, %v1001_v8 }
 0x113   : > { %v1036_v16 = vmul.f32 0.3275911, %v1004_v9  ;;  %v1452_v17 = vsub.f32 0.0, %v1004_v9  ;;  %13434 = vpow2.f32 %v1511_v4  ;;  %v1002_v22 = vand.u32 2147483647, %v14120_v13  ;;  %v14125_v23 = vpop.f32.mrb[11].mxu0 }
 0x114   : > { %v14122_v18 = vpop.eup %13420  ;;  %v1067_v19 = vadd.f32 1.0, %v1035_v11  ;;  %v1483_v21 = vmul.f32 %v1451_v12, %v1003_v5  ;;  %v1065_v31 = vadd.f32 1.0, %v1033_v14  ;;  %v1481_v33 = vmul.f32 %v1449_v15, %v1001_v8  ;;  %911 = vst.msk [vmem:[#allocation4 + $0x50] sm:$0xff] %vm900_vm2, %v14148_v55 }
 0x115   : > { %v14127_v25 = vpop.eup %13422  ;;  %v1159_v28 = vmul.f32 1.0614054, %v14122_v18  ;;  %v1068_v35 = vadd.f32 1.0, %v1036_v16  ;;  %v1484_v38 = vmul.f32 %v1452_v17, %v1004_v9  ;;  %v1034_v41 = vmul.f32 0.3275911, %v1002_v22 }
 0x116   : > { %v1157_v36 = vmul.f32 1.0614054, %v14127_v25  ;;  %13436 = vrcp.f32 %v1067_v19  ;;  %v1521_v37 = vmul.f32 1.442695, %v1483_v21  ;;  %v1517_v40 = vmul.f32 1.442695, %v1481_v33 }
 0x117   : > { %v1191_v39 = vadd.f32 -1.4531521, %v1159_v28  ;;  %13438 = vrcp.f32 %v1065_v31  ;;  %v14131_v42 = vpop.eup %13424  ;;  %v1450_v45 = vsub.f32 0.0, %v1002_v22  ;;  %v14136_v46 = vpop.f32.mrb[12].mxu0  ;;  %v1523_v50 = vmul.f32 1.442695, %v1484_v38 }
 0x118   : > { %v1189_v44 = vadd.f32 -1.4531521, %v1157_v36  ;;  %13440 = vpow2.f32 %v1521_v37  ;;  %v14138_v47 = vpop.eup %13426  ;;  %v1160_v49 = vmul.f32 1.0614054, %v14131_v42  ;;  %v1066_v51 = vadd.f32 1.0, %v1034_v41  ;;  %v14142_v52 = vpop.f32.mrb[13].mxu0 }
 0x119   : > { %v1223_v48 = vmul.f32 %v14122_v18, %v1191_v39  ;;  %v14144_v53 = vpop.eup %13428  ;;  %13442 = vrcp.f32 %v1068_v35  ;;  %v1482_v54 = vmul.f32 %v1450_v45, %v1002_v22  ;;  %v14150_v56 = vpop.f32.mrb[14].mxu0  ;;  %v14158_v9 = vmul.f32 0.5, %v14057_v27 }
 0x11a   : > { %v1221_v24 = vmul.f32 %v14127_v25, %v1189_v44  ;;  %v14152_v57 = vpop.eup %13430  ;;  %v1192_v63 = vadd.f32 -1.4531521, %v1160_v49  ;;  %v1158_v4 = vmul.f32 1.0614054, %v14144_v53  ;;  %13444 = vpow2.f32 %v1517_v40  ;;  %v14162_v3 = vpop.f32.mrb[15].mxu0 }
 0x11b   : > { %v1255_v60 = vadd.f32 1.4214138, %v1223_v48  ;;  %v14155_v5 = vpop.eup %13432  ;;  %13446 = vrcp.f32 %v1066_v51  ;;  %v1519_v11 = vmul.f32 1.442695, %v1482_v54  ;;  %v14167_v16 = vmul.f32 0.70710677, %v14148_v55 }
 0x11c   : > { %v1253_v8 = vadd.f32 1.4214138, %v1221_v24  ;;  %v1224_v14 = vmul.f32 %v14131_v42, %v1192_v63  ;;  %v1190_v15 = vadd.f32 -1.4531521, %v1158_v4  ;;  %13448 = vpow2.f32 %v1523_v50 }
 0x11d   : > { %v1287_v12 = vmul.f32 %v14122_v18, %v1255_v60  ;;  %v14169_v17 = vpop.eup %13434  ;;  %v14174_v19 = vadd.f32 %v14047_v20, %v14111_v6  ;;  %v14178_v21 = vadd.f32 %v14117_v10, %v14047_v20  ;;  %v1007_v33 = vand.u32 2147483647, %v14167_v16 }
 0x11e   : > { %v1285_v27 = vmul.f32 %v14127_v25, %v1253_v8  ;;  %v1256_v28 = vadd.f32 1.4214138, %v1224_v14  ;;  %v1222_v31 = vmul.f32 %v14144_v53, %v1190_v15  ;;  %v14185_v37 = vmul.f32 0.5, %v14065_v30 }
 0x11f   : > { %v1319_v22 = vadd.f32 -0.28449672, %v1287_v12  ;;  %13450 = vpow2.f32 %v1519_v11  ;;  %909 = vst.msk [vmem:[#allocation4 + $0x40] sm:$0xff] %vm900_vm2, %v14174_v19  ;;  %v14190_v6 = vmul.f32 0.70710677, %v14174_v19  ;;  %912 = vst.msk [vmem:[#allocation4 + $0x58] sm:$0xff] %vm900_vm2, %v14178_v21 }
 0x120   : > { %v14182_v35 = vpop.eup %13436  ;;  %v1317_v36 = vadd.f32 -0.28449672, %v1285_v27  ;;  %v1288_v39 = vmul.f32 %v14131_v42, %v1256_v28  ;;  %v1254_v40 = vadd.f32 1.4214138, %v1222_v31  ;;  %v14199_v41 = vpop.f32.mrb[16].mxu0  ;;  %v1455_v50 = vsub.f32 0.0, %v1007_v33 }
 0x121   : > { %v14194_v10 = vpop.eup %13438  ;;  %v1351_v38 = vmul.f32 %v14122_v18, %v1319_v22  ;;  %v1163_v30 = vmul.f32 1.0614054, %v14182_v35  ;;  %v1039_v49 = vmul.f32 0.3275911, %v1007_v33  ;;  %v14205_v51 = vpop.f32.mrb[17].mxu0  ;;  %vm1644_vm9 = vcmp.lt.f32.partialorder %v14106_v2, 0.0 }
 0x122   : > { %v14201_v44 = vpop.eup %13440  ;;  %v1349_v45 = vmul.f32 %v14127_v25, %v1317_v36  ;;  %v1161_v48 = vmul.f32 1.0614054, %v14194_v10  ;;  %v1320_v54 = vadd.f32 -0.28449672, %v1288_v39  ;;  %v1286_v60 = vmul.f32 %v14144_v53, %v1254_v40  ;;  %v14213_v15 = vpop.f32.mrb[18].mxu0 }
 0x123   : > { %v1383_v24 = vadd.f32 0.2548296, %v1351_v38  ;;  %v1195_v63 = vadd.f32 -1.4531521, %v1163_v30  ;;  %v14208_v4 = vpop.eup %13442  ;;  %v1071_v12 = vadd.f32 1.0, %v1039_v49  ;;  %v14211_v14 = vmul.f32 %v1455_v50, %v1007_v33  ;;  %v14221_v38 = vpop.f32.mrb[19].mxu0 }
 0x124   : > { %v1381_v8 = vadd.f32 0.2548296, %v1349_v45  ;;  %v1193_v11 = vadd.f32 -1.4531521, %v1161_v48  ;;  %v14215_v27 = vpop.eup %13444  ;;  %v1352_v28 = vmul.f32 %v14131_v42, %v1320_v54  ;;  %v1318_v31 = vadd.f32 -0.28449672, %v1286_v60 }
 0x125   : > { %v1415_v22 = vmul.f32 %v14122_v18, %v1383_v24  ;;  %v1227_v36 = vmul.f32 %v14182_v35, %v1195_v63  ;;  %19186 = vst [vmem:[#allocation10_spill] sm:$0xff] %v14221_v38  ;;  %v14223_v39 = vpop.eup %13446  ;;  %v1164_v30 = vmul.f32 1.0614054, %v14208_v4  ;;  %13452 = vrcp.f32 %v1071_v12 }
 0x126   : > { %v1413_v33 = vmul.f32 %v14127_v25, %v1381_v8  ;;  %v1225_v40 = vmul.f32 %v14194_v10, %v1193_v11  ;;  %v1384_v45 = vadd.f32 0.2548296, %v1352_v28  ;;  %v1350_v48 = vmul.f32 %v14144_v53, %v1318_v31  ;;  %v14232_v24 = vpop.eup %13448 }
 0x127   : > { %v1575_v18 = vmul.f32 %v14138_v47, %v1415_v22  ;;  %v1259_v49 = vadd.f32 1.4214138, %v1227_v36  ;;  %v14230_v50 = vpop.f32.mrb[20].mxu0  ;;  %v1196_v60 = vadd.f32 -1.4531521, %v1164_v30  ;;  %vm1642_vm10 = vcmp.lt.f32.partialorder %v14120_v13, 0.0 }
 0x128   : > { %19187 = vst [vmem:[#allocation11_spill] sm:$0xff] %v14230_v50  ;;  %v1573_v54 = vmul.f32 %v14152_v57, %v1413_v33  ;;  %v1257_v25 = vadd.f32 1.4214138, %v1225_v40  ;;  %v1162_v63 = vmul.f32 1.0614054, %v14223_v39  ;;  %v1416_v11 = vmul.f32 %v14131_v42, %v1384_v45  ;;  %v14239_v22 = vpop.f32.mrb[21].mxu0 }
 0x129   : > { %v1607_v8 = vsub.f32 1.0, %v1575_v18  ;;  %v1382_v47 = vadd.f32 0.2548296, %v1350_v48  ;;  %v1291_v12 = vmul.f32 %v14182_v35, %v1259_v49  ;;  %19188 = vst [vmem:[#allocation12_spill] sm:$0xff] %v14239_v22  ;;  %v14241_v28 = vpop.eup %13450  ;;  %v1228_v36 = vmul.f32 %v14208_v4, %v1196_v60  ;;  %v14246_v40 = vpop.f32.mrb[22].mxu0 }
 0x12a   : > { %v1605_v31 = vsub.f32 1.0, %v1573_v54  ;;  %v1289_v57 = vmul.f32 %v14194_v10, %v1257_v25  ;;  %v1194_v33 = vadd.f32 -1.4531521, %v1162_v63  ;;  %19189 = vst [vmem:[#allocation13_spill] sm:$0xff] %v14246_v40  ;;  %v1576_v42 = vmul.f32 %v14155_v5, %v1416_v11  ;;  %v14250_v48 = vpop.f32.mrb[23].mxu0 }
 0x12b   : > { %v1671_v30 = vsub.f32 0.0, %v1607_v8  ;;  %v1414_v18 = vmul.f32 %v14144_v53, %v1382_v47  ;;  %v1323_v45 = vadd.f32 -0.28449672, %v1291_v12  ;;  %v1260_v54 = vadd.f32 1.4214138, %v1228_v36 }
 0x12c   : > { %v1669_v49 = vsub.f32 0.0, %v1605_v31  ;;  %v1321_v22 = vadd.f32 -0.28449672, %v1289_v57  ;;  %v1226_v50 = vmul.f32 %v14223_v39, %v1194_v33  ;;  %v1608_v60 = vsub.f32 1.0, %v1576_v42 }
 0x12d   : > { %v1703_v25 = vsel %vm1639_vm3, %v1671_v30, %v1607_v8  ;;  %v1574_v63 = vmul.f32 %v14169_v17, %v1414_v18  ;;  %v1355_v40 = vmul.f32 %v14182_v35, %v1323_v45  ;;  %v1292_v11 = vmul.f32 %v14208_v4, %v1260_v54 }
 0x12e   : > { %v1735_v38 = vadd.f32 1.0, %v1703_v25  ;;  %v1701_v53 = vsel %vm1637_vm4, %v1669_v49, %v1605_v31  ;;  %v1353_v5 = vmul.f32 %v14194_v10, %v1321_v22  ;;  %v1672_v12 = vsub.f32 0.0, %v1608_v60 }
 0x12f   : > { %v1733_v47 = vadd.f32 1.0, %v1701_v53  ;;  %v1606_v57 = vsub.f32 1.0, %v1574_v63  ;;  %v1387_v36 = vadd.f32 0.2548296, %v1355_v40  ;;  %v14261_v33 = vpop.f32.mrb[24].mxu0  ;;  %v14263_v26 = vpop.eup %13452  ;;  %vm1647_vm11 = vcmp.lt.f32.partialorder %v14167_v16, 0.0 }
 0x130   : > { %v1767_v17 = vmul.f32 %v1735_v38, %v14113_v7  ;;  %v1385_v8 = vadd.f32 0.2548296, %v1353_v5  ;;  %v1324_v30 = vadd.f32 -0.28449672, %v1292_v11  ;;  %v1258_v42 = vadd.f32 1.4214138, %v1226_v50 }
 0x131   : > { %v1765_v29 = vmul.f32 %v1733_v47, %v14134_v43  ;;  %v1704_v22 = vsel %vm1640_vm5, %v1672_v12, %v1608_v60  ;;  %v1670_v31 = vsub.f32 0.0, %v1606_v57  ;;  %v1419_v18 = vmul.f32 %v14182_v35, %v1387_v36  ;;  %v14270_v45 = vpop.f32.mrb[25].mxu0 }
 0x132   : > { %1799 = vst.msk [vmem:[#allocation5 + $0x10] sm:$0xff] %vm900_vm2, %v1767_v17  ;;  %v1736_v40 = vadd.f32 1.0, %v1704_v22  ;;  %v1417_v49 = vmul.f32 %v14194_v10, %v1385_v8  ;;  %v1356_v7 = vmul.f32 %v14208_v4, %v1324_v30  ;;  %v1290_v38 = vmul.f32 %v14223_v39, %v1258_v42  ;;  %v14276_v50 = vpop.f32.mrb[26].mxu0 }
 0x133   : > { %1797 = vst.msk [vmem:[#allocation5] sm:$0xff] %vm900_vm2, %v1765_v29  ;;  %v1702_v32 = vsel %vm1638_vm6, %v1670_v31, %v1606_v57  ;;  %v1579_v43 = vmul.f32 %v14201_v44, %v1419_v18  ;;  %v1167_v35 = vmul.f32 1.0614054, %v14263_v26  ;;  %v1529_v54 = vmul.f32 1.442695, %v14211_v14 }
 0x134   : > { %v14284_v25 = vpop.f32.mrb[27].mxu0  ;;  %v1768_v10 = vmul.f32 %v1736_v40, %v14158_v9  ;;  %v1734_v60 = vadd.f32 1.0, %v1702_v32  ;;  %v1577_v63 = vmul.f32 %v14215_v27, %v1417_v49  ;;  %v1388_v53 = vadd.f32 0.2548296, %v1356_v7 }
 0x135   : > { %v939_v5 = vmul.f32 0.5, %v14082_v58  ;;  %v1611_v11 = vsub.f32 1.0, %v1579_v43  ;;  %v1322_v47 = vadd.f32 -0.28449672, %v1290_v38  ;;  %v1199_v34 = vadd.f32 -1.4531521, %v1167_v35 }
 0x136   : > { %1800 = vst.msk [vmem:[#allocation5 + $0x18] sm:$0xff] %vm900_vm2, %v1768_v10  ;;  %v1766_v44 = vmul.f32 %v1734_v60, %v14185_v37  ;;  %v1609_v12 = vsub.f32 1.0, %v1577_v63  ;;  %v1420_v14 = vmul.f32 %v14208_v4, %v1388_v53  ;;  %v14293_v57 = vand.u32 2147483647, %v14190_v6 }
 0x137   : > { %v1675_v9 = vsub.f32 0.0, %v1611_v11  ;;  %v1354_v27 = vmul.f32 %v14223_v39, %v1322_v47  ;;  %v1231_v58 = vmul.f32 %v14263_v26, %v1199_v34  ;;  %v14298_v36 = vpop.f32.mrb[28].mxu0  ;;  %13454 = vpow2.f32 %v1529_v54 }
 0x138   : > { %1798 = vst.msk [vmem:[#allocation5 + $0x8] sm:$0xff] %vm900_vm2, %v1766_v44  ;;  %v1673_v37 = vsub.f32 0.0, %v1609_v12  ;;  %v1580_v17 = vmul.f32 %v14232_v24, %v1420_v14  ;;  %v1037_v4 = vmul.f32 0.3275911, %v14293_v57  ;;  %v14304_v8 = vpop.f32.mrb[29].mxu0  ;;  %v937_v49 = vmul.f32 0.5, %v14085_v59 }
 0x139   : > { %v1707_v30 = vsel %vm1643_vm7, %v1675_v9, %v1611_v11  ;;  %v1386_v0 = vadd.f32 0.2548296, %v1354_v27  ;;  %v1263_v42 = vadd.f32 1.4214138, %v1231_v58  ;;  %v14306_v29 = vpop.f32.mrb[30].mxu0  ;;  %v14322_v63 = vadd.f32 %v14047_v20, %v14125_v23 }
 0x13a   : > { %v1739_v22 = vadd.f32 1.0, %v1707_v30  ;;  %v1705_v31 = vsel %vm1641_vm8, %v1673_v37, %v1609_v12  ;;  %v1612_v18 = vsub.f32 1.0, %v1580_v17  ;;  %v1069_v40 = vadd.f32 1.0, %v1037_v4  ;;  %v14311_v38 = vpop.f32.mrb[31].mxu0 }
 0x13b   : > { %v1737_v1 = vadd.f32 1.0, %v1705_v31  ;;  %v1418_v7 = vmul.f32 %v14223_v39, %v1386_v0  ;;  %v1295_v24 = vmul.f32 %v14263_v26, %v1263_v42  ;;  %v14314_v35 = vmul.f32 0.70710677, %v14178_v21  ;;  %910 = vst.msk [vmem:[#allocation4 + $0x48] sm:$0xff] %vm900_vm2, %v14322_v63 }
 0x13c   : > { %v1771_v32 = vmul.f32 %v1739_v22, %v939_v5  ;;  %v1676_v43 = vsub.f32 0.0, %v1612_v18  ;;  %13456 = vrcp.f32 %v1069_v40  ;;  %v940_v53 = vmul.f32 0.5, %v14088_v61 }
 0x13d   : > { %v1769_v54 = vmul.f32 %v1737_v1, %v937_v49  ;;  %v1578_v10 = vmul.f32 %v14241_v28, %v1418_v7  ;;  %v1327_v60 = vadd.f32 -0.28449672, %v1295_v24  ;;  %v1008_v39 = vand.u32 2147483647, %v14314_v35 }
 0x13e   : > { %1803 = vst.msk [vmem:[#allocation5 + $0x30] sm:$0xff] %vm900_vm2, %v1771_v32  ;;  %v1708_v59 = vsel %vm1644_vm9, %v1676_v43, %v1612_v18  ;;  %v1453_v28 = vsub.f32 0.0, %v14293_v57  ;;  %v14331_v34 = vmul.f32 0.70710677, %v14322_v63  ;;  %v14335_v14 = vadd.f32 %v14136_v46, %v14047_v20 }
 0x13f   : > { %1801 = vst.msk [vmem:[#allocation5 + $0x20] sm:$0xff] %vm900_vm2, %v1769_v54  ;;  %v1740_v5 = vadd.f32 1.0, %v1708_v59  ;;  %v1610_v11 = vsub.f32 1.0, %v1578_v10  ;;  %v1359_v2 = vmul.f32 %v14263_v26, %v1327_v60  ;;  %v1040_v47 = vmul.f32 0.3275911, %v1008_v39 }
 0x140   : > { %v1006_v9 = vand.u32 2147483647, %v14331_v34  ;;  %915 = vst.msk [vmem:[#allocation4 + $0x70] sm:$0xff] %vm900_vm2, %v14335_v14  ;;  %v14344_v17 = vmul.f32 0.70710677, %v14335_v14  ;;  %v938_v46 = vmul.f32 0.5, %v14091_v62  ;;  %v1485_v0 = vmul.f32 %v1453_v28, %v14293_v57 }
 0x141   : > { %v1772_v44 = vmul.f32 %v1740_v5, %v940_v53  ;;  %v1674_v23 = vsub.f32 0.0, %v1610_v11  ;;  %v1391_v12 = vadd.f32 0.2548296, %v1359_v2  ;;  %v1072_v61 = vadd.f32 1.0, %v1040_v47  ;;  %v13455_v27 = vpop.eup %13454 }
 0x142   : > { %v1038_v13 = vmul.f32 0.3275911, %v1006_v9  ;;  %v1011_v42 = vand.u32 2147483647, %v14344_v17  ;;  %v14353_v40 = vadd.f32 %v14047_v20, %v14142_v52  ;;  %v1454_v1 = vsub.f32 0.0, %v1006_v9 }
 0x143   : > { %1804 = vst.msk [vmem:[#allocation5 + $0x38] sm:$0xff] %vm900_vm2, %v1772_v44  ;;  %v1706_v58 = vsel %vm1642_vm10, %v1674_v23, %v1610_v11  ;;  %v1423_v37 = vmul.f32 %v14263_v26, %v1391_v12  ;;  %13458 = vrcp.f32 %v1072_v61  ;;  %v1456_v26 = vsub.f32 0.0, %v1008_v39 }
 0x144   : > { %v1738_v4 = vadd.f32 1.0, %v1706_v58  ;;  %v1070_v18 = vadd.f32 1.0, %v1038_v13  ;;  %v1043_v7 = vmul.f32 0.3275911, %v1011_v42  ;;  %913 = vst.msk [vmem:[#allocation4 + $0x60] sm:$0xff] %vm900_vm2, %v14353_v40  ;;  %v14366_v60 = vadd.f32 %v14150_v56, %v14047_v20 }
 0x145   : > { %v1583_v30 = vmul.f32 %v13455_v27, %v1423_v37  ;;  %v14360_v57 = vmul.f32 0.70710677, %v14353_v40  ;;  %v1525_v43 = vmul.f32 1.442695, %v1485_v0  ;;  %v1488_v52 = vmul.f32 %v1456_v26, %v1008_v39 }
 0x146   : > { %v14349_v22 = vpop.eup %13456  ;;  %v1770_v31 = vmul.f32 %v1738_v4, %v938_v46  ;;  %13460 = vrcp.f32 %v1070_v18  ;;  %v1075_v54 = vadd.f32 1.0, %v1043_v7  ;;  %v1486_v5 = vmul.f32 %v1454_v1, %v1006_v9  ;;  %916 = vst.msk [vmem:[#allocation4 + $0x78] sm:$0xff] %vm900_vm2, %v14366_v60 }
 0x147   : > { %v1615_v49 = vsub.f32 1.0, %v1583_v30  ;;  %v1165_v62 = vmul.f32 1.0614054, %v14349_v22  ;;  %v1009_v10 = vand.u32 2147483647, %v14360_v57  ;;  %v14371_v11 = vadd.f32 %v14047_v20, %v14162_v3 }
 0x148   : > { %1802 = vst.msk [vmem:[#allocation5 + $0x28] sm:$0xff] %vm900_vm2, %v1770_v31  ;;  %v943_v2 = vmul.f32 0.5, %v14148_v55  ;;  %13462 = vrcp.f32 %v1075_v54  ;;  %v14377_v39 = vmul.f32 0.5, %v14174_v19  ;;  %v14380_v47 = vmul.f32 0.70710677, %v14366_v60 }
 0x149   : > { %v1679_v24 = vsub.f32 0.0, %v1615_v49  ;;  %v1197_v32 = vadd.f32 -1.4531521, %v1165_v62  ;;  %v1041_v16 = vmul.f32 0.3275911, %v1009_v10  ;;  %13464 = vpow2.f32 %v1525_v43  ;;  %914 = vst.msk [vmem:[#allocation4 + $0x68] sm:$0xff] %vm900_vm2, %v14371_v11 }
 0x14a   : > { %v1531_v44 = vmul.f32 1.442695, %v1488_v52  ;;  %v1459_v23 = vsub.f32 0.0, %v1011_v42  ;;  %v1527_v19 = vmul.f32 1.442695, %v1486_v5  ;;  %v1457_v58 = vsub.f32 0.0, %v1009_v10 }
 0x14b   : > { %v1711_v59 = vsel %vm1647_vm11, %v1679_v24, %v1615_v49  ;;  %v1229_v53 = vmul.f32 %v14349_v22, %v1197_v32  ;;  %v1073_v12 = vadd.f32 1.0, %v1041_v16  ;;  %v1012_v27 = vand.u32 2147483647, %v14380_v47 }
 0x14c   : > { %v1743_v28 = vadd.f32 1.0, %v1711_v59  ;;  %v14391_v37 = vmul.f32 0.70710677, %v14371_v11  ;;  %v14395_v46 = vadd.f32 %v14199_v41, %v14047_v20  ;;  %v14398_v13 = vmul.f32 0.5, %v14178_v21 }
 0x14d   : > { %v1261_v56 = vadd.f32 1.4214138, %v1229_v53  ;;  %v14384_v3 = vpop.eup %13458  ;;  %13466 = vrcp.f32 %v1073_v12  ;;  %v14402_v0 = vadd.f32 %v14047_v20, %v14205_v51  ;;  %v1491_v26 = vmul.f32 %v1459_v23, %v1011_v42 }
 0x14e   : > { %v1775_v55 = vmul.f32 %v1743_v28, %v943_v2  ;;  %v1168_v9 = vmul.f32 1.0614054, %v14384_v3  ;;  %13468 = vpow2.f32 %v1531_v44  ;;  %v1044_v18 = vmul.f32 0.3275911, %v1012_v27  ;;  %919 = vst.msk [vmem:[#allocation4 + $0x90] sm:$0xff] %vm900_vm2, %v14395_v46 }
 0x14f   : > { %v1293_v61 = vmul.f32 %v14349_v22, %v1261_v56  ;;  %v1010_v49 = vand.u32 2147483647, %v14391_v37  ;;  %13470 = vpow2.f32 %v1527_v19  ;;  %917 = vst.msk [vmem:[#allocation4 + $0x80] sm:$0xff] %vm900_vm2, %v14402_v0  ;;  %v1489_v51 = vmul.f32 %v1457_v58, %v1009_v10 }
 0x150   : > { %1807 = vst.msk [vmem:[#allocation5 + $0x50] sm:$0xff] %vm900_vm2, %v1775_v55  ;;  %v1200_v30 = vadd.f32 -1.4531521, %v1168_v9  ;;  %v14404_v31 = vpop.eup %13460  ;;  %v1076_v1 = vadd.f32 1.0, %v1044_v18  ;;  %v1460_v7 = vsub.f32 0.0, %v1012_v27  ;;  %v14416_v54 = vadd.f32 %v14213_v15, %v14047_v20 }
 0x151   : > { %v1325_v4 = vadd.f32 -0.28449672, %v1293_v61  ;;  %v1166_v62 = vmul.f32 1.0614054, %v14404_v31  ;;  %v1042_v42 = vmul.f32 0.3275911, %v1010_v49 }
 0x152   : > { %v1232_v21 = vmul.f32 %v14384_v3, %v1200_v30  ;;  %v14418_v52 = vpop.eup %13462  ;;  %vm1645_vm12 = vcmp.lt.f32.partialorder %v14190_v6, 0.0  ;;  %v14422_v59 = vmul.f32 0.5, %v14322_v63  ;;  %v14425_v53 = vmul.f32 0.5, %v14335_v14  ;;  %920 = vst.msk [vmem:[#allocation4 + $0x98] sm:$0xff] %vm900_vm2, %v14416_v54 }
 0x153   : > { %v1357_v41 = vmul.f32 %v14349_v22, %v1325_v4  ;;  %v1198_v43 = vadd.f32 -1.4531521, %v1166_v62  ;;  %13472 = vrcp.f32 %v1076_v1  ;;  %v1074_v10 = vadd.f32 1.0, %v1042_v42  ;;  %v13465_v5 = vpop.eup %13464 }
 0x154   : > { %v1264_v32 = vadd.f32 1.4214138, %v1232_v21  ;;  %v1171_v15 = vmul.f32 1.0614054, %v14418_v52  ;;  %v1537_v16 = vmul.f32 1.442695, %v1491_v26  ;;  %v1492_v56 = vmul.f32 %v1460_v7, %v1012_v27 }
 0x155   : > { %v1389_v24 = vadd.f32 0.2548296, %v1357_v41  ;;  %v1230_v20 = vmul.f32 %v14404_v31, %v1198_v43  ;;  %v1533_v63 = vmul.f32 1.442695, %v1489_v51  ;;  %v14434_v14 = vmul.f32 0.70710677, %v14395_v46 }
 0x156   : > { %v1296_v28 = vmul.f32 %v14384_v3, %v1264_v32  ;;  %v1203_v12 = vadd.f32 -1.4531521, %v1171_v15  ;;  %v14439_v61 = vmul.f32 0.5, %v14353_v40  ;;  %13474 = vrcp.f32 %v1074_v10 }
 0x157   : > { %v1421_v2 = vmul.f32 %v14349_v22, %v1389_v24  ;;  %v1262_v23 = vadd.f32 1.4214138, %v1230_v20  ;;  %v14436_v22 = vpop.eup %13466  ;;  %v1458_v9 = vsub.f32 0.0, %v1010_v49  ;;  %v1015_v19 = vand.u32 2147483647, %v14434_v14 }
 0x158   : > { %v1328_v44 = vadd.f32 -0.28449672, %v1296_v28  ;;  %v1235_v30 = vmul.f32 %v14418_v52, %v1203_v12  ;;  %v13469_v26 = vpop.eup %13468  ;;  %13476 = vpow2.f32 %v1537_v16  ;;  %v1169_v18 = vmul.f32 1.0614054, %v14436_v22 }
 0x159   : > { %v1581_v55 = vmul.f32 %v13465_v5, %v1421_v2  ;;  %v1294_v27 = vmul.f32 %v14404_v31, %v1262_v23  ;;  %v1539_v41 = vmul.f32 1.442695, %v1492_v56  ;;  %v1047_v21 = vmul.f32 0.3275911, %v1015_v19  ;;  %v13471_v62 = vpop.eup %13470 }
 0x15a   : > { %v1360_v4 = vmul.f32 %v14384_v3, %v1328_v44  ;;  %13478 = vpow2.f32 %v1533_v63  ;;  %vm1648_vm13 = vcmp.lt.f32.partialorder %v14314_v35, 0.0  ;;  %v1267_v7 = vadd.f32 1.4214138, %v1235_v30 }
 0x15b   : > { %v1613_v58 = vsub.f32 1.0, %v1581_v55  ;;  %v1326_v1 = vadd.f32 -0.28449672, %v1294_v27  ;;  %v1201_v42 = vadd.f32 -1.4531521, %v1169_v18  ;;  %v1490_v24 = vmul.f32 %v1458_v9, %v1010_v49 }
 0x15c   : > { %v1392_v51 = vadd.f32 0.2548296, %v1360_v4  ;;  %v1079_v32 = vadd.f32 1.0, %v1047_v21  ;;  %v14452_v2 = vmul.f32 0.70710677, %v14402_v0  ;;  %v1299_v15 = vmul.f32 %v14418_v52, %v1267_v7 }
 0x15d   : > { %v1677_v40 = vsub.f32 0.0, %v1613_v58  ;;  %v1358_v5 = vmul.f32 %v14404_v31, %v1326_v1  ;;  %v14454_v28 = vpop.eup %13472  ;;  %v1233_v16 = vmul.f32 %v14436_v22, %v1201_v42  ;;  %v1463_v56 = vsub.f32 0.0, %v1015_v19 }
 0x15e   : > { %v1424_v10 = vmul.f32 %v14384_v3, %v1392_v51  ;;  %13480 = vrcp.f32 %v1079_v32  ;;  %v1172_v6 = vmul.f32 1.0614054, %v14454_v28  ;;  %vm1646_vm14 = vcmp.lt.f32.partialorder %v14331_v34, 0.0 }
 0x15f   : > { %v1709_v43 = vsel %vm1645_vm12, %v1677_v40, %v1613_v58  ;;  %v1390_v63 = vadd.f32 0.2548296, %v1358_v5  ;;  %v1331_v55 = vadd.f32 -0.28449672, %v1299_v15  ;;  %v1265_v44 = vadd.f32 1.4214138, %v1233_v16 }
 0x160   : > { %v1741_v20 = vadd.f32 1.0, %v1709_v43  ;;  %v1584_v49 = vmul.f32 %v13469_v26, %v1424_v10  ;;  %v14462_v23 = vand.u32 2147483647, %v14452_v2  ;;  %v1204_v58 = vadd.f32 -1.4531521, %v1172_v6  ;;  %v14465_v4 = vpop.eup %13474 }
 0x161   : > { %v1422_v9 = vmul.f32 %v14404_v31, %v1390_v63  ;;  %13482 = vpow2.f32 %v1539_v41  ;;  %v1363_v27 = vmul.f32 %v14418_v52, %v1331_v55  ;;  %v1535_v30 = vmul.f32 1.442695, %v1490_v24 }
 0x162   : > { %v1773_v3 = vmul.f32 %v1741_v20, %v14377_v39  ;;  %v1616_v12 = vsub.f32 1.0, %v1584_v49  ;;  %v1297_v39 = vmul.f32 %v14436_v22, %v1265_v44  ;;  %v1045_v26 = vmul.f32 0.3275911, %v14462_v23  ;;  %v13477_v31 = vpop.eup %13476 }
 0x163   : > { %v1582_v21 = vmul.f32 %v13471_v62, %v1422_v9  ;;  %v1236_v40 = vmul.f32 %v14454_v28, %v1204_v58  ;;  %v1170_v51 = vmul.f32 1.0614054, %v14465_v4  ;;  %v1395_v1 = vadd.f32 0.2548296, %v1363_v27 }
 0x164   : > { %1805 = vst.msk [vmem:[#allocation5 + $0x40] sm:$0xff] %vm900_vm2, %v1773_v3  ;;  %v1680_v18 = vsub.f32 0.0, %v1616_v12  ;;  %v1329_v41 = vadd.f32 -0.28449672, %v1297_v39  ;;  %v1495_v7 = vmul.f32 %v1463_v56, %v1015_v19  ;;  %v1077_v42 = vadd.f32 1.0, %v1045_v26  ;;  %v13479_v32 = vpop.eup %13478 }
 0x165   : > { %v1614_v10 = vsub.f32 1.0, %v1582_v21  ;;  %vm1651_vm15 = vcmp.lt.f32.partialorder %v14344_v17, 0.0  ;;  %v1268_v24 = vadd.f32 1.4214138, %v1236_v40  ;;  %v1202_v5 = vadd.f32 -1.4531521, %v1170_v51 }
 0x166   : > { %v1712_v43 = vsel %vm1648_vm13, %v1680_v18, %v1616_v12  ;;  %v1427_v62 = vmul.f32 %v14418_v52, %v1395_v1  ;;  %v1361_v15 = vmul.f32 %v14436_v22, %v1329_v41  ;;  %13484 = vrcp.f32 %v1077_v42 }
 0x167   : > { %v1744_v20 = vadd.f32 1.0, %v1712_v43  ;;  %v1678_v16 = vsub.f32 0.0, %v1614_v10  ;;  %v1300_v49 = vmul.f32 %v14454_v28, %v1268_v24  ;;  %v1234_v19 = vmul.f32 %v14465_v4, %v1202_v5 }
 0x168   : > { %13486 = vpow2.f32 %v1535_v30  ;;  %v14480_v63 = vpop.eup %13480  ;;  %v1587_v6 = vmul.f32 %v13477_v31, %v1427_v62  ;;  %v1393_v56 = vadd.f32 0.2548296, %v1361_v15  ;;  %v1545_v3 = vmul.f32 1.442695, %v1495_v7  ;;  %v14498_v31 = vld [vmem:[%s19163_s2] ss:$0 sm:$0xff] }
 0x169   : > { %v1776_v35 = vmul.f32 %v1744_v20, %v14398_v13  ;;  %v1710_v55 = vsel %vm1646_vm14, %v1678_v16, %v1614_v10  ;;  %v1332_v52 = vadd.f32 -0.28449672, %v1300_v49  ;;  %v1266_v44 = vadd.f32 1.4214138, %v1234_v19 }
 0x16a   : > { %v1175_v12 = vmul.f32 1.0614054, %v14480_v63  ;;  %v1742_v9 = vadd.f32 1.0, %v1710_v55  ;;  %v1619_v58 = vsub.f32 1.0, %v1587_v6  ;;  %v1425_v27 = vmul.f32 %v14436_v22, %v1393_v56  ;;  %v19190_v22 = vld [vmem:[#allocation10_spill] sm:$0xff] }
 0x16b   : > { %1808 = vst.msk [vmem:[#allocation5 + $0x58] sm:$0xff] %vm900_vm2, %v1776_v35  ;;  %v1461_v39 = vsub.f32 0.0, %v14462_v23  ;;  %v13483_v30 = vpop.eup %13482  ;;  %v1364_v13 = vmul.f32 %v14454_v28, %v1332_v52  ;;  %v1298_v26 = vmul.f32 %v14465_v4, %v1266_v44  ;;  %v14492_v34 = vmul.f32 0.70710677, %v14416_v54 }
 0x16c   : > { %v1207_v18 = vadd.f32 -1.4531521, %v1175_v12  ;;  %v1774_v21 = vmul.f32 %v1742_v9, %v14422_v59  ;;  %v1683_v40 = vsub.f32 0.0, %v1619_v58  ;;  %v1585_v51 = vmul.f32 %v13479_v32, %v1425_v27 }
 0x16d   : > { %v14502_v1 = vadd.f32 %v14498_v31, %v19190_v22  ;;  %v1396_v41 = vadd.f32 0.2548296, %v1364_v13  ;;  %v1330_v7 = vadd.f32 -0.28449672, %v1298_v26  ;;  %v14506_v43 = vand.u32 2147483647, %v14492_v34 }
 0x16e   : > { %v1239_v42 = vmul.f32 %v14480_v63, %v1207_v18  ;;  %1806 = vst.msk [vmem:[#allocation5 + $0x48] sm:$0xff] %vm900_vm2, %v1774_v21  ;;  %v1715_v59 = vsel %vm1651_vm15, %v1683_v40, %v1619_v58  ;;  %v1617_v32 = vsub.f32 1.0, %v1585_v51  ;;  %vm1649_vm0 = vcmp.lt.f32.partialorder %v14360_v57, 0.0 }
 0x16f   : > { %v1493_v10 = vmul.f32 %v1461_v39, %v14462_v23  ;;  %918 = vst.msk [vmem:[#allocation4 + $0x88] sm:$0xff] %vm900_vm2, %v14502_v1  ;;  %v1747_v24 = vadd.f32 1.0, %v1715_v59  ;;  %v1428_v5 = vmul.f32 %v14454_v28, %v1396_v41  ;;  %v1362_v20 = vmul.f32 %v14465_v4, %v1330_v7  ;;  %v19191_v59 = vld [vmem:[#allocation11_spill] sm:$0xff] }
 0x170   : > { %v1271_v62 = vadd.f32 1.4214138, %v1239_v42  ;;  %v14517_v15 = vpop.eup %13484  ;;  %v1681_v16 = vsub.f32 0.0, %v1617_v32  ;;  %13488 = vpow2.f32 %v1545_v3  ;;  %v1048_v17 = vmul.f32 0.3275911, %v14506_v43 }
 0x171   : > { %v14521_v49 = vmul.f32 0.70710677, %v14502_v1  ;;  %v1779_v23 = vmul.f32 %v1747_v24, %v14425_v53  ;;  %v1588_v35 = vmul.f32 %v13483_v30, %v1428_v5  ;;  %v1394_v6 = vadd.f32 0.2548296, %v1362_v20 }
 0x172   : > { %v13487_v19 = vpop.eup %13486  ;;  %v1303_v56 = vmul.f32 %v14480_v63, %v1271_v62  ;;  %v1713_v28 = vsel %vm1649_vm0, %v1681_v16, %v1617_v32  ;;  %v1173_v55 = vmul.f32 1.0614054, %v14517_v15  ;;  %v1541_v52 = vmul.f32 1.442695, %v1493_v10  ;;  %v19192_v32 = vld [vmem:[#allocation12_spill] sm:$0xff] }
 0x173   : > { %v1080_v44 = vadd.f32 1.0, %v1048_v17  ;;  %1811 = vst.msk [vmem:[#allocation5 + $0x70] sm:$0xff] %vm900_vm2, %v1779_v23  ;;  %v1745_v3 = vadd.f32 1.0, %v1713_v28  ;;  %v1620_v12 = vsub.f32 1.0, %v1588_v35  ;;  %v1426_v9 = vmul.f32 %v14465_v4, %v1394_v6 }
 0x174   : > { %v1335_v58 = vadd.f32 -0.28449672, %v1303_v56  ;;  %v1205_v27 = vadd.f32 -1.4531521, %v1173_v55  ;;  %v14531_v53 = vand.u32 2147483647, %v14521_v49  ;;  %v14548_v10 = vadd.f32 %v14498_v31, %v19192_v32 }
 0x175   : > { %13490 = vrcp.f32 %v1080_v44  ;;  %v1777_v39 = vmul.f32 %v1745_v3, %v14439_v61  ;;  %v1684_v57 = vsub.f32 0.0, %v1620_v12  ;;  %v1586_v30 = vmul.f32 %v13487_v19, %v1426_v9  ;;  %v19193_v44 = vld [vmem:[#allocation13_spill] sm:$0xff] }
 0x176   : > { %v1367_v13 = vmul.f32 %v14480_v63, %v1335_v58  ;;  %v948_v26 = vmul.f32 0.5, %v14366_v60  ;;  %vm1652_vm1 = vcmp.lt.f32.partialorder %v14380_v47, 0.0  ;;  %v1237_v18 = vmul.f32 %v14517_v15, %v1205_v27  ;;  %921 = vst.msk [vmem:[#allocation4 + $0xa0] sm:$0xff] %vm900_vm2, %v14548_v10 }
 0x177   : > { %v1046_v4 = vmul.f32 0.3275911, %v14531_v53  ;;  %1809 = vst.msk [vmem:[#allocation5 + $0x60] sm:$0xff] %vm900_vm2, %v1777_v39  ;;  %v1716_v21 = vsel %vm1652_vm1, %v1684_v57, %v1620_v12  ;;  %v1618_v40 = vsub.f32 1.0, %v1586_v30  ;;  %13492 = vpow2.f32 %v1541_v52 }
 0x178   : > { %v1399_v51 = vadd.f32 0.2548296, %v1367_v13  ;;  %v1748_v22 = vadd.f32 1.0, %v1716_v21  ;;  %v1269_v61 = vadd.f32 1.4214138, %v1237_v18  ;;  %v1464_v41 = vsub.f32 0.0, %v14506_v43 }
 0x179   : > { %v1078_v7 = vadd.f32 1.0, %v1046_v4  ;;  %v1682_v42 = vsub.f32 0.0, %v1618_v40  ;;  %v14544_v47 = vadd.f32 %v14498_v31, %v19191_v59  ;;  %vm1650_vm3 = vcmp.lt.f32.partialorder %v14391_v37, 0.0 }
 0x17a   : > { %v1431_v60 = vmul.f32 %v14480_v63, %v1399_v51  ;;  %v13489_v24 = vpop.eup %13488  ;;  %v1780_v5 = vmul.f32 %v1748_v22, %v948_v26  ;;  %v1301_v20 = vmul.f32 %v14517_v15, %v1269_v61  ;;  %v946_v17 = vmul.f32 0.5, %v14371_v11 }
 0x17b   : > { %13494 = vrcp.f32 %v1078_v7  ;;  %v1714_v62 = vsel %vm1650_vm3, %v1682_v42, %v1618_v40  ;;  %923 = vst.msk [vmem:[#allocation4 + $0xb0] sm:$0xff] %vm900_vm2, %v14544_v47  ;;  %v14555_v63 = vmul.f32 0.70710677, %v14544_v47  ;;  %v1496_v35 = vmul.f32 %v1464_v41, %v14506_v43 }
 0x17c   : > { %v1591_v16 = vmul.f32 %v13489_v24, %v1431_v60  ;;  %1812 = vst.msk [vmem:[#allocation5 + $0x78] sm:$0xff] %vm900_vm2, %v1780_v5  ;;  %v1746_v19 = vadd.f32 1.0, %v1714_v62  ;;  %v1333_v37 = vadd.f32 -0.28449672, %v1301_v20  ;;  %v14564_v56 = vmul.f32 0.70710677, %v14548_v10 }
 0x17d   : > { %v1019_v6 = vand.u32 2147483647, %v14555_v63  ;;  %v14571_v3 = vadd.f32 %v14498_v31, %v19193_v44  ;;  %v14575_v11 = vadd.f32 %v14498_v31, %v14250_v48  ;;  %v1462_v9 = vsub.f32 0.0, %v14531_v53 }
 0x17e   : > { %v1623_v23 = vsub.f32 1.0, %v1591_v16  ;;  %v1778_v55 = vmul.f32 %v1746_v19, %v946_v17  ;;  %v1365_v52 = vmul.f32 %v14517_v15, %v1333_v37  ;;  %v951_v27 = vmul.f32 0.5, %v14395_v46 }
 0x17f   : > { %v14566_v28 = vpop.eup %13490  ;;  %v1051_v58 = vmul.f32 0.3275911, %v1019_v6  ;;  %vm1655_vm4 = vcmp.lt.f32.partialorder %v14434_v14, 0.0  ;;  %v1017_v57 = vand.u32 2147483647, %v14564_v56  ;;  %924 = vst.msk [vmem:[#allocation4 + $0xb8] sm:$0xff] %vm900_vm2, %v14571_v3  ;;  %v1494_v51 = vmul.f32 %v1462_v9, %v14531_v53 }
 0x180   : > { %v1687_v12 = vsub.f32 0.0, %v1623_v23  ;;  %v1176_v43 = vmul.f32 1.0614054, %v14566_v28  ;;  %1810 = vst.msk [vmem:[#allocation5 + $0x68] sm:$0xff] %vm900_vm2, %v1778_v55  ;;  %v1397_v39 = vadd.f32 0.2548296, %v1365_v52  ;;  %v14617_v44 = vadd.f32 %v14498_v31, %v14261_v33 }
 0x181   : > { %922 = vst.msk [vmem:[#allocation4 + $0xa8] sm:$0xff] %vm900_vm2, %v14575_v11  ;;  %v13493_v48 = vpop.eup %13492  ;;  %v1547_v26 = vmul.f32 1.442695, %v1496_v35  ;;  %v1083_v18 = vadd.f32 1.0, %v1051_v58  ;;  %v949_v21 = vmul.f32 0.5, %v14402_v0  ;;  %v1467_v42 = vsub.f32 0.0, %v1019_v6 }
 0x182   : > { %v1719_v30 = vsel %vm1655_vm4, %v1687_v12, %v1623_v23  ;;  %v1208_v13 = vadd.f32 -1.4531521, %v1176_v43  ;;  %v1429_v46 = vmul.f32 %v14517_v15, %v1397_v39  ;;  %v1049_v14 = vmul.f32 0.3275911, %v1017_v57  ;;  %927 = vst.msk [vmem:[#allocation4 + $0xd0] sm:$0xff] %vm900_vm2, %v14617_v44 }
 0x183   : > { %v1751_v4 = vadd.f32 1.0, %v1719_v30  ;;  %13496 = vrcp.f32 %v1083_v18  ;;  %v14592_v22 = vmul.f32 0.70710677, %v14571_v3  ;;  %vm1653_vm5 = vcmp.lt.f32.partialorder %v14452_v2, 0.0 }
 0x184   : > { %v1240_v40 = vmul.f32 %v14566_v28, %v1208_v13  ;;  %v1589_v7 = vmul.f32 %v13493_v48, %v1429_v46  ;;  %v1081_v60 = vadd.f32 1.0, %v1049_v14  ;;  %13498 = vpow2.f32 %v1547_v26 }
 0x185   : > { %v14594_v61 = vpop.eup %13494  ;;  %v1783_v41 = vmul.f32 %v1751_v4, %v951_v27  ;;  %v1020_v15 = vand.u32 2147483647, %v14592_v22  ;;  %v14601_v53 = vmul.f32 0.5, %v14416_v54  ;;  %v14605_v5 = vmul.f32 0.5, %v14502_v1 }
 0x186   : > { %v1272_v59 = vadd.f32 1.4214138, %v1240_v40  ;;  %v1174_v0 = vmul.f32 1.0614054, %v14594_v61  ;;  %v1621_v32 = vsub.f32 1.0, %v1589_v7  ;;  %13500 = vrcp.f32 %v1081_v60 }
 0x187   : > { %1815 = vst.msk [vmem:[#allocation5 + $0x90] sm:$0xff] %vm900_vm2, %v1783_v41  ;;  %v1052_v62 = vmul.f32 0.3275911, %v1020_v15  ;;  %v1543_v17 = vmul.f32 1.442695, %v1494_v51  ;;  %v1499_v19 = vmul.f32 %v1467_v42, %v1019_v6  ;;  %v14612_v54 = vmul.f32 0.5, %v14544_v47 }
 0x188   : > { %v1304_v24 = vmul.f32 %v14566_v28, %v1272_v59  ;;  %v1206_v20 = vadd.f32 -1.4531521, %v1174_v0  ;;  %v1685_v16 = vsub.f32 0.0, %v1621_v32  ;;  %v14608_v37 = vmul.f32 0.70710677, %v14575_v11  ;;  %v13330_v51 = vld [vmem:[%s19164_s3] sm:$0xff]  }
 0x189   : > { %v1084_v35 = vadd.f32 1.0, %v1052_v62  ;;  %v1465_v52 = vsub.f32 0.0, %v1017_v57  ;;  %v1553_v9 = vmul.f32 1.442695, %v1499_v19  ;;  %v14621_v58 = vmul.f32 0.5, %v14548_v10  ;;  %12329 = vmatprep.subr.bf16.mxu1 %v13330_v51 }
 0x18a   : > { %v1336_v23 = vadd.f32 -0.28449672, %v1304_v24  ;;  %v1238_v2 = vmul.f32 %v14594_v61, %v1206_v20  ;;  %v1717_v55 = vsel %vm1653_vm5, %v1685_v16, %v1621_v32  ;;  %v1018_v1 = vand.u32 2147483647, %v14608_v37  ;;  %12330 = vmatpush3.bf16.msra.mxu1 %v13330_v51 }
 0x18b   : > { %v1749_v12 = vadd.f32 1.0, %v1717_v55  ;;  %13502 = vrcp.f32 %v1084_v35  ;;  %v14629_v30 = vmul.f32 0.70710677, %v14617_v44  ;;  %vm1656_vm6 = vcmp.lt.f32.partialorder %v14492_v34, 0.0 }
 0x18c   : > { %v1368_v6 = vmul.f32 %v14566_v28, %v1336_v23  ;;  %v1270_v43 = vadd.f32 1.4214138, %v1238_v2  ;;  %13504 = vpow2.f32 %v1543_v17  ;;  %v1050_v47 = vmul.f32 0.3275911, %v1018_v1 }
 0x18d   : > { %v14625_v27 = vpop.eup %13496  ;;  %v1781_v39 = vmul.f32 %v1749_v12, %v949_v21  ;;  %v1497_v26 = vmul.f32 %v1465_v52, %v1017_v57  ;;  %v1468_v10 = vsub.f32 0.0, %v1020_v15  ;;  %v14636_v21 = vmul.f32 0.5, %v14571_v3 }
 0x18e   : > { %v1400_v48 = vadd.f32 0.2548296, %v1368_v6  ;;  %v1302_v33 = vmul.f32 %v14594_v61, %v1270_v43  ;;  %v1179_v13 = vmul.f32 1.0614054, %v14625_v27  ;;  %v1082_v18 = vadd.f32 1.0, %v1050_v47  ;;  %v13499_v4 = vpop.eup %13498 }
 0x18f   : > { %1813 = vst.msk [vmem:[#allocation5 + $0x80] sm:$0xff] %vm900_vm2, %v1781_v39  ;;  %v1023_v40 = vand.u32 2147483647, %v14629_v30  ;;  %v1466_v7 = vsub.f32 0.0, %v1018_v1  ;;  %v14646_v42 = vadd.f32 %v14498_v31, %v14270_v45  ;;  %v1549_v24 = vmul.f32 1.442695, %v1497_v26 }
 0x190   : > { %v1432_v46 = vmul.f32 %v14566_v28, %v1400_v48  ;;  %v1334_v14 = vadd.f32 -0.28449672, %v1302_v33  ;;  %v14642_v41 = vpop.eup %13500  ;;  %v1211_v57 = vadd.f32 -1.4531521, %v1179_v13  ;;  %13506 = vrcp.f32 %v1082_v18  ;;  %v13331_v28 = vld [vmem:[%s19164_s3 + $0x30] sm:$0xff]  }
 0x191   : > { %v1177_v59 = vmul.f32 1.0614054, %v14642_v41  ;;  %v1055_v0 = vmul.f32 0.3275911, %v1023_v40  ;;  %13508 = vpow2.f32 %v1553_v9  ;;  %v1500_v20 = vmul.f32 %v1468_v10, %v1020_v15  ;;  %925 = vst.msk [vmem:[#allocation4 + $0xc0] sm:$0xff] %vm900_vm2, %v14646_v42  ;;  %12285 = vmatprep.subr.bf16.mxu0 %v13331_v28 }
 0x192   : > { %v1592_v3 = vmul.f32 %v13499_v4, %v1432_v46  ;;  %v1366_v60 = vmul.f32 %v14594_v61, %v1334_v14  ;;  %v1243_v32 = vmul.f32 %v14625_v27, %v1211_v57  ;;  %12286 = vmatpush3.bf16.msra.mxu0 %v13331_v28  ;;  %vm1654_vm7 = vcmp.lt.f32.partialorder %v14521_v49, 0.0 }
 0x193   : > { %v1209_v16 = vadd.f32 -1.4531521, %v1177_v59  ;;  %v1087_v17 = vadd.f32 1.0, %v1055_v0  ;;  %v1498_v23 = vmul.f32 %v1466_v7, %v1018_v1  ;;  %v14658_v2 = vmul.f32 0.70710677, %v14646_v42 }
 0x194   : > { %v1624_v45 = vsub.f32 1.0, %v1592_v3  ;;  %v1398_v62 = vadd.f32 0.2548296, %v1366_v60  ;;  %v1275_v19 = vadd.f32 1.4214138, %v1243_v32  ;;  %v14662_v15 = vadd.f32 %v14498_v31, %v14276_v50 }
 0x195   : > { %v14664_v35 = vpop.eup %13502  ;;  %v1241_v12 = vmul.f32 %v14642_v41, %v1209_v16  ;;  %13510 = vrcp.f32 %v1087_v17  ;;  %v1471_v9 = vsub.f32 0.0, %v1023_v40  ;;  %v1021_v47 = vand.u32 2147483647, %v14658_v2 }
 0x196   : > { %v1688_v55 = vsub.f32 0.0, %v1624_v45  ;;  %v1430_v52 = vmul.f32 %v14594_v61, %v1398_v62  ;;  %v13505_v6 = vpop.eup %13504  ;;  %v1307_v43 = vmul.f32 %v14625_v27, %v1275_v19  ;;  %v1180_v1 = vmul.f32 1.0614054, %v14664_v35  ;;  %928 = vst.msk [vmem:[#allocation4 + $0xd8] sm:$0xff] %vm900_vm2, %v14662_v15 }
 0x197   : > { %v1273_v48 = vadd.f32 1.4214138, %v1241_v12  ;;  %v1555_v61 = vmul.f32 1.442695, %v1500_v20  ;;  %13512 = vpow2.f32 %v1549_v24  ;;  %v1551_v4 = vmul.f32 1.442695, %v1498_v23 }
 0x198   : > { %v1720_v50 = vsel %vm1656_vm6, %v1688_v55, %v1624_v45  ;;  %v1590_v39 = vmul.f32 %v13505_v6, %v1430_v52  ;;  %v1339_v13 = vadd.f32 -0.28449672, %v1307_v43  ;;  %v1212_v26 = vadd.f32 -1.4531521, %v1180_v1 }
 0x199   : > { %v1752_v33 = vadd.f32 1.0, %v1720_v50  ;;  %v1305_v18 = vmul.f32 %v14642_v41, %v1273_v48  ;;  %v1053_v46 = vmul.f32 0.3275911, %v1021_v47  ;;  %v1503_v7 = vmul.f32 %v1471_v9, %v1023_v40 }
 0x19a   : > { %v1622_v10 = vsub.f32 1.0, %v1590_v39  ;;  %v14676_v14 = vpop.eup %13506  ;;  %v1371_v57 = vmul.f32 %v14625_v27, %v1339_v13  ;;  %v1244_v34 = vmul.f32 %v14664_v35, %v1212_v26  ;;  %13514 = vpow2.f32 %v1555_v61 }
 0x19b   : > { %v1784_v51 = vmul.f32 %v1752_v33, %v14601_v53  ;;  %v1337_v3 = vadd.f32 -0.28449672, %v1305_v18  ;;  %v1178_v60 = vmul.f32 1.0614054, %v14676_v14  ;;  %v1085_v59 = vadd.f32 1.0, %v1053_v46  ;;  %v13509_v0 = vpop.eup %13508 }
 0x19c   : > { %v1686_v28 = vsub.f32 0.0, %v1622_v10  ;;  %v1403_v32 = vadd.f32 0.2548296, %v1371_v57  ;;  %v1276_v24 = vadd.f32 1.4214138, %v1244_v34  ;;  %vm1659_vm8 = vcmp.lt.f32.partialorder %v14555_v63, 0.0 }
 0x19d   : > { %1816 = vst.msk [vmem:[#allocation5 + $0x98] sm:$0xff] %vm900_vm2, %v1784_v51  ;;  %v14684_v20 = vmul.f32 0.70710677, %v14662_v15  ;;  %v1369_v40 = vmul.f32 %v14642_v41, %v1337_v3  ;;  %v1210_v45 = vadd.f32 -1.4531521, %v1178_v60  ;;  %13516 = vrcp.f32 %v1085_v59 }
 0x19e   : > { %v1718_v53 = vsel %vm1654_vm7, %v1686_v28, %v1622_v10  ;;  %v1435_v16 = vmul.f32 %v14625_v27, %v1403_v32  ;;  %v1308_v17 = vmul.f32 %v14664_v35, %v1276_v24  ;;  %v1469_v19 = vsub.f32 0.0, %v1021_v47 }
 0x19f   : > { %v1750_v62 = vadd.f32 1.0, %v1718_v53  ;;  %v14692_v23 = vpop.eup %13510  ;;  %v1401_v55 = vadd.f32 0.2548296, %v1369_v40  ;;  %v1242_v52 = vmul.f32 %v14676_v14, %v1210_v45  ;;  %v1561_v12 = vmul.f32 1.442695, %v1503_v7 }
 0x1a0   : > { %v14696_v49 = vand.u32 2147483647, %v14684_v20  ;;  %v1595_v43 = vmul.f32 %v13509_v0, %v1435_v16  ;;  %vm1657_vm9 = vcmp.lt.f32.partialorder %v14564_v56, 0.0  ;;  %v1340_v1 = vadd.f32 -0.28449672, %v1308_v17 }
 0x1a1   : > { %v1782_v6 = vmul.f32 %v1750_v62, %v14605_v5  ;;  %v1183_v27 = vmul.f32 1.0614054, %v14692_v23  ;;  %v1433_v9 = vmul.f32 %v14642_v41, %v1401_v55  ;;  %v1274_v50 = vadd.f32 1.4214138, %v1242_v52  ;;  %v13513_v48 = vpop.eup %13512 }
 0x1a2   : > { %13518 = vpow2.f32 %v1551_v4  ;;  %v1056_v39 = vmul.f32 0.3275911, %v14696_v49  ;;  %v1627_v61 = vsub.f32 1.0, %v1595_v43  ;;  %v1372_v33 = vmul.f32 %v14664_v35, %v1340_v1 }
 0x1a3   : > { %1814 = vst.msk [vmem:[#allocation5 + $0x88] sm:$0xff] %vm900_vm2, %v1782_v6  ;;  %v1215_v13 = vadd.f32 -1.4531521, %v1183_v27  ;;  %v1501_v5 = vmul.f32 %v1469_v19, %v1021_v47  ;;  %v1593_v26 = vmul.f32 %v13513_v48, %v1433_v9  ;;  %v1306_v10 = vmul.f32 %v14676_v14, %v1274_v50 }
 0x1a4   : > { %v1088_v18 = vadd.f32 1.0, %v1056_v39  ;;  %v14708_v46 = vadd.f32 %v14498_v31, %v14284_v25  ;;  %v1691_v41 = vsub.f32 0.0, %v1627_v61  ;;  %v1404_v4 = vadd.f32 0.2548296, %v1372_v33  ;;  %v13515_v7 = vpop.eup %13514 }
 0x1a5   : > { %v1247_v51 = vmul.f32 %v14692_v23, %v1215_v13  ;;  %13520 = vpow2.f32 %v1561_v12  ;;  %v1625_v57 = vsub.f32 1.0, %v1593_v26  ;;  %vm1660_vm10 = vcmp.lt.f32.partialorder %v14592_v22, 0.0 }
 0x1a6   : > { %v14713_v34 = vmul.f32 0.5, %v14575_v11  ;;  %v1338_v47 = vadd.f32 -0.28449672, %v1306_v10  ;;  %13522 = vrcp.f32 %v1088_v18  ;;  %926 = vst.msk [vmem:[#allocation4 + $0xc8] sm:$0xff] %vm900_vm2, %v14708_v46  ;;  %v1723_v25 = vsel %vm1659_vm8, %v1691_v41, %v1627_v61 }
 0x1a7   : > { %v1436_v28 = vmul.f32 %v14664_v35, %v1404_v4  ;;  %v1279_v3 = vadd.f32 1.4214138, %v1247_v51  ;;  %v1557_v60 = vmul.f32 1.442695, %v1501_v5  ;;  %v14720_v59 = vpop.eup %13516  ;;  %v1755_v0 = vadd.f32 1.0, %v1723_v25 }
 0x1a8   : > { %v1689_v32 = vsub.f32 0.0, %v1625_v57  ;;  %v1370_v11 = vmul.f32 %v14676_v14, %v1338_v47  ;;  %v14724_v24 = vmul.f32 0.70710677, %v14708_v46  ;;  %v1181_v45 = vmul.f32 1.0614054, %v14720_v59 }
 0x1a9   : > { %v1596_v53 = vmul.f32 %v13515_v7, %v1436_v28  ;;  %v1311_v40 = vmul.f32 %v14692_v23, %v1279_v3  ;;  %v1472_v63 = vsub.f32 0.0, %v14696_v49  ;;  %v1787_v35 = vmul.f32 %v1755_v0, %v14612_v54 }
 0x1aa   : > { %v1721_v62 = vsel %vm1657_vm9, %v1689_v32, %v1625_v57  ;;  %v1402_v16 = vadd.f32 0.2548296, %v1370_v11  ;;  %v1022_v17 = vand.u32 2147483647, %v14724_v24  ;;  %vm1658_vm11 = vcmp.lt.f32.partialorder %v14608_v37, 0.0 }
 0x1ab   : > { %v1753_v19 = vadd.f32 1.0, %v1721_v62  ;;  %v1628_v55 = vsub.f32 1.0, %v1596_v53  ;;  %v1343_v52 = vadd.f32 -0.28449672, %v1311_v40  ;;  %v1213_v12 = vadd.f32 -1.4531521, %v1181_v45 }
 0x1ac   : > { %v13519_v6 = vpop.eup %13518  ;;  %1819 = vst.msk [vmem:[#allocation5 + $0xb0] sm:$0xff] %vm900_vm2, %v1787_v35  ;;  %v1434_v43 = vmul.f32 %v14676_v14, %v1402_v16  ;;  %v14737_v1 = vmul.f32 0.5, %v14617_v44  ;;  %13524 = vpow2.f32 %v1557_v60  ;;  %v1054_v56 = vmul.f32 0.3275911, %v1022_v17 }
 0x1ad   : > { %v1785_v54 = vmul.f32 %v1753_v19, %v14621_v58  ;;  %v1692_v27 = vsub.f32 0.0, %v1628_v55  ;;  %v1375_v9 = vmul.f32 %v14692_v23, %v1343_v52  ;;  %v1245_v50 = vmul.f32 %v14720_v59, %v1213_v12 }
 0x1ae   : > { %v1594_v39 = vmul.f32 %v13519_v6, %v1434_v43  ;;  %v1504_v48 = vmul.f32 %v1472_v63, %v14696_v49  ;;  %v1086_v61 = vadd.f32 1.0, %v1054_v56  ;;  %v14745_v33 = vadd.f32 %v14498_v31, %v14298_v36 }
 0x1af   : > { %v13521_v14 = vpop.eup %13520  ;;  %1817 = vst.msk [vmem:[#allocation5 + $0xa0] sm:$0xff] %vm900_vm2, %v1785_v54  ;;  %v1724_v44 = vsel %vm1660_vm10, %v1692_v27, %v1628_v55  ;;  %v1407_v58 = vadd.f32 0.2548296, %v1375_v9  ;;  %v1277_v13 = vadd.f32 1.4214138, %v1245_v50  ;;  %v14752_v5 = vadd.f32 %v14498_v31, %v14304_v8 }
 0x1b0   : > { %v14754_v26 = vpop.eup %13522  ;;  %v1756_v49 = vadd.f32 1.0, %v1724_v44  ;;  %v1626_v10 = vsub.f32 1.0, %v1594_v39  ;;  %13526 = vrcp.f32 %v1086_v61  ;;  %v1470_v18 = vsub.f32 0.0, %v1022_v17  ;;  %931 = vst.msk [vmem:[#allocation4 + $0xf0] sm:$0xff] %vm900_vm2, %v14745_v33 }
 0x1b1   : > { %v1439_v36 = vmul.f32 %v14692_v23, %v1407_v58  ;;  %vm1663_vm12 = vcmp.lt.f32.partialorder %v14629_v30, 0.0  ;;  %v1309_v22 = vmul.f32 %v14720_v59, %v1277_v13  ;;  %v1184_v41 = vmul.f32 1.0614054, %v14754_v26  ;;  %929 = vst.msk [vmem:[#allocation4 + $0xe0] sm:$0xff] %vm900_vm2, %v14752_v5  ;;  %v13332_v13 = vld [vmem:[%s19164_s3 + $0x8] sm:$0xff]  }
 0x1b2   : > { %v1788_v8 = vmul.f32 %v1756_v49, %v14636_v21  ;;  %v1690_v4 = vsub.f32 0.0, %v1626_v10  ;;  %v14766_v51 = vmul.f32 0.5, %v14646_v42  ;;  %v14769_v57 = vmul.f32 0.70710677, %v14745_v33  ;;  %12331 = vmatprep.subr.bf16.mxu1 %v13332_v13 }
 0x1b3   : > { %v1599_v47 = vmul.f32 %v13521_v14, %v1439_v36  ;;  %v1341_v23 = vadd.f32 -0.28449672, %v1309_v22  ;;  %v1216_v7 = vadd.f32 -1.4531521, %v1184_v41  ;;  %v1563_v25 = vmul.f32 1.442695, %v1504_v48  ;;  %12332 = vmatpush3.bf16.msra.mxu1 %v13332_v13 }
 0x1b4   : > { %1820 = vst.msk [vmem:[#allocation5 + $0xb8] sm:$0xff] %vm900_vm2, %v1788_v8  ;;  %v1722_v28 = vsel %vm1658_vm11, %v1690_v4, %v1626_v10  ;;  %v1502_v3 = vmul.f32 %v1470_v18, %v1022_v17  ;;  %v1027_v60 = vand.u32 2147483647, %v14769_v57  ;;  %v14776_v21 = vmul.f32 0.70710677, %v14752_v5  ;;  %v1830_v14 = vld [vmem:[#allocation5 + $0x8] sm:$0xff] }
 0x1b5   : > { %v1754_v42 = vadd.f32 1.0, %v1722_v28  ;;  %v1631_v0 = vsub.f32 1.0, %v1599_v47  ;;  %v1373_v32 = vmul.f32 %v14720_v59, %v1341_v23  ;;  %v1248_v11 = vmul.f32 %v14754_v26, %v1216_v7  ;;  %v1829_v18 = vld [vmem:[#allocation5] sm:$0xff] }
 0x1b6   : > { %v13525_v53 = vpop.eup %13524  ;;  %v14781_v40 = vmul.f32 0.5, %v14662_v15  ;;  %v1059_v45 = vmul.f32 0.3275911, %v1027_v60  ;;  %v1475_v63 = vsub.f32 0.0, %v1027_v60  ;;  %v1025_v37 = vand.u32 2147483647, %v14776_v21 }
 0x1b7   : > { %v1786_v35 = vmul.f32 %v1754_v42, %v14713_v34  ;;  %v1695_v62 = vsub.f32 0.0, %v1631_v0  ;;  %v1405_v16 = vadd.f32 0.2548296, %v1373_v32  ;;  %v1280_v17 = vadd.f32 1.4214138, %v1248_v11 }
 0x1b8   : > { %vm1661_vm13 = vcmp.lt.f32.partialorder %v14658_v2, 0.0  ;;  %13528 = vpow2.f32 %v1563_v25  ;;  %v1559_v19 = vmul.f32 1.442695, %v1502_v3  ;;  %v1091_v55 = vadd.f32 1.0, %v1059_v45  ;;  %v1832_v2 = vld [vmem:[#allocation5 + $0x18] sm:$0xff]  ;;  %v13335_v45 = vld [vmem:[%s19164_s3 + $0x40] sm:$0xff]  }
 0x1b9   : > { %v1057_v52 = vmul.f32 0.3275911, %v1025_v37  ;;  %1818 = vst.msk [vmem:[#allocation5 + $0xa8] sm:$0xff] %vm900_vm2, %v1786_v35  ;;  %v1727_v15 = vsel %vm1663_vm12, %v1695_v62, %v1631_v0  ;;  %v1437_v12 = vmul.f32 %v14720_v59, %v1405_v16  ;;  %v1312_v6 = vmul.f32 %v14754_v26, %v1280_v17  ;;  %v1831_v16 = vld [vmem:[#allocation5 + $0x10] sm:$0xff] }
 0x1ba   : > { %v14793_v34 = vadd.f32 %v14498_v31, %v14306_v29  ;;  %v14795_v43 = vpop.eup %13526  ;;  %v1759_v56 = vadd.f32 1.0, %v1727_v15  ;;  %13530 = vrcp.f32 %v1091_v55  ;;  %v1507_v54 = vmul.f32 %v1475_v63, %v1027_v60 }
 0x1bb   : > { %v1089_v27 = vadd.f32 1.0, %v1057_v52  ;;  %v1597_v9 = vmul.f32 %v13525_v53, %v1437_v12  ;;  %v1344_v50 = vadd.f32 -0.28449672, %v1312_v6  ;;  %v14798_v39 = vmul.f32 0.5, %v14708_v46 }
 0x1bc   : > { %v1182_v30 = vmul.f32 1.0614054, %v14795_v43  ;;  %932 = vst.msk [vmem:[#allocation4 + $0xf8] sm:$0xff] %vm900_vm2, %v14793_v34  ;;  %v1791_v59 = vmul.f32 %v1759_v56, %v14737_v1  ;;  %v14805_v29 = vmul.f32 0.5, %v14745_v33  ;;  %v1473_v48 = vsub.f32 0.0, %v1025_v37  ;;  %v13333_v1 = vld [vmem:[%s19164_s3 + $0x38] sm:$0xff]  }
 0x1bd   : > { %v14808_v61 = vmul.f32 0.70710677, %v14793_v34  ;;  %v1629_v44 = vsub.f32 1.0, %v1597_v9  ;;  %v1376_v58 = vmul.f32 %v14754_v26, %v1344_v50  ;;  %13532 = vrcp.f32 %v1089_v27  ;;  %12287 = vmatprep.subr.bf16.mxu0 %v13333_v1 }
 0x1be   : > { %v1214_v46 = vadd.f32 -1.4531521, %v1182_v30  ;;  %1823 = vst.msk [vmem:[#allocation5 + $0xd0] sm:$0xff] %vm900_vm2, %v1791_v59  ;;  %13534 = vpow2.f32 %v1559_v19  ;;  %v1569_v33 = vmul.f32 1.442695, %v1507_v54  ;;  %v14821_v10 = vadd.f32 %v14498_v31, %v14311_v38  ;;  %12288 = vmatpush3.bf16.msra.mxu0 %v13333_v1 }
 0x1bf   : > { %v1028_v49 = vand.u32 2147483647, %v14808_v61  ;;  %v1693_v36 = vsub.f32 0.0, %v1629_v44  ;;  %v1408_v22 = vadd.f32 0.2548296, %v1376_v58  ;;  %v14824_v8 = vpack.c.bf16 %v1830_v14, %v1829_v18  ;;  %12289 = vmatprep.subr.bf16.mxu0 %v13335_v45  ;;  %v13337_v58 = vld [vmem:[%s19164_s3 + $0x48] sm:$0xff]  }
 0x1c0   : > { %v1246_v41 = vmul.f32 %v14795_v43, %v1214_v46  ;;  %vm1664_vm14 = vcmp.lt.f32.partialorder %v14684_v20, 0.0  ;;  %v14828_v4 = vmul.f32 0.5, %v14752_v5  ;;  %v1505_v47 = vmul.f32 %v1473_v48, %v1025_v37  ;;  %930 = vst.msk [vmem:[#allocation4 + $0xe8] sm:$0xff] %vm900_vm2, %v14821_v10 }
 0x1c1   : > { %v1060_v23 = vmul.f32 0.3275911, %v1028_v49  ;;  %v1476_v7 = vsub.f32 0.0, %v1028_v49  ;;  %v1725_v38 = vsel %vm1661_vm13, %v1693_v36, %v1629_v44  ;;  %v1440_v31 = vmul.f32 %v14754_v26, %v1408_v22  ;;  %v13334_v26 = vld [vmem:[%s19164_s3 + $0x10] sm:$0xff]   ;;  %v13336_v44 = vld [vmem:[%s19164_s3 + $0x18] sm:$0xff]  }
 0x1c2   : > { %v1278_v25 = vadd.f32 1.4214138, %v1246_v41  ;;  %v14836_v28 = vmul.f32 0.70710677, %v14821_v10  ;;  %v13529_v3 = vpop.eup %13528  ;;  %v1757_v5 = vadd.f32 1.0, %v1725_v38  ;;  %v1894_v0 = vshrl.u32 %v14824_v8, 16  ;;  %12333 = vmatprep.subr.bf16.mxu1 %v13334_v26  ;;  %12290 = vmatpush3.bf16.msra.mxu0 %v13335_v45 }
 0x1c3   : > { %v1092_v60 = vadd.f32 1.0, %v1060_v23  ;;  %v1508_v42 = vmul.f32 %v1476_v7, %v1028_v49  ;;  %v1600_v32 = vmul.f32 %v13529_v3, %v1440_v31  ;;  %13536 = vpow2.f32 %v1569_v33  ;;  %12334 = vmatpush3.bf16.msra.mxu1 %v13334_v26  ;;  %v1834_v49 = vld [vmem:[#allocation5 + $0x28] sm:$0xff]  ;;  %v1836_v41 = vld [vmem:[#allocation5 + $0x38] sm:$0xff]  ;;  %v1833_v7 = vld [vmem:[#allocation5 + $0x20] sm:$0xff]  ;;  %12291 = vmatprep.subr.bf16.mxu0 %v13337_v58 }
 0x1c4   : > { %v1310_v11 = vmul.f32 %v14795_v43, %v1278_v25  ;;  %v1026_v53 = vand.u32 2147483647, %v14836_v28  ;;  %v14847_v63 = vpop.eup %13530  ;;  %v1789_v37 = vmul.f32 %v1757_v5, %v14766_v51  ;;  %v1565_v35 = vmul.f32 1.442695, %v1505_v47  ;;  %12335 = vmatprep.subr.bf16.mxu1 %v13336_v44  ;;  %v1835_v5 = vld [vmem:[#allocation5 + $0x30] sm:$0xff] }
 0x1c5   : > { %13538 = vrcp.f32 %v1092_v60  ;;  %v1896_v62 = vrot.slane %v1894_v0, 7  ;;  %v1632_v17 = vsub.f32 1.0, %v1600_v32  ;;  %v1187_v55 = vmul.f32 1.0614054, %v14847_v63 }
 0x1c6   : > { %v1342_v19 = vadd.f32 -0.28449672, %v1310_v11  ;;  %v1474_v52 = vsub.f32 0.0, %v1026_v53  ;;  %1821 = vst.msk [vmem:[#allocation5 + $0xc0] sm:$0xff] %vm900_vm2, %v1789_v37  ;;  %v1571_v15 = vmul.f32 1.442695, %v1508_v42  ;;  %v14855_v51 = vpack.c.bf16 %v1832_v2, %v1831_v16  ;;  %12292 = vmatpush3.bf16.msra.mxu0 %v13337_v58 }
 0x1c7   : > { %v1058_v12 = vmul.f32 0.3275911, %v1026_v53  ;;  %v1897_v6 = vshll.u32 %v14824_v8, 16  ;;  %v14857_v56 = vpop.eup %13532  ;;  %v1696_v54 = vsub.f32 0.0, %v1632_v17  ;;  %v1219_v9 = vadd.f32 -1.4531521, %v1187_v55  ;;  %12336 = vmatpush3.bf16.msra.mxu1 %v13336_v44 }
 0x1c8   : > { %v1374_v27 = vmul.f32 %v14795_v43, %v1342_v19  ;;  %v1506_v50 = vmul.f32 %v1474_v52, %v1026_v53  ;;  %v13535_v30 = vpop.eup %13534  ;;  %v1185_v59 = vmul.f32 1.0614054, %v14857_v56  ;;  %13540 = vpow2.f32 %v1565_v35  ;;  %v13339_v53 = vld [vmem:[%s19164_s3 + $0x50] sm:$0xff]   ;;  %v1838_v35 = vld [vmem:[#allocation5 + $0x48] sm:$0xff] }
 0x1c9   : > { %v1090_v48 = vadd.f32 1.0, %v1058_v12  ;;  %v1899_v14 = vor.u32 %v1897_v6, %v1896_v62  ;;  %v1728_v46 = vsel %vm1664_vm14, %v1696_v54, %v1632_v17  ;;  %v1251_v1 = vmul.f32 %v14847_v63, %v1219_v9  ;;  %12293 = vmatprep.subr.bf16.mxu0 %v13339_v53 }
 0x1ca   : > { %v1406_v13 = vadd.f32 0.2548296, %v1374_v27  ;;  %v1567_v33 = vmul.f32 1.442695, %v1506_v50  ;;  %v1760_v18 = vadd.f32 1.0, %v1728_v46  ;;  %vm1662_vm15 = vcmp.lt.f32.partialorder %v14724_v24, 0.0  ;;  %12294 = vmatpush3.bf16.msra.mxu0 %v13339_v53 }
 0x1cb   : > { %v1217_v36 = vadd.f32 -1.4531521, %v1185_v59  ;;  %13542 = vrcp.f32 %v1090_v48  ;;  %2005 = vrot.lane.b32.xlu0 %v1899_v14, %s19177_s17  ;;  %v1901_v22 = vshrl.u32 %v14855_v51, 16  ;;  %v1283_v47 = vadd.f32 1.4214138, %v1251_v1  ;;  %v13341_v59 = vld [vmem:[%s19164_s3 + $0x58] sm:$0xff]  }
 0x1cc   : > { %v1438_v20 = vmul.f32 %v14795_v43, %v1406_v13  ;;  %13544 = vpow2.f32 %v1571_v15  ;;  %v1904_v23 = vshll.u32 %v14855_v51, 16  ;;  %v1792_v38 = vmul.f32 %v1760_v18, %v14781_v40  ;;  %v13338_v40 = vld [vmem:[%s19164_s3 + $0x20] sm:$0xff]   ;;  %v1840_v18 = vld [vmem:[#allocation5 + $0x58] sm:$0xff]  ;;  %12295 = vmatprep.subr.bf16.mxu0 %v13341_v59 }
 0x1cd   : > { %v1249_v31 = vmul.f32 %v14857_v56, %v1217_v36  ;;  %v1903_v25 = vrot.slane %v1901_v22, 7  ;;  %v14879_v3 = vpack.c.bf16 %v1834_v49, %v1833_v7  ;;  %v14881_v60 = vpop.eup %13536  ;;  %v1315_v42 = vmul.f32 %v14847_v63, %v1283_v47  ;;  %12337 = vmatprep.subr.bf16.mxu1 %v13338_v40 }
 0x1ce   : > { %v1598_v43 = vmul.f32 %v13535_v30, %v1438_v20  ;;  %v2104_v32 = vrot.slane %v1897_v6, 1  ;;  %v14884_v11 = vpack.c.bf16 %v1836_v41, %v1835_v5  ;;  %1824 = vst.msk [vmem:[#allocation5 + $0xd8] sm:$0xff] %vm900_vm2, %v1792_v38  ;;  %13546 = vpow2.f32 %v1567_v33  ;;  %v1837_v6 = vld [vmem:[#allocation5 + $0x40] sm:$0xff]  ;;  %12338 = vmatpush3.bf16.msra.mxu1 %v13338_v40  ;;  %v13340_v30 = vld [vmem:[%s19164_s3 + $0x28] sm:$0xff]   ;;  %12296 = vmatpush3.bf16.msra.mxu0 %v13341_v59 }
 0x1cf   : > { %v14892_v2 = vpop.eup %13538  ;;  %v1281_v26 = vadd.f32 1.4214138, %v1249_v31  ;;  %v1906_v45 = vor.u32 %v1904_v23, %v1903_v25  ;;  %v1908_v37 = vshrl.u32 %v14879_v3, 16  ;;  %v1347_v16 = vadd.f32 -0.28449672, %v1315_v42  ;;  %12339 = vmatprep.subr.bf16.mxu1 %v13340_v30 }
 0x1d0   : > { %v1630_v62 = vsub.f32 1.0, %v1598_v43  ;;  %v1188_v17 = vmul.f32 1.0614054, %v14892_v2  ;;  %v1915_v19 = vshrl.u32 %v14884_v11, 16  ;;  %v1911_v15 = vshll.u32 %v14879_v3, 16 }
 0x1d1   : > { %v1313_v55 = vmul.f32 %v14857_v56, %v1281_v26  ;;  %2007 = vrot.lane.b32.xlu0 %v1906_v45, %s19177_s17  ;;  %v1910_v52 = vrot.slane %v1908_v37, 7  ;;  %v1918_v12 = vshll.u32 %v14884_v11, 16  ;;  %v1379_v27 = vmul.f32 %v14847_v63, %v1347_v16  ;;  %v1842_v45 = vld [vmem:[#allocation5 + $0x68] sm:$0xff] }
 0x1d2   : > { %v1694_v54 = vsub.f32 0.0, %v1630_v62  ;;  %v1220_v9 = vadd.f32 -1.4531521, %v1188_v17  ;;  %v1917_v50 = vrot.slane %v1915_v19, 7  ;;  %v13541_v48 = vpop.eup %13540  ;;  %v2106_v58 = vrot.slane %v1904_v23, 1  ;;  %v1839_v23 = vld [vmem:[#allocation5 + $0x50] sm:$0xff]  ;;  %12340 = vmatpush3.bf16.msra.mxu1 %v13340_v30 }
 0x1d3   : > { %v1345_v14 = vadd.f32 -0.28449672, %v1313_v55  ;;  %v1913_v44 = vor.u32 %v1911_v15, %v1910_v52  ;;  %v14913_v46 = vpack.c.bf16 %v1838_v35, %v1837_v6  ;;  %v1411_v1 = vadd.f32 0.2548296, %v1379_v27  ;;  %v1844_v35 = vld [vmem:[#allocation5 + $0x78] sm:$0xff] }
 0x1d4   : > { %v1726_v13 = vsel %vm1662_vm15, %v1694_v54, %v1630_v62  ;;  %v1252_v33 = vmul.f32 %v14892_v2, %v1220_v9  ;;  %v1920_v49 = vor.u32 %v1918_v12, %v1917_v50  ;;  %vm1667_vm0 = vcmp.lt.f32.partialorder %v14769_v57, 0.0 }
 0x1d5   : > { %v14920_v36 = vpop.eup %13542  ;;  %v1758_v41 = vadd.f32 1.0, %v1726_v13  ;;  %v1377_v20 = vmul.f32 %v14857_v56, %v1345_v14  ;;  %2009 = vrot.lane.b32.xlu1 %v1913_v44, %s19177_s17  ;;  %v2105_v24 = vor.u32 %v2104_v32, %v1894_v0  ;;  %v1922_v47 = vshrl.u32 %v14913_v46, 16 }
 0x1d6   : > { %v14928_v7 = vpop.eup %13544  ;;  %v1443_v38 = vmul.f32 %v14847_v63, %v1411_v1  ;;  %v1284_v31 = vadd.f32 1.4214138, %v1252_v33  ;;  %v1186_v25 = vmul.f32 1.0614054, %v14920_v36  ;;  %2011 = vrot.lane.b32.xlu0 %v1920_v49, %s19177_s17  ;;  %v1925_v5 = vshll.u32 %v14913_v46, 16  ;;  %v14942_v63 = vld [vmem:[%s19164_s3 + $0x60] sm:$0xff]  }
 0x1d7   : > { %v1790_v43 = vmul.f32 %v1758_v41, %v14798_v39  ;;  %v1409_v42 = vadd.f32 0.2548296, %v1377_v20  ;;  %v1924_v0 = vrot.slane %v1922_v47, 7  ;;  %v14937_v32 = vpack.c.bf16 %v1840_v18, %v1839_v23  ;;  %12373 = vmatprep.subr.bf16.mxu1 %v14942_v63 }
 0x1d8   : > { %v1603_v40 = vmul.f32 %v14881_v60, %v1443_v38  ;;  %vm1665_vm1 = vcmp.lt.f32.partialorder %v14776_v21, 0.0  ;;  %v1316_v53 = vmul.f32 %v14892_v2, %v1284_v31  ;;  %v1218_v26 = vadd.f32 -1.4531521, %v1186_v25  ;;  %v14949_v62 = vpop.eup %13546 }
 0x1d9   : > { %v2107_v39 = vor.u32 %v2106_v58, %v1901_v22  ;;  %1822 = vst.msk [vmem:[#allocation5 + $0xc8] sm:$0xff] %vm900_vm2, %v1790_v43  ;;  %v1441_v16 = vmul.f32 %v14857_v56, %v1409_v42  ;;  %v2108_v17 = vrot.slane %v1911_v15, 1  ;;  %2136 = vrot.lane.b32.xlu1 %v2105_v24, %s19175_s15  ;;  %v1927_v60 = vor.u32 %v1925_v5, %v1924_v0  ;;  %v1841_v56 = vld [vmem:[#allocation5 + $0x60] sm:$0xff]  ;;  %v1843_v15 = vld [vmem:[#allocation5 + $0x70] sm:$0xff]  ;;  %v1846_v43 = vld [vmem:[#allocation5 + $0x88] sm:$0xff] }
 0x1da   : > { %v1929_v55 = vshrl.u32 %v14937_v32, 16  ;;  %v1635_v22 = vsub.f32 1.0, %v1603_v40  ;;  %v1348_v52 = vadd.f32 -0.28449672, %v1316_v53  ;;  %v1250_v6 = vmul.f32 %v14920_v36, %v1218_v26  ;;  %v1848_v42 = vld [vmem:[#allocation5 + $0x98] sm:$0xff] }
 0x1db   : > { %2138 = vrot.lane.b32.xlu0 %v2107_v39, %s19175_s15  ;;  %v1932_v54 = vshll.u32 %v14937_v32, 16  ;;  %v1601_v27 = vmul.f32 %v13541_v48, %v1441_v16  ;;  %v14963_v50 = vpack.c.bf16 %v1842_v45, %v1841_v56  ;;  %v14965_v30 = vpack.c.bf16 %v1844_v35, %v1843_v15  ;;  %v1845_v35 = vld [vmem:[#allocation5 + $0x80] sm:$0xff]  ;;  %v1847_v16 = vld [vmem:[#allocation5 + $0x90] sm:$0xff]  ;;  %v1852_v56 = vld [vmem:[#allocation5 + $0xb8] sm:$0xff] }
 0x1dc   : > { %v1931_v9 = vrot.slane %v1929_v55, 7  ;;  %v1699_v59 = vsub.f32 0.0, %v1635_v22  ;;  %v1380_v14 = vmul.f32 %v14892_v2, %v1348_v52  ;;  %v1282_v44 = vadd.f32 1.4214138, %v1250_v6  ;;  %v1850_v6 = vld [vmem:[#allocation5 + $0xa8] sm:$0xff] }
 0x1dd   : > { %v2110_v58 = vrot.slane %v1918_v12, 1  ;;  %v1633_v13 = vsub.f32 1.0, %v1601_v27  ;;  %2013 = vrot.lane.b32.xlu1 %v1927_v60, %s19177_s17  ;;  %v2109_v48 = vor.u32 %v2108_v17, %v1908_v37  ;;  %v1936_v33 = vshrl.u32 %v14963_v50, 16 }
 0x1de   : > { %v1934_v1 = vor.u32 %v1932_v54, %v1931_v9  ;;  %v1731_v49 = vsel %vm1667_vm0, %v1699_v59, %v1635_v22  ;;  %v1412_v18 = vadd.f32 0.2548296, %v1380_v14  ;;  %v1314_v41 = vmul.f32 %v14920_v36, %v1282_v44  ;;  %v1849_v59 = vld [vmem:[#allocation5 + $0xa0] sm:$0xff]  ;;  %v1851_v14 = vld [vmem:[#allocation5 + $0xb0] sm:$0xff] }
 0x1df   : > { %v1943_v20 = vshrl.u32 %v14965_v30, 16  ;;  %v1763_v24 = vadd.f32 1.0, %v1731_v49  ;;  %v1697_v23 = vsub.f32 0.0, %v1633_v13  ;;  %v1938_v12 = vrot.slane %v1936_v33, 7 }
 0x1e0   : > { %2015 = vrot.lane.b32.xlu0 %v1934_v1, %s19177_s17  ;;  %v1939_v38 = vshll.u32 %v14963_v50, 16  ;;  %v1444_v37 = vmul.f32 %v14892_v2, %v1412_v18  ;;  %v1346_v31 = vadd.f32 -0.28449672, %v1314_v41  ;;  %v2111_v57 = vor.u32 %v2110_v58, %v1915_v19 }
 0x1e1   : > { %v1945_v25 = vrot.slane %v1943_v20, 7  ;;  %v1795_v0 = vmul.f32 %v1763_v24, %v14805_v29  ;;  %v1729_v40 = vsel %vm1665_vm1, %v1697_v23, %v1633_v13  ;;  %2140 = vrot.lane.b32.xlu1 %v2109_v48, %s19175_s15  ;;  %v1946_v26 = vshll.u32 %v14965_v30, 16 }
 0x1e2   : > { %v1941_v53 = vor.u32 %v1939_v38, %v1938_v12  ;;  %v1761_v2 = vadd.f32 1.0, %v1729_v40  ;;  %v1604_v39 = vmul.f32 %v14928_v7, %v1444_v37  ;;  %v1378_v19 = vmul.f32 %v14920_v36, %v1346_v31  ;;  %v1854_v31 = vld [vmem:[#allocation5 + $0xc8] sm:$0xff] }
 0x1e3   : > { %v2112_v45 = vrot.slane %v1925_v5, 1  ;;  %1827 = vst.msk [vmem:[#allocation5 + $0xf0] sm:$0xff] %vm900_vm2, %v1795_v0  ;;  %v1948_v21 = vor.u32 %v1946_v26, %v1945_v25  ;;  %v14998_v29 = vpack.c.bf16 %v1846_v43, %v1845_v35  ;;  %v15000_v17 = vpack.c.bf16 %v1848_v42, %v1847_v16  ;;  %v1856_v43 = vld [vmem:[#allocation5 + $0xd8] sm:$0xff] }
 0x1e4   : > { %2142 = vrot.lane.b32.xlu0 %v2111_v57, %s19175_s15  ;;  %v1793_v60 = vmul.f32 %v1761_v2, %v14828_v4  ;;  %v1636_v22 = vsub.f32 1.0, %v1604_v39  ;;  %v1410_v7 = vadd.f32 0.2548296, %v1378_v19  ;;  %v2114_v52 = vrot.slane %v1932_v54, 1  ;;  %v1855_v2 = vld [vmem:[#allocation5 + $0xd0] sm:$0xff] }
 0x1e5   : > { %vm1668_vm3 = vcmp.lt.f32.partialorder %v14808_v61, 0.0  ;;  %2017 = vrot.lane.b32.xlu1 %v1941_v53, %s19177_s17  ;;  %v1950_v5 = vshrl.u32 %v14998_v29, 16  ;;  %v1957_v15 = vshrl.u32 %v15000_v17, 16  ;;  %v2113_v4 = vor.u32 %v2112_v45, %v1922_v47  ;;  %v448_v39 = vld [vmem:[#allocation3 + $0x8] sm:$0x1] }
 0x1e6   : > { %1825 = vst.msk [vmem:[#allocation5 + $0xe0] sm:$0xff] %vm900_vm2, %v1793_v60  ;;  %v1700_v27 = vsub.f32 0.0, %v1636_v22  ;;  %v1442_v9 = vmul.f32 %v14920_v36, %v1410_v7  ;;  %v1953_v54 = vshll.u32 %v14998_v29, 16  ;;  %v15017_v13 = vpack.c.bf16 %v1850_v6, %v1849_v59  ;;  %v499_v16 = vld [vmem:[#allocation3 + $0x8] sm:$0x80] }
 0x1e7   : > { %v1952_v44 = vrot.slane %v1950_v5, 7  ;;  %v1959_v58 = vrot.slane %v1957_v15, 7  ;;  %v15019_v1 = vpack.c.bf16 %v1852_v56, %v1851_v14  ;;  %v964_v36 = vmul.f32 0.5, %v14793_v34  ;;  %v454_v7 = vld [vmem:[#allocation3 + $0x18] sm:$0x1] }
 0x1e8   : > { %2019 = vrot.lane.b32.xlu0 %v1948_v21, %s19177_s17  ;;  %v1732_v47 = vsel %vm1668_vm3, %v1700_v27, %v1636_v22  ;;  %v1602_v48 = vmul.f32 %v14949_v62, %v1442_v9  ;;  %v2115_v49 = vor.u32 %v2114_v52, %v1929_v55  ;;  %v1960_v24 = vshll.u32 %v15000_v17, 16  ;;  %v1853_v55 = vld [vmem:[#allocation5 + $0xc0] sm:$0xff]  ;;  %v505_v52 = vld [vmem:[#allocation3 + $0x18] sm:$0x80]  ;;  %v457_v6 = vld [vmem:[#allocation3 + $0x20] sm:$0x1] }
 0x1e9   : > { %v1764_v18 = vadd.f32 1.0, %v1732_v47  ;;  %2144 = vrot.lane.b32.xlu1 %v2113_v4, %s19175_s15  ;;  %v1955_v41 = vor.u32 %v1953_v54, %v1952_v44  ;;  %v1964_v23 = vshrl.u32 %v15017_v13, 16  ;;  %v2116_v37 = vrot.slane %v1939_v38, 1  ;;  %v451_v21 = vld [vmem:[#allocation3 + $0x10] sm:$0x1] }
 0x1ea   : > { %v1634_v12 = vsub.f32 1.0, %v1602_v48  ;;  %v1962_v61 = vor.u32 %v1960_v24, %v1959_v58  ;;  %v1971_v62 = vshrl.u32 %v15019_v1, 16  ;;  %v2118_v25 = vrot.slane %v1946_v26, 1  ;;  %v508_v4 = vld [vmem:[#allocation3 + $0x20] sm:$0x80] }
 0x1eb   : > { %v1796_v34 = vmul.f32 %v1764_v18, %v964_v36  ;;  %vm1666_vm4 = vcmp.lt.f32.partialorder %v14836_v28, 0.0  ;;  %v1966_v38 = vrot.slane %v1964_v23, 7  ;;  %v15037_v42 = vpack.c.bf16 %v1854_v31, %v1853_v55  ;;  %v463_v14 = vld [vmem:[#allocation3 + $0x30] sm:$0x1]  ;;  %v466_v18 = vld [vmem:[#allocation3 + $0x38] sm:$0x1] }
 0x1ec   : > { %2146 = vrot.lane.b32.xlu0 %v2115_v49, %s19175_s15  ;;  %v1698_v57 = vsub.f32 0.0, %v1634_v12  ;;  %v962_v0 = vmul.f32 0.5, %v14821_v10  ;;  %v2117_v53 = vor.u32 %v2116_v37, %v1936_v33  ;;  %v2120_v26 = vrot.slane %v1953_v54, 1  ;;  %v502_v10 = vld [vmem:[#allocation3 + $0x10] sm:$0x80] }
 0x1ed   : > { %1828 = vst.msk [vmem:[#allocation5 + $0xf8] sm:$0xff] %vm900_vm2, %v1796_v34  ;;  %2021 = vrot.lane.b32.xlu1 %v1955_v41, %s19177_s17  ;;  %v1967_v28 = vshll.u32 %v15017_v13, 16  ;;  %v1973_v45 = vrot.slane %v1971_v62, 7  ;;  %v15046_v35 = vpack.c.bf16 %v1856_v43, %v1855_v2  ;;  %v2119_v60 = vor.u32 %v2118_v25, %v1943_v20  ;;  %v460_v54 = vld [vmem:[#allocation3 + $0x28] sm:$0x1] }
 0x1ee   : > { %v1730_v40 = vsel %vm1666_vm4, %v1698_v57, %v1634_v12  ;;  %v1974_v33 = vshll.u32 %v15019_v1, 16  ;;  %v2122_v22 = vrot.slane %v1960_v24, 1  ;;  %vm445_vm5 = vcmask 516352   ;;  %v511_v20 = vld [vmem:[#allocation3 + $0x28] sm:$0x80] }
 0x1ef   : > { %v1762_v19 = vadd.f32 1.0, %v1730_v40  ;;  %v1969_v27 = vor.u32 %v1967_v28, %v1966_v38  ;;  %v1978_v9 = vshrl.u32 %v15037_v42, 16  ;;  %vm446_vm6 = vsmask.f32 256  ;;  %v514_v49 = vld [vmem:[#allocation3 + $0x30] sm:$0x80] }
 0x1f0   : > { %2023 = vrot.lane.b32.xlu0 %v1962_v61, %s19177_s17  ;;  %vm15053_vm7 = vmand %vm445_vm5, %vm446_vm6  ;;  %vm496_vm8 = vcmask 785927   ;;  %vm497_vm9 = vsmask.f32 7966  ;;  %v1976_v44 = vor.u32 %v1974_v33, %v1973_v45  ;;  %v2121_v58 = vor.u32 %v2120_v26, %v1950_v5  ;;  %v15078_v37 = vld [vmem:[#allocation3 + $0x38] sm:$0x80] }
 0x1f1   : > { %v1794_v56 = vmul.f32 %v1762_v19, %v962_v0  ;;  %2148 = vrot.lane.b32.xlu1 %v2117_v53, %s19175_s15  ;;  %v1985_v36 = vshrl.u32 %v15046_v35, 16  ;;  %v449_v47 = vsel %vm15053_vm7, 0, %v448_v39  ;;  %vm15064_vm10 = vmand %vm496_vm8, %vm497_vm9  ;;  %v15070_v41 = vor.u32 %v2122_v22, %v1957_v15  ;;  %v15080_v31 = vld [vmem:[#allocation3 + $0x40] sm:$0x1]  ;;  %v15091_v25 = vld [vmem:[#allocation3 + $0x40] sm:$0x80] }
 0x1f2   : > { %450 = vst [vmem:[#allocation3 + $0x8] sm:$0x1] %v449_v47  ;;  %v500_v24 = vsel %vm15064_vm10, 0, %v499_v16  ;;  %v452_v5 = vsel %vm15053_vm7, 0, %v451_v21  ;;  %v503_v12 = vsel %vm15064_vm10, 0, %v502_v10  ;;  %v1980_v15 = vrot.slane %v1978_v9, 7 }
 0x1f3   : > { %1826 = vst.msk [vmem:[#allocation5 + $0xe8] sm:$0xff] %vm900_vm2, %v1794_v56  ;;  %501 = vst [vmem:[#allocation3 + $0x8] sm:$0x80] %v500_v24  ;;  %v455_v34 = vsel %vm15053_vm7, 0, %v454_v7  ;;  %v506_v61 = vsel %vm15064_vm10, 0, %v505_v52  ;;  %v458_v57 = vsel %vm15053_vm7, 0, %v457_v6 }
 0x1f4   : > { %2150 = vrot.lane.b32.xlu0 %v2119_v60, %s19175_s15  ;;  %453 = vst [vmem:[#allocation3 + $0x10] sm:$0x1] %v452_v5  ;;  %504 = vst [vmem:[#allocation3 + $0x10] sm:$0x80] %v503_v12  ;;  %v15093_v55 = vld [vmem:[#allocation3 + $0x48] sm:$0x1] }
 0x1f5   : > { %2025 = vrot.lane.b32.xlu1 %v1969_v27, %s19177_s17  ;;  %v15095_v43 = vld [vmem:[#allocation3 + $0x48] sm:$0x80]  ;;  %v15097_v38 = vld [vmem:[#allocation3 + $0x50] sm:$0x1]  ;;  %v2124_v0 = vrot.slane %v1967_v28, 1  ;;  %v15099_v40 = vrot.slane %v1974_v33, 1 }
 0x1f6   : > { %1877 = vst.msk [vmem:[#allocation3 + $0x8] sm:$0xff] %vm900_vm2, %v14824_v8  ;;  %1878 = vst.msk [vmem:[#allocation3 + $0x10] sm:$0xff] %vm900_vm2, %v14855_v51  ;;  %v509_v53 = vsel %vm15064_vm10, 0, %v508_v4  ;;  %v461_v26 = vsel %vm15053_vm7, 0, %v460_v54  ;;  %v526_v2 = vld [vmem:[#allocation3 + $0x50] sm:$0x80] }
 0x1f7   : > { %456 = vst [vmem:[#allocation3 + $0x18] sm:$0x1] %v455_v34  ;;  %507 = vst [vmem:[#allocation3 + $0x18] sm:$0x80] %v506_v61  ;;  %v1981_v39 = vshll.u32 %v15037_v42, 16  ;;  %v1987_v8 = vrot.slane %v1985_v36, 7 }
 0x1f8   : > { %459 = vst [vmem:[#allocation3 + $0x20] sm:$0x1] %v458_v57  ;;  %2027 = vrot.lane.b32.xlu0 %v1976_v44, %s19177_s17  ;;  %1879 = vst.msk [vmem:[#allocation3 + $0x18] sm:$0xff] %vm900_vm2, %v14879_v3  ;;  %v512_v51 = vsel %vm15064_vm10, 0, %v511_v20  ;;  %v464_v19 = vsel %vm15053_vm7, 0, %v463_v14  ;;  %v515_v3 = vsel %vm15064_vm10, 0, %v514_v49 }
 0x1f9   : > { %510 = vst [vmem:[#allocation3 + $0x20] sm:$0x80] %v509_v53  ;;  %462 = vst [vmem:[#allocation3 + $0x28] sm:$0x1] %v461_v26  ;;  %v478_v28 = vld [vmem:[#allocation3 + $0x58] sm:$0x1]  ;;  %2152 = vrot.lane.b32.xlu1 %v2121_v58, %s19175_s15  ;;  %v1983_v22 = vor.u32 %v1981_v39, %v1980_v15  ;;  %v2127_v26 = vor.u32 %v15099_v40, %v1971_v62 }
 0x1fa   : > { %v529_v45 = vld [vmem:[#allocation3 + $0x58] sm:$0x80]  ;;  %v481_v16 = vld [vmem:[#allocation3 + $0x60] sm:$0x1]  ;;  %v532_v21 = vld [vmem:[#allocation3 + $0x60] sm:$0x80] }
 0x1fb   : > { %1880 = vst.msk [vmem:[#allocation3 + $0x20] sm:$0xff] %vm900_vm2, %v14884_v11  ;;  %513 = vst [vmem:[#allocation3 + $0x28] sm:$0x80] %v512_v51  ;;  %vm440_vm11 = vcmask 785408   ;;  %v467_v10 = vsel %vm15053_vm7, 0, %v466_v18  ;;  %v1988_v7 = vshll.u32 %v15046_v35, 16  ;;  %v2125_v18 = vor.u32 %v2124_v0, %v1964_v23 }
 0x1fc   : > { %465 = vst [vmem:[#allocation3 + $0x30] sm:$0x1] %v464_v19  ;;  %v484_v60 = vld [vmem:[#allocation3 + $0x68] sm:$0x1]  ;;  %v535_v33 = vld [vmem:[#allocation3 + $0x68] sm:$0x80]  ;;  %2154 = vrot.lane.b32.xlu0 %v15070_v41, %s19175_s15 }
 0x1fd   : > { %v1857_v52 = vld [vmem:[#allocation5 + $0xe0] sm:$0xff]  ;;  %1881 = vst.msk [vmem:[#allocation3 + $0x28] sm:$0xff] %vm900_vm2, %v14913_v46  ;;  %516 = vst [vmem:[#allocation3 + $0x30] sm:$0x80] %v515_v3  ;;  %v13873_v11 = vmov 0   ;;  %v518_v6 = vsel %vm15064_vm10, 0, %v15078_v37  ;;  %2029 = vrot.lane.b32.xlu1 %v1983_v22, %s19177_s17 }
 0x1fe   : > { %441 = vst.msk [vmem:[#allocation3] sm:$0xff] %vm440_vm11, %v13873_v11  ;;  %443 = vst.msk [vmem:[#allocation3 + $0x88] sm:$0xff] %vm440_vm11, %v13873_v11  ;;  %v470_v56 = vsel %vm15053_vm7, 0, %v15080_v31  ;;  %v487_v27 = vld [vmem:[#allocation3 + $0x70] sm:$0x1]  ;;  %v1858_v46 = vld [vmem:[#allocation5 + $0xe8] sm:$0xff] }
 0x1ff   : > { %468 = vst [vmem:[#allocation3 + $0x38] sm:$0x1] %v467_v10  ;;  %v538_v4 = vld [vmem:[#allocation3 + $0x70] sm:$0x80]  ;;  %v490_v54 = vld [vmem:[#allocation3 + $0x78] sm:$0x1]  ;;  %v15159_v24 = vpack.c.bf16 %v1858_v46, %v1857_v52 }
 0x200   : > { %v541_v20 = vld [vmem:[#allocation3 + $0x78] sm:$0x80]  ;;  %v1860_v14 = vld [vmem:[#allocation5 + $0xf8] sm:$0xff]  ;;  %1882 = vst.msk [vmem:[#allocation3 + $0x30] sm:$0xff] %vm900_vm2, %v14937_v32  ;;  %519 = vst [vmem:[#allocation3 + $0x38] sm:$0x80] %v518_v6  ;;  %v1990_v32 = vor.u32 %v1988_v7, %v1987_v8 }
 0x201   : > { %471 = vst [vmem:[#allocation3 + $0x40] sm:$0x1] %v470_v56  ;;  %v521_v44 = vsel %vm15064_vm10, 0, %v15091_v25  ;;  %v473_v58 = vsel %vm15053_vm7, 0, %v15093_v55  ;;  %v524_v47 = vsel %vm15064_vm10, 0, %v15095_v43  ;;  %v476_v49 = vsel %vm15053_vm7, 0, %v15097_v38  ;;  %2156 = vrot.lane.b32.xlu1 %v2125_v18, %s19175_s15 }
 0x202   : > { %1883 = vst.msk [vmem:[#allocation3 + $0x38] sm:$0xff] %vm900_vm2, %v14963_v50  ;;  %522 = vst [vmem:[#allocation3 + $0x40] sm:$0x80] %v521_v44  ;;  %v527_v5 = vsel %vm15064_vm10, 0, %v526_v2  ;;  %v493_v12 = vld [vmem:[#allocation3 + $0x80] sm:$0x1]  ;;  %2031 = vrot.lane.b32.xlu0 %v1990_v32, %s19177_s17 }
 0x203   : > { %474 = vst [vmem:[#allocation3 + $0x48] sm:$0x1] %v473_v58  ;;  %525 = vst [vmem:[#allocation3 + $0x48] sm:$0x80] %v524_v47  ;;  %v544_v41 = vld [vmem:[#allocation3 + $0x80] sm:$0x80] }
 0x204   : > { %477 = vst [vmem:[#allocation3 + $0x50] sm:$0x1] %v476_v49  ;;  %v1859_v37 = vld [vmem:[#allocation5 + $0xf0] sm:$0xff]  ;;  %1884 = vst.msk [vmem:[#allocation3 + $0x40] sm:$0xff] %vm900_vm2, %v14965_v30  ;;  %v479_v50 = vsel %vm15053_vm7, 0, %v478_v28  ;;  %v530_v23 = vsel %vm15064_vm10, 0, %v529_v45 }
 0x205   : > { %1885 = vst.msk [vmem:[#allocation3 + $0x48] sm:$0xff] %vm900_vm2, %v14998_v29  ;;  %528 = vst [vmem:[#allocation3 + $0x50] sm:$0x80] %v527_v5  ;;  %v482_v31 = vsel %vm15053_vm7, 0, %v481_v16  ;;  %v533_v15 = vsel %vm15064_vm10, 0, %v532_v21  ;;  %v1992_v30 = vshrl.u32 %v15159_v24, 16  ;;  %v1876_v34 = vpack.c.bf16 %v1860_v14, %v1859_v37 }
 0x206   : > { %1886 = vst.msk [vmem:[#allocation3 + $0x50] sm:$0xff] %vm900_vm2, %v15000_v17  ;;  %480 = vst [vmem:[#allocation3 + $0x58] sm:$0x1] %v479_v50  ;;  %v485_v29 = vsel %vm15053_vm7, 0, %v484_v60  ;;  %v536_v61 = vsel %vm15064_vm10, 0, %v535_v33  ;;  %v488_v17 = vsel %vm15053_vm7, 0, %v487_v27  ;;  %2158 = vrot.lane.b32.xlu0 %v2127_v26, %s19175_s15 }
 0x207   : > { %531 = vst [vmem:[#allocation3 + $0x58] sm:$0x80] %v530_v23  ;;  %483 = vst [vmem:[#allocation3 + $0x60] sm:$0x1] %v482_v31  ;;  %v539_v57 = vsel %vm15064_vm10, 0, %v538_v4  ;;  %v491_v25 = vsel %vm15053_vm7, 0, %v490_v54 }
 0x208   : > { %534 = vst [vmem:[#allocation3 + $0x60] sm:$0x80] %v533_v15  ;;  %1887 = vst.msk [vmem:[#allocation3 + $0x58] sm:$0xff] %vm900_vm2, %v15017_v13  ;;  %v542_v55 = vsel %vm15064_vm10, 0, %v541_v20  ;;  %v1994_v13 = vrot.slane %v1992_v30, 7  ;;  %v1995_v43 = vshll.u32 %v15159_v24, 16 }
 0x209   : > { %1888 = vst.msk [vmem:[#allocation3 + $0x60] sm:$0xff] %vm900_vm2, %v15019_v1  ;;  %486 = vst [vmem:[#allocation3 + $0x68] sm:$0x1] %v485_v29  ;;  %v494_v38 = vsel %vm15053_vm7, 0, %v493_v12  ;;  %v545_v0 = vsel %vm15064_vm10, 0, %v544_v41  ;;  %v2235_v53 = vld [vmem:[#allocation3] sm:$0xff] }
 0x20a   : > { %537 = vst [vmem:[#allocation3 + $0x68] sm:$0x80] %v536_v61  ;;  %489 = vst [vmem:[#allocation3 + $0x70] sm:$0x1] %v488_v17  ;;  %v1997_v59 = vor.u32 %v1995_v43, %v1994_v13  ;;  %v2130_v48 = vrot.slane %v1988_v7, 1  ;;  %v1999_v2 = vshrl.u32 %v1876_v34, 16  ;;  %12341 = vmatprep.mubr.msk.bf16.mxu1 %vm440_vm11, %v2235_v53 }
 0x20b   : > { %1889 = vst.msk [vmem:[#allocation3 + $0x68] sm:$0xff] %vm900_vm2, %v15037_v42  ;;  %540 = vst [vmem:[#allocation3 + $0x70] sm:$0x80] %v539_v57  ;;  %v2128_v8 = vrot.slane %v1981_v39, 1  ;;  %v2002_v51 = vshll.u32 %v1876_v34, 16  ;;  %v2132_v19 = vrot.slane %v1995_v43, 1 }
 0x20c   : > { %492 = vst [vmem:[#allocation3 + $0x78] sm:$0x1] %v491_v25  ;;  %543 = vst [vmem:[#allocation3 + $0x78] sm:$0x80] %v542_v55  ;;  %2033 = vrot.lane.b32.xlu1 %v1997_v59, %s19177_s17  ;;  %v2131_v1 = vor.u32 %v2130_v48, %v1985_v36  ;;  %v2001_v62 = vrot.slane %v1999_v2, 7  ;;  %vm2053_vm12 = vcmask 523520  }
 0x20d   : > { %1890 = vst.msk [vmem:[#allocation3 + $0x70] sm:$0xff] %vm900_vm2, %v15046_v35  ;;  %1891 = vst.msk [vmem:[#allocation3 + $0x78] sm:$0xff] %vm900_vm2, %v15159_v24  ;;  %v2129_v40 = vor.u32 %v2128_v8, %v1978_v9  ;;  %v2133_v45 = vor.u32 %v2132_v19, %v1992_v30  ;;  %v2134_v39 = vrot.slane %v2002_v51, 1  ;;  %vm2054_vm13 = vsmask.f32 7938  ;;  %v2056_v10 = vld [vmem:[#allocation3 + $0x8] sm:$0xff] }
 0x20e   : > { %495 = vst [vmem:[#allocation3 + $0x80] sm:$0x1] %v494_v38  ;;  %546 = vst [vmem:[#allocation3 + $0x80] sm:$0x80] %v545_v0  ;;  %2162 = vrot.lane.b32.xlu0 %v2131_v1, %s19175_s15  ;;  %v2004_v28 = vor.u32 %v2002_v51, %v2001_v62  ;;  %vm2184_vm14 = vcmask 785920   ;;  %v2059_v33 = vld [vmem:[#allocation3 + $0x10] sm:$0xff] }
 0x20f   : > { %1892 = vst.msk [vmem:[#allocation3 + $0x80] sm:$0xff] %vm900_vm2, %v1876_v34  ;;  %v2135_v16 = vor.u32 %v2134_v39, %v1999_v2  ;;  %vm2185_vm15 = vsmask.f32 7424  ;;  %vm15230_vm0 = vmand %vm2053_vm12, %vm2054_vm13  ;;  %v13343_v7 = vld [vmem:[%s19164_s3 + $0x68] sm:$0xff]   ;;  %v13344_v4 = vld [vmem:[%s19164_s3 + $0x70] sm:$0xff]   ;;  %vm3089_vm3 = vcmask 523264  }
 0x210   : > { %2160 = vrot.lane.b32.xlu1 %v2129_v40, %s19175_s15  ;;  %vm15234_vm1 = vmand %vm2184_vm14, %vm2185_vm15  ;;  %v2062_v20 = vld [vmem:[#allocation3 + $0x18] sm:$0xff]  ;;  %v13346_v24 = vld [vmem:[%s19164_s3 + $0x80] sm:$0xff]  }
 0x211   : > { %v13345_v58 = vld [vmem:[%s19164_s3 + $0x78] sm:$0xff]   ;;  %v2068_v12 = vld [vmem:[#allocation3 + $0x28] sm:$0xff]  ;;  %v2071_v50 = vld [vmem:[#allocation3 + $0x30] sm:$0xff] }
 0x212   : > { %2035 = vrot.lane.b32.xlu0 %v2004_v28, %s19177_s17  ;;  %v13347_v31 = vld [vmem:[%s19164_s3 + $0x88] sm:$0xff]   ;;  %v2074_v17 = vld [vmem:[#allocation3 + $0x38] sm:$0xff]  ;;  %v2077_v55 = vld [vmem:[#allocation3 + $0x40] sm:$0xff] }
 0x213   : > { %v2080_v59 = vld [vmem:[#allocation3 + $0x48] sm:$0xff]  ;;  %v2083_v8 = vld [vmem:[#allocation3 + $0x50] sm:$0xff]  ;;  %v13417_v3 = vld [vmem:[%s19172_s11 + $0x78] sm:$0xff]  }
 0x214   : > { %2164 = vrot.lane.b32.xlu1 %v2133_v45, %s19175_s15  ;;  %v2086_v45 = vld [vmem:[#allocation3 + $0x58] sm:$0xff]  ;;  %v13416_v9 = vld [vmem:[%s19172_s11 + $0x70] sm:$0xff]  }
 0x218   : > { %2166 = vrot.lane.b32.xlu1 %v2135_v16, %s19175_s15 }
 0x23d   : > { %v2006_v35 = vpop.permute.xlu0 %2005 }
 0x23e   : > { %v2057_v60 = vsel %vm15230_vm0, %v2006_v35, %v2056_v10  ;;  %v2089_v35 = vld [vmem:[#allocation3 + $0x60] sm:$0xff] }
 0x243   : > { %v2008_v36 = vpop.permute.xlu0 %2007 }
 0x244   : > { %v2060_v52 = vsel %vm15230_vm0, %v2008_v36, %v2059_v33  ;;  %v2095_v33 = vld [vmem:[#allocation3 + $0x70] sm:$0xff] }
 0x247   : > { %v2010_v42 = vpop.permute.xlu1 %2009 }
 0x248   : > { %v2012_v21 = vpop.permute.xlu0 %2011  ;;  %v2063_v46 = vsel %vm15230_vm0, %v2010_v42, %v2062_v20 }
 0x24b   : > { %v2137_v22 = vpop.permute.xlu1 %2136 }
 0x24c   : > { %v2188_v11 = vsel %vm15234_vm1, %v2137_v22, %v2057_v60 }
 0x24d   : > { %v2139_v6 = vpop.permute.xlu0 %2138  ;;  %2189 = vst [vmem:[#allocation3 + $0x8] sm:$0xff] %v2188_v11  ;;  %12297 = vmatprep.mubr.msk.bf16.mxu0 %vm440_vm11, %v2188_v11  ;;  %12342 = vmatmul.mubr.msk.bf16.vlgmr.msra.gmra.mrb[0].mxu1 %vm440_vm11, %v2188_v11 }
 0x24e   : > { %v15249_v56 = vsel %vm15234_vm1, %v2139_v6, %v2060_v52  ;;  %12374 = vmatpush3.bf16.msra.mxu1 %v14942_v63  ;;  %v2065_v63 = vld [vmem:[#allocation3 + $0x20] sm:$0xff]  ;;  %v2092_v52 = vld [vmem:[#allocation3 + $0x68] sm:$0xff] }
 0x24f   : > { %2192 = vst [vmem:[#allocation3 + $0x10] sm:$0xff] %v15249_v56  ;;  %12298 = vmatmul.mubr.msk.bf16.vlgmr.msra.gmra.mrb[32].mxu0 %vm440_vm11, %v15249_v56  ;;  %v2014_v27 = vpop.permute.xlu1 %2013  ;;  %12345 = vmatprep.mubr.msk.bf16.mxu1 %vm440_vm11, %v15249_v56  ;;  %v2066_v47 = vsel %vm15230_vm0, %v2012_v21, %v2065_v63 }
 0x250   : > { %12375 = vmatprep.subr.bf16.mxu1 %v13343_v7  ;;  %v2069_v41 = vsel %vm15230_vm0, %v2014_v27, %v2068_v12 }
 0x252   : > { %v2016_v54 = vpop.permute.xlu0 %2015  ;;  %12376 = vmatpush3.bf16.msra.mxu1 %v13343_v7 }
 0x253   : > { %v2141_v14 = vpop.permute.xlu1 %2140  ;;  %12377 = vmatprep.subr.bf16.mxu1 %v13344_v4  ;;  %v2072_v15 = vsel %vm15230_vm0, %v2016_v54, %v2071_v50  ;;  %v2098_v54 = vld [vmem:[#allocation3 + $0x78] sm:$0xff] }
 0x254   : > { %v15266_v44 = vsel %vm15234_vm1, %v2141_v14, %v2063_v46 }
 0x255   : > { %2195 = vst [vmem:[#allocation3 + $0x18] sm:$0xff] %v15266_v44  ;;  %12301 = vmatprep.mubr.msk.bf16.mxu0 %vm440_vm11, %v15266_v44  ;;  %12346 = vmatmul.mubr.msk.bf16.gmra.mrb[4].mxu1 %vm440_vm11, %v15266_v44 }
 0x256   : > { %v2143_v49 = vpop.permute.xlu0 %2142  ;;  %12378 = vmatpush3.bf16.msra.mxu1 %v13344_v4 }
 0x257   : > { %v15280_v32 = vsel %vm15234_vm1, %v2143_v49, %v2066_v47  ;;  %v2018_v18 = vpop.permute.xlu1 %2017  ;;  %12379 = vmatprep.subr.bf16.mxu1 %v13345_v58 }
 0x258   : > { %2198 = vst [vmem:[#allocation3 + $0x20] sm:$0xff] %v15280_v32  ;;  %12302 = vmatmul.mubr.msk.bf16.gmra.mrb[36].mxu0 %vm440_vm11, %v15280_v32  ;;  %12349 = vmatprep.mubr.msk.bf16.mxu1 %vm440_vm11, %v15280_v32  ;;  %v2075_v57 = vsel %vm15230_vm0, %v2018_v18, %v2074_v17 }
 0x25a   : > { %v2020_v5 = vpop.permute.xlu0 %2019  ;;  %12380 = vmatpush3.bf16.msra.mxu1 %v13345_v58  ;;  %v2101_v58 = vld [vmem:[#allocation3 + $0x80] sm:$0xff] }
 0x25b   : > { %v2145_v37 = vpop.permute.xlu1 %2144  ;;  %12381 = vmatprep.subr.bf16.mxu1 %v13346_v24  ;;  %v2078_v43 = vsel %vm15230_vm0, %v2020_v5, %v2077_v55 }
 0x25c   : > { %v15294_v23 = vsel %vm15234_vm1, %v2145_v37, %v2069_v41 }
 0x25d   : > { %2201 = vst [vmem:[#allocation3 + $0x28] sm:$0xff] %v15294_v23  ;;  %12305 = vmatprep.mubr.msk.bf16.mxu0 %vm440_vm11, %v15294_v23  ;;  %12350 = vmatmul.mubr.msk.bf16.gmra.mrb[8].mxu1 %vm440_vm11, %v15294_v23 }
 0x25e   : > { %v2147_v30 = vpop.permute.xlu0 %2146  ;;  %12382 = vmatpush3.bf16.msra.mxu1 %v13346_v24 }
 0x25f   : > { %v15308_v34 = vsel %vm15234_vm1, %v2147_v30, %v2072_v15  ;;  %v2022_v29 = vpop.permute.xlu1 %2021  ;;  %12383 = vmatprep.subr.bf16.mxu1 %v13347_v31 }
 0x260   : > { %2204 = vst [vmem:[#allocation3 + $0x30] sm:$0xff] %v15308_v34  ;;  %12306 = vmatmul.mubr.msk.bf16.gmra.mrb[40].mxu0 %vm440_vm11, %v15308_v34  ;;  %12353 = vmatprep.mubr.msk.bf16.mxu1 %vm440_vm11, %v15308_v34  ;;  %v2081_v48 = vsel %vm15230_vm0, %v2022_v29, %v2080_v59 }
 0x262   : > { %v2024_v61 = vpop.permute.xlu0 %2023  ;;  %12384 = vmatpush3.bf16.msra.mxu1 %v13347_v31 }
 0x263   : > { %v2149_v25 = vpop.permute.xlu1 %2148  ;;  %v2084_v62 = vsel %vm15230_vm0, %v2024_v61, %v2083_v8 }
 0x264   : > { %v15319_v13 = vsel %vm15234_vm1, %v2149_v25, %v2075_v57 }
 0x265   : > { %2207 = vst [vmem:[#allocation3 + $0x38] sm:$0xff] %v15319_v13  ;;  %12309 = vmatprep.mubr.msk.bf16.mxu0 %vm440_vm11, %v15319_v13  ;;  %12354 = vmatmul.mubr.msk.bf16.gmra.mrb[12].mxu1 %vm440_vm11, %v15319_v13 }
 0x266   : > { %v2151_v38 = vpop.permute.xlu0 %2150 }
 0x267   : > { %v15330_v0 = vsel %vm15234_vm1, %v2151_v38, %v2078_v43  ;;  %v2026_v53 = vpop.permute.xlu1 %2025 }
 0x268   : > { %2210 = vst [vmem:[#allocation3 + $0x40] sm:$0xff] %v15330_v0  ;;  %12310 = vmatmul.mubr.msk.bf16.gmra.mrb[44].mxu0 %vm440_vm11, %v15330_v0  ;;  %12357 = vmatprep.mubr.msk.bf16.mxu1 %vm440_vm11, %v15330_v0  ;;  %v2087_v39 = vsel %vm15230_vm0, %v2026_v53, %v2086_v45 }
 0x26a   : > { %v2028_v26 = vpop.permute.xlu0 %2027 }
 0x26b   : > { %v2153_v2 = vpop.permute.xlu1 %2152  ;;  %v2090_v42 = vsel %vm15230_vm0, %v2028_v26, %v2089_v35 }
 0x26c   : > { %v2212_v1 = vsel %vm15234_vm1, %v2153_v2, %v2081_v48 }
 0x26d   : > { %2213 = vst [vmem:[#allocation3 + $0x48] sm:$0xff] %v2212_v1  ;;  %12313 = vmatprep.mubr.msk.bf16.mxu0 %vm440_vm11, %v2212_v1  ;;  %12358 = vmatmul.mubr.msk.bf16.gmra.mrb[16].mxu1 %vm440_vm11, %v2212_v1 }
 0x26e   : > { %v2155_v40 = vpop.permute.xlu0 %2154 }
 0x26f   : > { %v2215_v51 = vsel %vm15234_vm1, %v2155_v40, %v2084_v62  ;;  %v2030_v19 = vpop.permute.xlu1 %2029 }
 0x270   : > { %2216 = vst [vmem:[#allocation3 + $0x50] sm:$0xff] %v2215_v51  ;;  %12314 = vmatmul.mubr.msk.bf16.gmra.mrb[48].mxu0 %vm440_vm11, %v2215_v51  ;;  %12361 = vmatprep.mubr.msk.bf16.mxu1 %vm440_vm11, %v2215_v51  ;;  %v2093_v6 = vsel %vm15230_vm0, %v2030_v19, %v2092_v52 }
 0x273   : > { %v2157_v16 = vpop.permute.xlu1 %2156 }
 0x274   : > { %v2032_v28 = vpop.permute.xlu0 %2031  ;;  %v2218_v36 = vsel %vm15234_vm1, %v2157_v16, %v2087_v39 }
 0x275   : > { %2219 = vst [vmem:[#allocation3 + $0x58] sm:$0xff] %v2218_v36  ;;  %12317 = vmatprep.mubr.msk.bf16.mxu0 %vm440_vm11, %v2218_v36  ;;  %12362 = vmatmul.mubr.msk.bf16.gmra.mrb[20].mxu1 %vm440_vm11, %v2218_v36  ;;  %v2096_v22 = vsel %vm15230_vm0, %v2032_v28, %v2095_v33 }
 0x278   : > { %v2159_v21 = vpop.permute.xlu0 %2158 }
 0x279   : > { %v2221_v10 = vsel %vm15234_vm1, %v2159_v21, %v2090_v42  ;;  %v15462_v21 = vld [vmem:[%s19165_s4] ss:$0 sm:$0xff] }
 0x27a   : > { %2222 = vst [vmem:[#allocation3 + $0x60] sm:$0xff] %v2221_v10  ;;  %12318 = vmatmul.mubr.msk.bf16.gmra.mrb[52].mxu0 %vm440_vm11, %v2221_v10  ;;  %12365 = vmatprep.mubr.msk.bf16.mxu1 %vm440_vm11, %v2221_v10 }
 0x27e   : > { %v2034_v60 = vpop.permute.xlu1 %2033 }
 0x27f   : > { %v2099_v20 = vsel %vm15230_vm0, %v2034_v60, %v2098_v54 }
 0x280   : > { %v2163_v7 = vpop.permute.xlu0 %2162 }
 0x281   : > { %v2227_v11 = vsel %vm15234_vm1, %v2163_v7, %v2096_v22 }
 0x282   : > { %2228 = vst [vmem:[#allocation3 + $0x70] sm:$0xff] %v2227_v11  ;;  %v2161_v27 = vpop.permute.xlu1 %2160 }
 0x283   : > { %v2224_v4 = vsel %vm15234_vm1, %v2161_v27, %v2093_v6 }
 0x284   : > { %2225 = vst [vmem:[#allocation3 + $0x68] sm:$0xff] %v2224_v4  ;;  %12321 = vmatprep.mubr.msk.bf16.mxu0 %vm440_vm11, %v2224_v4  ;;  %12366 = vmatmul.mubr.msk.bf16.gmra.mrb[24].mxu1 %vm440_vm11, %v2224_v4  ;;  %v2036_v14 = vpop.permute.xlu0 %2035 }
 0x285   : > { %12369 = vmatprep.mubr.msk.bf16.mxu1 %vm440_vm11, %v2227_v11  ;;  %12322 = vmatmul.mubr.msk.bf16.gmra.mrb[56].mxu0 %vm440_vm11, %v2227_v11  ;;  %v2102_v47 = vsel %vm15230_vm0, %v2036_v14, %v2101_v58 }
 0x286   : > { %v2165_v46 = vpop.permute.xlu1 %2164 }
 0x287   : > { %v2230_v63 = vsel %vm15234_vm1, %v2165_v46, %v2099_v20 }
 0x288   : > { %2231 = vst [vmem:[#allocation3 + $0x78] sm:$0xff] %v2230_v63  ;;  %12325 = vmatprep.mubr.msk.bf16.mxu0 %vm440_vm11, %v2230_v63 }
 0x28a   : > { %v2167_v49 = vpop.permute.xlu1 %2166 }
 0x28b   : > { %v2233_v18 = vsel %vm15234_vm1, %v2167_v49, %v2102_v47 }
 0x28c   : > { %2234 = vst [vmem:[#allocation3 + $0x80] sm:$0xff] %v2233_v18  ;;  %12370 = vmatmul.mubr.msk.bf16.gmra.mrb[28].mxu1 %vm440_vm11, %v2230_v63 }
 0x28d   : > { %12385 = vmatprep.mubr.msk.bf16.mxu1 %vm440_vm11, %v15249_v56  ;;  %12326 = vmatmul.mubr.msk.bf16.gmra.mrb[60].mxu0 %vm440_vm11, %v2233_v18  ;;  %v2798_v56 = vld [vmem:[#allocation3 + $0x88] sm:$0xff] }
 0x294   : > { %12386 = vmatmul.mubr.msk.bf16.vlgmr.msra.gmra.mrb[0].mxu1 %vm440_vm11, %v15266_v44 }
 0x295   : > { %12389 = vmatprep.mubr.msk.bf16.mxu1 %vm440_vm11, %v15280_v32 }
 0x29c   : > { %12390 = vmatmul.mubr.msk.bf16.gmra.mrb[4].mxu1 %vm440_vm11, %v15294_v23 }
 0x29d   : > { %12393 = vmatprep.mubr.msk.bf16.mxu1 %vm440_vm11, %v15308_v34 }
 0x2a4   : > { %12394 = vmatmul.mubr.msk.bf16.gmra.mrb[8].mxu1 %vm440_vm11, %v15319_v13 }
 0x2a5   : > { %12397 = vmatprep.mubr.msk.bf16.mxu1 %vm440_vm11, %v15330_v0 }
 0x2ac   : > { %12398 = vmatmul.mubr.msk.bf16.gmra.mrb[12].mxu1 %vm440_vm11, %v2212_v1 }
 0x2ad   : > { %12401 = vmatprep.mubr.msk.bf16.mxu1 %vm440_vm11, %v2215_v51 }
 0x2b4   : > { %12402 = vmatmul.mubr.msk.bf16.gmra.mrb[16].mxu1 %vm440_vm11, %v2218_v36 }
 0x2b5   : > { %12405 = vmatprep.mubr.msk.bf16.mxu1 %vm440_vm11, %v2221_v10 }
 0x2bc   : > { %12406 = vmatmul.mubr.msk.bf16.gmra.mrb[20].mxu1 %vm440_vm11, %v2224_v4 }
 0x2bd   : > { %12409 = vmatprep.mubr.msk.bf16.mxu1 %vm440_vm11, %v2227_v11 }
 0x2c4   : > { %12410 = vmatmul.mubr.msk.bf16.gmra.mrb[24].mxu1 %vm440_vm11, %v2230_v63 }
 0x2c5   : > { %12413 = vmatprep.mubr.msk.bf16.mxu1 %vm440_vm11, %v2233_v18 }
 0x2cc   : > { %12414 = vmatmul.mubr.msk.bf16.gmra.mrb[28].mxu1 %vm440_vm11, %v2798_v56 }
 0x322   : > { %v12299_v44 = vpop.f32.mrb[32].mxu0 }
 0x323   : > { %v2410_v32 = vpop.f32.mrb[33].mxu0 }
 0x324   : > { %v12300_v24 = vpop.f32.mrb[34].mxu0 }
 0x325   : > { %v2413_v5 = vpop.f32.mrb[35].mxu0 }
 0x32b   : > { %v12303_v12 = vpop.f32.mrb[36].mxu0 }
 0x32c   : > { %v2426_v41 = vpop.f32.mrb[37].mxu0 }
 0x32d   : > { %v12304_v37 = vpop.f32.mrb[38].mxu0 }
 0x32e   : > { %v2429_v50 = vpop.f32.mrb[39].mxu0 }
 0x333   : > { %v15407_v23 = vpop.f32.mrb[40].mxu0 }
 0x334   : > { %v15409_v31 = vpop.f32.mrb[41].mxu0 }
 0x335   : > { %v15411_v15 = vpop.f32.mrb[42].mxu0 }
 0x336   : > { %v15413_v30 = vpop.f32.mrb[43].mxu0 }
 0x33b   : > { %v15415_v34 = vpop.f32.mrb[44].mxu0 }
 0x33c   : > { %v15417_v29 = vpop.f32.mrb[45].mxu0 }
 0x33d   : > { %v15419_v61 = vpop.f32.mrb[46].mxu0 }
 0x33e   : > { %v15421_v17 = vpop.f32.mrb[47].mxu0 }
 0x343   : > { %v15423_v57 = vpop.f32.mrb[48].mxu0 }
 0x344   : > { %v15425_v25 = vpop.f32.mrb[49].mxu0 }
 0x345   : > { %v15427_v55 = vpop.f32.mrb[50].mxu0 }
 0x346   : > { %v15429_v13 = vpop.f32.mrb[51].mxu0 }
 0x34d   : > { %v15431_v43 = vpop.f32.mrb[52].mxu0 }
 0x34e   : > { %v15433_v38 = vpop.f32.mrb[53].mxu0 }
 0x34f   : > { %v15435_v0 = vpop.f32.mrb[54].mxu0 }
 0x350   : > { %v15437_v53 = vpop.f32.mrb[55].mxu0 }
 0x358   : > { %v15439_v26 = vpop.f32.mrb[56].mxu0 }
 0x359   : > { %v15441_v59 = vpop.f32.mrb[57].mxu0 }
 0x35a   : > { %v15443_v48 = vpop.f32.mrb[58].mxu0 }
 0x35b   : > { %v15445_v2 = vpop.f32.mrb[59].mxu0 }
 0x360   : > { %v15447_v8 = vpop.f32.mrb[60].mxu0 }
 0x361   : > { %v15449_v1 = vpop.f32.mrb[61].mxu0 }
 0x362   : > { %v15451_v62 = vpop.f32.mrb[62].mxu0 }
 0x363   : > { %v15453_v40 = vpop.f32.mrb[63].mxu0 }
 0x367   : > { %v12387_v51 = vpop.f32.mrb[0].mxu1 }
 0x368   : > { %v12945_v19 = vadd.f32 %v12387_v51, %v12299_v44  ;;  %v2930_v28 = vpop.f32.mrb[1].mxu1 }
 0x369   : > { %v12946_v45 = vadd.f32 %v2930_v28, %v2410_v32  ;;  %v12388_v39 = vpop.f32.mrb[2].mxu1 }
 0x36a   : > { %3092 = vst.msk [vmem:[#allocation2 + $0x10] sm:$0xff] %vm3089_vm3, %v12945_v19  ;;  %v12947_v16 = vadd.f32 %v12388_v39, %v12300_v24  ;;  %v2933_v35 = vpop.f32.mrb[3].mxu1 }
 0x36b   : > { %3090 = vst.msk [vmem:[#allocation2] sm:$0xff] %vm3089_vm3, %v12946_v45  ;;  %v12948_v36 = vadd.f32 %v2933_v35, %v2413_v5 }
 0x36c   : > { %3093 = vst.msk [vmem:[#allocation2 + $0x18] sm:$0xff] %vm3089_vm3, %v12947_v16 }
 0x36d   : > { %3091 = vst.msk [vmem:[#allocation2 + $0x8] sm:$0xff] %vm3089_vm3, %v12948_v36 }
 0x36f   : > { %v12391_v42 = vpop.f32.mrb[4].mxu1 }
 0x370   : > { %v12949_v10 = vadd.f32 %v12391_v42, %v12303_v12  ;;  %v2946_v60 = vpop.f32.mrb[5].mxu1 }
 0x371   : > { %v12950_v33 = vadd.f32 %v2946_v60, %v2426_v41  ;;  %v12392_v22 = vpop.f32.mrb[6].mxu1  ;;  %v3124_v7 = vld [vmem:[#allocation2 + $0x10] sm:$0xff] }
 0x372   : > { %3096 = vst.msk [vmem:[#allocation2 + $0x30] sm:$0xff] %vm3089_vm3, %v12949_v10  ;;  %v12951_v52 = vadd.f32 %v12392_v22, %v12304_v37  ;;  %v2949_v11 = vpop.f32.mrb[7].mxu1  ;;  %v3163_v6 = vadd.f32 %v15462_v21, %v3124_v7  ;;  %v3122_v27 = vld [vmem:[#allocation2] sm:$0xff] }
 0x373   : > { %3094 = vst.msk [vmem:[#allocation2 + $0x20] sm:$0xff] %vm3089_vm3, %v12950_v33  ;;  %v12952_v4 = vadd.f32 %v2949_v11, %v2429_v50  ;;  %v3125_v54 = vld [vmem:[#allocation2 + $0x18] sm:$0xff]  ;;  %v3161_v20 = vadd.f32 %v15462_v21, %v3122_v27 }
 0x374   : > { %3097 = vst.msk [vmem:[#allocation2 + $0x38] sm:$0xff] %vm3089_vm3, %v12951_v52  ;;  %v3164_v46 = vadd.f32 %v15462_v21, %v3125_v54  ;;  %v15470_v14 = vmul.f32 0.70710677, %v3163_v6  ;;  %v3123_v63 = vld [vmem:[#allocation2 + $0x8] sm:$0xff] }
 0x375   : > { %3095 = vst.msk [vmem:[#allocation2 + $0x28] sm:$0xff] %vm3089_vm3, %v12952_v4  ;;  %v15474_v58 = vadd.f32 %v15462_v21, %v3123_v63  ;;  %v15476_v47 = vmul.f32 0.70710677, %v3161_v20  ;;  %v15499_v63 = vmul.f32 0.5, %v3163_v6 }
 0x376   : > { %v15478_v49 = vmul.f32 0.70710677, %v3164_v46  ;;  %v3259_v18 = vand.u32 2147483647, %v15470_v14  ;;  %v15509_v6 = vmul.f32 0.5, %v3164_v46  ;;  %vm3899_vm4 = vcmp.lt.f32.partialorder %v15470_v14, 0.0 }
 0x377   : > { %v12395_v56 = vpop.f32.mrb[8].mxu1  ;;  %v15482_v44 = vmul.f32 0.70710677, %v15474_v58  ;;  %v3257_v32 = vand.u32 2147483647, %v15476_v47  ;;  %vm3897_vm5 = vcmp.lt.f32.partialorder %v15476_v47, 0.0 }
 0x378   : > { %v12953_v24 = vadd.f32 %v12395_v56, %v15407_v23  ;;  %v2962_v5 = vpop.f32.mrb[9].mxu1  ;;  %v3260_v12 = vand.u32 2147483647, %v15478_v49  ;;  %v3291_v41 = vmul.f32 0.3275911, %v3259_v18  ;;  %v3707_v35 = vsub.f32 0.0, %v3259_v18 }
 0x379   : > { %v12954_v37 = vadd.f32 %v2962_v5, %v15409_v31  ;;  %v12396_v50 = vpop.f32.mrb[10].mxu1  ;;  %v3258_v51 = vand.u32 2147483647, %v15482_v44  ;;  %v3289_v19 = vmul.f32 0.3275911, %v3257_v32  ;;  %v3705_v60 = vsub.f32 0.0, %v3257_v32 }
 0x37a   : > { %3100 = vst.msk [vmem:[#allocation2 + $0x50] sm:$0xff] %vm3089_vm3, %v12953_v24  ;;  %v12955_v28 = vadd.f32 %v12396_v50, %v15411_v15  ;;  %v2965_v45 = vpop.f32.mrb[11].mxu1  ;;  %v3292_v39 = vmul.f32 0.3275911, %v3260_v12  ;;  %v3323_v16 = vadd.f32 1.0, %v3291_v41  ;;  %v3708_v36 = vsub.f32 0.0, %v3260_v12 }
 0x37b   : > { %3098 = vst.msk [vmem:[#allocation2 + $0x40] sm:$0xff] %vm3089_vm3, %v12954_v37  ;;  %v12956_v23 = vadd.f32 %v2965_v45, %v15413_v30  ;;  %v3290_v42 = vmul.f32 0.3275911, %v3258_v51  ;;  %v3321_v10 = vadd.f32 1.0, %v3289_v19  ;;  %v3128_v33 = vld [vmem:[#allocation2 + $0x30] sm:$0xff]  ;;  %v3706_v22 = vsub.f32 0.0, %v3258_v51 }
 0x37c   : > { %3101 = vst.msk [vmem:[#allocation2 + $0x58] sm:$0xff] %vm3089_vm3, %v12955_v28  ;;  %v3324_v31 = vadd.f32 1.0, %v3292_v39  ;;  %13548 = vrcp.f32 %v3323_v16  ;;  %v3129_v7 = vld [vmem:[#allocation2 + $0x38] sm:$0xff]  ;;  %v3739_v52 = vmul.f32 %v3707_v35, %v3259_v18  ;;  %v3740_v27 = vmul.f32 %v3708_v36, %v3260_v12  ;;  %v3126_v5 = vld [vmem:[#allocation2 + $0x20] sm:$0xff]  ;;  %v3127_v12 = vld [vmem:[#allocation2 + $0x28] sm:$0xff] }
 0x37d   : > { %3099 = vst.msk [vmem:[#allocation2 + $0x48] sm:$0xff] %vm3089_vm3, %v12956_v23  ;;  %v3322_v15 = vadd.f32 1.0, %v3290_v42  ;;  %13550 = vrcp.f32 %v3321_v10  ;;  %v15496_v30 = vadd.f32 %v15462_v21, %v3128_v33  ;;  %v3737_v56 = vmul.f32 %v3705_v60, %v3257_v32 }
 0x37e   : > { %13552 = vrcp.f32 %v3324_v31  ;;  %v15502_v24 = vadd.f32 %v15462_v21, %v3129_v7  ;;  %v15505_v50 = vmul.f32 0.5, %v3161_v20  ;;  %v3738_v18 = vmul.f32 %v3706_v22, %v3258_v51 }
 0x37f   : > { %v12399_v11 = vpop.f32.mrb[12].mxu1  ;;  %13554 = vrcp.f32 %v3322_v15  ;;  %v3773_v32 = vmul.f32 1.442695, %v3739_v52  ;;  %v15512_v28 = vmul.f32 0.70710677, %v15496_v30  ;;  %v15520_v51 = vadd.f32 %v15462_v21, %v3126_v5 }
 0x380   : > { %v12957_v4 = vadd.f32 %v12399_v11, %v15415_v34  ;;  %v2978_v54 = vpop.f32.mrb[13].mxu1  ;;  %v3775_v20 = vmul.f32 1.442695, %v3740_v27  ;;  %v15517_v45 = vmul.f32 0.70710677, %v15502_v24  ;;  %v15528_v16 = vadd.f32 %v15462_v21, %v3127_v12 }
 0x381   : > { %v12958_v41 = vadd.f32 %v2978_v54, %v15417_v29  ;;  %v12400_v37 = vpop.f32.mrb[14].mxu1  ;;  %v3769_v46 = vmul.f32 1.442695, %v3737_v56  ;;  %v3263_v39 = vand.u32 2147483647, %v15512_v28  ;;  %13556 = vpow2.f32 %v3773_v32 }
 0x382   : > { %3104 = vst.msk [vmem:[#allocation2 + $0x70] sm:$0xff] %vm3089_vm3, %v12957_v4  ;;  %v12959_v34 = vadd.f32 %v12400_v37, %v15419_v61  ;;  %v2981_v19 = vpop.f32.mrb[15].mxu1  ;;  %v15524_v61 = vmul.f32 0.5, %v15474_v58  ;;  %v3264_v35 = vand.u32 2147483647, %v15517_v45  ;;  %13558 = vpow2.f32 %v3775_v20 }
 0x383   : > { %3102 = vst.msk [vmem:[#allocation2 + $0x60] sm:$0xff] %vm3089_vm3, %v12958_v41  ;;  %v12960_v29 = vadd.f32 %v2981_v19, %v15421_v17  ;;  %v3771_v17 = vmul.f32 1.442695, %v3738_v18  ;;  %v15533_v23 = vmul.f32 0.70710677, %v15520_v51  ;;  %v3711_v58 = vsub.f32 0.0, %v3263_v39 }
 0x384   : > { %3105 = vst.msk [vmem:[#allocation2 + $0x78] sm:$0xff] %vm3089_vm3, %v12959_v34  ;;  %v3295_v42 = vmul.f32 0.3275911, %v3263_v39  ;;  %v15538_v10 = vmul.f32 0.70710677, %v15528_v16  ;;  %v3712_v22 = vsub.f32 0.0, %v3264_v35 }
 0x385   : > { %3103 = vst.msk [vmem:[#allocation2 + $0x68] sm:$0xff] %vm3089_vm3, %v12960_v29  ;;  %v3296_v15 = vmul.f32 0.3275911, %v3264_v35  ;;  %v3743_v54 = vmul.f32 %v3711_v58, %v3263_v39  ;;  %vm3900_vm6 = vcmp.lt.f32.partialorder %v15478_v49, 0.0  ;;  %vm3898_vm7 = vcmp.lt.f32.partialorder %v15482_v44, 0.0 }
 0x386   : > { %v15535_v36 = vpop.eup %13548  ;;  %v3327_v4 = vadd.f32 1.0, %v3295_v42  ;;  %vm3903_vm8 = vcmp.lt.f32.partialorder %v15512_v28, 0.0  ;;  %vm3904_vm9 = vcmp.lt.f32.partialorder %v15517_v45, 0.0  ;;  %vm3901_vm10 = vcmp.lt.f32.partialorder %v15533_v23, 0.0 }
 0x387   : > { %v15540_v31 = vpop.eup %13550  ;;  %v12403_v60 = vpop.f32.mrb[16].mxu1  ;;  %v3419_v33 = vmul.f32 1.0614054, %v15535_v36  ;;  %v3328_v18 = vadd.f32 1.0, %v3296_v15  ;;  %v3781_v42 = vmul.f32 1.442695, %v3743_v54 }
 0x388   : > { %v15543_v7 = vpop.eup %13552  ;;  %v12961_v52 = vadd.f32 %v12403_v60, %v15423_v57  ;;  %v2994_v11 = vpop.f32.mrb[17].mxu1  ;;  %v3417_v27 = vmul.f32 1.0614054, %v15540_v31  ;;  %13560 = vrcp.f32 %v3327_v4  ;;  %v3744_v57 = vmul.f32 %v3712_v22, %v3264_v35 }
 0x389   : > { %v12962_v56 = vadd.f32 %v2994_v11, %v15425_v25  ;;  %v12404_v5 = vpop.f32.mrb[18].mxu1  ;;  %v3420_v41 = vmul.f32 1.0614054, %v15543_v7  ;;  %v3451_v37 = vadd.f32 -1.4531521, %v3419_v33  ;;  %v15551_v32 = vpop.eup %13554  ;;  %13562 = vrcp.f32 %v3328_v18 }
 0x38a   : > { %3108 = vst.msk [vmem:[#allocation2 + $0x90] sm:$0xff] %vm3089_vm3, %v12961_v52  ;;  %v12963_v12 = vadd.f32 %v12404_v5, %v15427_v55  ;;  %v2997_v34 = vpop.f32.mrb[19].mxu1  ;;  %v3449_v19 = vadd.f32 -1.4531521, %v3417_v27  ;;  %13564 = vpow2.f32 %v3769_v46  ;;  %vm3902_vm12 = vcmp.lt.f32.partialorder %v15538_v10, 0.0 }
 0x38b   : > { %3106 = vst.msk [vmem:[#allocation2 + $0x80] sm:$0xff] %vm3089_vm3, %v12962_v56  ;;  %v12964_v29 = vadd.f32 %v2997_v34, %v15429_v13  ;;  %v3452_v25 = vadd.f32 -1.4531521, %v3420_v41  ;;  %v3483_v20 = vmul.f32 %v15535_v36, %v3451_v37  ;;  %v3418_v39 = vmul.f32 1.0614054, %v15551_v32  ;;  %v13557_v4 = vpop.eup %13556 }
 0x38c   : > { %3109 = vst.msk [vmem:[#allocation2 + $0x98] sm:$0xff] %vm3089_vm3, %v12963_v12  ;;  %v3481_v55 = vmul.f32 %v15540_v31, %v3449_v19  ;;  %v3261_v60 = vand.u32 2147483647, %v15533_v23  ;;  %v15563_v13 = vand.u32 2147483647, %v15538_v10  ;;  %13566 = vpow2.f32 %v3771_v17  ;;  %v13559_v18 = vpop.eup %13558 }
 0x38d   : > { %3107 = vst.msk [vmem:[#allocation2 + $0x88] sm:$0xff] %vm3089_vm3, %v12964_v29  ;;  %v3484_v35 = vmul.f32 %v15543_v7, %v3452_v25  ;;  %v3515_v58 = vadd.f32 1.4214138, %v3483_v20  ;;  %v3450_v33 = vadd.f32 -1.4531521, %v3418_v39  ;;  %13568 = vpow2.f32 %v3781_v42 }
 0x38e   : > { %v3513_v15 = vadd.f32 1.4214138, %v3481_v55  ;;  %v3783_v22 = vmul.f32 1.442695, %v3744_v57  ;;  %v3293_v46 = vmul.f32 0.3275911, %v3261_v60 }
 0x38f   : > { %v12407_v52 = vpop.f32.mrb[20].mxu1  ;;  %v3516_v11 = vadd.f32 1.4214138, %v3484_v35  ;;  %v3547_v27 = vmul.f32 %v15535_v36, %v3515_v58  ;;  %v3482_v5 = vmul.f32 %v15551_v32, %v3450_v33  ;;  %v3294_v37 = vmul.f32 0.3275911, %v15563_v13 }
 0x390   : > { %v12965_v54 = vadd.f32 %v12407_v52, %v15431_v43  ;;  %v3010_v56 = vpop.f32.mrb[21].mxu1  ;;  %v3545_v41 = vmul.f32 %v15540_v31, %v3513_v15  ;;  %v3325_v57 = vadd.f32 1.0, %v3293_v46  ;;  %v3709_v33 = vsub.f32 0.0, %v3261_v60 }
 0x391   : > { %v12966_v17 = vadd.f32 %v3010_v56, %v15433_v38  ;;  %v12408_v12 = vpop.f32.mrb[22].mxu1  ;;  %v3548_v34 = vmul.f32 %v15543_v7, %v3516_v11  ;;  %v3579_v19 = vadd.f32 -0.28449672, %v3547_v27  ;;  %v3514_v25 = vadd.f32 1.4214138, %v3482_v5 }
 0x392   : > { %3112 = vst.msk [vmem:[#allocation2 + $0xb0] sm:$0xff] %vm3089_vm3, %v12965_v54  ;;  %v12967_v29 = vadd.f32 %v12408_v12, %v15435_v0  ;;  %v3013_v43 = vpop.f32.mrb[23].mxu1  ;;  %v3577_v20 = vadd.f32 -0.28449672, %v3545_v41  ;;  %v3326_v39 = vadd.f32 1.0, %v3294_v37  ;;  %13570 = vrcp.f32 %v3325_v57  ;;  %v15577_v35 = vpop.eup %13560 }
 0x393   : > { %3110 = vst.msk [vmem:[#allocation2 + $0xa0] sm:$0xff] %vm3089_vm3, %v12966_v17  ;;  %v12968_v55 = vadd.f32 %v3013_v43, %v15437_v53  ;;  %v3580_v42 = vadd.f32 -0.28449672, %v3548_v34  ;;  %v3611_v38 = vmul.f32 %v15535_v36, %v3579_v19  ;;  %v3546_v58 = vmul.f32 %v15551_v32, %v3514_v25  ;;  %v15582_v15 = vpop.eup %13562 }
 0x394   : > { %3113 = vst.msk [vmem:[#allocation2 + $0xb8] sm:$0xff] %vm3089_vm3, %v12967_v29  ;;  %v3609_v0 = vmul.f32 %v15540_v31, %v3577_v20  ;;  %13572 = vrcp.f32 %v3326_v39  ;;  %v3423_v11 = vmul.f32 1.0614054, %v15577_v35  ;;  %v3710_v27 = vsub.f32 0.0, %v15563_v13  ;;  %v13565_v46 = vpop.eup %13564 }
 0x395   : > { %3111 = vst.msk [vmem:[#allocation2 + $0xa8] sm:$0xff] %vm3089_vm3, %v12968_v55  ;;  %v3612_v53 = vmul.f32 %v15543_v7, %v3580_v42  ;;  %v3643_v52 = vadd.f32 0.2548296, %v3611_v38  ;;  %v3578_v54 = vadd.f32 -0.28449672, %v3546_v58  ;;  %13574 = vpow2.f32 %v3783_v22 }
 0x396   : > { %v3641_v56 = vadd.f32 0.2548296, %v3609_v0  ;;  %v3424_v5 = vmul.f32 1.0614054, %v15582_v15  ;;  %v3455_v12 = vadd.f32 -1.4531521, %v3423_v11  ;;  %v3741_v34 = vmul.f32 %v3709_v33, %v3261_v60  ;;  %v13567_v19 = vpop.eup %13566 }
 0x397   : > { %v12411_v41 = vpop.f32.mrb[24].mxu1  ;;  %v3644_v37 = vadd.f32 0.2548296, %v3612_v53  ;;  %v3675_v17 = vmul.f32 %v15535_v36, %v3643_v52  ;;  %v3610_v43 = vmul.f32 %v15551_v32, %v3578_v54  ;;  %v15596_v22 = vpop.eup %13568  ;;  %v3742_v11 = vmul.f32 %v3710_v27, %v15563_v13 }
 0x398   : > { %v12969_v57 = vadd.f32 %v12411_v41, %v15439_v26  ;;  %v3026_v29 = vpop.f32.mrb[25].mxu1  ;;  %v3673_v25 = vmul.f32 %v15540_v31, %v3641_v56  ;;  %v3456_v20 = vadd.f32 -1.4531521, %v3424_v5  ;;  %v3487_v60 = vmul.f32 %v15577_v35, %v3455_v12 }
 0x399   : > { %v12970_v39 = vadd.f32 %v3026_v29, %v15441_v59  ;;  %v12412_v36 = vpop.f32.mrb[26].mxu1  ;;  %v3676_v55 = vmul.f32 %v15543_v7, %v3644_v37  ;;  %v3835_v42 = vmul.f32 %v13557_v4, %v3675_v17  ;;  %v3642_v58 = vadd.f32 0.2548296, %v3610_v43 }
 0x39a   : > { %3116 = vst.msk [vmem:[#allocation2 + $0xd0] sm:$0xff] %vm3089_vm3, %v12969_v57  ;;  %v12971_v26 = vadd.f32 %v12412_v36, %v15443_v48  ;;  %v3029_v38 = vpop.f32.mrb[27].mxu1  ;;  %v3833_v0 = vmul.f32 %v13565_v46, %v3673_v25  ;;  %v3488_v31 = vmul.f32 %v15582_v15, %v3456_v20  ;;  %v3519_v7 = vadd.f32 1.4214138, %v3487_v60 }
 0x39b   : > { %3114 = vst.msk [vmem:[#allocation2 + $0xc0] sm:$0xff] %vm3089_vm3, %v12970_v39  ;;  %v12972_v33 = vadd.f32 %v3029_v38, %v15445_v2  ;;  %v3836_v59 = vmul.f32 %v13559_v18, %v3676_v55  ;;  %v3867_v53 = vsub.f32 1.0, %v3835_v42  ;;  %v3674_v4 = vmul.f32 %v15551_v32, %v3642_v58 }
 0x39c   : > { %3117 = vst.msk [vmem:[#allocation2 + $0xd8] sm:$0xff] %vm3089_vm3, %v12971_v26  ;;  %v3865_v52 = vsub.f32 1.0, %v3833_v0  ;;  %v3520_v48 = vadd.f32 1.4214138, %v3488_v31  ;;  %v15610_v46 = vpop.eup %13570  ;;  %v3551_v2 = vmul.f32 %v15577_v35, %v3519_v7  ;;  %v3777_v18 = vmul.f32 1.442695, %v3741_v34 }
 0x39d   : > { %3115 = vst.msk [vmem:[#allocation2 + $0xc8] sm:$0xff] %vm3089_vm3, %v12972_v33  ;;  %v3868_v54 = vsub.f32 1.0, %v3836_v59  ;;  %v3931_v56 = vsub.f32 0.0, %v3867_v53  ;;  %v3834_v41 = vmul.f32 %v13567_v19, %v3674_v4  ;;  %v3421_v32 = vmul.f32 1.0614054, %v15610_v46  ;;  %v3132_v33 = vld [vmem:[#allocation2 + $0x50] sm:$0xff] }
 0x39e   : > { %v15614_v5 = vpop.eup %13572  ;;  %v3929_v37 = vsub.f32 0.0, %v3865_v52  ;;  %v3552_v17 = vmul.f32 %v15582_v15, %v3520_v48  ;;  %v3583_v27 = vadd.f32 -0.28449672, %v3551_v2  ;;  %v3779_v60 = vmul.f32 1.442695, %v3742_v11 }
 0x39f   : > { %v12415_v12 = vpop.f32.mrb[28].mxu1  ;;  %v3932_v57 = vsub.f32 0.0, %v3868_v54  ;;  %v3963_v13 = vsel %vm3899_vm4, %v3931_v56, %v3867_v53  ;;  %v3422_v29 = vmul.f32 1.0614054, %v15614_v5  ;;  %v13575_v43 = vpop.eup %13574  ;;  %v3866_v39 = vsub.f32 1.0, %v3834_v41 }
 0x3a0   : > { %v12973_v25 = vadd.f32 %v12415_v12, %v15447_v8  ;;  %v3042_v34 = vpop.f32.mrb[29].mxu1  ;;  %v3995_v20 = vadd.f32 1.0, %v3963_v13  ;;  %v3961_v19 = vsel %vm3897_vm5, %v3929_v37, %v3865_v52  ;;  %v3584_v14 = vadd.f32 -0.28449672, %v3552_v17 }
 0x3a1   : > { %v12974_v36 = vadd.f32 %v3042_v34, %v15449_v1  ;;  %v12416_v55 = vpop.f32.mrb[30].mxu1  ;;  %v3964_v42 = vsel %vm3900_vm6, %v3932_v57, %v3868_v54  ;;  %v3930_v58 = vsub.f32 0.0, %v3866_v39  ;;  %v3993_v0 = vadd.f32 1.0, %v3961_v19 }
 0x3a2   : > { %3120 = vst.msk [vmem:[#allocation2 + $0xf0] sm:$0xff] %vm3089_vm3, %v12973_v25  ;;  %v12975_v26 = vadd.f32 %v12416_v55, %v15451_v62  ;;  %v3045_v38 = vpop.f32.mrb[31].mxu1  ;;  %v3996_v8 = vadd.f32 1.0, %v3964_v42  ;;  %v4027_v1 = vmul.f32 %v3995_v20, %v15499_v63  ;;  %v3615_v31 = vmul.f32 %v15577_v35, %v3583_v27 }
 0x3a3   : > { %3118 = vst.msk [vmem:[#allocation2 + $0xe0] sm:$0xff] %vm3089_vm3, %v12974_v36  ;;  %v12976_v47 = vadd.f32 %v3045_v38, %v15453_v40  ;;  %v3616_v49 = vmul.f32 %v15582_v15, %v3584_v14  ;;  %v3962_v62 = vsel %vm3898_vm7, %v3930_v58, %v3866_v39  ;;  %v3453_v53 = vadd.f32 -1.4531521, %v3421_v32 }
 0x3a4   : > { %3121 = vst.msk [vmem:[#allocation2 + $0xf8] sm:$0xff] %vm3089_vm3, %v12975_v26  ;;  %v4028_v59 = vmul.f32 %v3996_v8, %v15509_v6  ;;  %v3454_v7 = vadd.f32 -1.4531521, %v3422_v29  ;;  %v3994_v4 = vadd.f32 1.0, %v3962_v62  ;;  %v3199_v40 = vmul.f32 0.5, %v15496_v30  ;;  %v3130_v62 = vld [vmem:[#allocation2 + $0x40] sm:$0xff] }
 0x3a5   : > { %3119 = vst.msk [vmem:[#allocation2 + $0xe8] sm:$0xff] %vm3089_vm3, %v12976_v47  ;;  %v3647_v63 = vadd.f32 0.2548296, %v3615_v31  ;;  %v3648_v52 = vadd.f32 0.2548296, %v3616_v49  ;;  %v3485_v11 = vmul.f32 %v15610_v46, %v3453_v53  ;;  %v15645_v6 = vadd.f32 %v15462_v21, %v3132_v33 }
 0x3a6   : > { %v15640_v48 = vpack.c.bf16 %v4028_v59, %v4027_v1  ;;  %v3486_v54 = vmul.f32 %v15614_v5, %v3454_v7  ;;  %v4025_v44 = vmul.f32 %v3993_v0, %v15505_v50  ;;  %v4026_v56 = vmul.f32 %v3994_v4, %v15524_v61  ;;  %v3133_v50 = vld [vmem:[#allocation2 + $0x58] sm:$0xff] }
 0x3a7   : > { %v3679_v2 = vmul.f32 %v15577_v35, %v3647_v63  ;;  %v3680_v41 = vmul.f32 %v15582_v15, %v3648_v52  ;;  %v3517_v37 = vadd.f32 1.4214138, %v3485_v11  ;;  %13576 = vpow2.f32 %v3777_v18 }
 0x3a8   : > { %v4097_v30 = vshrl.u32 %v15640_v48, 16  ;;  %4074 = vst.msk [vmem:[#allocation3 + $0x10] sm:$0xff] %vm900_vm2, %v15640_v48  ;;  %v3518_v17 = vadd.f32 1.4214138, %v3486_v54  ;;  %v15654_v32 = vpack.c.bf16 %v4026_v56, %v4025_v44  ;;  %13578 = vpow2.f32 %v3779_v60  ;;  %v3131_v54 = vld [vmem:[#allocation2 + $0x48] sm:$0xff] }
 0x3a9   : > { %v3839_v12 = vmul.f32 %v15596_v22, %v3679_v2  ;;  %v3840_v57 = vmul.f32 %v13575_v43, %v3680_v41  ;;  %v4100_v35 = vshll.u32 %v15640_v48, 16  ;;  %v3549_v15 = vmul.f32 %v15610_v46, %v3517_v37 }
 0x3aa   : > { %v4099_v61 = vrot.slane %v4097_v30, 7  ;;  %v3550_v13 = vmul.f32 %v15614_v5, %v3518_v17  ;;  %v4090_v27 = vshrl.u32 %v15654_v32, 16  ;;  %4073 = vst.msk [vmem:[#allocation3 + $0x8] sm:$0xff] %vm900_vm2, %v15654_v32  ;;  %v15667_v34 = vadd.f32 %v15462_v21, %v3133_v50 }
 0x3ab   : > { %v3871_v18 = vsub.f32 1.0, %v3839_v12  ;;  %v3872_v29 = vsub.f32 1.0, %v3840_v57  ;;  %v3581_v43 = vadd.f32 -0.28449672, %v3549_v15  ;;  %v4093_v39 = vshll.u32 %v15654_v32, 16 }
 0x3ac   : > { %v4102_v22 = vor.u32 %v4100_v35, %v4099_v61  ;;  %v3582_v25 = vadd.f32 -0.28449672, %v3550_v13  ;;  %v4092_v20 = vrot.slane %v4090_v27, 7  ;;  %v15677_v14 = vmul.f32 0.70710677, %v15645_v6 }
 0x3ad   : > { %v3935_v19 = vsub.f32 0.0, %v3871_v18  ;;  %v3936_v36 = vsub.f32 0.0, %v3872_v29  ;;  %v3613_v55 = vmul.f32 %v15610_v46, %v3581_v43  ;;  %v3200_v26 = vmul.f32 0.5, %v15502_v24 }
 0x3ae   : > { %4203 = vrot.lane.b32.xlu1 %v4102_v22, %s19177_s17  ;;  %v3614_v42 = vmul.f32 %v15614_v5, %v3582_v25  ;;  %v4095_v60 = vor.u32 %v4093_v39, %v4092_v20  ;;  %v15686_v1 = vmul.f32 0.70710677, %v15667_v34  ;;  %v3267_v31 = vand.u32 2147483647, %v15677_v14 }
 0x3af   : > { %v3967_v38 = vsel %vm3903_vm8, %v3935_v19, %v3871_v18  ;;  %v3968_v8 = vsel %vm3904_vm9, %v3936_v36, %v3872_v29  ;;  %v3645_v47 = vadd.f32 0.2548296, %v3613_v55  ;;  %v3197_v44 = vmul.f32 0.5, %v15520_v51  ;;  %v3136_v18 = vld [vmem:[#allocation2 + $0x70] sm:$0xff]  ;;  %v3137_v36 = vld [vmem:[#allocation2 + $0x78] sm:$0xff] }
 0x3b0   : > { %v3999_v58 = vadd.f32 1.0, %v3967_v38  ;;  %v4000_v0 = vadd.f32 1.0, %v3968_v8  ;;  %v3646_v45 = vadd.f32 0.2548296, %v3614_v42  ;;  %4201 = vrot.lane.b32.xlu0 %v4095_v60, %s19177_s17  ;;  %v3268_v7 = vand.u32 2147483647, %v15686_v1 }
 0x3b1   : > { %v13577_v49 = vpop.eup %13576  ;;  %v3677_v24 = vmul.f32 %v15610_v46, %v3645_v47  ;;  %v3299_v4 = vmul.f32 0.3275911, %v3267_v31  ;;  %v3170_v17 = vadd.f32 %v15462_v21, %v3131_v54  ;;  %v4299_v61 = vrot.slane %v4100_v35, 1 }
 0x3b2   : > { %v4031_v33 = vmul.f32 %v3999_v58, %v3199_v40  ;;  %v4032_v59 = vmul.f32 %v4000_v0, %v3200_v26  ;;  %v3678_v28 = vmul.f32 %v15614_v5, %v3646_v45  ;;  %v13579_v53 = vpop.eup %13578  ;;  %v3300_v56 = vmul.f32 0.3275911, %v3268_v7 }
 0x3b3   : > { %v3837_v52 = vmul.f32 %v13577_v49, %v3677_v24  ;;  %v3331_v2 = vadd.f32 1.0, %v3299_v4  ;;  %v3169_v40 = vadd.f32 %v15462_v21, %v3130_v62  ;;  %v3715_v15 = vsub.f32 0.0, %v3267_v31 }
 0x3b4   : > { %v15692_v63 = vpack.c.bf16 %v4032_v59, %v4031_v33  ;;  %v3838_v11 = vmul.f32 %v13579_v53, %v3678_v28  ;;  %v3332_v37 = vadd.f32 1.0, %v3300_v56  ;;  %v3716_v22 = vsub.f32 0.0, %v3268_v7 }
 0x3b5   : > { %v3869_v5 = vsub.f32 1.0, %v3837_v52  ;;  %13580 = vrcp.f32 %v3331_v2  ;;  %v15705_v13 = vmul.f32 0.70710677, %v3169_v40  ;;  %v3198_v43 = vmul.f32 0.5, %v15528_v16 }
 0x3b6   : > { %v4111_v46 = vshrl.u32 %v15692_v63, 16  ;;  %4076 = vst.msk [vmem:[#allocation3 + $0x20] sm:$0xff] %vm900_vm2, %v15692_v63  ;;  %v3870_v41 = vsub.f32 1.0, %v3838_v11  ;;  %v4114_v12 = vshll.u32 %v15692_v63, 16  ;;  %13582 = vrcp.f32 %v3332_v37  ;;  %v3134_v37 = vld [vmem:[#allocation2 + $0x60] sm:$0xff] }
 0x3b7   : > { %v3933_v57 = vsub.f32 0.0, %v3869_v5  ;;  %v15710_v19 = vmul.f32 0.70710677, %v3170_v17  ;;  %v4297_v35 = vrot.slane %v4093_v39, 1  ;;  %v3265_v55 = vand.u32 2147483647, %v15705_v13 }
 0x3b8   : > { %v4113_v51 = vrot.slane %v4111_v46, 7  ;;  %v3934_v50 = vsub.f32 0.0, %v3870_v41  ;;  %v15717_v42 = vadd.f32 %v15462_v21, %v3136_v18  ;;  %v3747_v38 = vmul.f32 %v3715_v15, %v3267_v31  ;;  %v3135_v15 = vld [vmem:[#allocation2 + $0x68] sm:$0xff] }
 0x3b9   : > { %v3965_v10 = vsel %vm3901_vm10, %v3933_v57, %v3869_v5  ;;  %v3266_v16 = vand.u32 2147483647, %v15710_v19  ;;  %v4300_v8 = vor.u32 %v4299_v61, %v4097_v30  ;;  %v3748_v58 = vmul.f32 %v3716_v22, %v3268_v7 }
 0x3ba   : > { %v4116_v23 = vor.u32 %v4114_v12, %v4113_v51  ;;  %v3966_v29 = vsel %vm3902_vm12, %v3934_v50, %v3870_v41  ;;  %v3997_v25 = vadd.f32 1.0, %v3965_v10  ;;  %v3297_v0 = vmul.f32 0.3275911, %v3265_v55 }
 0x3bb   : > { %v3998_v20 = vadd.f32 1.0, %v3966_v29  ;;  %v15723_v47 = vadd.f32 %v15462_v21, %v3137_v36  ;;  %v15728_v39 = vmul.f32 0.5, %v15645_v6  ;;  %v15731_v49 = vmul.f32 0.5, %v15667_v34 }
 0x3bc   : > { %4207 = vrot.lane.b32.xlu1 %v4116_v23, %s19177_s17  ;;  %v4029_v60 = vmul.f32 %v3997_v25, %v3197_v44  ;;  %v3298_v33 = vmul.f32 0.3275911, %v3266_v16  ;;  %v4298_v48 = vor.u32 %v4297_v35, %v4090_v27  ;;  %v3329_v30 = vadd.f32 1.0, %v3297_v0 }
 0x3bd   : > { %v4030_v26 = vmul.f32 %v3998_v20, %v3198_v43  ;;  %v3713_v31 = vsub.f32 0.0, %v3265_v55  ;;  %v15737_v59 = vmul.f32 0.70710677, %v15717_v42  ;;  %v3789_v6 = vmul.f32 1.442695, %v3747_v38 }
 0x3be   : > { %v15744_v34 = vmul.f32 0.5, %v3169_v40  ;;  %v3330_v62 = vadd.f32 1.0, %v3298_v33  ;;  %v3791_v32 = vmul.f32 1.442695, %v3748_v58  ;;  %13584 = vrcp.f32 %v3329_v30 }
 0x3bf   : > { %v15725_v45 = vpack.c.bf16 %v4030_v26, %v4029_v60  ;;  %v15739_v24 = vpop.eup %13580  ;;  %v15748_v27 = vmul.f32 0.70710677, %v15723_v47  ;;  %v3714_v11 = vsub.f32 0.0, %v3266_v16  ;;  %v3745_v56 = vmul.f32 %v3713_v31, %v3265_v55 }
 0x3c0   : > { %4331 = vrot.lane.b32.xlu1 %v4300_v8, %s19175_s15  ;;  %v3427_v53 = vmul.f32 1.0614054, %v15739_v24  ;;  %v15750_v7 = vpop.eup %13582  ;;  %13586 = vrcp.f32 %v3330_v62  ;;  %v3271_v2 = vand.u32 2147483647, %v15737_v59  ;;  %v15759_v5 = vmul.f32 0.5, %v3170_v17 }
 0x3c1   : > { %v4104_v28 = vshrl.u32 %v15725_v45, 16  ;;  %4075 = vst.msk [vmem:[#allocation3 + $0x18] sm:$0xff] %vm900_vm2, %v15725_v45  ;;  %v4107_v52 = vshll.u32 %v15725_v45, 16  ;;  %v3428_v54 = vmul.f32 1.0614054, %v15750_v7  ;;  %13588 = vpow2.f32 %v3789_v6 }
 0x3c2   : > { %v3459_v44 = vadd.f32 -1.4531521, %v3427_v53  ;;  %v3272_v41 = vand.u32 2147483647, %v15748_v27  ;;  %v4303_v50 = vrot.slane %v4114_v12, 1  ;;  %13590 = vpow2.f32 %v3791_v32 }
 0x3c3   : > { %v4106_v4 = vrot.slane %v4104_v28, 7  ;;  %v3460_v51 = vadd.f32 -1.4531521, %v3428_v54  ;;  %v3303_v61 = vmul.f32 0.3275911, %v3271_v2  ;;  %v3746_v18 = vmul.f32 %v3714_v11, %v3266_v16 }
 0x3c4   : > { %v3491_v57 = vmul.f32 %v15739_v24, %v3459_v44  ;;  %v3304_v23 = vmul.f32 0.3275911, %v3272_v41  ;;  %v3719_v10 = vsub.f32 0.0, %v3271_v2  ;;  %v3785_v22 = vmul.f32 1.442695, %v3745_v56 }
 0x3c5   : > { %v4109_v40 = vor.u32 %v4107_v52, %v4106_v4  ;;  %v3492_v17 = vmul.f32 %v15750_v7, %v3460_v51  ;;  %v3335_v43 = vadd.f32 1.0, %v3303_v61  ;;  %v3720_v20 = vsub.f32 0.0, %v3272_v41 }
 0x3c6   : > { %v3523_v29 = vadd.f32 1.4214138, %v3491_v57  ;;  %v3336_v25 = vadd.f32 1.0, %v3304_v23  ;;  %v15768_v36 = vadd.f32 %v15462_v21, %v3134_v37  ;;  %v15771_v12 = vadd.f32 %v15462_v21, %v3135_v15 }
 0x3c7   : > { %4205 = vrot.lane.b32.xlu0 %v4109_v40, %s19177_s17  ;;  %v3524_v35 = vadd.f32 1.4214138, %v3492_v17  ;;  %v15776_v60 = vor.u32 %v4303_v50, %v4111_v46  ;;  %13592 = vrcp.f32 %v3335_v43  ;;  %v3787_v26 = vmul.f32 1.442695, %v3746_v18 }
 0x3c8   : > { %v3555_v55 = vmul.f32 %v15739_v24, %v3523_v29  ;;  %v15780_v38 = vmul.f32 0.5, %v15717_v42  ;;  %13594 = vrcp.f32 %v3336_v25  ;;  %v3751_v16 = vmul.f32 %v3719_v10, %v3271_v2  ;;  %v15782_v8 = vpop.eup %13584 }
 0x3c9   : > { %v3556_v58 = vmul.f32 %v15750_v7, %v3524_v35  ;;  %v15786_v33 = vmul.f32 0.5, %v15723_v47  ;;  %v15789_v63 = vmul.f32 0.70710677, %v15768_v36  ;;  %13596 = vpow2.f32 %v3785_v22 }
 0x3ca   : > { %v3587_v0 = vadd.f32 -0.28449672, %v3555_v55  ;;  %v15791_v46 = vpop.eup %13586  ;;  %v3752_v42 = vmul.f32 %v3720_v20, %v3272_v41  ;;  %v15795_v30 = vmul.f32 0.70710677, %v15771_v12  ;;  %13598 = vpow2.f32 %v3787_v26 }
 0x3cb   : > { %4329 = vrot.lane.b32.xlu0 %v4298_v48, %s19175_s15  ;;  %v3425_v48 = vmul.f32 1.0614054, %v15782_v8  ;;  %v3588_v31 = vadd.f32 -0.28449672, %v3556_v58  ;;  %v3426_v62 = vmul.f32 1.0614054, %v15791_v46  ;;  %v13589_v53 = vpop.eup %13588 }
 0x3cc   : > { %v3619_v6 = vmul.f32 %v15739_v24, %v3587_v0  ;;  %v3269_v47 = vand.u32 2147483647, %v15789_v63  ;;  %v3797_v4 = vmul.f32 1.442695, %v3751_v16  ;;  %v3270_v11 = vand.u32 2147483647, %v15795_v30  ;;  %v13591_v40 = vpop.eup %13590 }
 0x3cd   : > { %v3457_v32 = vadd.f32 -1.4531521, %v3425_v48  ;;  %v3620_v54 = vmul.f32 %v15750_v7, %v3588_v31  ;;  %v3458_v56 = vadd.f32 -1.4531521, %v3426_v62  ;;  %vm3907_vm13 = vcmp.lt.f32.partialorder %v15677_v14, 0.0  ;;  %v3140_v48 = vld [vmem:[#allocation2 + $0x90] sm:$0xff] }
 0x3ce   : > { %v3651_v44 = vadd.f32 0.2548296, %v3619_v6  ;;  %v3301_v2 = vmul.f32 0.3275911, %v3269_v47  ;;  %v3799_v37 = vmul.f32 1.442695, %v3752_v42  ;;  %13600 = vpow2.f32 %v3797_v4 }
 0x3cf   : > { %v3489_v41 = vmul.f32 %v15782_v8, %v3457_v32  ;;  %v3302_v51 = vmul.f32 0.3275911, %v3270_v11  ;;  %v3717_v57 = vsub.f32 0.0, %v3269_v47  ;;  %v3652_v50 = vadd.f32 0.2548296, %v3620_v54  ;;  %v3141_v42 = vld [vmem:[#allocation2 + $0x98] sm:$0xff] }
 0x3d0   : > { %v3683_v61 = vmul.f32 %v15739_v24, %v3651_v44  ;;  %v3490_v15 = vmul.f32 %v15791_v46, %v3458_v56  ;;  %v3333_v18 = vadd.f32 1.0, %v3301_v2  ;;  %vm3908_vm14 = vcmp.lt.f32.partialorder %v15686_v1, 0.0 }
 0x3d1   : > { %v3521_v23 = vadd.f32 1.4214138, %v3489_v41  ;;  %v3334_v10 = vadd.f32 1.0, %v3302_v51  ;;  %v3749_v17 = vmul.f32 %v3717_v57, %v3269_v47  ;;  %v15807_v29 = vpop.eup %13592  ;;  %v3684_v22 = vmul.f32 %v15750_v7, %v3652_v50 }
 0x3d2   : > { %v3843_v43 = vmul.f32 %v13589_v53, %v3683_v61  ;;  %v3522_v25 = vadd.f32 1.4214138, %v3490_v15  ;;  %13602 = vrcp.f32 %v3333_v18  ;;  %v15810_v20 = vpop.eup %13594  ;;  %v3431_v35 = vmul.f32 1.0614054, %v15807_v29 }
 0x3d3   : > { %v3553_v24 = vmul.f32 %v15782_v8, %v3521_v23  ;;  %13604 = vrcp.f32 %v3334_v10  ;;  %v3718_v55 = vsub.f32 0.0, %v3270_v11  ;;  %v3844_v26 = vmul.f32 %v13591_v40, %v3684_v22  ;;  %v13597_v7 = vpop.eup %13596 }
 0x3d4   : > { %v3875_v16 = vsub.f32 1.0, %v3843_v43  ;;  %v3554_v58 = vmul.f32 %v15791_v46, %v3522_v25  ;;  %v3432_v0 = vmul.f32 1.0614054, %v15810_v20  ;;  %v3463_v6 = vadd.f32 -1.4531521, %v3431_v35  ;;  %v13599_v54 = vpop.eup %13598 }
 0x3d5   : > { %v3585_v31 = vadd.f32 -0.28449672, %v3553_v24  ;;  %13606 = vpow2.f32 %v3799_v37  ;;  %v3793_v62 = vmul.f32 1.442695, %v3749_v17  ;;  %v3876_v47 = vsub.f32 1.0, %v3844_v26 }
 0x3d6   : > { %v3939_v53 = vsub.f32 0.0, %v3875_v16  ;;  %v3586_v32 = vadd.f32 -0.28449672, %v3554_v58  ;;  %v3464_v4 = vadd.f32 -1.4531521, %v3432_v0  ;;  %v3495_v56 = vmul.f32 %v15807_v29, %v3463_v6 }
 0x3d7   : > { %v3617_v44 = vmul.f32 %v15782_v8, %v3585_v31  ;;  %v15819_v2 = vadd.f32 %v15462_v21, %v3140_v48  ;;  %v15822_v40 = vadd.f32 %v15462_v21, %v3141_v42  ;;  %v3940_v41 = vsub.f32 0.0, %v3876_v47 }
 0x3d8   : > { %v3971_v37 = vsel %vm3907_vm13, %v3939_v53, %v3875_v16  ;;  %v3618_v51 = vmul.f32 %v15791_v46, %v3586_v32  ;;  %v3496_v57 = vmul.f32 %v15810_v20, %v3464_v4  ;;  %v3527_v15 = vadd.f32 1.4214138, %v3495_v56  ;;  %v13601_v17 = vpop.eup %13600 }
 0x3d9   : > { %v4003_v50 = vadd.f32 1.0, %v3971_v37  ;;  %v3649_v61 = vadd.f32 0.2548296, %v3617_v44  ;;  %v3750_v18 = vmul.f32 %v3718_v55, %v3270_v11  ;;  %v3972_v23 = vsel %vm3908_vm14, %v3940_v41, %v3876_v47 }
 0x3da   : > { %v3650_v10 = vadd.f32 0.2548296, %v3618_v51  ;;  %vm3905_vm15 = vcmp.lt.f32.partialorder %v15705_v13, 0.0  ;;  %v3528_v21 = vadd.f32 1.4214138, %v3496_v57  ;;  %13608 = vpow2.f32 %v3793_v62 }
 0x3db   : > { %v4004_v22 = vadd.f32 1.0, %v3972_v23  ;;  %v4035_v14 = vmul.f32 %v4003_v50, %v15728_v39  ;;  %v3681_v43 = vmul.f32 %v15782_v8, %v3649_v61  ;;  %vm3906_vm4 = vcmp.lt.f32.partialorder %v15710_v19, 0.0 }
 0x3dc   : > { %v3559_v25 = vmul.f32 %v15807_v29, %v3527_v15  ;;  %v15835_v24 = vpop.eup %13602  ;;  %v3682_v1 = vmul.f32 %v15791_v46, %v3650_v10  ;;  %v3560_v11 = vmul.f32 %v15810_v20, %v3528_v21  ;;  %v15840_v35 = vmul.f32 0.70710677, %v15819_v2 }
 0x3dd   : > { %v15843_v55 = vmul.f32 0.70710677, %v15822_v40  ;;  %v15845_v26 = vpop.eup %13604  ;;  %v4036_v39 = vmul.f32 %v4004_v22, %v15731_v49  ;;  %v3841_v8 = vmul.f32 %v13597_v7, %v3681_v43  ;;  %v3429_v58 = vmul.f32 1.0614054, %v15835_v24 }
 0x3de   : > { %v3591_v16 = vadd.f32 -0.28449672, %v3559_v25  ;;  %v3842_v0 = vmul.f32 %v13599_v54, %v3682_v1  ;;  %v3592_v48 = vadd.f32 -0.28449672, %v3560_v11  ;;  %v3430_v46 = vmul.f32 1.0614054, %v15845_v26 }
 0x3df   : > { %v3795_v42 = vmul.f32 1.442695, %v3750_v18  ;;  %v13607_v31 = vpop.eup %13606  ;;  %v15850_v6 = vpack.c.bf16 %v4036_v39, %v4035_v14  ;;  %v3873_v62 = vsub.f32 1.0, %v3841_v8  ;;  %v3461_v53 = vadd.f32 -1.4531521, %v3429_v58 }
 0x3e0   : > { %v3623_v47 = vmul.f32 %v15807_v29, %v3591_v16  ;;  %v3874_v32 = vsub.f32 1.0, %v3842_v0  ;;  %v3624_v4 = vmul.f32 %v15810_v20, %v3592_v48  ;;  %v3462_v49 = vadd.f32 -1.4531521, %v3430_v46 }
 0x3e1   : > { %v15855_v7 = vand.u32 2147483647, %v15840_v35  ;;  %v4125_v54 = vshrl.u32 %v15850_v6, 16  ;;  %4078 = vst.msk [vmem:[#allocation3 + $0x30] sm:$0xff] %vm900_vm2, %v15850_v6  ;;  %v3937_v44 = vsub.f32 0.0, %v3873_v62  ;;  %v3493_v57 = vmul.f32 %v15835_v24, %v3461_v53 }
 0x3e2   : > { %v3655_v56 = vadd.f32 0.2548296, %v3623_v47  ;;  %v15861_v41 = vand.u32 2147483647, %v15843_v55  ;;  %v3938_v37 = vsub.f32 0.0, %v3874_v32  ;;  %v3494_v50 = vmul.f32 %v15845_v26, %v3462_v49 }
 0x3e3   : > { %v3656_v51 = vadd.f32 0.2548296, %v3624_v4  ;;  %v4127_v61 = vrot.slane %v4125_v54, 7  ;;  %v4128_v15 = vshll.u32 %v15850_v6, 16  ;;  %v3969_v18 = vsel %vm3905_vm15, %v3937_v44, %v3873_v62 }
 0x3e4   : > { %v3687_v23 = vmul.f32 %v15807_v29, %v3655_v56  ;;  %v13609_v10 = vpop.eup %13608  ;;  %v3970_v21 = vsel %vm3906_vm4, %v3938_v37, %v3874_v32  ;;  %v4001_v22 = vadd.f32 1.0, %v3969_v18  ;;  %v3525_v43 = vadd.f32 1.4214138, %v3493_v57 }
 0x3e5   : > { %v3688_v14 = vmul.f32 %v15810_v20, %v3656_v51  ;;  %v4130_v25 = vor.u32 %v4128_v15, %v4127_v61  ;;  %v4002_v1 = vadd.f32 1.0, %v3970_v21  ;;  %v3526_v39 = vadd.f32 1.4214138, %v3494_v50 }
 0x3e6   : > { %v3847_v11 = vmul.f32 %v13601_v17, %v3687_v23  ;;  %v4033_v8 = vmul.f32 %v4001_v22, %v15744_v34  ;;  %v3557_v16 = vmul.f32 %v15835_v24, %v3525_v43  ;;  %13610 = vpow2.f32 %v3795_v42  ;;  %v3139_v22 = vld [vmem:[#allocation2 + $0x88] sm:$0xff] }
 0x3e7   : > { %v3848_v13 = vmul.f32 %v13607_v31, %v3688_v14  ;;  %4211 = vrot.lane.b32.xlu1 %v4130_v25, %s19177_s17  ;;  %v4034_v19 = vmul.f32 %v4002_v1, %v15759_v5  ;;  %v3558_v20 = vmul.f32 %v15845_v26, %v3526_v39  ;;  %v3307_v58 = vmul.f32 0.3275911, %v15855_v7 }
 0x3e8   : > { %v3879_v29 = vsub.f32 1.0, %v3847_v11  ;;  %v4301_v0 = vrot.slane %v4107_v52, 1  ;;  %v3589_v48 = vadd.f32 -0.28449672, %v3557_v16  ;;  %v3308_v34 = vmul.f32 0.3275911, %v15861_v41 }
 0x3e9   : > { %v3880_v17 = vsub.f32 1.0, %v3848_v13  ;;  %v15885_v46 = vpack.c.bf16 %v4034_v19, %v4033_v8  ;;  %v3590_v42 = vadd.f32 -0.28449672, %v3558_v20  ;;  %v3339_v62 = vadd.f32 1.0, %v3307_v58  ;;  %v15914_v11 = vld [vmem:[%s19165_s4] ss:$0 sm:$0xff] }
 0x3ea   : > { %v3943_v31 = vsub.f32 0.0, %v3879_v29  ;;  %vm3911_vm5 = vcmp.lt.f32.partialorder %v15737_v59, 0.0  ;;  %v3621_v47 = vmul.f32 %v15835_v24, %v3589_v48  ;;  %v3340_v53 = vadd.f32 1.0, %v3308_v34 }
 0x3eb   : > { %v3944_v5 = vsub.f32 0.0, %v3880_v17  ;;  %v4118_v32 = vshrl.u32 %v15885_v46, 16  ;;  %4077 = vst.msk [vmem:[#allocation3 + $0x28] sm:$0xff] %vm900_vm2, %v15885_v46  ;;  %4335 = vrot.lane.b32.xlu1 %v15776_v60, %s19175_s15  ;;  %vm3912_vm6 = vcmp.lt.f32.partialorder %v15748_v27, 0.0  ;;  %v3622_v4 = vmul.f32 %v15845_v26, %v3590_v42  ;;  %v3138_v27 = vld [vmem:[#allocation2 + $0x80] sm:$0xff] }
 0x3ec   : > { %v3975_v52 = vsel %vm3911_vm5, %v3943_v31, %v3879_v29  ;;  %v3653_v59 = vadd.f32 0.2548296, %v3621_v47  ;;  %13612 = vrcp.f32 %v3339_v62  ;;  %v4121_v37 = vshll.u32 %v15885_v46, 16 }
 0x3ed   : > { %v3976_v49 = vsel %vm3912_vm6, %v3944_v5, %v3880_v17  ;;  %v4007_v44 = vadd.f32 1.0, %v3975_v52  ;;  %v4120_v56 = vrot.slane %v4118_v32, 7  ;;  %v3654_v57 = vadd.f32 0.2548296, %v3622_v4 }
 0x3ee   : > { %v4008_v51 = vadd.f32 1.0, %v3976_v49  ;;  %v3685_v50 = vmul.f32 %v15835_v24, %v3653_v59  ;;  %13614 = vrcp.f32 %v3340_v53  ;;  %v3723_v60 = vsub.f32 0.0, %v15855_v7 }
 0x3ef   : > { %v4123_v61 = vor.u32 %v4121_v37, %v4120_v56  ;;  %v4039_v18 = vmul.f32 %v4007_v44, %v15780_v38  ;;  %v3686_v21 = vmul.f32 %v15845_v26, %v3654_v57  ;;  %v4302_v24 = vor.u32 %v4301_v0, %v4104_v28  ;;  %v3144_v56 = vld [vmem:[#allocation2 + $0xb0] sm:$0xff] }
 0x3f0   : > { %v4040_v23 = vmul.f32 %v4008_v51, %v15786_v33  ;;  %v13611_v14 = vpop.eup %13610  ;;  %v3845_v43 = vmul.f32 %v13609_v10, %v3685_v50  ;;  %v15917_v38 = vadd.f32 %v15914_v11, %v3138_v27  ;;  %v3205_v33 = vmul.f32 0.5, %v15768_v36  ;;  %v3145_v51 = vld [vmem:[#allocation2 + $0xb8] sm:$0xff] }
 0x3f1   : > { %4209 = vrot.lane.b32.xlu0 %v4123_v61, %s19177_s17  ;;  %v3846_v1 = vmul.f32 %v13611_v14, %v3686_v21  ;;  %v3755_v10 = vmul.f32 %v3723_v60, %v15855_v7  ;;  %v15922_v39 = vadd.f32 %v15914_v11, %v3139_v22  ;;  %v3206_v28 = vmul.f32 0.5, %v15771_v12 }
 0x3f2   : > { %v15909_v25 = vpack.c.bf16 %v4040_v23, %v4039_v18  ;;  %v3877_v26 = vsub.f32 1.0, %v3845_v43  ;;  %vm3909_vm7 = vcmp.lt.f32.partialorder %v15789_v63, 0.0  ;;  %vm3910_vm8 = vcmp.lt.f32.partialorder %v15795_v30, 0.0 }
 0x3f3   : > { %v3878_v8 = vsub.f32 1.0, %v3846_v1  ;;  %v3724_v36 = vsub.f32 0.0, %v15861_v41  ;;  %v15932_v7 = vmul.f32 0.70710677, %v15917_v38  ;;  %v15939_v12 = vmul.f32 0.70710677, %v15922_v39 }
 0x3f4   : > { %v4139_v45 = vshrl.u32 %v15909_v25, 16  ;;  %4080 = vst.msk [vmem:[#allocation3 + $0x40] sm:$0xff] %vm900_vm2, %v15909_v25  ;;  %v3941_v13 = vsub.f32 0.0, %v3877_v26  ;;  %v4142_v19 = vshll.u32 %v15909_v25, 16  ;;  %v4307_v20 = vrot.slane %v4128_v15, 1 }
 0x3f5   : > { %4333 = vrot.lane.b32.xlu0 %v4302_v24, %s19175_s15  ;;  %v3942_v29 = vsub.f32 0.0, %v3878_v8  ;;  %v3805_v58 = vmul.f32 1.442695, %v3755_v10  ;;  %v3273_v0 = vand.u32 2147483647, %v15932_v7  ;;  %v3756_v5 = vmul.f32 %v3724_v36, %v15861_v41 }
 0x3f6   : > { %v4141_v16 = vrot.slane %v4139_v45, 7  ;;  %v15941_v63 = vpop.eup %13612  ;;  %v3973_v30 = vsel %vm3909_vm7, %v3941_v13, %v3877_v26  ;;  %v15953_v47 = vand.u32 2147483647, %v15939_v12  ;;  %v4308_v57 = vor.u32 %v4307_v20, %v4125_v54  ;;  %v3143_v26 = vld [vmem:[#allocation2 + $0xa8] sm:$0xff] }
 0x3f7   : > { %v3974_v48 = vsel %vm3910_vm8, %v3942_v29, %v3878_v8  ;;  %v4005_v34 = vadd.f32 1.0, %v3973_v30  ;;  %v3435_v31 = vmul.f32 1.0614054, %v15941_v63  ;;  %v3305_v53 = vmul.f32 0.3275911, %v3273_v0 }
 0x3f8   : > { %v4144_v17 = vor.u32 %v4142_v19, %v4141_v16  ;;  %v15949_v42 = vpop.eup %13614  ;;  %v4006_v62 = vadd.f32 1.0, %v3974_v48  ;;  %v3306_v44 = vmul.f32 0.3275911, %v15953_v47  ;;  %13616 = vpow2.f32 %v3805_v58 }
 0x3f9   : > { %v3436_v15 = vmul.f32 1.0614054, %v15949_v42  ;;  %v3467_v52 = vadd.f32 -1.4531521, %v3435_v31  ;;  %v4037_v4 = vmul.f32 %v4005_v34, %v3205_v33  ;;  %v3337_v59 = vadd.f32 1.0, %v3305_v53  ;;  %v3142_v33 = vld [vmem:[#allocation2 + $0xa0] sm:$0xff] }
 0x3fa   : > { %4215 = vrot.lane.b32.xlu1 %v4144_v17, %s19177_s17  ;;  %v4038_v49 = vmul.f32 %v4006_v62, %v3206_v28  ;;  %v3807_v27 = vmul.f32 1.442695, %v3756_v5  ;;  %v3338_v61 = vadd.f32 1.0, %v3306_v44  ;;  %v15966_v21 = vadd.f32 %v15914_v11, %v3144_v56 }
 0x3fb   : > { %v3468_v41 = vadd.f32 -1.4531521, %v3436_v15  ;;  %v3499_v50 = vmul.f32 %v15941_v63, %v3467_v52  ;;  %13618 = vrcp.f32 %v3337_v59  ;;  %v15969_v6 = vadd.f32 %v15914_v11, %v3145_v51 }
 0x3fc   : > { %v15961_v60 = vpack.c.bf16 %v4038_v49, %v4037_v4  ;;  %v15975_v22 = vmul.f32 0.5, %v15819_v2  ;;  %13620 = vrcp.f32 %v3338_v61  ;;  %v4305_v14 = vrot.slane %v4121_v37, 1 }
 0x3fd   : > { %v3500_v18 = vmul.f32 %v15949_v42, %v3468_v41  ;;  %v3531_v23 = vadd.f32 1.4214138, %v3499_v50  ;;  %v15980_v43 = vmul.f32 0.5, %v15822_v40  ;;  %13622 = vpow2.f32 %v3807_v27 }
 0x3fe   : > { %4339 = vrot.lane.b32.xlu1 %v4308_v57, %s19175_s15  ;;  %v4132_v54 = vshrl.u32 %v15961_v60, 16  ;;  %4079 = vst.msk [vmem:[#allocation3 + $0x38] sm:$0xff] %vm900_vm2, %v15961_v60  ;;  %v4135_v28 = vshll.u32 %v15961_v60, 16  ;;  %v3721_v2 = vsub.f32 0.0, %v3273_v0  ;;  %v15988_v37 = vmul.f32 0.70710677, %v15966_v21 }
 0x3ff   : > { %v3532_v24 = vadd.f32 1.4214138, %v3500_v18  ;;  %v3563_v1 = vmul.f32 %v15941_v63, %v3531_v23  ;;  %v15991_v40 = vmul.f32 0.70710677, %v15969_v6  ;;  %v3722_v16 = vsub.f32 0.0, %v15953_v47 }
 0x400   : > { %v4134_v10 = vrot.slane %v4132_v54, 7  ;;  %v15997_v29 = vadd.f32 %v15914_v11, %v3142_v33  ;;  %v16000_v30 = vadd.f32 %v15914_v11, %v3143_v26  ;;  %v3279_v17 = vand.u32 2147483647, %v15988_v37 }
 0x401   : > { %v3564_v8 = vmul.f32 %v15949_v42, %v3532_v24  ;;  %v3595_v13 = vadd.f32 -0.28449672, %v3563_v1  ;;  %v3280_v48 = vand.u32 2147483647, %v15991_v40  ;;  %v4306_v34 = vor.u32 %v4305_v14, %v4118_v32 }
 0x402   : > { %v4137_v36 = vor.u32 %v4135_v28, %v4134_v10  ;;  %v16009_v31 = vmul.f32 0.5, %v15917_v38  ;;  %v3753_v62 = vmul.f32 %v3721_v2, %v3273_v0  ;;  %v4311_v5 = vrot.slane %v4142_v19, 1  ;;  %v13617_v53 = vpop.eup %13616 }
 0x403   : > { %v3596_v20 = vadd.f32 -0.28449672, %v3564_v8  ;;  %v3627_v58 = vmul.f32 %v15941_v63, %v3595_v13  ;;  %v3311_v4 = vmul.f32 0.3275911, %v3279_v17  ;;  %v3312_v49 = vmul.f32 0.3275911, %v3280_v48 }
 0x404   : > { %4213 = vrot.lane.b32.xlu0 %v4137_v36, %s19177_s17  ;;  %vm3915_vm9 = vcmp.lt.f32.partialorder %v15840_v35, 0.0  ;;  %v16018_v46 = vmul.f32 0.5, %v15922_v39  ;;  %v3754_v32 = vmul.f32 %v3722_v16, %v15953_v47  ;;  %v16022_v38 = vmul.f32 0.70710677, %v15997_v29  ;;  %v3148_v35 = vld [vmem:[#allocation2 + $0xd0] sm:$0xff] }
 0x405   : > { %v3628_v15 = vmul.f32 %v15949_v42, %v3596_v20  ;;  %v3659_v52 = vadd.f32 0.2548296, %v3627_v58  ;;  %v16014_v44 = vpop.eup %13618  ;;  %v16025_v19 = vmul.f32 0.70710677, %v16000_v30  ;;  %v3343_v51 = vadd.f32 1.0, %v3311_v4 }
 0x406   : > { %v3433_v56 = vmul.f32 1.0614054, %v16014_v44  ;;  %v16029_v57 = vpop.eup %13620  ;;  %vm3916_vm10 = vcmp.lt.f32.partialorder %v15843_v55, 0.0  ;;  %v3801_v39 = vmul.f32 1.442695, %v3753_v62  ;;  %v16035_v47 = vor.u32 %v4311_v5, %v4139_v45 }
 0x407   : > { %v3660_v0 = vadd.f32 0.2548296, %v3628_v15  ;;  %v3691_v59 = vmul.f32 %v15941_v63, %v3659_v52  ;;  %v3344_v41 = vadd.f32 1.0, %v3312_v49  ;;  %v3277_v50 = vand.u32 2147483647, %v16022_v38  ;;  %v13623_v23 = vpop.eup %13622  ;;  %v13348_v52 = vld [vmem:[%s19166_s5 + $0x30] sm:$0xff]  }
 0x408   : > { %4337 = vrot.lane.b32.xlu0 %v4306_v34, %s19175_s15  ;;  %v3434_v61 = vmul.f32 1.0614054, %v16029_v57  ;;  %v3465_v18 = vadd.f32 -1.4531521, %v3433_v56  ;;  %v3803_v14 = vmul.f32 1.442695, %v3754_v32  ;;  %13624 = vrcp.f32 %v3343_v51  ;;  %12417 = vmatprep.subr.bf16.mxu0 %v13348_v52 }
 0x409   : > { %v3692_v27 = vmul.f32 %v15949_v42, %v3660_v0  ;;  %v3851_v63 = vmul.f32 %v13617_v53, %v3691_v59  ;;  %v3727_v24 = vsub.f32 0.0, %v3279_v17  ;;  %v16041_v1 = vand.u32 2147483647, %v16025_v19  ;;  %12418 = vmatpush3.bf16.msra.mxu0 %v13348_v52 }
 0x40a   : > { %v3466_v45 = vadd.f32 -1.4531521, %v3434_v61  ;;  %v3497_v26 = vmul.f32 %v16014_v44, %v3465_v18  ;;  %13626 = vrcp.f32 %v3344_v41  ;;  %v3728_v10 = vsub.f32 0.0, %v3280_v48 }
 0x40b   : > { %v3852_v33 = vmul.f32 %v13623_v23, %v3692_v27  ;;  %v3883_v25 = vsub.f32 1.0, %v3851_v63  ;;  %v3309_v2 = vmul.f32 0.3275911, %v3277_v50  ;;  %v3310_v42 = vmul.f32 0.3275911, %v16041_v1  ;;  %v3149_v63 = vld [vmem:[#allocation2 + $0xd8] sm:$0xff] }
 0x40c   : > { %v3498_v36 = vmul.f32 %v16029_v57, %v3466_v45  ;;  %v3529_v16 = vadd.f32 1.4214138, %v3497_v26  ;;  %13628 = vpow2.f32 %v3801_v39  ;;  %v3759_v20 = vmul.f32 %v3727_v24, %v3279_v17 }
 0x40d   : > { %v3884_v8 = vsub.f32 1.0, %v3852_v33  ;;  %v3947_v13 = vsub.f32 0.0, %v3883_v25  ;;  %v3341_v58 = vadd.f32 1.0, %v3309_v2  ;;  %v3342_v34 = vadd.f32 1.0, %v3310_v42 }
 0x40e   : > { %v3530_v53 = vadd.f32 1.4214138, %v3498_v36  ;;  %v3561_v15 = vmul.f32 %v16014_v44, %v3529_v16  ;;  %13630 = vpow2.f32 %v3803_v14  ;;  %v3760_v49 = vmul.f32 %v3728_v10, %v3280_v48 }
 0x40f   : > { %v3948_v62 = vsub.f32 0.0, %v3884_v8  ;;  %v3979_v5 = vsel %vm3915_vm9, %v3947_v13, %v3883_v25  ;;  %v3725_v32 = vsub.f32 0.0, %v3277_v50  ;;  %13632 = vrcp.f32 %v3341_v58 }
 0x410   : > { %v4011_v4 = vadd.f32 1.0, %v3979_v5  ;;  %v3562_v0 = vmul.f32 %v16029_v57, %v3530_v53  ;;  %v3593_v59 = vadd.f32 -0.28449672, %v3561_v15  ;;  %v16056_v51 = vmul.f32 0.5, %v15966_v21 }
 0x411   : > { %v3980_v17 = vsel %vm3916_vm10, %v3948_v62, %v3884_v8  ;;  %v3813_v39 = vmul.f32 1.442695, %v3759_v20  ;;  %13634 = vrcp.f32 %v3342_v34  ;;  %v16061_v55 = vrot.slane %v4135_v28, 1 }
 0x412   : > { %v4012_v56 = vadd.f32 1.0, %v3980_v17  ;;  %v3594_v41 = vadd.f32 -0.28449672, %v3562_v0  ;;  %v3625_v48 = vmul.f32 %v16014_v44, %v3593_v59  ;;  %v3726_v27 = vsub.f32 0.0, %v16041_v1  ;;  %v16064_v61 = vpop.eup %13624  ;;  %v13349_v0 = vld [vmem:[%s19166_s5 + $0x38] sm:$0xff]  }
 0x413   : > { %v4043_v18 = vmul.f32 %v4011_v4, %v15975_v22  ;;  %v3757_v23 = vmul.f32 %v3725_v32, %v3277_v50  ;;  %v16069_v14 = vadd.f32 %v15914_v11, %v3148_v35  ;;  %v3439_v25 = vmul.f32 1.0614054, %v16064_v61  ;;  %12419 = vmatprep.subr.bf16.mxu0 %v13349_v0 }
 0x414   : > { %v4044_v21 = vmul.f32 %v4012_v56, %v15980_v43  ;;  %v3626_v24 = vmul.f32 %v16029_v57, %v3594_v41  ;;  %v3657_v33 = vadd.f32 0.2548296, %v3625_v48  ;;  %v3815_v28 = vmul.f32 1.442695, %v3760_v49  ;;  %v16073_v45 = vpop.eup %13626  ;;  %12420 = vmatpush3.bf16.msra.mxu0 %v13349_v0 }
 0x415   : > { %vm3913_vm12 = vcmp.lt.f32.partialorder %v15932_v7, 0.0  ;;  %13636 = vpow2.f32 %v3813_v39  ;;  %v16079_v22 = vadd.f32 %v15914_v11, %v3149_v63  ;;  %v16082_v43 = vmul.f32 0.70710677, %v16069_v14 }
 0x416   : > { %v16075_v26 = vpack.c.bf16 %v4044_v21, %v4043_v18  ;;  %v3658_v50 = vadd.f32 0.2548296, %v3626_v24  ;;  %v3689_v10 = vmul.f32 %v16014_v44, %v3657_v33  ;;  %v3440_v2 = vmul.f32 1.0614054, %v16073_v45  ;;  %v13629_v8 = vpop.eup %13628 }
 0x417   : > { %v3471_v42 = vadd.f32 -1.4531521, %v3439_v25  ;;  %vm3914_vm13 = vcmp.lt.f32.partialorder %v15939_v12, 0.0  ;;  %v3758_v36 = vmul.f32 %v3726_v27, %v16041_v1  ;;  %v3809_v16 = vmul.f32 1.442695, %v3757_v23 }
 0x418   : > { %v4153_v13 = vshrl.u32 %v16075_v26, 16  ;;  %4082 = vst.msk [vmem:[#allocation3 + $0x50] sm:$0xff] %vm900_vm2, %v16075_v26  ;;  %v16092_v20 = vmul.f32 0.70710677, %v16079_v22  ;;  %v3690_v58 = vmul.f32 %v16029_v57, %v3658_v50  ;;  %v3849_v44 = vmul.f32 %v13629_v8, %v3689_v10  ;;  %v13631_v5 = vpop.eup %13630 }
 0x419   : > { %v3472_v34 = vadd.f32 -1.4531521, %v3440_v2  ;;  %v3503_v62 = vmul.f32 %v16064_v61, %v3471_v42  ;;  %v4156_v15 = vshll.u32 %v16075_v26, 16  ;;  %v16100_v52 = vand.u32 2147483647, %v16082_v43  ;;  %v16105_v4 = vpop.eup %13632 }
 0x41a   : > { %v4155_v53 = vrot.slane %v4153_v13, 7  ;;  %v16103_v1 = vand.u32 2147483647, %v16092_v20  ;;  %v3850_v49 = vmul.f32 %v13631_v5, %v3690_v58  ;;  %v3881_v57 = vsub.f32 1.0, %v3849_v44 }
 0x41b   : > { %v3504_v32 = vmul.f32 %v16073_v45, %v3472_v34  ;;  %v3535_v17 = vadd.f32 1.4214138, %v3503_v62  ;;  %v16111_v59 = vpop.eup %13634  ;;  %v3437_v56 = vmul.f32 1.0614054, %v16105_v4  ;;  %v3811_v39 = vmul.f32 1.442695, %v3758_v36 }
 0x41c   : > { %v4158_v35 = vor.u32 %v4156_v15, %v4155_v53  ;;  %v3315_v41 = vmul.f32 0.3275911, %v16100_v52  ;;  %v3882_v48 = vsub.f32 1.0, %v3850_v49  ;;  %v3945_v27 = vsub.f32 0.0, %v3881_v57 }
 0x41d   : > { %v3536_v63 = vadd.f32 1.4214138, %v3504_v32  ;;  %v3567_v18 = vmul.f32 %v16064_v61, %v3535_v17  ;;  %13638 = vpow2.f32 %v3815_v28  ;;  %v3438_v21 = vmul.f32 1.0614054, %v16111_v59 }
 0x41e   : > { %4219 = vrot.lane.b32.xlu1 %v4158_v35, %s19177_s17  ;;  %v3469_v23 = vadd.f32 -1.4531521, %v3437_v56  ;;  %v3316_v24 = vmul.f32 0.3275911, %v16103_v1  ;;  %v3946_v33 = vsub.f32 0.0, %v3882_v48  ;;  %v3977_v25 = vsel %vm3913_vm12, %v3945_v27, %v3881_v57 }
 0x41f   : > { %v3568_v50 = vmul.f32 %v16073_v45, %v3536_v63  ;;  %v3599_v10 = vadd.f32 -0.28449672, %v3567_v18  ;;  %v13637_v2 = vpop.eup %13636  ;;  %v4009_v42 = vadd.f32 1.0, %v3977_v25  ;;  %v3470_v8 = vadd.f32 -1.4531521, %v3438_v21 }
 0x420   : > { %v3501_v36 = vmul.f32 %v16105_v4, %v3469_v23  ;;  %v3347_v58 = vadd.f32 1.0, %v3315_v41  ;;  %v3978_v28 = vsel %vm3914_vm13, %v3946_v33, %v3882_v48  ;;  %v3348_v62 = vadd.f32 1.0, %v3316_v24 }
 0x421   : > { %v3600_v44 = vadd.f32 -0.28449672, %v3568_v50  ;;  %v3631_v34 = vmul.f32 %v16064_v61, %v3599_v10  ;;  %v4010_v5 = vadd.f32 1.0, %v3978_v28  ;;  %v3502_v7 = vmul.f32 %v16111_v59, %v3470_v8  ;;  %v3147_v10 = vld [vmem:[#allocation2 + $0xc8] sm:$0xff] }
 0x422   : > { %4343 = vrot.lane.b32.xlu1 %v16035_v47, %s19175_s15  ;;  %v3533_v53 = vadd.f32 1.4214138, %v3501_v36  ;;  %13640 = vpow2.f32 %v3809_v16  ;;  %v4041_v49 = vmul.f32 %v4009_v42, %v16009_v31  ;;  %v3731_v47 = vsub.f32 0.0, %v16100_v52 }
 0x423   : > { %v3632_v57 = vmul.f32 %v16073_v45, %v3600_v44  ;;  %v3663_v32 = vadd.f32 0.2548296, %v3631_v34  ;;  %13642 = vrcp.f32 %v3347_v58  ;;  %v4042_v12 = vmul.f32 %v4010_v5, %v16018_v46 }
 0x424   : > { %v3534_v17 = vadd.f32 1.4214138, %v3502_v7  ;;  %v3565_v0 = vmul.f32 %v16105_v4, %v3533_v53  ;;  %13644 = vrcp.f32 %v3348_v62  ;;  %v3216_v31 = vmul.f32 0.5, %v15969_v6 }
 0x425   : > { %v3664_v35 = vadd.f32 0.2548296, %v3632_v57  ;;  %v3695_v56 = vmul.f32 %v16064_v61, %v3663_v32  ;;  %13646 = vpow2.f32 %v3811_v39  ;;  %v16137_v41 = vpack.c.bf16 %v4042_v12, %v4041_v49  ;;  %v13350_v61 = vld [vmem:[%s19166_s5 + $0x40] sm:$0xff]  }
 0x426   : > { %v3566_v16 = vmul.f32 %v16111_v59, %v3534_v17  ;;  %v3597_v48 = vadd.f32 -0.28449672, %v3565_v0  ;;  %v4310_v46 = vor.u32 %v16061_v55, %v4132_v54  ;;  %vm3919_vm14 = vcmp.lt.f32.partialorder %v15988_v37, 0.0  ;;  %v3146_v55 = vld [vmem:[#allocation2 + $0xc0] sm:$0xff]  ;;  %12421 = vmatprep.subr.bf16.mxu0 %v13350_v61 }
 0x427   : > { %v3696_v27 = vmul.f32 %v16073_v45, %v3664_v35  ;;  %v3855_v63 = vmul.f32 %v13637_v2, %v3695_v56  ;;  %v13639_v39 = vpop.eup %13638  ;;  %v4146_v18 = vshrl.u32 %v16137_v41, 16  ;;  %4081 = vst.msk [vmem:[#allocation3 + $0x48] sm:$0xff] %vm900_vm2, %v16137_v41  ;;  %v3732_v54 = vsub.f32 0.0, %v16103_v1  ;;  %12422 = vmatpush3.bf16.msra.mxu0 %v13350_v61  ;;  %v13351_v35 = vld [vmem:[%s19166_s5 + $0x48] sm:$0xff]  }
 0x428   : > { %v3598_v6 = vadd.f32 -0.28449672, %v3566_v16  ;;  %v3629_v60 = vmul.f32 %v16105_v4, %v3597_v48  ;;  %vm3920_vm15 = vcmp.lt.f32.partialorder %v15991_v40, 0.0  ;;  %v3763_v23 = vmul.f32 %v3731_v47, %v16100_v52  ;;  %12423 = vmatprep.subr.bf16.mxu0 %v13351_v35 }
 0x429   : > { %v3856_v45 = vmul.f32 %v13639_v39, %v3696_v27  ;;  %v3887_v21 = vsub.f32 1.0, %v3855_v63  ;;  %v4148_v24 = vrot.slane %v4146_v18, 7  ;;  %v4149_v33 = vshll.u32 %v16137_v41, 16 }
 0x42a   : > { %v3630_v25 = vmul.f32 %v16111_v59, %v3598_v6  ;;  %v3661_v50 = vadd.f32 0.2548296, %v3629_v60  ;;  %v16161_v8 = vmul.f32 0.5, %v15997_v29  ;;  %v16164_v36 = vadd.f32 %v15914_v11, %v3146_v55 }
 0x42b   : > { %v3888_v2 = vsub.f32 1.0, %v3856_v45  ;;  %v3951_v42 = vsub.f32 0.0, %v3887_v21  ;;  %v4151_v58 = vor.u32 %v4149_v33, %v4148_v24  ;;  %v3764_v34 = vmul.f32 %v3732_v54, %v16103_v1  ;;  %12424 = vmatpush3.bf16.msra.mxu0 %v13351_v35 }
 0x42c   : > { %v13641_v52 = vpop.eup %13640  ;;  %v3662_v28 = vadd.f32 0.2548296, %v3630_v25  ;;  %v3693_v44 = vmul.f32 %v16105_v4, %v3661_v50  ;;  %v3821_v29 = vmul.f32 1.442695, %v3763_v23  ;;  %v16175_v53 = vadd.f32 %v15914_v11, %v3147_v10 }
 0x42d   : > { %v16170_v62 = vpop.eup %13642  ;;  %v3952_v5 = vsub.f32 0.0, %v3888_v2  ;;  %v3983_v7 = vsel %vm3919_vm14, %v3951_v42, %v3887_v21  ;;  %4217 = vrot.lane.b32.xlu0 %v4151_v58, %s19177_s17  ;;  %vm3917_vm4 = vcmp.lt.f32.partialorder %v16022_v38, 0.0  ;;  %v16187_v0 = vmul.f32 0.70710677, %v16164_v36 }
 0x42e   : > { %v16177_v49 = vpop.eup %13644  ;;  %v4015_v57 = vadd.f32 1.0, %v3983_v7  ;;  %v3694_v32 = vmul.f32 %v16111_v59, %v3662_v28  ;;  %v3853_v4 = vmul.f32 %v13641_v52, %v3693_v44  ;;  %v3443_v1 = vmul.f32 1.0614054, %v16170_v62 }
 0x42f   : > { %v13647_v12 = vpop.eup %13646  ;;  %v3984_v17 = vsel %vm3920_vm15, %v3952_v5, %v3888_v2  ;;  %v3444_v37 = vmul.f32 1.0614054, %v16177_v49  ;;  %v3823_v16 = vmul.f32 1.442695, %v3764_v34  ;;  %v16194_v63 = vmul.f32 0.70710677, %v16175_v53 }
 0x430   : > { %v4016_v56 = vadd.f32 1.0, %v3984_v17  ;;  %v3854_v59 = vmul.f32 %v13647_v12, %v3694_v32  ;;  %v3885_v47 = vsub.f32 1.0, %v3853_v4  ;;  %v4047_v48 = vmul.f32 %v4015_v57, %v16056_v51  ;;  %v3152_v32 = vld [vmem:[#allocation2 + $0xf0] sm:$0xff]  ;;  %v3153_v4 = vld [vmem:[#allocation2 + $0xf8] sm:$0xff] }
 0x431   : > { %v3475_v27 = vadd.f32 -1.4531521, %v3443_v1  ;;  %v3476_v40 = vadd.f32 -1.4531521, %v3444_v37  ;;  %4341 = vrot.lane.b32.xlu0 %v4310_v46, %s19175_s15  ;;  %v3281_v60 = vand.u32 2147483647, %v16187_v0  ;;  %13648 = vpow2.f32 %v3821_v29 }
 0x432   : > { %v4048_v61 = vmul.f32 %v4016_v56, %v3216_v31  ;;  %v3886_v39 = vsub.f32 1.0, %v3854_v59  ;;  %v3949_v6 = vsub.f32 0.0, %v3885_v47  ;;  %vm3918_vm5 = vcmp.lt.f32.partialorder %v16025_v19, 0.0 }
 0x433   : > { %v3507_v54 = vmul.f32 %v16170_v62, %v3475_v27  ;;  %v3508_v51 = vmul.f32 %v16177_v49, %v3476_v40  ;;  %v3282_v55 = vand.u32 2147483647, %v16194_v63  ;;  %v3313_v31 = vmul.f32 0.3275911, %v3281_v60 }
 0x434   : > { %v16202_v45 = vpack.c.bf16 %v4048_v61, %v4047_v48  ;;  %v3950_v21 = vsub.f32 0.0, %v3886_v39  ;;  %v3981_v46 = vsel %vm3917_vm4, %v3949_v6, %v3885_v47  ;;  %13650 = vpow2.f32 %v3823_v16 }
 0x435   : > { %v4013_v23 = vadd.f32 1.0, %v3981_v46  ;;  %v3539_v24 = vadd.f32 1.4214138, %v3507_v54  ;;  %v3540_v25 = vadd.f32 1.4214138, %v3508_v51  ;;  %v3214_v2 = vmul.f32 0.5, %v16000_v30 }
 0x436   : > { %v4167_v50 = vshrl.u32 %v16202_v45, 16  ;;  %4084 = vst.msk [vmem:[#allocation3 + $0x60] sm:$0xff] %vm900_vm2, %v16202_v45  ;;  %v3982_v19 = vsel %vm3918_vm5, %v3950_v21, %v3886_v39  ;;  %v3314_v10 = vmul.f32 0.3275911, %v3282_v55  ;;  %v4170_v28 = vshll.u32 %v16202_v45, 16 }
 0x437   : > { %v4014_v42 = vadd.f32 1.0, %v3982_v19  ;;  %v3571_v52 = vmul.f32 %v16170_v62, %v3539_v24  ;;  %v3572_v38 = vmul.f32 %v16177_v49, %v3540_v25  ;;  %v3345_v44 = vadd.f32 1.0, %v3313_v31 }
 0x438   : > { %v4169_v58 = vrot.slane %v4167_v50, 7  ;;  %v3346_v34 = vadd.f32 1.0, %v3314_v10  ;;  %v4045_v5 = vmul.f32 %v4013_v23, %v16161_v8  ;;  %v4315_v1 = vrot.slane %v4156_v15, 1  ;;  %v13352_v8 = vld [vmem:[%s19166_s5 + $0x50] sm:$0xff]  }
 0x439   : > { %v4046_v7 = vmul.f32 %v4014_v42, %v3214_v2  ;;  %v3603_v29 = vadd.f32 -0.28449672, %v3571_v52  ;;  %v3604_v57 = vadd.f32 -0.28449672, %v3572_v38  ;;  %13652 = vrcp.f32 %v3345_v44  ;;  %12425 = vmatprep.subr.bf16.mxu0 %v13352_v8  ;;  %v3150_v2 = vld [vmem:[#allocation2 + $0xe0] sm:$0xff] }
 0x43a   : > { %v4172_v30 = vor.u32 %v4170_v28, %v4169_v58  ;;  %13654 = vrcp.f32 %v3346_v34  ;;  %v3729_v35 = vsub.f32 0.0, %v3281_v60  ;;  %v16229_v56 = vadd.f32 %v15914_v11, %v3152_v32  ;;  %12426 = vmatpush3.bf16.msra.mxu0 %v13352_v8 }
 0x43b   : > { %v16220_v12 = vpack.c.bf16 %v4046_v7, %v4045_v5  ;;  %v3635_v17 = vmul.f32 %v16170_v62, %v3603_v29  ;;  %v3636_v37 = vmul.f32 %v16177_v49, %v3604_v57  ;;  %v16232_v15 = vadd.f32 %v15914_v11, %v3153_v4  ;;  %v13649_v40 = vpop.eup %13648 }
 0x43c   : > { %4223 = vrot.lane.b32.xlu1 %v4172_v30, %s19177_s17  ;;  %v3730_v48 = vsub.f32 0.0, %v3282_v55  ;;  %v4316_v27 = vor.u32 %v4315_v1, %v4153_v13  ;;  %v4313_v21 = vrot.slane %v4149_v33, 1  ;;  %v3761_v46 = vmul.f32 %v3729_v35, %v3281_v60 }
 0x43d   : > { %v4160_v59 = vshrl.u32 %v16220_v12, 16  ;;  %4083 = vst.msk [vmem:[#allocation3 + $0x58] sm:$0xff] %vm900_vm2, %v16220_v12  ;;  %v3667_v47 = vadd.f32 0.2548296, %v3635_v17  ;;  %v3668_v16 = vadd.f32 0.2548296, %v3636_v37  ;;  %v16277_v4 = vadd.f32 %v15914_v11, %v3150_v2 }
 0x43e   : > { %v4163_v39 = vshll.u32 %v16220_v12, 16  ;;  %v13651_v51 = vpop.eup %13650  ;;  %v16248_v26 = vmul.f32 0.70710677, %v16229_v56  ;;  %v16251_v13 = vmul.f32 0.70710677, %v16232_v15  ;;  %v3762_v24 = vmul.f32 %v3730_v48, %v3282_v55  ;;  %v3151_v55 = vld [vmem:[#allocation2 + $0xe8] sm:$0xff] }
 0x43f   : > { %v4162_v61 = vrot.slane %v4160_v59, 7  ;;  %v3699_v6 = vmul.f32 %v16170_v62, %v3667_v47  ;;  %v3700_v54 = vmul.f32 %v16177_v49, %v3668_v16  ;;  %v3219_v49 = vmul.f32 0.5, %v16069_v14  ;;  %v13353_v17 = vld [vmem:[%s19166_s5 + $0x58] sm:$0xff]  }
 0x440   : > { %4347 = vrot.lane.b32.xlu1 %v4316_v27, %s19175_s15  ;;  %v3220_v25 = vmul.f32 0.5, %v16079_v22  ;;  %v16258_v19 = vand.u32 2147483647, %v16248_v26  ;;  %v16261_v33 = vand.u32 2147483647, %v16251_v13  ;;  %vm3923_vm6 = vcmp.lt.f32.partialorder %v16082_v43, 0.0  ;;  %v16291_v43 = vpop.permute.xlu1 %4203  ;;  %12427 = vmatprep.subr.bf16.mxu0 %v13353_v17  ;;  %v16297_v27 = vpop.permute.xlu0 %4201 }
 0x441   : > { %v4165_v31 = vor.u32 %v4163_v39, %v4162_v61  ;;  %v3859_v23 = vmul.f32 %v13649_v40, %v3699_v6  ;;  %v3860_v62 = vmul.f32 %v13651_v51, %v3700_v54  ;;  %vm3924_vm7 = vcmp.lt.f32.partialorder %v16092_v20, 0.0  ;;  %12428 = vmatpush3.bf16.msra.mxu0 %v13353_v17  ;;  %v16305_v6 = vld [vmem:[%s19166_s5] sm:$0xff]  }
 0x442   : > { %v4314_v14 = vor.u32 %v4313_v21, %v4146_v18  ;;  %v3817_v22 = vmul.f32 1.442695, %v3761_v46  ;;  %v3319_v52 = vmul.f32 0.3275911, %v16258_v19  ;;  %v3320_v38 = vmul.f32 0.3275911, %v16261_v33  ;;  %12461 = vmatprep.subr.bf16.mxu0 %v16305_v6 }
 0x443   : > { %4221 = vrot.lane.b32.xlu0 %v4165_v31, %s19177_s17  ;;  %v3891_v60 = vsub.f32 1.0, %v3859_v23  ;;  %v3892_v10 = vsub.f32 1.0, %v3860_v62  ;;  %v16266_v42 = vpop.eup %13652  ;;  %v3819_v7 = vmul.f32 1.442695, %v3762_v24  ;;  %v16285_v1 = vadd.f32 %v15914_v11, %v3151_v55 }
 0x444   : > { %v16272_v58 = vpop.eup %13654  ;;  %v3441_v5 = vmul.f32 1.0614054, %v16266_v42  ;;  %v3351_v57 = vadd.f32 1.0, %v3319_v52  ;;  %v3352_v32 = vadd.f32 1.0, %v3320_v38  ;;  %v16295_v11 = vmul.f32 0.70710677, %v16277_v4  ;;  %v16318_v24 = vpop.permute.xlu1 %4207 }
 0x445   : > { %v3955_v44 = vsub.f32 0.0, %v3891_v60  ;;  %v3956_v34 = vsub.f32 0.0, %v3892_v10  ;;  %v3442_v29 = vmul.f32 1.0614054, %v16272_v58  ;;  %v16300_v61 = vmul.f32 0.70710677, %v16285_v1 }
 0x446   : > { %v3473_v30 = vadd.f32 -1.4531521, %v3441_v5  ;;  %13656 = vrcp.f32 %v3351_v57  ;;  %v16310_v21 = vand.u32 2147483647, %v16295_v11  ;;  %v3735_v31 = vsub.f32 0.0, %v16258_v19 }
 0x447   : > { %4345 = vrot.lane.b32.xlu0 %v4314_v14, %s19175_s15  ;;  %v3987_v41 = vsel %vm3923_vm6, %v3955_v44, %v3891_v60  ;;  %v3988_v18 = vsel %vm3924_vm7, %v3956_v34, %v3892_v10  ;;  %v3474_v35 = vadd.f32 -1.4531521, %v3442_v29  ;;  %13658 = vrcp.f32 %v3352_v32  ;;  %v16326_v10 = vpop.permute.xlu0 %4205 }
 0x448   : > { %v4019_v37 = vadd.f32 1.0, %v3987_v41  ;;  %v4020_v8 = vadd.f32 1.0, %v3988_v18  ;;  %v3505_v47 = vmul.f32 %v16266_v42, %v3473_v30  ;;  %13660 = vpow2.f32 %v3817_v22  ;;  %v4332_v17 = vpop.permute.xlu1 %4331 }
 0x449   : > { %v3506_v48 = vmul.f32 %v16272_v58, %v3474_v35  ;;  %13662 = vpow2.f32 %v3819_v7  ;;  %v3736_v23 = vsub.f32 0.0, %v16261_v33  ;;  %v16316_v62 = vand.u32 2147483647, %v16300_v61  ;;  %v4249_v35 = vld [vmem:[#allocation3 + $0x8] sm:$0xff] }
 0x44a   : > { %v4051_v20 = vmul.f32 %v4019_v37, %v3219_v49  ;;  %v4052_v16 = vmul.f32 %v4020_v8, %v3220_v25  ;;  %v3537_v40 = vadd.f32 1.4214138, %v3505_v47  ;;  %v3317_v60 = vmul.f32 0.3275911, %v16310_v21  ;;  %v4252_v8 = vld [vmem:[#allocation3 + $0x10] sm:$0xff] }
 0x44b   : > { %v3538_v51 = vadd.f32 1.4214138, %v3506_v48  ;;  %v4319_v55 = vrot.slane %v4170_v28, 1  ;;  %v3318_v14 = vmul.f32 0.3275911, %v16316_v62  ;;  %v3767_v5 = vmul.f32 %v3735_v31, %v16258_v19  ;;  %v4330_v47 = vpop.permute.xlu0 %4329 }
 0x44c   : > { %v16307_v54 = vpack.c.bf16 %v4052_v16, %v4051_v20  ;;  %v3569_v46 = vmul.f32 %v16266_v42, %v3537_v40  ;;  %v3349_v44 = vadd.f32 1.0, %v3317_v60  ;;  %v3768_v7 = vmul.f32 %v3736_v23, %v16261_v33 }
 0x44d   : > { %v3570_v25 = vmul.f32 %v16272_v58, %v3538_v51  ;;  %v3350_v29 = vadd.f32 1.0, %v3318_v14  ;;  %v4320_v33 = vor.u32 %v4319_v55, %v4167_v50  ;;  %v3829_v40 = vmul.f32 1.442695, %v3767_v5 }
 0x44e   : > { %v4181_v49 = vshrl.u32 %v16307_v54, 16  ;;  %4086 = vst.msk [vmem:[#allocation3 + $0x70] sm:$0xff] %vm900_vm2, %v16307_v54  ;;  %v3601_v2 = vadd.f32 -0.28449672, %v3569_v46  ;;  %v4184_v52 = vshll.u32 %v16307_v54, 16  ;;  %13664 = vrcp.f32 %v3349_v44 }
 0x44f   : > { %v3602_v38 = vadd.f32 -0.28449672, %v3570_v25  ;;  %13666 = vrcp.f32 %v3350_v29  ;;  %v3831_v51 = vmul.f32 1.442695, %v3768_v7  ;;  %v4253_v45 = vsel %vm15230_vm0, %v16291_v43, %v4252_v8 }
 0x450   : > { %v4183_v22 = vrot.slane %v4181_v49, 7  ;;  %v3633_v34 = vmul.f32 %v16266_v42, %v3601_v2  ;;  %v16337_v57 = vpop.eup %13656  ;;  %v4250_v50 = vsel %vm15230_vm0, %v16297_v27, %v4249_v35  ;;  %v3733_v55 = vsub.f32 0.0, %v16310_v21 }
 0x451   : > { %v3634_v32 = vmul.f32 %v16272_v58, %v3602_v38  ;;  %v16342_v41 = vpop.eup %13658  ;;  %v3447_v30 = vmul.f32 1.0614054, %v16337_v57  ;;  %v16364_v2 = vsel %vm15234_vm1, %v4330_v47, %v4250_v50  ;;  %v3734_v14 = vsub.f32 0.0, %v16316_v62 }
 0x452   : > { %v4186_v28 = vor.u32 %v4184_v52, %v4183_v22  ;;  %v3665_v18 = vadd.f32 0.2548296, %v3633_v34  ;;  %v3448_v37 = vmul.f32 1.0614054, %v16342_v41  ;;  %v13661_v20 = vpop.eup %13660  ;;  %4379 = vst [vmem:[#allocation3 + $0x8] sm:$0xff] %v16364_v2  ;;  %12429 = vmatprep.mubr.msk.bf16.mxu0 %vm440_vm11, %v16364_v2  ;;  %v3217_v22 = vmul.f32 0.5, %v16164_v36 }
 0x453   : > { %v3666_v19 = vadd.f32 0.2548296, %v3634_v32  ;;  %v3479_v48 = vadd.f32 -1.4531521, %v3447_v30  ;;  %v13663_v46 = vpop.eup %13662  ;;  %v3218_v38 = vmul.f32 0.5, %v16175_v53  ;;  %vm3921_vm8 = vcmp.lt.f32.partialorder %v16187_v0, 0.0 }
 0x454   : > { %4227 = vrot.lane.b32.xlu1 %v4186_v28, %s19177_s17  ;;  %v3697_v16 = vmul.f32 %v16266_v42, %v3665_v18  ;;  %v3480_v23 = vadd.f32 -1.4531521, %v3448_v37  ;;  %v16360_v42 = vsel %vm15234_vm1, %v4332_v17, %v4253_v45  ;;  %13668 = vpow2.f32 %v3829_v40  ;;  %v13356_v53 = vld [vmem:[%s19166_s5 + $0x10] sm:$0xff]  }
 0x455   : > { %v3698_v31 = vmul.f32 %v16272_v58, %v3666_v19  ;;  %v3511_v60 = vmul.f32 %v16337_v57, %v3479_v48  ;;  %v13355_v58 = vld [vmem:[%s19166_s5 + $0x8] sm:$0xff]   ;;  %4382 = vst [vmem:[#allocation3 + $0x10] sm:$0xff] %v16360_v42  ;;  %12430 = vmatmul.mubr.msk.bf16.vlgmr.msra.gmra.mrb[64].mxu0 %vm440_vm11, %v16360_v42  ;;  %vm3922_vm9 = vcmp.lt.f32.partialorder %v16194_v63, 0.0  ;;  %13670 = vpow2.f32 %v3831_v51  ;;  %v4258_v19 = vld [vmem:[#allocation3 + $0x20] sm:$0xff] }
 0x456   : > { %v3857_v25 = vmul.f32 %v13661_v20, %v3697_v16  ;;  %v3512_v27 = vmul.f32 %v16342_v41, %v3480_v23  ;;  %12462 = vmatpush3.bf16.msra.mxu0 %v16305_v6  ;;  %v3765_v17 = vmul.f32 %v3733_v55, %v16310_v21  ;;  %v3766_v6 = vmul.f32 %v3734_v14, %v16316_v62 }
 0x457   : > { %v3858_v43 = vmul.f32 %v13663_v46, %v3698_v31  ;;  %v3543_v34 = vadd.f32 1.4214138, %v3511_v60  ;;  %12463 = vmatprep.subr.bf16.mxu0 %v13355_v58  ;;  %v4259_v47 = vsel %vm15230_vm0, %v16318_v24, %v4258_v19  ;;  %vm3927_vm10 = vcmp.lt.f32.partialorder %v16248_v26, 0.0 }
 0x458   : > { %4351 = vrot.lane.b32.xlu1 %v4320_v33, %s19175_s15  ;;  %v3889_v44 = vsub.f32 1.0, %v3857_v25  ;;  %v3544_v29 = vadd.f32 1.4214138, %v3512_v27  ;;  %v16390_v32 = vpop.eup %13664  ;;  %v3825_v23 = vmul.f32 1.442695, %v3765_v17  ;;  %vm3928_vm12 = vcmp.lt.f32.partialorder %v16251_v13, 0.0 }
 0x459   : > { %v16379_v5 = vpop.permute.xlu1 %4211  ;;  %v3890_v7 = vsub.f32 1.0, %v3858_v43  ;;  %v3575_v36 = vmul.f32 %v16337_v57, %v3543_v34  ;;  %v16395_v33 = vpop.eup %13666  ;;  %v3445_v35 = vmul.f32 1.0614054, %v16390_v32  ;;  %v3827_v63 = vmul.f32 1.442695, %v3766_v6  ;;  %v13357_v34 = vld [vmem:[%s19166_s5 + $0x18] sm:$0xff]  }
 0x45a   : > { %v3953_v28 = vsub.f32 0.0, %v3889_v44  ;;  %v3576_v30 = vmul.f32 %v16342_v41, %v3544_v29  ;;  %v3446_v62 = vmul.f32 1.0614054, %v16395_v33  ;;  %12464 = vmatpush3.bf16.msra.mxu0 %v13355_v58  ;;  %13672 = vpow2.f32 %v3825_v23 }
 0x45b   : > { %v3954_v18 = vsub.f32 0.0, %v3890_v7  ;;  %v3607_v8 = vadd.f32 -0.28449672, %v3575_v36  ;;  %v3477_v51 = vadd.f32 -1.4531521, %v3445_v35  ;;  %12465 = vmatprep.subr.bf16.mxu0 %v13356_v53  ;;  %13674 = vpow2.f32 %v3827_v63 }
 0x45c   : > { %v3985_v37 = vsel %vm3921_vm8, %v3953_v28, %v3889_v44  ;;  %v3608_v48 = vadd.f32 -0.28449672, %v3576_v30  ;;  %v3478_v31 = vadd.f32 -1.4531521, %v3446_v62  ;;  %vm3925_vm13 = vcmp.lt.f32.partialorder %v16295_v11, 0.0 }
 0x45d   : > { %v4336_v20 = vpop.permute.xlu1 %4335  ;;  %v3986_v16 = vsel %vm3922_vm9, %v3954_v18, %v3890_v7  ;;  %v4017_v21 = vadd.f32 1.0, %v3985_v37  ;;  %v3639_v0 = vmul.f32 %v16337_v57, %v3607_v8  ;;  %v3509_v60 = vmul.f32 %v16390_v32, %v3477_v51 }
 0x45e   : > { %v4018_v40 = vadd.f32 1.0, %v3986_v16  ;;  %v16409_v46 = vsel %vm15234_vm1, %v4336_v20, %v4259_v47  ;;  %v3640_v24 = vmul.f32 %v16342_v41, %v3608_v48  ;;  %v3510_v43 = vmul.f32 %v16395_v33, %v3478_v31  ;;  %12466 = vmatpush3.bf16.msra.mxu0 %v13356_v53  ;;  %v4255_v53 = vld [vmem:[#allocation3 + $0x18] sm:$0xff] }
 0x45f   : > { %4388 = vst [vmem:[#allocation3 + $0x20] sm:$0xff] %v16409_v46  ;;  %v4049_v45 = vmul.f32 %v4017_v21, %v3217_v22  ;;  %v3671_v25 = vadd.f32 0.2548296, %v3639_v0  ;;  %v3541_v14 = vadd.f32 1.4214138, %v3509_v60  ;;  %v13669_v22 = vpop.eup %13668  ;;  %12467 = vmatprep.subr.bf16.mxu0 %v13357_v34  ;;  %vm3926_vm14 = vcmp.lt.f32.partialorder %v16300_v61, 0.0 }
 0x460   : > { %v4050_v50 = vmul.f32 %v4018_v40, %v3218_v38  ;;  %v3672_v58 = vadd.f32 0.2548296, %v3640_v24  ;;  %v3542_v7 = vadd.f32 1.4214138, %v3510_v43  ;;  %v13671_v29 = vpop.eup %13670  ;;  %v3223_v24 = vmul.f32 0.5, %v16229_v56 }
 0x461   : > { %v3703_v55 = vmul.f32 %v16337_v57, %v3671_v25  ;;  %v3573_v57 = vmul.f32 %v16390_v32, %v3541_v14 }
 0x462   : > { %v16415_v27 = vpack.c.bf16 %v4050_v50, %v4049_v45  ;;  %v3704_v38 = vmul.f32 %v16342_v41, %v3672_v58  ;;  %v3574_v30 = vmul.f32 %v16395_v33, %v3542_v7  ;;  %v4256_v41 = vsel %vm15230_vm0, %v16326_v10, %v4255_v53  ;;  %12468 = vmatpush3.bf16.msra.mxu0 %v13357_v34  ;;  %v4264_v58 = vld [vmem:[#allocation3 + $0x30] sm:$0xff] }
 0x463   : > { %v16418_v44 = vpop.permute.xlu0 %4209  ;;  %v3863_v36 = vmul.f32 %v13669_v22, %v3703_v55  ;;  %v3605_v37 = vadd.f32 -0.28449672, %v3573_v57  ;;  %v4317_v10 = vrot.slane %v4163_v39, 1  ;;  %v3224_v45 = vmul.f32 0.5, %v16232_v15 }
 0x464   : > { %v4174_v28 = vshrl.u32 %v16415_v27, 16  ;;  %4085 = vst.msk [vmem:[#allocation3 + $0x68] sm:$0xff] %vm900_vm2, %v16415_v27  ;;  %v3864_v18 = vmul.f32 %v13671_v29, %v3704_v38  ;;  %v4177_v6 = vshll.u32 %v16415_v27, 16  ;;  %v3606_v47 = vadd.f32 -0.28449672, %v3574_v30  ;;  %v13673_v60 = vpop.eup %13672 }
 0x465   : > { %v3895_v19 = vsub.f32 1.0, %v3863_v36  ;;  %v3637_v48 = vmul.f32 %v16390_v32, %v3605_v37  ;;  %v4318_v26 = vor.u32 %v4317_v10, %v4160_v59  ;;  %v13675_v43 = vpop.eup %13674  ;;  %v4265_v12 = vsel %vm15230_vm0, %v16379_v5, %v4264_v58  ;;  %v11617_v27 = vld [vmem:[%s19167_s6] ss:$0 sm:$0xff] }
 0x466   : > { %v4176_v17 = vrot.slane %v4174_v28, 7  ;;  %v3896_v35 = vsub.f32 1.0, %v3864_v18  ;;  %v3638_v40 = vmul.f32 %v16395_v33, %v3606_v47  ;;  %v3221_v53 = vmul.f32 0.5, %v16277_v4  ;;  %v4261_v47 = vld [vmem:[#allocation3 + $0x28] sm:$0xff] }
 0x467   : > { %v4334_v8 = vpop.permute.xlu0 %4333  ;;  %v3959_v21 = vsub.f32 0.0, %v3895_v19  ;;  %v3669_v0 = vadd.f32 0.2548296, %v3637_v48  ;;  %v4262_v4 = vsel %vm15230_vm0, %v16418_v44, %v4261_v47  ;;  %v13358_v48 = vld [vmem:[%s19166_s5 + $0x20] sm:$0xff]  }
 0x468   : > { %v16437_v20 = vsel %vm15234_vm1, %v4334_v8, %v4256_v41  ;;  %v4179_v16 = vor.u32 %v4177_v6, %v4176_v17  ;;  %v3960_v62 = vsub.f32 0.0, %v3896_v35  ;;  %v3670_v63 = vadd.f32 0.2548296, %v3638_v40  ;;  %12469 = vmatprep.subr.bf16.mxu0 %v13358_v48 }
 0x469   : > { %4385 = vst [vmem:[#allocation3 + $0x18] sm:$0xff] %v16437_v20  ;;  %12433 = vmatprep.mubr.msk.bf16.mxu0 %vm440_vm11, %v16437_v20  ;;  %v3991_v39 = vsel %vm3927_vm10, %v3959_v21, %v3895_v19  ;;  %v3701_v25 = vmul.f32 %v16390_v32, %v3669_v0  ;;  %v3222_v19 = vmul.f32 0.5, %v16285_v1  ;;  %v4323_v8 = vrot.slane %v4184_v52, 1  ;;  %12470 = vmatpush3.bf16.msra.mxu0 %v13358_v48  ;;  %v5536_v48 = vld [vmem:[#allocation5 + $0xc8] sm:$0xff] }
 0x46a   : > { %12434 = vmatmul.mubr.msk.bf16.gmra.mrb[68].mxu0 %vm440_vm11, %v16409_v46  ;;  %4225 = vrot.lane.b32.xlu0 %v4179_v16, %s19177_s17  ;;  %v3992_v31 = vsel %vm3928_vm12, %v3960_v62, %v3896_v35  ;;  %v4023_v23 = vadd.f32 1.0, %v3991_v39  ;;  %v3702_v13 = vmul.f32 %v16395_v33, %v3670_v63  ;;  %v4321_v40 = vrot.slane %v4177_v6, 1  ;;  %v5511_v39 = vld [vmem:[#allocation5] sm:$0xff]  ;;  %v5513_v6 = vld [vmem:[#allocation5 + $0x10] sm:$0xff] }
 0x46b   : > { %v4024_v50 = vadd.f32 1.0, %v3992_v31  ;;  %v3861_v14 = vmul.f32 %v13673_v60, %v3701_v25  ;;  %v4324_v10 = vor.u32 %v4323_v8, %v4181_v49  ;;  %v13359_v31 = vld [vmem:[%s19166_s5 + $0x28] sm:$0xff]   ;;  %v5517_v63 = vld [vmem:[#allocation5 + $0x30] sm:$0xff]  ;;  %v5519_v60 = vld [vmem:[#allocation5 + $0x40] sm:$0xff] }
 0x46c   : > { %v16453_v51 = vpop.permute.xlu1 %4215  ;;  %v4055_v55 = vmul.f32 %v4023_v23, %v3223_v24  ;;  %v3862_v34 = vmul.f32 %v13675_v43, %v3702_v13  ;;  %v4322_v0 = vor.u32 %v4321_v40, %v4174_v28  ;;  %12471 = vmatprep.subr.bf16.mxu0 %v13359_v31  ;;  %v5515_v28 = vld [vmem:[#allocation5 + $0x20] sm:$0xff]  ;;  %v4270_v25 = vld [vmem:[#allocation3 + $0x40] sm:$0xff] }
 0x46d   : > { %v4056_v56 = vmul.f32 %v4024_v50, %v3224_v45  ;;  %v3893_v22 = vsub.f32 1.0, %v3861_v14  ;;  %12472 = vmatpush3.bf16.msra.mxu0 %v13359_v31  ;;  %v16521_v45 = vld [vmem:[%s19166_s5 + $0x60] sm:$0xff]   ;;  %v5512_v50 = vld [vmem:[#allocation5 + $0x8] sm:$0xff]  ;;  %v4271_v13 = vsel %vm15230_vm0, %v16453_v51, %v4270_v25  ;;  %v5518_v51 = vld [vmem:[#allocation5 + $0x38] sm:$0xff] }
 0x46e   : > { %4349 = vrot.lane.b32.xlu0 %v4318_v26, %s19175_s15  ;;  %v3894_v33 = vsub.f32 1.0, %v3862_v34  ;;  %12505 = vmatprep.subr.bf16.mxu0 %v16521_v45  ;;  %v5516_v14 = vld [vmem:[#allocation5 + $0x28] sm:$0xff]  ;;  %v4288_v25 = vld [vmem:[#allocation3 + $0x70] sm:$0xff] }
 0x46f   : > { %v4072_v32 = vpack.c.bf16 %v4056_v56, %v4055_v55  ;;  %v3957_v7 = vsub.f32 0.0, %v3893_v22  ;;  %v5514_v55 = vld [vmem:[#allocation5 + $0x18] sm:$0xff]  ;;  %v5521_v56 = vld [vmem:[#allocation5 + $0x50] sm:$0xff] }
 0x470   : > { %v4340_v59 = vpop.permute.xlu1 %4339  ;;  %v3958_v29 = vsub.f32 0.0, %v3894_v33 }
 0x471   : > { %v16467_v15 = vsel %vm15234_vm1, %v4340_v59, %v4265_v12  ;;  %v4195_v38 = vshrl.u32 %v4072_v32, 16  ;;  %4088 = vst.msk [vmem:[#allocation3 + $0x80] sm:$0xff] %vm900_vm2, %v4072_v32  ;;  %v4198_v5 = vshll.u32 %v4072_v32, 16  ;;  %v3989_v57 = vsel %vm3925_vm13, %v3957_v7, %v3893_v22  ;;  %v5523_v12 = vld [vmem:[#allocation5 + $0x60] sm:$0xff]  ;;  %v5525_v59 = vld [vmem:[#allocation5 + $0x70] sm:$0xff]  ;;  %v5520_v32 = vld [vmem:[#allocation5 + $0x48] sm:$0xff] }
 0x472   : > { %4394 = vst [vmem:[#allocation3 + $0x30] sm:$0xff] %v16467_v15  ;;  %v3990_v18 = vsel %vm3926_vm14, %v3958_v29, %v3894_v33  ;;  %v4021_v30 = vadd.f32 1.0, %v3989_v57  ;;  %v4267_v22 = vld [vmem:[#allocation3 + $0x38] sm:$0xff]  ;;  %v5527_v33 = vld [vmem:[#allocation5 + $0x80] sm:$0xff] }
 0x473   : > { %v4197_v36 = vrot.slane %v4195_v38, 7  ;;  %v4022_v37 = vadd.f32 1.0, %v3990_v18  ;;  %v4327_v21 = vrot.slane %v4198_v5, 1  ;;  %v5524_v57 = vld [vmem:[#allocation5 + $0x68] sm:$0xff]  ;;  %v5526_v18 = vld [vmem:[#allocation5 + $0x78] sm:$0xff] }
 0x474   : > { %v4053_v11 = vmul.f32 %v4021_v30, %v3221_v53  ;;  %v5531_v53 = vld [vmem:[#allocation5 + $0xa0] sm:$0xff] }
 0x475   : > { %v4200_v17 = vor.u32 %v4198_v5, %v4197_v36  ;;  %v4054_v35 = vmul.f32 %v4022_v37, %v3222_v19  ;;  %v4328_v44 = vor.u32 %v4327_v21, %v4195_v38  ;;  %v5522_v36 = vld [vmem:[#allocation5 + $0x58] sm:$0xff]  ;;  %v5529_v5 = vld [vmem:[#allocation5 + $0x90] sm:$0xff]  ;;  %v5528_v19 = vld [vmem:[#allocation5 + $0x88] sm:$0xff] }
 0x476   : > { %v16474_v41 = vpop.permute.xlu0 %4213 }
 0x477   : > { %4231 = vrot.lane.b32.xlu1 %v4200_v17, %s19177_s17  ;;  %v4071_v16 = vpack.c.bf16 %v4054_v35, %v4053_v11  ;;  %v4268_v38 = vsel %vm15230_vm0, %v16474_v41, %v4267_v22  ;;  %v5533_v41 = vld [vmem:[#allocation5 + $0xb0] sm:$0xff]  ;;  %v4276_v17 = vld [vmem:[#allocation3 + $0x50] sm:$0xff] }
 0x478   : > { %v5535_v35 = vld [vmem:[#allocation5 + $0xc0] sm:$0xff] }
 0x479   : > { %v4188_v52 = vshrl.u32 %v4071_v16, 16  ;;  %4087 = vst.msk [vmem:[#allocation3 + $0x78] sm:$0xff] %vm900_vm2, %v4071_v16  ;;  %v4191_v49 = vshll.u32 %v4071_v16, 16  ;;  %v4273_v16 = vld [vmem:[#allocation3 + $0x48] sm:$0xff] }
 0x47a   : > { %v4338_v61 = vpop.permute.xlu0 %4337 }
 0x47b   : > { %v16487_v1 = vsel %vm15234_vm1, %v4338_v61, %v4262_v4  ;;  %4355 = vrot.lane.b32.xlu1 %v4324_v10, %s19175_s15  ;;  %v4190_v54 = vrot.slane %v4188_v52, 7  ;;  %v4325_v24 = vrot.slane %v4191_v49, 1  ;;  %v5530_v4 = vld [vmem:[#allocation5 + $0x98] sm:$0xff]  ;;  %v5537_v61 = vld [vmem:[#allocation5 + $0xd0] sm:$0xff] }
 0x47c   : > { %4391 = vst [vmem:[#allocation3 + $0x28] sm:$0xff] %v16487_v1  ;;  %12437 = vmatprep.mubr.msk.bf16.mxu0 %vm440_vm11, %v16487_v1 }
 0x47d   : > { %12438 = vmatmul.mubr.msk.bf16.gmra.mrb[72].mxu0 %vm440_vm11, %v16467_v15  ;;  %v4193_v62 = vor.u32 %v4191_v49, %v4190_v54  ;;  %v4326_v23 = vor.u32 %v4325_v24, %v4188_v52  ;;  %v5532_v52 = vld [vmem:[#allocation5 + $0xa8] sm:$0xff]  ;;  %v5539_v49 = vld [vmem:[#allocation5 + $0xe0] sm:$0xff] }
 0x47f   : > { %4359 = vrot.lane.b32.xlu1 %v4328_v44, %s19175_s15  ;;  %4229 = vrot.lane.b32.xlu0 %v4193_v62, %s19177_s17  ;;  %v5534_v44 = vld [vmem:[#allocation5 + $0xb8] sm:$0xff] }
 0x480   : > { %v5538_v62 = vld [vmem:[#allocation5 + $0xd8] sm:$0xff] }
 0x483   : > { %5575 = vrot.lane.b32.xlu1 %v5511_v39, %s19177_s17  ;;  %4353 = vrot.lane.b32.xlu0 %v4322_v0, %s19175_s15  ;;  %v4282_v39 = vld [vmem:[#allocation3 + $0x60] sm:$0xff]  ;;  %v5540_v0 = vld [vmem:[#allocation5 + $0xe8] sm:$0xff] }
 0x487   : > { %5579 = vrot.lane.b32.xlu1 %v5513_v6, %s19177_s17  ;;  %4357 = vrot.lane.b32.xlu0 %v4326_v23, %s19175_s15  ;;  %s11397_s15 = sshll.u32 %s431_s24, 6 }
 0x488   : > { %s433_s30 = scalar_lea.vmem [#allocation6], %s11397_s15 }
 0x48b   : > { %5583 = vrot.lane.b32.xlu1 %v5515_v28, %s19177_s17  ;;  %5476 = vrot.lane.b32.xlu0 %v11617_v27, %s19177_s17  ;;  %v4279_v27 = vld [vmem:[#allocation3 + $0x58] sm:$0xff] }
 0x48f   : > { %5587 = vrot.lane.b32.xlu1 %v5517_v63, %s19177_s17  ;;  %5577 = vrot.lane.b32.xlu0 %v5512_v50, %s19177_s17 }
 0x490   : > { %v4220_v26 = vpop.permute.xlu1 %4219 }
 0x491   : > { %v4277_v37 = vsel %vm15230_vm0, %v4220_v26, %v4276_v17 }
 0x493   : > { %5591 = vrot.lane.b32.xlu1 %v5519_v60, %s19177_s17  ;;  %5581 = vrot.lane.b32.xlu0 %v5514_v55, %s19177_s17  ;;  %v4294_v55 = vld [vmem:[#allocation3 + $0x80] sm:$0xff] }
 0x494   : > { %v4344_v58 = vpop.permute.xlu1 %4343 }
 0x495   : > { %v16531_v43 = vsel %vm15234_vm1, %v4344_v58, %v4271_v13 }
 0x496   : > { %4400 = vst [vmem:[#allocation3 + $0x40] sm:$0xff] %v16531_v43 }
 0x497   : > { %5595 = vrot.lane.b32.xlu1 %v5521_v56, %s19177_s17  ;;  %5585 = vrot.lane.b32.xlu0 %v5516_v14, %s19177_s17 }
 0x49b   : > { %5599 = vrot.lane.b32.xlu1 %v5523_v12, %s19177_s17  ;;  %5589 = vrot.lane.b32.xlu0 %v5518_v51, %s19177_s17 }
 0x49f   : > { %v4218_v34 = vpop.permute.xlu0 %4217  ;;  %5603 = vrot.lane.b32.xlu1 %v5525_v59, %s19177_s17  ;;  %5593 = vrot.lane.b32.xlu0 %v5520_v32, %s19177_s17  ;;  %v4285_v59 = vld [vmem:[#allocation3 + $0x68] sm:$0xff] }
 0x4a0   : > { %v4274_v10 = vsel %vm15230_vm0, %v4218_v34, %v4273_v16 }
 0x4a3   : > { %v4342_v7 = vpop.permute.xlu0 %4341  ;;  %5607 = vrot.lane.b32.xlu1 %v5527_v33, %s19177_s17  ;;  %5597 = vrot.lane.b32.xlu0 %v5522_v36, %s19177_s17  ;;  %v4291_v33 = vld [vmem:[#allocation3 + $0x78] sm:$0xff] }
 0x4a4   : > { %v16547_v29 = vsel %vm15234_vm1, %v4342_v7, %v4268_v38 }
 0x4a5   : > { %4397 = vst [vmem:[#allocation3 + $0x38] sm:$0xff] %v16547_v29  ;;  %12441 = vmatprep.mubr.msk.bf16.mxu0 %vm440_vm11, %v16547_v29 }
 0x4a6   : > { %12442 = vmatmul.mubr.msk.bf16.gmra.mrb[76].mxu0 %vm440_vm11, %v16531_v43 }
 0x4a7   : > { %5611 = vrot.lane.b32.xlu1 %v5529_v5, %s19177_s17  ;;  %5601 = vrot.lane.b32.xlu0 %v5524_v57, %s19177_s17  ;;  %v4425_v5 = vld [vmem:[#allocation3] sm:$0xff]  ;;  %v13361_v57 = vld [vmem:[%s19166_s5 + $0x68] sm:$0xff]  }
 0x4ab   : > { %5615 = vrot.lane.b32.xlu1 %v5531_v53, %s19177_s17  ;;  %5605 = vrot.lane.b32.xlu0 %v5526_v18, %s19177_s17  ;;  %v13362_v53 = vld [vmem:[%s19166_s5 + $0x70] sm:$0xff]   ;;  %v13363_v18 = vld [vmem:[%s19166_s5 + $0x78] sm:$0xff]  }
 0x4ae   : > { %v4224_v30 = vpop.permute.xlu1 %4223 }
 0x4af   : > { %5619 = vrot.lane.b32.xlu1 %v5533_v41, %s19177_s17  ;;  %5609 = vrot.lane.b32.xlu0 %v5528_v19, %s19177_s17  ;;  %v4283_v24 = vsel %vm15230_vm0, %v4224_v30, %v4282_v39 }
 0x4b2   : > { %v4348_v8 = vpop.permute.xlu1 %4347 }
 0x4b3   : > { %v16565_v11 = vsel %vm15234_vm1, %v4348_v8, %v4277_v37  ;;  %5623 = vrot.lane.b32.xlu1 %v5535_v35, %s19177_s17  ;;  %5613 = vrot.lane.b32.xlu0 %v5530_v4, %s19177_s17 }
 0x4b4   : > { %4406 = vst [vmem:[#allocation3 + $0x50] sm:$0xff] %v16565_v11 }
 0x4b5   : > { %v4222_v47 = vpop.permute.xlu0 %4221 }
 0x4b6   : > { %v4280_v28 = vsel %vm15230_vm0, %v4222_v47, %v4279_v27 }
 0x4b7   : > { %5627 = vrot.lane.b32.xlu1 %v5537_v61, %s19177_s17  ;;  %5617 = vrot.lane.b32.xlu0 %v5532_v52, %s19177_s17 }
 0x4b9   : > { %v4346_v21 = vpop.permute.xlu0 %4345 }
 0x4ba   : > { %v16575_v54 = vsel %vm15234_vm1, %v4346_v21, %v4274_v10 }
 0x4bb   : > { %4403 = vst [vmem:[#allocation3 + $0x48] sm:$0xff] %v16575_v54  ;;  %12445 = vmatprep.mubr.msk.bf16.mxu0 %vm440_vm11, %v16575_v54  ;;  %5631 = vrot.lane.b32.xlu1 %v5539_v49, %s19177_s17 }
 0x4bc   : > { %12446 = vmatmul.mubr.msk.bf16.gmra.mrb[80].mxu0 %vm440_vm11, %v16565_v11  ;;  %5621 = vrot.lane.b32.xlu0 %v5534_v44, %s19177_s17 }
 0x4c0   : > { %5625 = vrot.lane.b32.xlu0 %v5536_v48, %s19177_s17 }
 0x4c4   : > { %5629 = vrot.lane.b32.xlu0 %v5538_v62, %s19177_s17 }
 0x4c6   : > { %v4228_v40 = vpop.permute.xlu1 %4227 }
 0x4c7   : > { %v4289_v60 = vsel %vm15230_vm0, %v4228_v40, %v4288_v25 }
 0x4c8   : > { %5633 = vrot.lane.b32.xlu0 %v5540_v0, %s19177_s17 }
 0x4ca   : > { %v4352_v31 = vpop.permute.xlu1 %4351 }
 0x4cb   : > { %v16592_v6 = vsel %vm15234_vm1, %v4352_v31, %v4283_v24 }
 0x4cc   : > { %4412 = vst [vmem:[#allocation3 + $0x60] sm:$0xff] %v16592_v6 }
 0x4dc   : > { %v4226_v23 = vpop.permute.xlu0 %4225 }
 0x4dd   : > { %v4286_v34 = vsel %vm15230_vm0, %v4226_v23, %v4285_v59  ;;  %v5541_v59 = vld [vmem:[#allocation5 + $0xf0] sm:$0xff] }
 0x4e0   : > { %v4350_v63 = vpop.permute.xlu0 %4349 }
 0x4e1   : > { %v16599_v26 = vsel %vm15234_vm1, %v4350_v63, %v4280_v28 }
 0x4e2   : > { %4409 = vst [vmem:[#allocation3 + $0x58] sm:$0xff] %v16599_v26  ;;  %12449 = vmatprep.mubr.msk.bf16.mxu0 %vm440_vm11, %v16599_v26 }
 0x4e3   : > { %12450 = vmatmul.mubr.msk.bf16.gmra.mrb[84].mxu0 %vm440_vm11, %v16592_v6 }
 0x4e9   : > { %v4232_v50 = vpop.permute.xlu1 %4231 }
 0x4ea   : > { %v4295_v56 = vsel %vm15230_vm0, %v4232_v50, %v4294_v55 }
 0x4ed   : > { %v4356_v13 = vpop.permute.xlu1 %4355 }
 0x4ee   : > { %v16610_v58 = vsel %vm15234_vm1, %v4356_v13, %v4289_v60 }
 0x4ef   : > { %4418 = vst [vmem:[#allocation3 + $0x70] sm:$0xff] %v16610_v58 }
 0x4f1   : > { %v4360_v14 = vpop.permute.xlu1 %4359  ;;  %v4230_v51 = vpop.permute.xlu0 %4229 }
 0x4f2   : > { %v16617_v12 = vsel %vm15234_vm1, %v4360_v14, %v4295_v56  ;;  %v4292_v38 = vsel %vm15230_vm0, %v4230_v51, %v4291_v33 }
 0x4f3   : > { %4424 = vst [vmem:[#allocation3 + $0x80] sm:$0xff] %v16617_v12 }
 0x4f5   : > { %v4354_v32 = vpop.permute.xlu0 %4353  ;;  %v16726_v10 = vpop.permute.xlu1 %5575 }
 0x4f6   : > { %v4414_v22 = vsel %vm15234_vm1, %v4354_v32, %v4286_v34  ;;  %v5542_v34 = vld [vmem:[#allocation5 + $0xf8] sm:$0xff] }
 0x4f7   : > { %4415 = vst [vmem:[#allocation3 + $0x68] sm:$0xff] %v4414_v22  ;;  %12453 = vmatprep.mubr.msk.bf16.mxu0 %vm440_vm11, %v4414_v22 }
 0x4f8   : > { %12454 = vmatmul.mubr.msk.bf16.gmra.mrb[88].mxu0 %vm440_vm11, %v16610_v58 }
 0x4f9   : > { %v4358_v7 = vpop.permute.xlu0 %4357  ;;  %v16732_v44 = vpop.permute.xlu1 %5579 }
 0x4fa   : > { %v4420_v36 = vsel %vm15234_vm1, %v4358_v7, %v4292_v38 }
 0x4fb   : > { %4421 = vst [vmem:[#allocation3 + $0x78] sm:$0xff] %v4420_v36  ;;  %12457 = vmatprep.mubr.msk.bf16.mxu0 %vm440_vm11, %v4420_v36 }
 0x4fd   : > { %v16740_v39 = vpop.permute.xlu1 %5583 }
 0x500   : > { %12458 = vmatmul.mubr.msk.bf16.gmra.mrb[92].mxu0 %vm440_vm11, %v16617_v12 }
 0x501   : > { %12473 = vmatprep.mubr.msk.bf16.mxu0 %vm440_vm11, %v4425_v5  ;;  %v16746_v23 = vpop.permute.xlu1 %5587 }
 0x505   : > { %v16754_v25 = vpop.permute.xlu1 %5591 }
 0x508   : > { %12474 = vmatmul.mubr.msk.bf16.vlgmr.msra.gmra.mrb[64].mxu0 %vm440_vm11, %v16364_v2  ;;  %v13364_v2 = vld [vmem:[%s19166_s5 + $0x80] sm:$0xff]  }
 0x509   : > { %12506 = vmatpush3.bf16.msra.mxu0 %v16521_v45  ;;  %12477 = vmatprep.mubr.msk.bf16.mxu0 %vm440_vm11, %v16360_v42  ;;  %v13365_v45 = vld [vmem:[%s19166_s5 + $0x88] sm:$0xff]   ;;  %v16760_v56 = vpop.permute.xlu1 %5595 }
 0x50a   : > { %12507 = vmatprep.subr.bf16.mxu0 %v13361_v57 }
 0x50d   : > { %12508 = vmatpush3.bf16.msra.mxu0 %v13361_v57  ;;  %v16768_v51 = vpop.permute.xlu1 %5599 }
 0x50e   : > { %12509 = vmatprep.subr.bf16.mxu0 %v13362_v53 }
 0x510   : > { %12478 = vmatmul.mubr.msk.bf16.gmra.mrb[68].mxu0 %vm440_vm11, %v16437_v20 }
 0x511   : > { %12481 = vmatprep.mubr.msk.bf16.mxu0 %vm440_vm11, %v16409_v46  ;;  %12510 = vmatpush3.bf16.msra.mxu0 %v13362_v53 }
 0x512   : > { %12511 = vmatprep.subr.bf16.mxu0 %v13363_v18 }
 0x515   : > { %12512 = vmatpush3.bf16.msra.mxu0 %v13363_v18 }
 0x516   : > { %12513 = vmatprep.subr.bf16.mxu0 %v13364_v2 }
 0x518   : > { %12482 = vmatmul.mubr.msk.bf16.gmra.mrb[72].mxu0 %vm440_vm11, %v16487_v1 }
 0x519   : > { %12485 = vmatprep.mubr.msk.bf16.mxu0 %vm440_vm11, %v16467_v15  ;;  %12514 = vmatpush3.bf16.msra.mxu0 %v13364_v2 }
 0x51a   : > { %12515 = vmatprep.subr.bf16.mxu0 %v13365_v45 }
 0x51d   : > { %12516 = vmatpush3.bf16.msra.mxu0 %v13365_v45 }
 0x520   : > { %12486 = vmatmul.mubr.msk.bf16.gmra.mrb[76].mxu0 %vm440_vm11, %v16547_v29 }
 0x521   : > { %12489 = vmatprep.mubr.msk.bf16.mxu0 %vm440_vm11, %v16531_v43 }
 0x528   : > { %12490 = vmatmul.mubr.msk.bf16.gmra.mrb[80].mxu0 %vm440_vm11, %v16575_v54 }
 0x529   : > { %12493 = vmatprep.mubr.msk.bf16.mxu0 %vm440_vm11, %v16565_v11 }
 0x530   : > { %12494 = vmatmul.mubr.msk.bf16.gmra.mrb[84].mxu0 %vm440_vm11, %v16599_v26 }
 0x531   : > { %12497 = vmatprep.mubr.msk.bf16.mxu0 %vm440_vm11, %v16592_v6 }
 0x538   : > { %12498 = vmatmul.mubr.msk.bf16.gmra.mrb[88].mxu0 %vm440_vm11, %v4414_v22 }
 0x539   : > { %12501 = vmatprep.mubr.msk.bf16.mxu0 %vm440_vm11, %v16610_v58 }
 0x540   : > { %12502 = vmatmul.mubr.msk.bf16.gmra.mrb[92].mxu0 %vm440_vm11, %v4420_v36 }
 0x541   : > { %12517 = vmatprep.mubr.msk.bf16.mxu0 %vm440_vm11, %v16360_v42  ;;  %v4987_v42 = vld [vmem:[#allocation3 + $0x88] sm:$0xff] }
 0x548   : > { %12518 = vmatmul.mubr.msk.bf16.vlgmr.msra.gmra.mrb[64].mxu0 %vm440_vm11, %v16437_v20 }
 0x549   : > { %12521 = vmatprep.mubr.msk.bf16.mxu0 %vm440_vm11, %v16409_v46 }
 0x550   : > { %12522 = vmatmul.mubr.msk.bf16.gmra.mrb[68].mxu0 %vm440_vm11, %v16487_v1 }
 0x551   : > { %12525 = vmatprep.mubr.msk.bf16.mxu0 %vm440_vm11, %v16467_v15 }
 0x558   : > { %12526 = vmatmul.mubr.msk.bf16.gmra.mrb[72].mxu0 %vm440_vm11, %v16547_v29 }
 0x559   : > { %12529 = vmatprep.mubr.msk.bf16.mxu0 %vm440_vm11, %v16531_v43 }
 0x560   : > { %12530 = vmatmul.mubr.msk.bf16.gmra.mrb[76].mxu0 %vm440_vm11, %v16575_v54 }
 0x561   : > { %12533 = vmatprep.mubr.msk.bf16.mxu0 %vm440_vm11, %v16565_v11  ;;  %v16718_v11 = vpop.permute.xlu0 %5476 }
 0x565   : > { %v16722_v61 = vpop.permute.xlu0 %5577 }
 0x568   : > { %12534 = vmatmul.mubr.msk.bf16.gmra.mrb[80].mxu0 %vm440_vm11, %v16599_v26 }
 0x569   : > { %12537 = vmatprep.mubr.msk.bf16.mxu0 %vm440_vm11, %v16592_v6  ;;  %v16730_v52 = vpop.permute.xlu0 %5581 }
 0x56d   : > { %v16736_v62 = vpop.permute.xlu0 %5585 }
 0x570   : > { %12538 = vmatmul.mubr.msk.bf16.gmra.mrb[84].mxu0 %vm440_vm11, %v4414_v22  ;;  %v16774_v22 = vpop.permute.xlu1 %5603 }
 0x571   : > { %12541 = vmatprep.mubr.msk.bf16.mxu0 %vm440_vm11, %v16610_v58  ;;  %v16744_v6 = vpop.permute.xlu0 %5589 }
 0x574   : > { %v16778_v38 = vpop.permute.xlu1 %5607 }
 0x575   : > { %v16750_v26 = vpop.permute.xlu0 %5593 }
 0x578   : > { %12542 = vmatmul.mubr.msk.bf16.gmra.mrb[88].mxu0 %vm440_vm11, %v4420_v36  ;;  %v16782_v36 = vpop.permute.xlu1 %5611 }
 0x579   : > { %12545 = vmatprep.mubr.msk.bf16.mxu0 %vm440_vm11, %v16617_v12  ;;  %v16758_v13 = vpop.permute.xlu0 %5597 }
 0x57c   : > { %v16786_v57 = vpop.permute.xlu1 %5615 }
 0x57d   : > { %v16764_v12 = vpop.permute.xlu0 %5601 }
 0x580   : > { %12546 = vmatmul.mubr.msk.bf16.gmra.mrb[92].mxu0 %vm440_vm11, %v4987_v42  ;;  %v16790_v18 = vpop.permute.xlu1 %5619 }
 0x581   : > { %v16772_v32 = vpop.permute.xlu0 %5605 }
 0x584   : > { %v16794_v45 = vpop.permute.xlu1 %5623 }
 0x585   : > { %v16776_v33 = vpop.permute.xlu0 %5609 }
 0x589   : > { %v16780_v7 = vpop.permute.xlu0 %5613 }
 0x58d   : > { %v16784_v5 = vpop.permute.xlu0 %5617 }
 0x591   : > { %v16788_v53 = vpop.permute.xlu0 %5621 }
 0x595   : > { %v16792_v2 = vpop.permute.xlu0 %5625 }
 0x599   : > { %v16796_v42 = vpop.permute.xlu0 %5629 }
 0x61b   : > { %v12519_v46 = vpop.f32.mrb[64].mxu0 }
 0x61c   : > { %5346 = vrot.lane.b32.xlu0 %v12519_v46, %s19177_s17  ;;  %v5119_v20 = vpop.f32.mrb[65].mxu0  ;;  %v16798_v46 = vpop.permute.xlu1 %5627 }
 0x61d   : > { %v12520_v15 = vpop.f32.mrb[66].mxu0 }
 0x61e   : > { %5348 = vrot.lane.b32.xlu1 %v12520_v15, %s19177_s17  ;;  %v5122_v1 = vpop.f32.mrb[67].mxu0 }
 0x620   : > { %5342 = vrot.lane.b32.xlu0 %v5119_v20, %s19177_s17  ;;  %v16800_v20 = vpop.permute.xlu0 %5633  ;;  %v16802_v15 = vpop.permute.xlu1 %5631 }
 0x622   : > { %5344 = vrot.lane.b32.xlu1 %v5122_v1, %s19177_s17 }
 0x623   : > { %v12523_v43 = vpop.f32.mrb[68].mxu0 }
 0x624   : > { %v5135_v29 = vpop.f32.mrb[69].mxu0 }
 0x625   : > { %v12524_v30 = vpop.f32.mrb[70].mxu0 }
 0x626   : > { %5354 = vrot.lane.b32.xlu1 %v12523_v43, %s19177_s17  ;;  %5356 = vrot.lane.b32.xlu0 %v12524_v30, %s19177_s17  ;;  %v5138_v41 = vpop.f32.mrb[71].mxu0  ;;  %v5278_v30 = vld [vmem:[#allocation2] sm:$0xff] }
 0x62a   : > { %5350 = vrot.lane.b32.xlu1 %v5135_v29, %s19177_s17  ;;  %5352 = vrot.lane.b32.xlu0 %v5138_v41, %s19177_s17  ;;  %v5280_v29 = vld [vmem:[#allocation2 + $0x10] sm:$0xff] }
 0x62b   : > { %v12527_v17 = vpop.f32.mrb[72].mxu0 }
 0x62c   : > { %v5151_v19 = vpop.f32.mrb[73].mxu0 }
 0x62d   : > { %v12528_v37 = vpop.f32.mrb[74].mxu0 }
 0x62e   : > { %5362 = vrot.lane.b32.xlu1 %v12527_v17, %s19177_s17  ;;  %5364 = vrot.lane.b32.xlu0 %v12528_v37, %s19177_s17  ;;  %v5154_v8 = vpop.f32.mrb[75].mxu0  ;;  %v5281_v37 = vld [vmem:[#allocation2 + $0x18] sm:$0xff] }
 0x632   : > { %5358 = vrot.lane.b32.xlu1 %v5151_v19, %s19177_s17  ;;  %5360 = vrot.lane.b32.xlu0 %v5154_v8, %s19177_s17  ;;  %v5279_v8 = vld [vmem:[#allocation2 + $0x8] sm:$0xff] }
 0x633   : > { %v12531_v35 = vpop.f32.mrb[76].mxu0 }
 0x634   : > { %v5167_v47 = vpop.f32.mrb[77].mxu0 }
 0x635   : > { %v12532_v4 = vpop.f32.mrb[78].mxu0 }
 0x636   : > { %5370 = vrot.lane.b32.xlu1 %v12531_v35, %s19177_s17  ;;  %5372 = vrot.lane.b32.xlu0 %v12532_v4, %s19177_s17  ;;  %v5170_v16 = vpop.f32.mrb[79].mxu0 }
 0x63a   : > { %5366 = vrot.lane.b32.xlu1 %v5167_v47, %s19177_s17  ;;  %5368 = vrot.lane.b32.xlu0 %v5170_v16, %s19177_s17 }
 0x63b   : > { %v12535_v21 = vpop.f32.mrb[80].mxu0 }
 0x63c   : > { %v5183_v54 = vpop.f32.mrb[81].mxu0 }
 0x63d   : > { %v12536_v49 = vpop.f32.mrb[82].mxu0 }
 0x63e   : > { %5378 = vrot.lane.b32.xlu1 %v12535_v21, %s19177_s17  ;;  %5380 = vrot.lane.b32.xlu0 %v12536_v49, %s19177_s17  ;;  %v5186_v48 = vpop.f32.mrb[83].mxu0 }
 0x642   : > { %5374 = vrot.lane.b32.xlu1 %v5183_v54, %s19177_s17  ;;  %5376 = vrot.lane.b32.xlu0 %v5186_v48, %s19177_s17 }
 0x643   : > { %v12539_v40 = vpop.f32.mrb[84].mxu0 }
 0x644   : > { %v5199_v0 = vpop.f32.mrb[85].mxu0 }
 0x645   : > { %v12540_v24 = vpop.f32.mrb[86].mxu0 }
 0x646   : > { %5386 = vrot.lane.b32.xlu1 %v12539_v40, %s19177_s17  ;;  %5388 = vrot.lane.b32.xlu0 %v12540_v24, %s19177_s17  ;;  %v5202_v31 = vpop.f32.mrb[87].mxu0 }
 0x64a   : > { %5382 = vrot.lane.b32.xlu1 %v5199_v0, %s19177_s17  ;;  %5384 = vrot.lane.b32.xlu0 %v5202_v31, %s19177_s17 }
 0x64b   : > { %v12543_v27 = vpop.f32.mrb[88].mxu0 }
 0x64c   : > { %v5215_v28 = vpop.f32.mrb[89].mxu0 }
 0x64d   : > { %v12544_v63 = vpop.f32.mrb[90].mxu0 }
 0x64e   : > { %5394 = vrot.lane.b32.xlu1 %v12543_v27, %s19177_s17  ;;  %5396 = vrot.lane.b32.xlu0 %v12544_v63, %s19177_s17  ;;  %v5218_v50 = vpop.f32.mrb[91].mxu0  ;;  %v5284_v27 = vld [vmem:[#allocation2 + $0x30] sm:$0xff] }
 0x652   : > { %5390 = vrot.lane.b32.xlu1 %v5215_v28, %s19177_s17  ;;  %5392 = vrot.lane.b32.xlu0 %v5218_v50, %s19177_s17  ;;  %v5285_v28 = vld [vmem:[#allocation2 + $0x38] sm:$0xff] }
 0x653   : > { %v12547_v60 = vpop.f32.mrb[92].mxu0 }
 0x654   : > { %v5231_v58 = vpop.f32.mrb[93].mxu0 }
 0x655   : > { %v12548_v55 = vpop.f32.mrb[94].mxu0 }
 0x656   : > { %5402 = vrot.lane.b32.xlu1 %v12547_v60, %s19177_s17  ;;  %5404 = vrot.lane.b32.xlu0 %v12548_v55, %s19177_s17  ;;  %v5234_v14 = vpop.f32.mrb[95].mxu0 }
 0x65a   : > { %5398 = vrot.lane.b32.xlu1 %v5231_v58, %s19177_s17  ;;  %5400 = vrot.lane.b32.xlu0 %v5234_v14, %s19177_s17  ;;  %v5283_v58 = vld [vmem:[#allocation2 + $0x28] sm:$0xff] }
 0x65e   : > { %5635 = vrot.lane.b32.xlu1 %v5541_v59, %s19177_s17  ;;  %5637 = vrot.lane.b32.xlu0 %v5542_v34, %s19177_s17  ;;  %s19202_s17 = smov 32  }
 0x68e   : > { %v5347_v1 = vpop.permute.xlu0 %5346 }
 0x68f   : > { %v5440_v17 = vadd.f32 %v5347_v1, %v5280_v29 }
 0x690   : > { %v5349_v43 = vpop.permute.xlu1 %5348 }
 0x691   : > { %v5441_v47 = vadd.f32 %v5349_v43, %v5281_v37  ;;  %v5481_v21 = vadd.f32 %v16718_v11, %v5440_v17  ;;  %v5288_v17 = vld [vmem:[#allocation2 + $0x50] sm:$0xff] }
 0x692   : > { %v5343_v41 = vpop.permute.xlu0 %5342 }
 0x693   : > { %v5438_v19 = vadd.f32 %v5343_v41, %v5278_v30  ;;  %v5482_v0 = vadd.f32 %v16718_v11, %v5441_v47  ;;  %v5673_v31 = vadd.f32 %v16732_v44, %v5481_v21 }
 0x694   : > { %v5345_v35 = vpop.permute.xlu1 %5344 }
 0x695   : > { %v5479_v4 = vadd.f32 %v16718_v11, %v5438_v19  ;;  %v5439_v16 = vadd.f32 %v5345_v35, %v5279_v8  ;;  %v5674_v14 = vadd.f32 %v16730_v52, %v5482_v0  ;;  %v5289_v8 = vld [vmem:[#allocation2 + $0x58] sm:$0xff]  ;;  %v5286_v35 = vld [vmem:[#allocation2 + $0x40] sm:$0xff] }
 0x697   : > { %v5671_v54 = vadd.f32 %v16726_v10, %v5479_v4  ;;  %v5480_v49 = vadd.f32 %v16718_v11, %v5439_v16  ;;  %v5282_v10 = vld [vmem:[#allocation2 + $0x20] sm:$0xff]  ;;  %v5287_v4 = vld [vmem:[#allocation2 + $0x48] sm:$0xff] }
 0x698   : > { %v5355_v48 = vpop.permute.xlu1 %5354  ;;  %v5357_v40 = vpop.permute.xlu0 %5356 }
 0x699   : > { %v5672_v24 = vadd.f32 %v16722_v61, %v5480_v49  ;;  %5735 = vrot.lane.b32.xlu1 %v5671_v54, %s13874_s22  ;;  %v5444_v63 = vadd.f32 %v5355_v48, %v5284_v27  ;;  %v5445_v50 = vadd.f32 %v5357_v40, %v5285_v28  ;;  %v5292_v27 = vld [vmem:[#allocation2 + $0x70] sm:$0xff]  ;;  %v5293_v28 = vld [vmem:[#allocation2 + $0x78] sm:$0xff] }
 0x69b   : > { %5737 = vrot.lane.b32.xlu0 %v5672_v24, %s13874_s22  ;;  %v5485_v1 = vadd.f32 %v16718_v11, %v5444_v63  ;;  %v5486_v43 = vadd.f32 %v16718_v11, %v5445_v50 }
 0x69c   : > { %v5351_v60 = vpop.permute.xlu1 %5350  ;;  %v5353_v55 = vpop.permute.xlu0 %5352 }
 0x69d   : > { %v5442_v59 = vadd.f32 %v5351_v60, %v5282_v10  ;;  %v5443_v34 = vadd.f32 %v5353_v55, %v5283_v58  ;;  %5739 = vrot.lane.b32.xlu1 %v5673_v31, %s13874_s22  ;;  %v5677_v19 = vadd.f32 %v16746_v23, %v5485_v1  ;;  %v5678_v37 = vadd.f32 %v16744_v6, %v5486_v43  ;;  %v5290_v10 = vld [vmem:[#allocation2 + $0x60] sm:$0xff]  ;;  %v5291_v58 = vld [vmem:[#allocation2 + $0x68] sm:$0xff] }
 0x69f   : > { %v5483_v61 = vadd.f32 %v16718_v11, %v5442_v59  ;;  %v5484_v44 = vadd.f32 %v16718_v11, %v5443_v34  ;;  %5741 = vrot.lane.b32.xlu0 %v5674_v14, %s13874_s22 }
 0x6a0   : > { %v5363_v29 = vpop.permute.xlu1 %5362  ;;  %v5365_v30 = vpop.permute.xlu0 %5364 }
 0x6a1   : > { %v5675_v41 = vadd.f32 %v16740_v39, %v5483_v61  ;;  %v5676_v52 = vadd.f32 %v16736_v62, %v5484_v44  ;;  %v5448_v21 = vadd.f32 %v5363_v29, %v5288_v17  ;;  %v5449_v54 = vadd.f32 %v5365_v30, %v5289_v8  ;;  %v5296_v30 = vld [vmem:[#allocation2 + $0x90] sm:$0xff]  ;;  %v5297_v17 = vld [vmem:[#allocation2 + $0x98] sm:$0xff]  ;;  %v5295_v8 = vld [vmem:[#allocation2 + $0x88] sm:$0xff] }
 0x6a3   : > { %5743 = vrot.lane.b32.xlu1 %v5675_v41, %s13874_s22  ;;  %5745 = vrot.lane.b32.xlu0 %v5676_v52, %s13874_s22  ;;  %v5489_v6 = vadd.f32 %v16718_v11, %v5448_v21  ;;  %v5490_v0 = vadd.f32 %v16718_v11, %v5449_v54 }
 0x6a4   : > { %v5359_v47 = vpop.permute.xlu1 %5358  ;;  %v5361_v16 = vpop.permute.xlu0 %5360 }
 0x6a5   : > { %v5446_v49 = vadd.f32 %v5359_v47, %v5286_v35  ;;  %v5447_v39 = vadd.f32 %v5361_v16, %v5287_v4  ;;  %v5681_v14 = vadd.f32 %v16760_v56, %v5489_v6  ;;  %v5682_v59 = vadd.f32 %v16758_v13, %v5490_v0  ;;  %v5298_v0 = vld [vmem:[#allocation2 + $0xa0] sm:$0xff] }
 0x6a7   : > { %v5487_v62 = vadd.f32 %v16718_v11, %v5446_v49  ;;  %v5488_v48 = vadd.f32 %v16718_v11, %v5447_v39  ;;  %5747 = vrot.lane.b32.xlu1 %v5677_v19, %s13874_s22  ;;  %5749 = vrot.lane.b32.xlu0 %v5678_v37, %s13874_s22  ;;  %v5294_v19 = vld [vmem:[#allocation2 + $0x80] sm:$0xff] }
 0x6a8   : > { %v5371_v23 = vpop.permute.xlu1 %5370  ;;  %v5373_v40 = vpop.permute.xlu0 %5372 }
 0x6a9   : > { %v5679_v24 = vadd.f32 %v16754_v25, %v5487_v62  ;;  %v5680_v31 = vadd.f32 %v16750_v26, %v5488_v48  ;;  %v5452_v63 = vadd.f32 %v5371_v23, %v5292_v27  ;;  %v5453_v50 = vadd.f32 %v5373_v40, %v5293_v28  ;;  %v5300_v48 = vld [vmem:[#allocation2 + $0xb0] sm:$0xff]  ;;  %v5301_v23 = vld [vmem:[#allocation2 + $0xb8] sm:$0xff] }
 0x6ab   : > { %5751 = vrot.lane.b32.xlu1 %v5679_v24, %s13874_s22  ;;  %5753 = vrot.lane.b32.xlu0 %v5680_v31, %s13874_s22  ;;  %v5493_v44 = vadd.f32 %v16718_v11, %v5452_v63  ;;  %v5494_v1 = vadd.f32 %v16718_v11, %v5453_v50  ;;  %v5299_v31 = vld [vmem:[#allocation2 + $0xa8] sm:$0xff] }
 0x6ac   : > { %v5367_v60 = vpop.permute.xlu1 %5366  ;;  %v5369_v55 = vpop.permute.xlu0 %5368 }
 0x6ad   : > { %v5450_v34 = vadd.f32 %v5367_v60, %v5290_v10  ;;  %v5451_v25 = vadd.f32 %v5369_v55, %v5291_v58  ;;  %v5685_v41 = vadd.f32 %v16774_v22, %v5493_v44  ;;  %v5686_v52 = vadd.f32 %v16772_v32, %v5494_v1  ;;  %v5303_v1 = vld [vmem:[#allocation2 + $0xc8] sm:$0xff] }
 0x6af   : > { %v5491_v26 = vadd.f32 %v16718_v11, %v5450_v34  ;;  %v5492_v61 = vadd.f32 %v16718_v11, %v5451_v25  ;;  %5755 = vrot.lane.b32.xlu1 %v5681_v14, %s13874_s22  ;;  %5757 = vrot.lane.b32.xlu0 %v5682_v59, %s13874_s22  ;;  %v5304_v59 = vld [vmem:[#allocation2 + $0xd0] sm:$0xff] }
 0x6b0   : > { %v5379_v43 = vpop.permute.xlu1 %5378  ;;  %v5381_v29 = vpop.permute.xlu0 %5380 }
 0x6b1   : > { %v5683_v56 = vadd.f32 %v16768_v51, %v5491_v26  ;;  %v5684_v13 = vadd.f32 %v16764_v12, %v5492_v61  ;;  %v5456_v47 = vadd.f32 %v5379_v43, %v5296_v30  ;;  %v5457_v4 = vadd.f32 %v5381_v29, %v5297_v17  ;;  %v5305_v26 = vld [vmem:[#allocation2 + $0xd8] sm:$0xff]  ;;  %v5302_v61 = vld [vmem:[#allocation2 + $0xc0] sm:$0xff] }
 0x6b3   : > { %5759 = vrot.lane.b32.xlu1 %v5683_v56, %s13874_s22  ;;  %5761 = vrot.lane.b32.xlu0 %v5684_v13, %s13874_s22  ;;  %v5497_v32 = vadd.f32 %v16718_v11, %v5456_v47  ;;  %v5498_v49 = vadd.f32 %v16718_v11, %v5457_v4 }
 0x6b4   : > { %v5375_v37 = vpop.permute.xlu1 %5374  ;;  %v5377_v35 = vpop.permute.xlu0 %5376 }
 0x6b5   : > { %v5454_v16 = vadd.f32 %v5375_v37, %v5294_v19  ;;  %v5455_v51 = vadd.f32 %v5377_v35, %v5295_v8  ;;  %v5689_v28 = vadd.f32 %v16782_v36, %v5497_v32  ;;  %v5690_v63 = vadd.f32 %v16780_v7, %v5498_v49  ;;  %v5306_v37 = vld [vmem:[#allocation2 + $0xe0] sm:$0xff]  ;;  %v5307_v35 = vld [vmem:[#allocation2 + $0xe8] sm:$0xff] }
 0x6b7   : > { %v5495_v12 = vadd.f32 %v16718_v11, %v5454_v16  ;;  %v5496_v21 = vadd.f32 %v16718_v11, %v5455_v51  ;;  %5763 = vrot.lane.b32.xlu1 %v5685_v41, %s13874_s22  ;;  %5765 = vrot.lane.b32.xlu0 %v5686_v52, %s13874_s22  ;;  %v5308_v51 = vld [vmem:[#allocation2 + $0xf0] sm:$0xff] }
 0x6b8   : > { %v5387_v22 = vpop.permute.xlu1 %5386  ;;  %v5389_v54 = vpop.permute.xlu0 %5388 }
 0x6b9   : > { %v5687_v39 = vadd.f32 %v16778_v38, %v5495_v12  ;;  %v5688_v62 = vadd.f32 %v16776_v33, %v5496_v21  ;;  %v5460_v40 = vadd.f32 %v5387_v22, %v5300_v48  ;;  %v5461_v6 = vadd.f32 %v5389_v54, %v5301_v23  ;;  %v5309_v54 = vld [vmem:[#allocation2 + $0xf8] sm:$0xff] }
 0x6bb   : > { %5767 = vrot.lane.b32.xlu1 %v5687_v39, %s13874_s22  ;;  %5769 = vrot.lane.b32.xlu0 %v5688_v62, %s13874_s22  ;;  %v5501_v60 = vadd.f32 %v16718_v11, %v5460_v40  ;;  %v5502_v58 = vadd.f32 %v16718_v11, %v5461_v6  ;;  %v13369_v6 = vld [vmem:[%s19168_s7 + $0x48] sm:$0xff]  }
 0x6bc   : > { %v5383_v24 = vpop.permute.xlu1 %5382  ;;  %v5385_v27 = vpop.permute.xlu0 %5384 }
 0x6bd   : > { %v5458_v50 = vadd.f32 %v5383_v24, %v5298_v0  ;;  %v5459_v38 = vadd.f32 %v5385_v27, %v5299_v31  ;;  %v5693_v34 = vadd.f32 %v16790_v18, %v5501_v60  ;;  %v5694_v25 = vadd.f32 %v16788_v53, %v5502_v58 }
 0x6bf   : > { %v5499_v33 = vadd.f32 %v16718_v11, %v5458_v50  ;;  %v5500_v10 = vadd.f32 %v16718_v11, %v5459_v38  ;;  %5771 = vrot.lane.b32.xlu1 %v5689_v28, %s13874_s22  ;;  %5773 = vrot.lane.b32.xlu0 %v5690_v63, %s13874_s22  ;;  %v13370_v28 = vld [vmem:[%s19168_s7 + $0x50] sm:$0xff]  }
 0x6c0   : > { %v5395_v55 = vpop.permute.xlu1 %5394  ;;  %v5397_v14 = vpop.permute.xlu0 %5396 }
 0x6c1   : > { %v5691_v36 = vadd.f32 %v16786_v57, %v5499_v33  ;;  %v5692_v7 = vadd.f32 %v16784_v5, %v5500_v10  ;;  %v5464_v29 = vadd.f32 %v5395_v55, %v5304_v59  ;;  %v5465_v56 = vadd.f32 %v5397_v14, %v5305_v26 }
 0x6c3   : > { %5775 = vrot.lane.b32.xlu1 %v5691_v36, %s13874_s22  ;;  %5777 = vrot.lane.b32.xlu0 %v5692_v7, %s13874_s22  ;;  %v5505_v53 = vadd.f32 %v16718_v11, %v5464_v29  ;;  %v5506_v52 = vadd.f32 %v16718_v11, %v5465_v56 }
 0x6c4   : > { %v5391_v44 = vpop.permute.xlu1 %5390  ;;  %v5393_v43 = vpop.permute.xlu0 %5392 }
 0x6c5   : > { %v5462_v13 = vadd.f32 %v5391_v44, %v5302_v61  ;;  %v5463_v57 = vadd.f32 %v5393_v43, %v5303_v1  ;;  %v5697_v4 = vadd.f32 %v16798_v46, %v5505_v53  ;;  %v5698_v16 = vadd.f32 %v16796_v42, %v5506_v52 }
 0x6c7   : > { %v5503_v5 = vadd.f32 %v16718_v11, %v5462_v13  ;;  %v5504_v30 = vadd.f32 %v16718_v11, %v5463_v57  ;;  %5779 = vrot.lane.b32.xlu1 %v5693_v34, %s13874_s22  ;;  %5781 = vrot.lane.b32.xlu0 %v5694_v25, %s13874_s22  ;;  %v13371_v57 = vld [vmem:[%s19168_s7 + $0x58] sm:$0xff]  }
 0x6c8   : > { %v5403_v18 = vpop.permute.xlu1 %5402  ;;  %v5405_v41 = vpop.permute.xlu0 %5404 }
 0x6c9   : > { %v5695_v17 = vadd.f32 %v16794_v45, %v5503_v5  ;;  %v5696_v19 = vadd.f32 %v16792_v2, %v5504_v30  ;;  %v5468_v22 = vadd.f32 %v5403_v18, %v5308_v51  ;;  %v5469_v45 = vadd.f32 %v5405_v41, %v5309_v54 }
 0x6cb   : > { %5783 = vrot.lane.b32.xlu1 %v5695_v17, %s13874_s22  ;;  %5785 = vrot.lane.b32.xlu0 %v5696_v19, %s13874_s22  ;;  %v5509_v62 = vadd.f32 %v16718_v11, %v5468_v22  ;;  %v5510_v48 = vadd.f32 %v16718_v11, %v5469_v45 }
 0x6cc   : > { %v5399_v8 = vpop.permute.xlu1 %5398  ;;  %v5401_v47 = vpop.permute.xlu0 %5400 }
 0x6cd   : > { %v5466_v12 = vadd.f32 %v5399_v8, %v5306_v37  ;;  %v5467_v21 = vadd.f32 %v5401_v47, %v5307_v35 }
 0x6cf   : > { %v5507_v2 = vadd.f32 %v16718_v11, %v5466_v12  ;;  %v5508_v32 = vadd.f32 %v16718_v11, %v5467_v21  ;;  %5787 = vrot.lane.b32.xlu1 %v5697_v4, %s13874_s22  ;;  %5789 = vrot.lane.b32.xlu0 %v5698_v16, %s13874_s22  ;;  %v13368_v11 = vld [vmem:[%s19168_s7 + $0x40] sm:$0xff]  }
 0x6d0   : > { %v5636_v39 = vpop.permute.xlu1 %5635  ;;  %v5638_v42 = vpop.permute.xlu0 %5637 }
 0x6d1   : > { %v5699_v49 = vadd.f32 %v16802_v15, %v5507_v2  ;;  %v5700_v46 = vadd.f32 %v16800_v20, %v5508_v32  ;;  %v5701_v23 = vadd.f32 %v5636_v39, %v5509_v62  ;;  %v5702_v40 = vadd.f32 %v5638_v42, %v5510_v48  ;;  %v13366_v20 = vld [vmem:[%s19168_s7 + $0x30] sm:$0xff]   ;;  %v13367_v15 = vld [vmem:[%s19168_s7 + $0x38] sm:$0xff]  }
 0x6d2   : > { %12549 = vmatprep.subr.bf16.mxu1 %v13366_v20 }
 0x6d3   : > { %5791 = vrot.lane.b32.xlu1 %v5699_v49, %s13874_s22  ;;  %5793 = vrot.lane.b32.xlu0 %v5700_v46, %s13874_s22 }
 0x6d4   : > { %12550 = vmatpush3.bf16.msra.mxu1 %v13366_v20  ;;  %v16964_v20 = vld [vmem:[%s19168_s7] sm:$0xff]  }
 0x6d5   : > { %12551 = vmatprep.subr.bf16.mxu1 %v13367_v15 }
 0x6d7   : > { %5795 = vrot.lane.b32.xlu1 %v5701_v23, %s13874_s22  ;;  %5797 = vrot.lane.b32.xlu0 %v5702_v40, %s13874_s22 }
 0x6d8   : > { %12552 = vmatpush3.bf16.msra.mxu1 %v13367_v15 }
 0x6d9   : > { %12553 = vmatprep.subr.bf16.mxu1 %v13368_v11 }
 0x6dc   : > { %12554 = vmatpush3.bf16.msra.mxu1 %v13368_v11 }
 0x6dd   : > { %12555 = vmatprep.subr.bf16.mxu1 %v13369_v6 }
 0x6e0   : > { %12556 = vmatpush3.bf16.msra.mxu1 %v13369_v6 }
 0x6e1   : > { %12557 = vmatprep.subr.bf16.mxu1 %v13370_v28 }
 0x6e4   : > { %12558 = vmatpush3.bf16.msra.mxu1 %v13370_v28 }
 0x6e5   : > { %12559 = vmatprep.subr.bf16.mxu1 %v13371_v57 }
 0x6e8   : > { %12560 = vmatpush3.bf16.msra.mxu1 %v13371_v57 }
 0x6e9   : > { %12593 = vmatprep.subr.bf16.mxu1 %v16964_v20 }
 0x70b   : > { %v5736_v0 = vpop.permute.xlu1 %5735 }
 0x70c   : > { %5831 = vst.msk [vmem:[#allocation5] sm:$0xff] %vm900_vm2, %v5736_v0 }
 0x70d   : > { %v5738_v24 = vpop.permute.xlu0 %5737 }
 0x70e   : > { %5832 = vst.msk [vmem:[#allocation5 + $0x8] sm:$0xff] %vm900_vm2, %v5738_v24 }
 0x70f   : > { %v5740_v31 = vpop.permute.xlu1 %5739 }
 0x710   : > { %5833 = vst.msk [vmem:[#allocation5 + $0x10] sm:$0xff] %vm900_vm2, %v5740_v31 }
 0x711   : > { %v5742_v27 = vpop.permute.xlu0 %5741 }
 0x712   : > { %5834 = vst.msk [vmem:[#allocation5 + $0x18] sm:$0xff] %vm900_vm2, %v5742_v27 }
 0x713   : > { %v5863_v38 = vld [vmem:[#allocation5] sm:$0xff] }
 0x715   : > { %v5744_v63 = vpop.permute.xlu1 %5743  ;;  %v5746_v50 = vpop.permute.xlu0 %5745  ;;  %v5864_v33 = vld [vmem:[#allocation5 + $0x8] sm:$0xff] }
 0x716   : > { %5835 = vst.msk [vmem:[#allocation5 + $0x20] sm:$0xff] %vm900_vm2, %v5744_v63  ;;  %5836 = vst.msk [vmem:[#allocation5 + $0x28] sm:$0xff] %vm900_vm2, %v5746_v50  ;;  %v5895_v10 = vpack.c.bf16 %v5864_v33, %v5863_v38 }
 0x717   : > { %v5865_v14 = vld [vmem:[#allocation5 + $0x10] sm:$0xff] }
 0x718   : > { %v5928_v60 = vshrl.u32 %v5895_v10, 16  ;;  %5911 = vst.msk [vmem:[#allocation3 + $0x8] sm:$0xff] %vm900_vm2, %v5895_v10  ;;  %v5931_v59 = vshll.u32 %v5895_v10, 16 }
 0x719   : > { %v5748_v58 = vpop.permute.xlu1 %5747  ;;  %v5750_v55 = vpop.permute.xlu0 %5749  ;;  %v5866_v36 = vld [vmem:[#allocation5 + $0x18] sm:$0xff] }
 0x71a   : > { %5837 = vst.msk [vmem:[#allocation5 + $0x30] sm:$0xff] %vm900_vm2, %v5748_v58  ;;  %5838 = vst.msk [vmem:[#allocation5 + $0x38] sm:$0xff] %vm900_vm2, %v5750_v55  ;;  %v5930_v7 = vrot.slane %v5928_v60, 7  ;;  %v5896_v34 = vpack.c.bf16 %v5866_v36, %v5865_v14  ;;  %v6135_v35 = vrot.slane %v5931_v59, 1 }
 0x71c   : > { %v5933_v25 = vor.u32 %v5931_v59, %v5930_v7  ;;  %v5935_v26 = vshrl.u32 %v5896_v34, 16  ;;  %5912 = vst.msk [vmem:[#allocation3 + $0x10] sm:$0xff] %vm900_vm2, %v5896_v34  ;;  %v5938_v56 = vshll.u32 %v5896_v34, 16  ;;  %v6136_v45 = vor.u32 %v6135_v35, %v5928_v60 }
 0x71d   : > { %v5752_v61 = vpop.permute.xlu1 %5751  ;;  %v5754_v44 = vpop.permute.xlu0 %5753  ;;  %v5867_v1 = vld [vmem:[#allocation5 + $0x20] sm:$0xff]  ;;  %v5868_v43 = vld [vmem:[#allocation5 + $0x28] sm:$0xff] }
 0x71e   : > { %5839 = vst.msk [vmem:[#allocation5 + $0x40] sm:$0xff] %vm900_vm2, %v5752_v61  ;;  %5840 = vst.msk [vmem:[#allocation5 + $0x48] sm:$0xff] %vm900_vm2, %v5754_v44  ;;  %6039 = vrot.lane.b32.xlu1 %v5933_v25, %s19202_s17  ;;  %v5937_v29 = vrot.slane %v5935_v26, 7  ;;  %v16926_v13 = vpack.c.bf16 %v5868_v43, %v5867_v1  ;;  %v6137_v32 = vrot.slane %v5938_v56, 1 }
 0x720   : > { %v5940_v5 = vor.u32 %v5938_v56, %v5937_v29  ;;  %v5942_v30 = vshrl.u32 %v16926_v13, 16  ;;  %5913 = vst.msk [vmem:[#allocation3 + $0x18] sm:$0xff] %vm900_vm2, %v16926_v13  ;;  %v5945_v19 = vshll.u32 %v16926_v13, 16  ;;  %v6138_v15 = vor.u32 %v6137_v32, %v5935_v26 }
 0x721   : > { %v5756_v18 = vpop.permute.xlu1 %5755  ;;  %v5758_v41 = vpop.permute.xlu0 %5757  ;;  %v5869_v53 = vld [vmem:[#allocation5 + $0x30] sm:$0xff]  ;;  %v5870_v52 = vld [vmem:[#allocation5 + $0x38] sm:$0xff] }
 0x722   : > { %5841 = vst.msk [vmem:[#allocation5 + $0x50] sm:$0xff] %vm900_vm2, %v5756_v18  ;;  %5842 = vst.msk [vmem:[#allocation5 + $0x58] sm:$0xff] %vm900_vm2, %v5758_v41  ;;  %6041 = vrot.lane.b32.xlu0 %v5940_v5, %s19202_s17  ;;  %v5944_v17 = vrot.slane %v5942_v30, 7  ;;  %v16938_v37 = vpack.c.bf16 %v5870_v52, %v5869_v53  ;;  %v6139_v6 = vrot.slane %v5945_v19, 1 }
 0x724   : > { %v5947_v8 = vor.u32 %v5945_v19, %v5944_v17  ;;  %v5949_v47 = vshrl.u32 %v16938_v37, 16  ;;  %5914 = vst.msk [vmem:[#allocation3 + $0x20] sm:$0xff] %vm900_vm2, %v16938_v37  ;;  %v5952_v22 = vshll.u32 %v16938_v37, 16  ;;  %v6140_v33 = vor.u32 %v6139_v6, %v5942_v30 }
 0x725   : > { %v5760_v4 = vpop.permute.xlu1 %5759  ;;  %v5762_v16 = vpop.permute.xlu0 %5761  ;;  %v5871_v51 = vld [vmem:[#allocation5 + $0x40] sm:$0xff]  ;;  %v5872_v12 = vld [vmem:[#allocation5 + $0x48] sm:$0xff] }
 0x726   : > { %5843 = vst.msk [vmem:[#allocation5 + $0x60] sm:$0xff] %vm900_vm2, %v5760_v4  ;;  %5844 = vst.msk [vmem:[#allocation5 + $0x68] sm:$0xff] %vm900_vm2, %v5762_v16  ;;  %6043 = vrot.lane.b32.xlu1 %v5947_v8, %s19202_s17  ;;  %v5951_v21 = vrot.slane %v5949_v47, 7  ;;  %v16947_v54 = vpack.c.bf16 %v5872_v12, %v5871_v51  ;;  %v6141_v60 = vrot.slane %v5952_v22, 1 }
 0x728   : > { %v5954_v2 = vor.u32 %v5952_v22, %v5951_v21  ;;  %v5956_v49 = vshrl.u32 %v16947_v54, 16  ;;  %5915 = vst.msk [vmem:[#allocation3 + $0x28] sm:$0xff] %vm900_vm2, %v16947_v54  ;;  %v5959_v23 = vshll.u32 %v16947_v54, 16  ;;  %v6142_v26 = vor.u32 %v6141_v60, %v5949_v47 }
 0x729   : > { %v5764_v46 = vpop.permute.xlu1 %5763  ;;  %v5766_v39 = vpop.permute.xlu0 %5765  ;;  %v5873_v42 = vld [vmem:[#allocation5 + $0x50] sm:$0xff]  ;;  %v5874_v62 = vld [vmem:[#allocation5 + $0x58] sm:$0xff] }
 0x72a   : > { %5845 = vst.msk [vmem:[#allocation5 + $0x70] sm:$0xff] %vm900_vm2, %v5764_v46  ;;  %5846 = vst.msk [vmem:[#allocation5 + $0x78] sm:$0xff] %vm900_vm2, %v5766_v39  ;;  %6167 = vrot.lane.b32.xlu1 %v6136_v45, %s19203_s16  ;;  %6045 = vrot.lane.b32.xlu0 %v5954_v2, %s19202_s17  ;;  %v5958_v48 = vrot.slane %v5956_v49, 7  ;;  %v16959_v40 = vpack.c.bf16 %v5874_v62, %v5873_v42  ;;  %v6143_v44 = vrot.slane %v5959_v23, 1 }
 0x72c   : > { %v5961_v11 = vor.u32 %v5959_v23, %v5958_v48  ;;  %v5963_v0 = vshrl.u32 %v16959_v40, 16  ;;  %5916 = vst.msk [vmem:[#allocation3 + $0x30] sm:$0xff] %vm900_vm2, %v16959_v40  ;;  %v5966_v50 = vshll.u32 %v16959_v40, 16  ;;  %v6144_v18 = vor.u32 %v6143_v44, %v5956_v49 }
 0x72d   : > { %v5768_v24 = vpop.permute.xlu1 %5767  ;;  %v5770_v31 = vpop.permute.xlu0 %5769  ;;  %v5875_v27 = vld [vmem:[#allocation5 + $0x60] sm:$0xff]  ;;  %v5876_v28 = vld [vmem:[#allocation5 + $0x68] sm:$0xff] }
 0x72e   : > { %5847 = vst.msk [vmem:[#allocation5 + $0x80] sm:$0xff] %vm900_vm2, %v5768_v24  ;;  %5848 = vst.msk [vmem:[#allocation5 + $0x88] sm:$0xff] %vm900_vm2, %v5770_v31  ;;  %6169 = vrot.lane.b32.xlu0 %v6138_v15, %s19203_s16  ;;  %6047 = vrot.lane.b32.xlu1 %v5961_v11, %s19202_s17  ;;  %v5965_v63 = vrot.slane %v5963_v0, 7  ;;  %v16975_v38 = vpack.c.bf16 %v5876_v28, %v5875_v27  ;;  %v6145_v53 = vrot.slane %v5966_v50, 1 }
 0x730   : > { %v5968_v10 = vor.u32 %v5966_v50, %v5965_v63  ;;  %v5970_v58 = vshrl.u32 %v16975_v38, 16  ;;  %5917 = vst.msk [vmem:[#allocation3 + $0x38] sm:$0xff] %vm900_vm2, %v16975_v38  ;;  %v5973_v34 = vshll.u32 %v16975_v38, 16  ;;  %v6146_v16 = vor.u32 %v6145_v53, %v5963_v0 }
 0x731   : > { %v5772_v55 = vpop.permute.xlu1 %5771  ;;  %v5774_v14 = vpop.permute.xlu0 %5773  ;;  %v5877_v36 = vld [vmem:[#allocation5 + $0x70] sm:$0xff]  ;;  %v5878_v7 = vld [vmem:[#allocation5 + $0x78] sm:$0xff] }
 0x732   : > { %5849 = vst.msk [vmem:[#allocation5 + $0x90] sm:$0xff] %vm900_vm2, %v5772_v55  ;;  %5850 = vst.msk [vmem:[#allocation5 + $0x98] sm:$0xff] %vm900_vm2, %v5774_v14  ;;  %6171 = vrot.lane.b32.xlu1 %v6140_v33, %s19203_s16  ;;  %6049 = vrot.lane.b32.xlu0 %v5968_v10, %s19202_s17  ;;  %v5972_v59 = vrot.slane %v5970_v58, 7  ;;  %v16985_v25 = vpack.c.bf16 %v5878_v7, %v5877_v36  ;;  %v6147_v12 = vrot.slane %v5973_v34, 1 }
 0x734   : > { %v5975_v61 = vor.u32 %v5973_v34, %v5972_v59  ;;  %v5977_v1 = vshrl.u32 %v16985_v25, 16  ;;  %5918 = vst.msk [vmem:[#allocation3 + $0x40] sm:$0xff] %vm900_vm2, %v16985_v25  ;;  %v5980_v5 = vshll.u32 %v16985_v25, 16  ;;  %v6148_v39 = vor.u32 %v6147_v12, %v5970_v58 }
 0x735   : > { %v5776_v43 = vpop.permute.xlu1 %5775  ;;  %v5778_v29 = vpop.permute.xlu0 %5777  ;;  %v5879_v56 = vld [vmem:[#allocation5 + $0x80] sm:$0xff]  ;;  %v5880_v13 = vld [vmem:[#allocation5 + $0x88] sm:$0xff] }
 0x736   : > { %5851 = vst.msk [vmem:[#allocation5 + $0xa0] sm:$0xff] %vm900_vm2, %v5776_v43  ;;  %5852 = vst.msk [vmem:[#allocation5 + $0xa8] sm:$0xff] %vm900_vm2, %v5778_v29  ;;  %6173 = vrot.lane.b32.xlu0 %v6142_v26, %s19203_s16  ;;  %6051 = vrot.lane.b32.xlu1 %v5975_v61, %s19202_s17  ;;  %v5979_v57 = vrot.slane %v5977_v1, 7  ;;  %v16995_v30 = vpack.c.bf16 %v5880_v13, %v5879_v56  ;;  %v6149_v62 = vrot.slane %v5980_v5, 1 }
 0x738   : > { %v5982_v41 = vor.u32 %v5980_v5, %v5979_v57  ;;  %v5984_v52 = vshrl.u32 %v16995_v30, 16  ;;  %5919 = vst.msk [vmem:[#allocation3 + $0x48] sm:$0xff] %vm900_vm2, %v16995_v30  ;;  %v5987_v47 = vshll.u32 %v16995_v30, 16  ;;  %v6150_v31 = vor.u32 %v6149_v62, %v5977_v1 }
 0x739   : > { %v5780_v17 = vpop.permute.xlu1 %5779  ;;  %v5782_v19 = vpop.permute.xlu0 %5781  ;;  %v5881_v37 = vld [vmem:[#allocation5 + $0x90] sm:$0xff]  ;;  %v5882_v8 = vld [vmem:[#allocation5 + $0x98] sm:$0xff] }
 0x73a   : > { %5853 = vst.msk [vmem:[#allocation5 + $0xb0] sm:$0xff] %vm900_vm2, %v5780_v17  ;;  %5854 = vst.msk [vmem:[#allocation5 + $0xb8] sm:$0xff] %vm900_vm2, %v5782_v19  ;;  %6175 = vrot.lane.b32.xlu1 %v6144_v18, %s19203_s16  ;;  %6053 = vrot.lane.b32.xlu0 %v5982_v41, %s19202_s17  ;;  %v5986_v35 = vrot.slane %v5984_v52, 7  ;;  %v17007_v4 = vpack.c.bf16 %v5882_v8, %v5881_v37  ;;  %v6151_v28 = vrot.slane %v5987_v47, 1 }
 0x73c   : > { %v5989_v51 = vor.u32 %v5987_v47, %v5986_v35  ;;  %v5991_v21 = vshrl.u32 %v17007_v4, 16  ;;  %5920 = vst.msk [vmem:[#allocation3 + $0x50] sm:$0xff] %vm900_vm2, %v17007_v4  ;;  %v5994_v49 = vshll.u32 %v17007_v4, 16  ;;  %v6152_v14 = vor.u32 %v6151_v28, %v5984_v52 }
 0x73d   : > { %v5784_v22 = vpop.permute.xlu1 %5783  ;;  %v5786_v54 = vpop.permute.xlu0 %5785  ;;  %v5883_v45 = vld [vmem:[#allocation5 + $0xa0] sm:$0xff]  ;;  %v5884_v2 = vld [vmem:[#allocation5 + $0xa8] sm:$0xff] }
 0x73e   : > { %5855 = vst.msk [vmem:[#allocation5 + $0xc0] sm:$0xff] %vm900_vm2, %v5784_v22  ;;  %5856 = vst.msk [vmem:[#allocation5 + $0xc8] sm:$0xff] %vm900_vm2, %v5786_v54  ;;  %6177 = vrot.lane.b32.xlu0 %v6146_v16, %s19203_s16  ;;  %6055 = vrot.lane.b32.xlu1 %v5989_v51, %s19202_s17  ;;  %v5993_v32 = vrot.slane %v5991_v21, 7  ;;  %v5905_v46 = vpack.c.bf16 %v5884_v2, %v5883_v45  ;;  %v6153_v7 = vrot.slane %v5994_v49, 1 }
 0x740   : > { %v5996_v42 = vor.u32 %v5994_v49, %v5993_v32  ;;  %v5998_v48 = vshrl.u32 %v5905_v46, 16  ;;  %5921 = vst.msk [vmem:[#allocation3 + $0x58] sm:$0xff] %vm900_vm2, %v5905_v46  ;;  %v6001_v0 = vshll.u32 %v5905_v46, 16  ;;  %v6154_v29 = vor.u32 %v6153_v7, %v5991_v21 }
 0x741   : > { %v5788_v23 = vpop.permute.xlu1 %5787  ;;  %v5790_v40 = vpop.permute.xlu0 %5789  ;;  %v5885_v15 = vld [vmem:[#allocation5 + $0xb0] sm:$0xff]  ;;  %v5886_v11 = vld [vmem:[#allocation5 + $0xb8] sm:$0xff] }
 0x742   : > { %5857 = vst.msk [vmem:[#allocation5 + $0xd0] sm:$0xff] %vm900_vm2, %v5788_v23  ;;  %5858 = vst.msk [vmem:[#allocation5 + $0xd8] sm:$0xff] %vm900_vm2, %v5790_v40  ;;  %6179 = vrot.lane.b32.xlu1 %v6148_v39, %s19203_s16  ;;  %6057 = vrot.lane.b32.xlu0 %v5996_v42, %s19202_s17  ;;  %v6000_v6 = vrot.slane %v5998_v48, 7  ;;  %v5906_v24 = vpack.c.bf16 %v5886_v11, %v5885_v15  ;;  %v6155_v13 = vrot.slane %v6001_v0, 1  ;;  %v6087_v11 = vld [vmem:[#allocation3 + $0x8] sm:$0xff] }
 0x744   : > { %v6003_v27 = vor.u32 %v6001_v0, %v6000_v6  ;;  %v6005_v63 = vshrl.u32 %v5906_v24, 16  ;;  %5922 = vst.msk [vmem:[#allocation3 + $0x60] sm:$0xff] %vm900_vm2, %v5906_v24  ;;  %v6008_v58 = vshll.u32 %v5906_v24, 16  ;;  %v6156_v52 = vor.u32 %v6155_v13, %v5998_v48  ;;  %v6102_v13 = vld [vmem:[#allocation3 + $0x30] sm:$0xff] }
 0x745   : > { %v5792_v50 = vpop.permute.xlu1 %5791  ;;  %v5794_v38 = vpop.permute.xlu0 %5793  ;;  %v5887_v33 = vld [vmem:[#allocation5 + $0xc0] sm:$0xff]  ;;  %v5888_v10 = vld [vmem:[#allocation5 + $0xc8] sm:$0xff] }
 0x746   : > { %5859 = vst.msk [vmem:[#allocation5 + $0xe0] sm:$0xff] %vm900_vm2, %v5792_v50  ;;  %5860 = vst.msk [vmem:[#allocation5 + $0xe8] sm:$0xff] %vm900_vm2, %v5794_v38  ;;  %6181 = vrot.lane.b32.xlu0 %v6150_v31, %s19203_s16  ;;  %6059 = vrot.lane.b32.xlu1 %v6003_v27, %s19202_s17  ;;  %v6007_v60 = vrot.slane %v6005_v63, 7  ;;  %v5907_v55 = vpack.c.bf16 %v5888_v10, %v5887_v33  ;;  %v6157_v19 = vrot.slane %v6008_v58, 1  ;;  %v6090_v27 = vld [vmem:[#allocation3 + $0x10] sm:$0xff]  ;;  %v13373_v38 = vld [vmem:[%s19168_s7 + $0x8] sm:$0xff]  }
 0x747   : > { %v6093_v10 = vld [vmem:[#allocation3 + $0x18] sm:$0xff] }
 0x748   : > { %v6010_v36 = vor.u32 %v6008_v58, %v6007_v60  ;;  %v6012_v59 = vshrl.u32 %v5907_v55, 16  ;;  %5923 = vst.msk [vmem:[#allocation3 + $0x68] sm:$0xff] %vm900_vm2, %v5907_v55  ;;  %v6015_v1 = vshll.u32 %v5907_v55, 16  ;;  %v6158_v51 = vor.u32 %v6157_v19, %v6005_v63 }
 0x749   : > { %v5796_v34 = vpop.permute.xlu1 %5795  ;;  %v5798_v25 = vpop.permute.xlu0 %5797  ;;  %v5889_v26 = vld [vmem:[#allocation5 + $0xd0] sm:$0xff]  ;;  %v5890_v61 = vld [vmem:[#allocation5 + $0xd8] sm:$0xff] }
 0x74a   : > { %5861 = vst.msk [vmem:[#allocation5 + $0xf0] sm:$0xff] %vm900_vm2, %v5796_v34  ;;  %5862 = vst.msk [vmem:[#allocation5 + $0xf8] sm:$0xff] %vm900_vm2, %v5798_v25  ;;  %6183 = vrot.lane.b32.xlu1 %v6152_v14, %s19203_s16  ;;  %6061 = vrot.lane.b32.xlu0 %v6010_v36, %s19202_s17  ;;  %v6014_v44 = vrot.slane %v6012_v59, 7  ;;  %v5908_v43 = vpack.c.bf16 %v5890_v61, %v5889_v26  ;;  %v6159_v21 = vrot.slane %v6015_v1, 1  ;;  %v13374_v14 = vld [vmem:[%s19168_s7 + $0x10] sm:$0xff]   ;;  %v13375_v25 = vld [vmem:[%s19168_s7 + $0x18] sm:$0xff]  }
 0x74b   : > { %v6099_v61 = vld [vmem:[#allocation3 + $0x28] sm:$0xff] }
 0x74c   : > { %v6017_v56 = vor.u32 %v6015_v1, %v6014_v44  ;;  %v6019_v57 = vshrl.u32 %v5908_v43, 16  ;;  %5924 = vst.msk [vmem:[#allocation3 + $0x70] sm:$0xff] %vm900_vm2, %v5908_v43  ;;  %v6022_v41 = vshll.u32 %v5908_v43, 16  ;;  %v6160_v2 = vor.u32 %v6159_v21, %v6012_v59 }
 0x74d   : > { %v5891_v5 = vld [vmem:[#allocation5 + $0xe0] sm:$0xff]  ;;  %v5892_v30 = vld [vmem:[#allocation5 + $0xe8] sm:$0xff] }
 0x74e   : > { %6185 = vrot.lane.b32.xlu0 %v6154_v29, %s19203_s16  ;;  %6063 = vrot.lane.b32.xlu1 %v6017_v56, %s19202_s17  ;;  %v6021_v18 = vrot.slane %v6019_v57, 7  ;;  %v5909_v53 = vpack.c.bf16 %v5892_v30, %v5891_v5  ;;  %v6161_v46 = vrot.slane %v6022_v41, 1  ;;  %v13376_v29 = vld [vmem:[%s19168_s7 + $0x20] sm:$0xff]  }
 0x750   : > { %v6024_v17 = vor.u32 %v6022_v41, %v6021_v18  ;;  %v6026_v37 = vshrl.u32 %v5909_v53, 16  ;;  %5925 = vst.msk [vmem:[#allocation3 + $0x78] sm:$0xff] %vm900_vm2, %v5909_v53  ;;  %v6029_v4 = vshll.u32 %v5909_v53, 16  ;;  %v6162_v42 = vor.u32 %v6161_v46, %v6019_v57  ;;  %v13377_v18 = vld [vmem:[%s19168_s7 + $0x28] sm:$0xff]   ;;  %v6105_v53 = vld [vmem:[#allocation3 + $0x38] sm:$0xff] }
 0x751   : > { %v5893_v8 = vld [vmem:[#allocation5 + $0xf0] sm:$0xff]  ;;  %v5894_v35 = vld [vmem:[#allocation5 + $0xf8] sm:$0xff] }
 0x752   : > { %6187 = vrot.lane.b32.xlu1 %v6156_v52, %s19203_s16  ;;  %6065 = vrot.lane.b32.xlu0 %v6024_v17, %s19202_s17  ;;  %v6028_v47 = vrot.slane %v6026_v37, 7  ;;  %v5910_v16 = vpack.c.bf16 %v5894_v35, %v5893_v8  ;;  %v6163_v49 = vrot.slane %v6029_v4, 1  ;;  %v6108_v35 = vld [vmem:[#allocation3 + $0x40] sm:$0xff] }
 0x754   : > { %v6031_v12 = vor.u32 %v6029_v4, %v6028_v47  ;;  %v6033_v22 = vshrl.u32 %v5910_v16, 16  ;;  %5926 = vst.msk [vmem:[#allocation3 + $0x80] sm:$0xff] %vm900_vm2, %v5910_v16  ;;  %v6036_v45 = vshll.u32 %v5910_v16, 16  ;;  %v6164_v39 = vor.u32 %v6163_v49, %v6026_v37  ;;  %v17121_v37 = vld [vmem:[%s19168_s7 + $0x60] sm:$0xff]  }
 0x756   : > { %6189 = vrot.lane.b32.xlu0 %v6158_v51, %s19203_s16  ;;  %6067 = vrot.lane.b32.xlu1 %v6031_v12, %s19202_s17  ;;  %v6035_v54 = vrot.slane %v6033_v22, 7  ;;  %v6165_v62 = vrot.slane %v6036_v45, 1  ;;  %v6111_v12 = vld [vmem:[#allocation3 + $0x48] sm:$0xff] }
 0x758   : > { %v6038_v32 = vor.u32 %v6036_v45, %v6035_v54  ;;  %v6166_v48 = vor.u32 %v6165_v62, %v6033_v22 }
 0x75a   : > { %6191 = vrot.lane.b32.xlu1 %v6160_v2, %s19203_s16  ;;  %6069 = vrot.lane.b32.xlu0 %v6038_v32, %s19202_s17  ;;  %v6114_v2 = vld [vmem:[#allocation3 + $0x50] sm:$0xff] }
 0x75e   : > { %6195 = vrot.lane.b32.xlu1 %v6164_v39, %s19203_s16  ;;  %6193 = vrot.lane.b32.xlu0 %v6162_v42, %s19203_s16  ;;  %v6117_v42 = vld [vmem:[#allocation3 + $0x58] sm:$0xff] }
 0x762   : > { %6197 = vrot.lane.b32.xlu0 %v6166_v48, %s19203_s16 }
 0x790   : > { %v6040_v23 = vpop.permute.xlu1 %6039 }
 0x791   : > { %v6088_v6 = vsel %vm15230_vm0, %v6040_v23, %v6087_v11 }
 0x794   : > { %v6042_v40 = vpop.permute.xlu0 %6041 }
 0x795   : > { %v6091_v28 = vsel %vm15230_vm0, %v6042_v40, %v6090_v27  ;;  %v6123_v27 = vld [vmem:[#allocation3 + $0x68] sm:$0xff] }
 0x798   : > { %v6044_v15 = vpop.permute.xlu1 %6043 }
 0x799   : > { %v6094_v60 = vsel %vm15230_vm0, %v6044_v15, %v6093_v10  ;;  %v6120_v15 = vld [vmem:[#allocation3 + $0x60] sm:$0xff]  ;;  %v6126_v10 = vld [vmem:[#allocation3 + $0x70] sm:$0xff] }
 0x79c   : > { %v6168_v0 = vpop.permute.xlu1 %6167  ;;  %v6046_v24 = vpop.permute.xlu0 %6045 }
 0x79d   : > { %v17050_v31 = vsel %vm15234_vm1, %v6168_v0, %v6088_v6 }
 0x79e   : > { %6217 = vst [vmem:[#allocation3 + $0x8] sm:$0xff] %v17050_v31  ;;  %12561 = vmatprep.mubr.msk.bf16.mxu1 %vm440_vm11, %v17050_v31 }
 0x7a0   : > { %v6048_v63 = vpop.permute.xlu1 %6047  ;;  %v6170_v50 = vpop.permute.xlu0 %6169 }
 0x7a1   : > { %v17062_v33 = vsel %vm15234_vm1, %v6170_v50, %v6091_v28  ;;  %v6100_v44 = vsel %vm15230_vm0, %v6048_v63, %v6099_v61 }
 0x7a2   : > { %6220 = vst [vmem:[#allocation3 + $0x10] sm:$0xff] %v17062_v33  ;;  %12562 = vmatmul.mubr.msk.bf16.vlgmr.msra.gmra.mrb[32].mxu1 %vm440_vm11, %v17062_v33 }
 0x7a3   : > { %12594 = vmatpush3.bf16.msra.mxu1 %v16964_v20  ;;  %v6096_v20 = vld [vmem:[#allocation3 + $0x20] sm:$0xff] }
 0x7a4   : > { %v6172_v58 = vpop.permute.xlu1 %6171  ;;  %v6050_v55 = vpop.permute.xlu0 %6049  ;;  %12595 = vmatprep.subr.bf16.mxu1 %v13373_v38  ;;  %v6097_v7 = vsel %vm15230_vm0, %v6046_v24, %v6096_v20 }
 0x7a5   : > { %v17075_v36 = vsel %vm15234_vm1, %v6172_v58, %v6094_v60  ;;  %v6103_v57 = vsel %vm15230_vm0, %v6050_v55, %v6102_v13  ;;  %v6129_v60 = vld [vmem:[#allocation3 + $0x78] sm:$0xff] }
 0x7a6   : > { %6223 = vst [vmem:[#allocation3 + $0x18] sm:$0xff] %v17075_v36  ;;  %12565 = vmatprep.mubr.msk.bf16.mxu1 %vm440_vm11, %v17075_v36  ;;  %v13381_v13 = vld [vmem:[%s19168_s7 + $0x78] sm:$0xff]  }
 0x7a7   : > { %12596 = vmatpush3.bf16.msra.mxu1 %v13373_v38 }
 0x7a8   : > { %v6052_v59 = vpop.permute.xlu1 %6051  ;;  %v6174_v34 = vpop.permute.xlu0 %6173  ;;  %12597 = vmatprep.subr.bf16.mxu1 %v13374_v14 }
 0x7a9   : > { %v17087_v26 = vsel %vm15234_vm1, %v6174_v34, %v6097_v7  ;;  %v6106_v52 = vsel %vm15230_vm0, %v6052_v59, %v6105_v53  ;;  %v6132_v34 = vld [vmem:[#allocation3 + $0x80] sm:$0xff] }
 0x7aa   : > { %6226 = vst [vmem:[#allocation3 + $0x20] sm:$0xff] %v17087_v26  ;;  %12566 = vmatmul.mubr.msk.bf16.gmra.mrb[36].mxu1 %vm440_vm11, %v17087_v26 }
 0x7ab   : > { %12598 = vmatpush3.bf16.msra.mxu1 %v13374_v14 }
 0x7ac   : > { %v6176_v1 = vpop.permute.xlu1 %6175  ;;  %v6054_v43 = vpop.permute.xlu0 %6053  ;;  %12599 = vmatprep.subr.bf16.mxu1 %v13375_v25 }
 0x7ad   : > { %v17099_v56 = vsel %vm15234_vm1, %v6176_v1, %v6100_v44  ;;  %v6109_v47 = vsel %vm15230_vm0, %v6054_v43, %v6108_v35  ;;  %v6263_v1 = vld [vmem:[#allocation3] sm:$0xff]  ;;  %v13379_v43 = vld [vmem:[%s19168_s7 + $0x68] sm:$0xff]  }
 0x7ae   : > { %6229 = vst [vmem:[#allocation3 + $0x28] sm:$0xff] %v17099_v56  ;;  %12569 = vmatprep.mubr.msk.bf16.mxu1 %vm440_vm11, %v17099_v56 }
 0x7af   : > { %12600 = vmatpush3.bf16.msra.mxu1 %v13375_v25 }
 0x7b0   : > { %v6056_v5 = vpop.permute.xlu1 %6055  ;;  %v6178_v30 = vpop.permute.xlu0 %6177  ;;  %12601 = vmatprep.subr.bf16.mxu1 %v13376_v29 }
 0x7b1   : > { %v17111_v41 = vsel %vm15234_vm1, %v6178_v30, %v6103_v57  ;;  %v6112_v21 = vsel %vm15230_vm0, %v6056_v5, %v6111_v12  ;;  %v13383_v57 = vld [vmem:[%s19168_s7 + $0x88] sm:$0xff]   ;;  %v17280_v30 = vld [vmem:[%s19169_s8] ss:$0 sm:$0xff] }
 0x7b2   : > { %6232 = vst [vmem:[#allocation3 + $0x30] sm:$0xff] %v17111_v41  ;;  %12570 = vmatmul.mubr.msk.bf16.gmra.mrb[40].mxu1 %vm440_vm11, %v17111_v41 }
 0x7b3   : > { %12602 = vmatpush3.bf16.msra.mxu1 %v13376_v29  ;;  %v13380_v29 = vld [vmem:[%s19168_s7 + $0x70] sm:$0xff]  }
 0x7b4   : > { %v6180_v17 = vpop.permute.xlu1 %6179  ;;  %v6058_v19 = vpop.permute.xlu0 %6057  ;;  %12603 = vmatprep.subr.bf16.mxu1 %v13377_v18 }
 0x7b5   : > { %v17125_v8 = vsel %vm15234_vm1, %v6180_v17, %v6106_v52  ;;  %v6115_v32 = vsel %vm15230_vm0, %v6058_v19, %v6114_v2 }
 0x7b6   : > { %6235 = vst [vmem:[#allocation3 + $0x38] sm:$0xff] %v17125_v8  ;;  %12573 = vmatprep.mubr.msk.bf16.mxu1 %vm440_vm11, %v17125_v8 }
 0x7b7   : > { %12604 = vmatpush3.bf16.msra.mxu1 %v13377_v18 }
 0x7b8   : > { %v6060_v4 = vpop.permute.xlu1 %6059  ;;  %v6182_v16 = vpop.permute.xlu0 %6181  ;;  %12637 = vmatprep.subr.bf16.mxu1 %v17121_v37 }
 0x7b9   : > { %v17135_v51 = vsel %vm15234_vm1, %v6182_v16, %v6109_v47  ;;  %v6118_v62 = vsel %vm15230_vm0, %v6060_v4, %v6117_v42 }
 0x7ba   : > { %6238 = vst [vmem:[#allocation3 + $0x40] sm:$0xff] %v17135_v51  ;;  %12574 = vmatmul.mubr.msk.bf16.gmra.mrb[44].mxu1 %vm440_vm11, %v17135_v51 }
 0x7bc   : > { %v6184_v22 = vpop.permute.xlu1 %6183  ;;  %v6062_v54 = vpop.permute.xlu0 %6061 }
 0x7bd   : > { %v17144_v45 = vsel %vm15234_vm1, %v6184_v22, %v6112_v21  ;;  %v6121_v11 = vsel %vm15230_vm0, %v6062_v54, %v6120_v15 }
 0x7be   : > { %6241 = vst [vmem:[#allocation3 + $0x48] sm:$0xff] %v17144_v45  ;;  %12577 = vmatprep.mubr.msk.bf16.mxu1 %vm440_vm11, %v17144_v45 }
 0x7c0   : > { %v6064_v49 = vpop.permute.xlu1 %6063  ;;  %v6186_v46 = vpop.permute.xlu0 %6185 }
 0x7c1   : > { %v17153_v39 = vsel %vm15234_vm1, %v6186_v46, %v6115_v32  ;;  %v6124_v28 = vsel %vm15230_vm0, %v6064_v49, %v6123_v27 }
 0x7c2   : > { %6244 = vst [vmem:[#allocation3 + $0x50] sm:$0xff] %v17153_v39  ;;  %12578 = vmatmul.mubr.msk.bf16.gmra.mrb[48].mxu1 %vm440_vm11, %v17153_v39 }
 0x7c4   : > { %v6188_v48 = vpop.permute.xlu1 %6187  ;;  %v6066_v23 = vpop.permute.xlu0 %6065 }
 0x7c5   : > { %v17162_v40 = vsel %vm15234_vm1, %v6188_v48, %v6118_v62  ;;  %v6127_v58 = vsel %vm15230_vm0, %v6066_v23, %v6126_v10 }
 0x7c6   : > { %6247 = vst [vmem:[#allocation3 + $0x58] sm:$0xff] %v17162_v40  ;;  %12581 = vmatprep.mubr.msk.bf16.mxu1 %vm440_vm11, %v17162_v40 }
 0x7c8   : > { %v6068_v6 = vpop.permute.xlu1 %6067  ;;  %v6190_v0 = vpop.permute.xlu0 %6189 }
 0x7c9   : > { %v17171_v24 = vsel %vm15234_vm1, %v6190_v0, %v6121_v11  ;;  %v6130_v55 = vsel %vm15230_vm0, %v6068_v6, %v6129_v60 }
 0x7ca   : > { %6250 = vst [vmem:[#allocation3 + $0x60] sm:$0xff] %v17171_v24  ;;  %12582 = vmatmul.mubr.msk.bf16.gmra.mrb[52].mxu1 %vm440_vm11, %v17171_v24 }
 0x7cc   : > { %v6192_v63 = vpop.permute.xlu1 %6191  ;;  %v6070_v50 = vpop.permute.xlu0 %6069 }
 0x7cd   : > { %v17180_v38 = vsel %vm15234_vm1, %v6192_v63, %v6124_v28  ;;  %v6133_v25 = vsel %vm15230_vm0, %v6070_v50, %v6132_v34 }
 0x7ce   : > { %6253 = vst [vmem:[#allocation3 + $0x68] sm:$0xff] %v17180_v38  ;;  %12585 = vmatprep.mubr.msk.bf16.mxu1 %vm440_vm11, %v17180_v38 }
 0x7d0   : > { %v6196_v14 = vpop.permute.xlu1 %6195  ;;  %v6194_v20 = vpop.permute.xlu0 %6193 }
 0x7d1   : > { %v6258_v7 = vsel %vm15234_vm1, %v6196_v14, %v6130_v55  ;;  %v6255_v59 = vsel %vm15234_vm1, %v6194_v20, %v6127_v58 }
 0x7d2   : > { %6259 = vst [vmem:[#allocation3 + $0x78] sm:$0xff] %v6258_v7  ;;  %6256 = vst [vmem:[#allocation3 + $0x70] sm:$0xff] %v6255_v59  ;;  %12586 = vmatmul.mubr.msk.bf16.gmra.mrb[56].mxu1 %vm440_vm11, %v6255_v59 }
 0x7d3   : > { %12589 = vmatprep.mubr.msk.bf16.mxu1 %vm440_vm11, %v6258_v7 }
 0x7d4   : > { %v6198_v61 = vpop.permute.xlu0 %6197 }
 0x7d5   : > { %v6261_v44 = vsel %vm15234_vm1, %v6198_v61, %v6133_v25 }
 0x7d6   : > { %6262 = vst [vmem:[#allocation3 + $0x80] sm:$0xff] %v6261_v44 }
 0x7da   : > { %12590 = vmatmul.mubr.msk.bf16.gmra.mrb[60].mxu1 %vm440_vm11, %v6261_v44 }
 0x7db   : > { %12605 = vmatprep.mubr.msk.bf16.mxu1 %vm440_vm11, %v6263_v1 }
 0x7e2   : > { %12606 = vmatmul.mubr.msk.bf16.vlgmr.msra.gmra.mrb[32].mxu1 %vm440_vm11, %v17050_v31  ;;  %v13382_v31 = vld [vmem:[%s19168_s7 + $0x80] sm:$0xff]  }
 0x7e3   : > { %12638 = vmatpush3.bf16.msra.mxu1 %v17121_v37  ;;  %12609 = vmatprep.mubr.msk.bf16.mxu1 %vm440_vm11, %v17062_v33 }
 0x7e4   : > { %12639 = vmatprep.subr.bf16.mxu1 %v13379_v43 }
 0x7e7   : > { %12640 = vmatpush3.bf16.msra.mxu1 %v13379_v43 }
 0x7e8   : > { %12641 = vmatprep.subr.bf16.mxu1 %v13380_v29 }
 0x7ea   : > { %12610 = vmatmul.mubr.msk.bf16.gmra.mrb[36].mxu1 %vm440_vm11, %v17075_v36 }
 0x7eb   : > { %12613 = vmatprep.mubr.msk.bf16.mxu1 %vm440_vm11, %v17087_v26  ;;  %12642 = vmatpush3.bf16.msra.mxu1 %v13380_v29 }
 0x7ec   : > { %12643 = vmatprep.subr.bf16.mxu1 %v13381_v13 }
 0x7ef   : > { %12644 = vmatpush3.bf16.msra.mxu1 %v13381_v13 }
 0x7f0   : > { %12645 = vmatprep.subr.bf16.mxu1 %v13382_v31 }
 0x7f2   : > { %12614 = vmatmul.mubr.msk.bf16.gmra.mrb[40].mxu1 %vm440_vm11, %v17099_v56 }
 0x7f3   : > { %12617 = vmatprep.mubr.msk.bf16.mxu1 %vm440_vm11, %v17111_v41  ;;  %12646 = vmatpush3.bf16.msra.mxu1 %v13382_v31 }
 0x7f4   : > { %12647 = vmatprep.subr.bf16.mxu1 %v13383_v57 }
 0x7f7   : > { %12648 = vmatpush3.bf16.msra.mxu1 %v13383_v57 }
 0x7fa   : > { %12618 = vmatmul.mubr.msk.bf16.gmra.mrb[44].mxu1 %vm440_vm11, %v17125_v8 }
 0x7fb   : > { %12621 = vmatprep.mubr.msk.bf16.mxu1 %vm440_vm11, %v17135_v51 }
 0x802   : > { %12622 = vmatmul.mubr.msk.bf16.gmra.mrb[48].mxu1 %vm440_vm11, %v17144_v45 }
 0x803   : > { %12625 = vmatprep.mubr.msk.bf16.mxu1 %vm440_vm11, %v17153_v39 }
 0x80a   : > { %12626 = vmatmul.mubr.msk.bf16.gmra.mrb[52].mxu1 %vm440_vm11, %v17162_v40 }
 0x80b   : > { %12629 = vmatprep.mubr.msk.bf16.mxu1 %vm440_vm11, %v17171_v24 }
 0x812   : > { %12630 = vmatmul.mubr.msk.bf16.gmra.mrb[56].mxu1 %vm440_vm11, %v17180_v38 }
 0x813   : > { %12633 = vmatprep.mubr.msk.bf16.mxu1 %vm440_vm11, %v6255_v59 }
 0x81a   : > { %12634 = vmatmul.mubr.msk.bf16.gmra.mrb[60].mxu1 %vm440_vm11, %v6258_v7 }
 0x81b   : > { %12649 = vmatprep.mubr.msk.bf16.mxu1 %vm440_vm11, %v17062_v33  ;;  %v6825_v33 = vld [vmem:[#allocation3 + $0x88] sm:$0xff] }
 0x822   : > { %12650 = vmatmul.mubr.msk.bf16.vlgmr.msra.gmra.mrb[32].mxu1 %vm440_vm11, %v17075_v36 }
 0x823   : > { %12653 = vmatprep.mubr.msk.bf16.mxu1 %vm440_vm11, %v17087_v26 }
 0x82a   : > { %12654 = vmatmul.mubr.msk.bf16.gmra.mrb[36].mxu1 %vm440_vm11, %v17099_v56 }
 0x82b   : > { %12657 = vmatprep.mubr.msk.bf16.mxu1 %vm440_vm11, %v17111_v41 }
 0x832   : > { %12658 = vmatmul.mubr.msk.bf16.gmra.mrb[40].mxu1 %vm440_vm11, %v17125_v8 }
 0x833   : > { %12661 = vmatprep.mubr.msk.bf16.mxu1 %vm440_vm11, %v17135_v51 }
 0x83a   : > { %12662 = vmatmul.mubr.msk.bf16.gmra.mrb[44].mxu1 %vm440_vm11, %v17144_v45 }
 0x83b   : > { %12665 = vmatprep.mubr.msk.bf16.mxu1 %vm440_vm11, %v17153_v39 }
 0x842   : > { %12666 = vmatmul.mubr.msk.bf16.gmra.mrb[48].mxu1 %vm440_vm11, %v17162_v40 }
 0x843   : > { %12669 = vmatprep.mubr.msk.bf16.mxu1 %vm440_vm11, %v17171_v24 }
 0x84a   : > { %12670 = vmatmul.mubr.msk.bf16.gmra.mrb[52].mxu1 %vm440_vm11, %v17180_v38 }
 0x84b   : > { %12673 = vmatprep.mubr.msk.bf16.mxu1 %vm440_vm11, %v6255_v59 }
 0x852   : > { %12674 = vmatmul.mubr.msk.bf16.gmra.mrb[56].mxu1 %vm440_vm11, %v6258_v7 }
 0x853   : > { %12677 = vmatprep.mubr.msk.bf16.mxu1 %vm440_vm11, %v6261_v44 }
 0x85a   : > { %12678 = vmatmul.mubr.msk.bf16.gmra.mrb[60].mxu1 %vm440_vm11, %v6825_v33 }
 0x8f5   : > { %v12651_v36 = vpop.f32.mrb[32].mxu1 }
 0x8f6   : > { %7118 = vst.msk [vmem:[#allocation2 + $0x10] sm:$0xff] %vm3089_vm3, %v12651_v36  ;;  %v6957_v26 = vpop.f32.mrb[33].mxu1 }
 0x8f7   : > { %7116 = vst.msk [vmem:[#allocation2] sm:$0xff] %vm3089_vm3, %v6957_v26  ;;  %v12652_v56 = vpop.f32.mrb[34].mxu1 }
 0x8f8   : > { %7119 = vst.msk [vmem:[#allocation2 + $0x18] sm:$0xff] %vm3089_vm3, %v12652_v56  ;;  %v6960_v5 = vpop.f32.mrb[35].mxu1 }
 0x8f9   : > { %7117 = vst.msk [vmem:[#allocation2 + $0x8] sm:$0xff] %vm3089_vm3, %v6960_v5 }
 0x8fd   : > { %v12655_v18 = vpop.f32.mrb[36].mxu1  ;;  %v7150_v41 = vld [vmem:[#allocation2 + $0x10] sm:$0xff] }
 0x8fe   : > { %7122 = vst.msk [vmem:[#allocation2 + $0x30] sm:$0xff] %vm3089_vm3, %v12655_v18  ;;  %v6973_v53 = vpop.f32.mrb[37].mxu1  ;;  %v7189_v52 = vadd.f32 %v17280_v30, %v7150_v41  ;;  %v7148_v17 = vld [vmem:[#allocation2] sm:$0xff] }
 0x8ff   : > { %7120 = vst.msk [vmem:[#allocation2 + $0x20] sm:$0xff] %vm3089_vm3, %v6973_v53  ;;  %v12656_v19 = vpop.f32.mrb[38].mxu1  ;;  %v7151_v37 = vld [vmem:[#allocation2 + $0x18] sm:$0xff]  ;;  %v7187_v8 = vadd.f32 %v17280_v30, %v7148_v17 }
 0x900   : > { %7123 = vst.msk [vmem:[#allocation2 + $0x38] sm:$0xff] %vm3089_vm3, %v12656_v19  ;;  %v6976_v35 = vpop.f32.mrb[39].mxu1  ;;  %v7190_v47 = vadd.f32 %v17280_v30, %v7151_v37  ;;  %v17288_v4 = vmul.f32 0.70710677, %v7189_v52  ;;  %v7149_v16 = vld [vmem:[#allocation2 + $0x8] sm:$0xff]  ;;  %v17313_v34 = vmul.f32 0.5, %v7189_v52 }
 0x901   : > { %7121 = vst.msk [vmem:[#allocation2 + $0x28] sm:$0xff] %vm3089_vm3, %v6976_v35  ;;  %v7188_v51 = vadd.f32 %v17280_v30, %v7149_v16  ;;  %v17292_v12 = vmul.f32 0.70710677, %v7187_v8  ;;  %v17324_v57 = vmul.f32 0.5, %v7187_v8 }
 0x902   : > { %v17294_v21 = vmul.f32 0.70710677, %v7190_v47  ;;  %v7285_v22 = vand.u32 2147483647, %v17288_v4  ;;  %v17328_v56 = vmul.f32 0.5, %v7190_v47  ;;  %vm7925_vm15 = vcmp.lt.f32.partialorder %v17288_v4, 0.0 }
 0x903   : > { %v17297_v54 = vmul.f32 0.70710677, %v7188_v51  ;;  %v7283_v45 = vand.u32 2147483647, %v17292_v12  ;;  %v17335_v53 = vmul.f32 0.5, %v7188_v51  ;;  %vm7923_vm4 = vcmp.lt.f32.partialorder %v17292_v12, 0.0 }
 0x904   : > { %v7286_v2 = vand.u32 2147483647, %v17294_v21  ;;  %v7317_v32 = vmul.f32 0.3275911, %v7285_v22  ;;  %v7733_v49 = vsub.f32 0.0, %v7285_v22  ;;  %vm7926_vm5 = vcmp.lt.f32.partialorder %v17294_v21, 0.0 }
 0x905   : > { %v12659_v46 = vpop.f32.mrb[40].mxu1  ;;  %v7284_v39 = vand.u32 2147483647, %v17297_v54  ;;  %v7315_v42 = vmul.f32 0.3275911, %v7283_v45  ;;  %v7731_v15 = vsub.f32 0.0, %v7283_v45 }
 0x906   : > { %7126 = vst.msk [vmem:[#allocation2 + $0x50] sm:$0xff] %vm3089_vm3, %v12659_v46  ;;  %v6989_v62 = vpop.f32.mrb[41].mxu1  ;;  %v7318_v48 = vmul.f32 0.3275911, %v7286_v2  ;;  %v7349_v23 = vadd.f32 1.0, %v7317_v32  ;;  %v7734_v40 = vsub.f32 0.0, %v7286_v2  ;;  %v7765_v63 = vmul.f32 %v7733_v49, %v7285_v22 }
 0x907   : > { %7124 = vst.msk [vmem:[#allocation2 + $0x40] sm:$0xff] %vm3089_vm3, %v6989_v62  ;;  %v12660_v11 = vpop.f32.mrb[42].mxu1  ;;  %v7316_v6 = vmul.f32 0.3275911, %v7284_v39  ;;  %v7347_v0 = vadd.f32 1.0, %v7315_v42  ;;  %v7154_v24 = vld [vmem:[#allocation2 + $0x30] sm:$0xff]  ;;  %v7763_v14 = vmul.f32 %v7731_v15, %v7283_v45 }
 0x908   : > { %7127 = vst.msk [vmem:[#allocation2 + $0x58] sm:$0xff] %vm3089_vm3, %v12660_v11  ;;  %v6992_v27 = vpop.f32.mrb[43].mxu1  ;;  %v7350_v28 = vadd.f32 1.0, %v7318_v48  ;;  %13676 = vrcp.f32 %v7349_v23  ;;  %v7155_v50 = vld [vmem:[#allocation2 + $0x38] sm:$0xff]  ;;  %v7152_v38 = vld [vmem:[#allocation2 + $0x20] sm:$0xff]  ;;  %v7766_v10 = vmul.f32 %v7734_v40, %v7286_v2  ;;  %v7732_v58 = vsub.f32 0.0, %v7284_v39 }
 0x909   : > { %7125 = vst.msk [vmem:[#allocation2 + $0x48] sm:$0xff] %vm3089_vm3, %v6992_v27  ;;  %v7348_v60 = vadd.f32 1.0, %v7316_v6  ;;  %13678 = vrcp.f32 %v7347_v0  ;;  %v7153_v55 = vld [vmem:[#allocation2 + $0x28] sm:$0xff]  ;;  %v7193_v20 = vadd.f32 %v17280_v30, %v7154_v24  ;;  %v17308_v7 = vadd.f32 %v17280_v30, %v7155_v50 }
 0x90a   : > { %13680 = vrcp.f32 %v7350_v28  ;;  %v17311_v59 = vadd.f32 %v17280_v30, %v7152_v38  ;;  %v7799_v25 = vmul.f32 1.442695, %v7765_v63  ;;  %v17318_v44 = vadd.f32 %v17280_v30, %v7153_v55 }
 0x90b   : > { %v17315_v61 = vmul.f32 0.70710677, %v7193_v20  ;;  %v7801_v43 = vmul.f32 1.442695, %v7766_v10  ;;  %13682 = vrcp.f32 %v7348_v60  ;;  %v7764_v29 = vmul.f32 %v7732_v58, %v7284_v39 }
 0x90c   : > { %v17321_v13 = vmul.f32 0.70710677, %v17308_v7  ;;  %v7795_v33 = vmul.f32 1.442695, %v7763_v14  ;;  %v17332_v18 = vmul.f32 0.70710677, %v17311_v59  ;;  %13684 = vpow2.f32 %v7799_v25 }
 0x90d   : > { %v12663_v1 = vpop.f32.mrb[44].mxu1  ;;  %v7289_v36 = vand.u32 2147483647, %v17315_v61  ;;  %v17338_v17 = vmul.f32 0.70710677, %v17318_v44  ;;  %13686 = vpow2.f32 %v7801_v43  ;;  %v17353_v42 = vmul.f32 0.5, %v7193_v20 }
 0x90e   : > { %7130 = vst.msk [vmem:[#allocation2 + $0x70] sm:$0xff] %vm3089_vm3, %v12663_v1  ;;  %v7005_v31 = vpop.f32.mrb[45].mxu1  ;;  %v7290_v5 = vand.u32 2147483647, %v17321_v13  ;;  %v7287_v8 = vand.u32 2147483647, %v17332_v18  ;;  %13688 = vpow2.f32 %v7795_v33 }
 0x90f   : > { %7128 = vst.msk [vmem:[#allocation2 + $0x60] sm:$0xff] %vm3089_vm3, %v7005_v31  ;;  %v12664_v26 = vpop.f32.mrb[46].mxu1  ;;  %v7321_v52 = vmul.f32 0.3275911, %v7289_v36  ;;  %v7737_v16 = vsub.f32 0.0, %v7289_v36  ;;  %v7158_v48 = vld [vmem:[#allocation2 + $0x50] sm:$0xff] }
 0x910   : > { %7131 = vst.msk [vmem:[#allocation2 + $0x78] sm:$0xff] %vm3089_vm3, %v12664_v26  ;;  %v7008_v41 = vpop.f32.mrb[47].mxu1  ;;  %v17341_v19 = vmul.f32 1.442695, %v7764_v29  ;;  %v7738_v22 = vsub.f32 0.0, %v7290_v5  ;;  %v7735_v60 = vsub.f32 0.0, %v7287_v8  ;;  %v17365_v1 = vadd.f32 %v17280_v30, %v7158_v48 }
 0x911   : > { %7129 = vst.msk [vmem:[#allocation2 + $0x68] sm:$0xff] %vm3089_vm3, %v7008_v41  ;;  %v7322_v37 = vmul.f32 0.3275911, %v7290_v5  ;;  %v7353_v47 = vadd.f32 1.0, %v7321_v52  ;;  %v7288_v51 = vand.u32 2147483647, %v17338_v17  ;;  %v7769_v24 = vmul.f32 %v7737_v16, %v7289_v36 }
 0x912   : > { %v17344_v35 = vpop.eup %13676  ;;  %v7319_v49 = vmul.f32 0.3275911, %v7287_v8  ;;  %v7770_v27 = vmul.f32 %v7738_v22, %v7290_v5  ;;  %v7159_v25 = vld [vmem:[#allocation2 + $0x58] sm:$0xff]  ;;  %v7767_v31 = vmul.f32 %v7735_v60, %v7287_v8  ;;  %vm7924_vm6 = vcmp.lt.f32.partialorder %v17297_v54, 0.0 }
 0x913   : > { %v17347_v45 = vpop.eup %13678  ;;  %v7445_v2 = vmul.f32 1.0614054, %v17344_v35  ;;  %v7354_v32 = vadd.f32 1.0, %v7322_v37  ;;  %13690 = vrcp.f32 %v7353_v47  ;;  %v7320_v62 = vmul.f32 0.3275911, %v7288_v51 }
 0x914   : > { %v17350_v46 = vpop.eup %13680  ;;  %v7443_v39 = vmul.f32 1.0614054, %v17347_v45  ;;  %v7351_v11 = vadd.f32 1.0, %v7319_v49  ;;  %v7736_v20 = vsub.f32 0.0, %v7288_v51  ;;  %v7807_v5 = vmul.f32 1.442695, %v7769_v24 }
 0x915   : > { %v12667_v23 = vpop.f32.mrb[48].mxu1  ;;  %v7446_v40 = vmul.f32 1.0614054, %v17350_v46  ;;  %v7477_v15 = vadd.f32 -1.4531521, %v7445_v2  ;;  %13692 = vrcp.f32 %v7354_v32  ;;  %v7352_v28 = vadd.f32 1.0, %v7320_v62  ;;  %v17357_v63 = vpop.eup %13682 }
 0x916   : > { %7134 = vst.msk [vmem:[#allocation2 + $0x90] sm:$0xff] %vm3089_vm3, %v12667_v23  ;;  %v7021_v6 = vpop.f32.mrb[49].mxu1  ;;  %v7475_v0 = vadd.f32 -1.4531521, %v7443_v39  ;;  %13694 = vrcp.f32 %v7351_v11  ;;  %v17369_v33 = vpop.eup %13684  ;;  %v7768_v41 = vmul.f32 %v7736_v20, %v7288_v51  ;;  %v17375_v22 = vadd.f32 %v17280_v30, %v7159_v25 }
 0x917   : > { %7132 = vst.msk [vmem:[#allocation2 + $0x80] sm:$0xff] %vm3089_vm3, %v7021_v6  ;;  %v12668_v50 = vpop.f32.mrb[50].mxu1  ;;  %v7478_v38 = vadd.f32 -1.4531521, %v7446_v40  ;;  %v7509_v10 = vmul.f32 %v17344_v35, %v7477_v15  ;;  %13696 = vrcp.f32 %v7352_v28  ;;  %v17371_v52 = vpop.eup %13686  ;;  %vm7930_vm7 = vcmp.lt.f32.partialorder %v17321_v13, 0.0 }
 0x918   : > { %7135 = vst.msk [vmem:[#allocation2 + $0x98] sm:$0xff] %vm3089_vm3, %v12668_v50  ;;  %v7024_v58 = vpop.f32.mrb[51].mxu1  ;;  %v7444_v55 = vmul.f32 1.0614054, %v17357_v63  ;;  %v7507_v14 = vmul.f32 %v17347_v45, %v7475_v0  ;;  %v13689_v39 = vpop.eup %13688  ;;  %13698 = vpow2.f32 %v17341_v19  ;;  %v17388_v0 = vmul.f32 0.5, %v17308_v7 }
 0x919   : > { %7133 = vst.msk [vmem:[#allocation2 + $0x88] sm:$0xff] %vm3089_vm3, %v7024_v58  ;;  %v7510_v43 = vmul.f32 %v17350_v46, %v7478_v38  ;;  %v7541_v29 = vadd.f32 1.4214138, %v7509_v10  ;;  %v7809_v16 = vmul.f32 1.442695, %v7770_v27  ;;  %13700 = vpow2.f32 %v7807_v5 }
 0x91a   : > { %v7476_v36 = vadd.f32 -1.4531521, %v7444_v55  ;;  %v7539_v26 = vadd.f32 1.4214138, %v7507_v14  ;;  %v7803_v8 = vmul.f32 1.442695, %v7767_v31 }
 0x91b   : > { %v7542_v37 = vadd.f32 1.4214138, %v7510_v43  ;;  %v7573_v47 = vmul.f32 %v17344_v35, %v7541_v29  ;;  %v7805_v49 = vmul.f32 1.442695, %v7768_v41  ;;  %v17382_v23 = vmul.f32 0.70710677, %v17365_v1 }
 0x91c   : > { %v7508_v2 = vmul.f32 %v17357_v63, %v7476_v36  ;;  %v7571_v32 = vmul.f32 %v17347_v45, %v7539_v26  ;;  %13702 = vpow2.f32 %v7809_v16  ;;  %v17400_v58 = vmul.f32 0.70710677, %v17375_v22 }
 0x91d   : > { %v12671_v62 = vpop.f32.mrb[52].mxu1  ;;  %v7574_v48 = vmul.f32 %v17350_v46, %v7542_v37  ;;  %v7605_v51 = vadd.f32 -0.28449672, %v7573_v47  ;;  %v17384_v40 = vpop.eup %13690  ;;  %v17407_v43 = vand.u32 2147483647, %v17382_v23  ;;  %13704 = vpow2.f32 %v7803_v8 }
 0x91e   : > { %7138 = vst.msk [vmem:[#allocation2 + $0xb0] sm:$0xff] %vm3089_vm3, %v12671_v62  ;;  %v7037_v15 = vpop.f32.mrb[53].mxu1  ;;  %v7540_v11 = vadd.f32 1.4214138, %v7508_v2  ;;  %13706 = vpow2.f32 %v7805_v49  ;;  %vm7927_vm8 = vcmp.lt.f32.partialorder %v17332_v18, 0.0  ;;  %vm7928_vm9 = vcmp.lt.f32.partialorder %v17338_v17, 0.0 }
 0x91f   : > { %v7603_v6 = vadd.f32 -0.28449672, %v7571_v32  ;;  %v17390_v24 = vpop.eup %13692  ;;  %7136 = vst.msk [vmem:[#allocation2 + $0xa0] sm:$0xff] %vm3089_vm3, %v7037_v15  ;;  %v12672_v27 = vpop.f32.mrb[54].mxu1  ;;  %v7606_v19 = vadd.f32 -0.28449672, %v7574_v48  ;;  %v7637_v28 = vmul.f32 %v17344_v35, %v7605_v51 }
 0x920   : > { %v7449_v50 = vmul.f32 1.0614054, %v17384_v40  ;;  %7139 = vst.msk [vmem:[#allocation2 + $0xb8] sm:$0xff] %vm3089_vm3, %v12672_v27  ;;  %v7040_v38 = vpop.f32.mrb[55].mxu1  ;;  %v7572_v10 = vmul.f32 %v17357_v63, %v7540_v11  ;;  %v7450_v60 = vmul.f32 1.0614054, %v17390_v24  ;;  %v17402_v55 = vpop.eup %13694 }
 0x921   : > { %v7635_v7 = vmul.f32 %v17347_v45, %v7603_v6  ;;  %7137 = vst.msk [vmem:[#allocation2 + $0xa8] sm:$0xff] %vm3089_vm3, %v7040_v38  ;;  %v7638_v14 = vmul.f32 %v17350_v46, %v7606_v19  ;;  %v7669_v20 = vadd.f32 0.2548296, %v7637_v28  ;;  %v17410_v26 = vpop.eup %13696  ;;  %v7447_v47 = vmul.f32 1.0614054, %v17402_v55 }
 0x922   : > { %v7481_v25 = vadd.f32 -1.4531521, %v7449_v50  ;;  %v7604_v29 = vadd.f32 -0.28449672, %v7572_v10  ;;  %v7482_v36 = vadd.f32 -1.4531521, %v7450_v60  ;;  %v13699_v28 = vpop.eup %13698 }
 0x923   : > { %v7667_v31 = vadd.f32 0.2548296, %v7635_v7  ;;  %v7670_v5 = vadd.f32 0.2548296, %v7638_v14  ;;  %v7701_v41 = vmul.f32 %v17344_v35, %v7669_v20  ;;  %v7448_v8 = vmul.f32 1.0614054, %v17410_v26  ;;  %v13701_v10 = vpop.eup %13700 }
 0x924   : > { %v7513_v37 = vmul.f32 %v17384_v40, %v7481_v25  ;;  %v7636_v16 = vmul.f32 %v17357_v63, %v7604_v29  ;;  %v7514_v32 = vmul.f32 %v17390_v24, %v7482_v36  ;;  %v7479_v15 = vadd.f32 -1.4531521, %v7447_v47 }
 0x925   : > { %v7699_v2 = vmul.f32 %v17347_v45, %v7667_v31  ;;  %v12675_v62 = vpop.f32.mrb[56].mxu1  ;;  %v7702_v48 = vmul.f32 %v17350_v46, %v7670_v5  ;;  %v7861_v35 = vmul.f32 %v17369_v33, %v7701_v41  ;;  %v7480_v33 = vadd.f32 -1.4531521, %v7448_v8 }
 0x926   : > { %v7545_v51 = vadd.f32 1.4214138, %v7513_v37  ;;  %7142 = vst.msk [vmem:[#allocation2 + $0xd0] sm:$0xff] %vm3089_vm3, %v12675_v62  ;;  %v7053_v11 = vpop.f32.mrb[57].mxu1  ;;  %v7546_v19 = vadd.f32 1.4214138, %v7514_v32  ;;  %v7511_v14 = vmul.f32 %v17402_v55, %v7479_v15  ;;  %v13703_v20 = vpop.eup %13702 }
 0x927   : > { %v7668_v6 = vadd.f32 0.2548296, %v7636_v16  ;;  %v7859_v27 = vmul.f32 %v13689_v39, %v7699_v2  ;;  %7140 = vst.msk [vmem:[#allocation2 + $0xc0] sm:$0xff] %vm3089_vm3, %v7053_v11  ;;  %v12676_v45 = vpop.f32.mrb[58].mxu1  ;;  %v7862_v50 = vmul.f32 %v17371_v52, %v7702_v48  ;;  %v7893_v38 = vsub.f32 1.0, %v7861_v35  ;;  %v17437_v32 = vpop.eup %13704 }
 0x928   : > { %v7577_v46 = vmul.f32 %v17384_v40, %v7545_v51  ;;  %7143 = vst.msk [vmem:[#allocation2 + $0xd8] sm:$0xff] %vm3089_vm3, %v12676_v45  ;;  %v7056_v7 = vpop.f32.mrb[59].mxu1  ;;  %v7578_v49 = vmul.f32 %v17390_v24, %v7546_v19  ;;  %v7512_v31 = vmul.f32 %v17410_v26, %v7480_v33  ;;  %v7543_v37 = vadd.f32 1.4214138, %v7511_v14 }
 0x929   : > { %v7700_v39 = vmul.f32 %v17357_v63, %v7668_v6  ;;  %v7891_v60 = vsub.f32 1.0, %v7859_v27  ;;  %7141 = vst.msk [vmem:[#allocation2 + $0xc8] sm:$0xff] %vm3089_vm3, %v7056_v7  ;;  %v7894_v52 = vsub.f32 1.0, %v7862_v50  ;;  %v7957_v25 = vsub.f32 0.0, %v7893_v38  ;;  %v13707_v7 = vpop.eup %13706 }
 0x92a   : > { %v7609_v29 = vadd.f32 -0.28449672, %v7577_v46  ;;  %v7610_v41 = vadd.f32 -0.28449672, %v7578_v49  ;;  %v7544_v2 = vadd.f32 1.4214138, %v7512_v31  ;;  %v7575_v4 = vmul.f32 %v17402_v55, %v7543_v37 }
 0x92b   : > { %v7860_v36 = vmul.f32 %v13699_v28, %v7700_v39  ;;  %v7955_v5 = vsub.f32 0.0, %v7891_v60  ;;  %v7958_v47 = vsub.f32 0.0, %v7894_v52  ;;  %v7989_v63 = vsel %vm7925_vm15, %v7957_v25, %v7893_v38 }
 0x92c   : > { %v7641_v16 = vmul.f32 %v17384_v40, %v7609_v29  ;;  %v8021_v8 = vadd.f32 1.0, %v7989_v63  ;;  %v7642_v35 = vmul.f32 %v17390_v24, %v7610_v41  ;;  %v7576_v46 = vmul.f32 %v17410_v26, %v7544_v2 }
 0x92d   : > { %v7892_v62 = vsub.f32 1.0, %v7860_v36  ;;  %v7987_v48 = vsel %vm7923_vm4, %v7955_v5, %v7891_v60  ;;  %v12679_v51 = vpop.f32.mrb[60].mxu1  ;;  %v7990_v15 = vsel %vm7926_vm5, %v7958_v47, %v7894_v52  ;;  %v7607_v33 = vadd.f32 -0.28449672, %v7575_v4 }
 0x92e   : > { %v8019_v11 = vadd.f32 1.0, %v7987_v48  ;;  %v7673_v6 = vadd.f32 0.2548296, %v7641_v16  ;;  %7146 = vst.msk [vmem:[#allocation2 + $0xf0] sm:$0xff] %vm3089_vm3, %v12679_v51  ;;  %v7069_v27 = vpop.f32.mrb[61].mxu1  ;;  %v8022_v19 = vadd.f32 1.0, %v7990_v15  ;;  %v8053_v28 = vmul.f32 %v8021_v8, %v17313_v34 }
 0x92f   : > { %v7956_v45 = vsub.f32 0.0, %v7892_v62  ;;  %v7674_v50 = vadd.f32 0.2548296, %v7642_v35  ;;  %7144 = vst.msk [vmem:[#allocation2 + $0xe0] sm:$0xff] %vm3089_vm3, %v7069_v27  ;;  %v12680_v12 = vpop.f32.mrb[62].mxu1  ;;  %v7639_v25 = vmul.f32 %v17402_v55, %v7607_v33  ;;  %vm7933_vm10 = vcmp.lt.f32.partialorder %v17382_v23, 0.0 }
 0x930   : > { %v8051_v38 = vmul.f32 %v8019_v11, %v17324_v57  ;;  %v7705_v21 = vmul.f32 %v17384_v40, %v7673_v6  ;;  %7147 = vst.msk [vmem:[#allocation2 + $0xf8] sm:$0xff] %vm3089_vm3, %v12680_v12  ;;  %v7072_v39 = vpop.f32.mrb[63].mxu1  ;;  %v8054_v60 = vmul.f32 %v8022_v19, %v17328_v56  ;;  %v17457_v14 = vand.u32 2147483647, %v17400_v58 }
 0x931   : > { %v7988_v34 = vsel %vm7924_vm6, %v7956_v45, %v7892_v62  ;;  %v7706_v49 = vmul.f32 %v17390_v24, %v7674_v50  ;;  %7145 = vst.msk [vmem:[#allocation2 + $0xe8] sm:$0xff] %vm3089_vm3, %v7072_v39  ;;  %v7608_v52 = vadd.f32 -0.28449672, %v7576_v46  ;;  %v7325_v56 = vmul.f32 0.3275911, %v17407_v43 }
 0x932   : > { %v8020_v57 = vadd.f32 1.0, %v7988_v34  ;;  %v7865_v40 = vmul.f32 %v13701_v10, %v7705_v21  ;;  %v17461_v29 = vpack.c.bf16 %v8054_v60, %v8053_v28  ;;  %v7326_v54 = vmul.f32 0.3275911, %v17457_v14  ;;  %v7156_v28 = vld [vmem:[#allocation2 + $0x40] sm:$0xff] }
 0x933   : > { %v7866_v31 = vmul.f32 %v13703_v20, %v7706_v49  ;;  %v7640_v5 = vmul.f32 %v17410_v26, %v7608_v52  ;;  %v7671_v41 = vadd.f32 0.2548296, %v7639_v25  ;;  %vm7929_vm3 = vcmp.lt.f32.partialorder %v17315_v61, 0.0 }
 0x934   : > { %v8052_v36 = vmul.f32 %v8020_v57, %v17335_v53  ;;  %v7897_v24 = vsub.f32 1.0, %v7865_v40  ;;  %v8123_v37 = vshrl.u32 %v17461_v29, 16  ;;  %8100 = vst.msk [vmem:[#allocation3 + $0x10] sm:$0xff] %vm900_vm2, %v17461_v29  ;;  %v8126_v2 = vshll.u32 %v17461_v29, 16 }
 0x935   : > { %v7898_v10 = vsub.f32 1.0, %v7866_v31  ;;  %v7672_v63 = vadd.f32 0.2548296, %v7640_v5  ;;  %v7703_v53 = vmul.f32 %v17402_v55, %v7671_v41  ;;  %v7357_v62 = vadd.f32 1.0, %v7325_v56 }
 0x936   : > { %v17472_v20 = vpack.c.bf16 %v8052_v36, %v8051_v38  ;;  %v7961_v47 = vsub.f32 0.0, %v7897_v24  ;;  %v8125_v16 = vrot.slane %v8123_v37, 7  ;;  %v7358_v35 = vadd.f32 1.0, %v7326_v54 }
 0x937   : > { %v7962_v8 = vsub.f32 0.0, %v7898_v10  ;;  %v7704_v13 = vmul.f32 %v17410_v26, %v7672_v63  ;;  %v7863_v55 = vmul.f32 %v17437_v32, %v7703_v53  ;;  %13708 = vrcp.f32 %v7357_v62  ;;  %v7157_v26 = vld [vmem:[#allocation2 + $0x48] sm:$0xff] }
 0x938   : > { %v8116_v48 = vshrl.u32 %v17472_v20, 16  ;;  %8099 = vst.msk [vmem:[#allocation3 + $0x8] sm:$0xff] %vm900_vm2, %v17472_v20  ;;  %v7993_v61 = vsel %vm7929_vm3, %v7961_v47, %v7897_v24  ;;  %v8128_v51 = vor.u32 %v8126_v2, %v8125_v16  ;;  %v8119_v4 = vshll.u32 %v17472_v20, 16 }
 0x939   : > { %v7994_v15 = vsel %vm7930_vm7, %v7962_v8, %v7898_v10  ;;  %v8025_v11 = vadd.f32 1.0, %v7993_v61  ;;  %v7864_v19 = vmul.f32 %v13707_v7, %v7704_v13  ;;  %v7895_v50 = vsub.f32 1.0, %v7863_v55  ;;  %v7162_v10 = vld [vmem:[#allocation2 + $0x70] sm:$0xff]  ;;  %v7163_v8 = vld [vmem:[#allocation2 + $0x78] sm:$0xff] }
 0x93a   : > { %v8118_v6 = vrot.slane %v8116_v48, 7  ;;  %v8026_v27 = vadd.f32 1.0, %v7994_v15  ;;  %8229 = vrot.lane.b32.xlu0 %v8128_v51, %s19202_s17  ;;  %13710 = vrcp.f32 %v7358_v35  ;;  %v7741_v46 = vsub.f32 0.0, %v17407_v43 }
 0x93b   : > { %v8057_v45 = vmul.f32 %v8025_v11, %v17353_v42  ;;  %v7896_v21 = vsub.f32 1.0, %v7864_v19  ;;  %v7959_v32 = vsub.f32 0.0, %v7895_v50  ;;  %v17491_v33 = vadd.f32 %v17280_v30, %v7156_v28 }
 0x93c   : > { %v8121_v12 = vor.u32 %v8119_v4, %v8118_v6  ;;  %v8058_v38 = vmul.f32 %v8026_v27, %v17388_v0  ;;  %v17498_v39 = vadd.f32 %v17280_v30, %v7157_v26  ;;  %v7223_v0 = vmul.f32 0.5, %v17311_v59 }
 0x93d   : > { %v7960_v42 = vsub.f32 0.0, %v7896_v21  ;;  %v7991_v60 = vsel %vm7927_vm8, %v7959_v32, %v7895_v50  ;;  %v8325_v40 = vrot.slane %v8126_v2, 1  ;;  %v7224_v52 = vmul.f32 0.5, %v17318_v44 }
 0x93e   : > { %8227 = vrot.lane.b32.xlu1 %v8121_v12, %s19202_s17  ;;  %v17494_v7 = vpack.c.bf16 %v8058_v38, %v8057_v45  ;;  %v8023_v57 = vadd.f32 1.0, %v7991_v60  ;;  %v7773_v25 = vmul.f32 %v7741_v46, %v17407_v43  ;;  %v17508_v31 = vmul.f32 0.70710677, %v17491_v33  ;;  %v7160_v46 = vld [vmem:[#allocation2 + $0x60] sm:$0xff]  ;;  %v7161_v60 = vld [vmem:[#allocation2 + $0x68] sm:$0xff] }
 0x93f   : > { %v7992_v49 = vsel %vm7928_vm9, %v7960_v42, %v7896_v21  ;;  %v7742_v56 = vsub.f32 0.0, %v17457_v14  ;;  %v17515_v54 = vmul.f32 0.70710677, %v17498_v39  ;;  %v8326_v43 = vor.u32 %v8325_v40, %v8123_v37 }
 0x940   : > { %v8137_v34 = vshrl.u32 %v17494_v7, 16  ;;  %8102 = vst.msk [vmem:[#allocation3 + $0x20] sm:$0xff] %vm900_vm2, %v17494_v7  ;;  %v8024_v18 = vadd.f32 1.0, %v7992_v49  ;;  %v8140_v17 = vshll.u32 %v17494_v7, 16  ;;  %v8055_v36 = vmul.f32 %v8023_v57, %v7223_v0 }
 0x941   : > { %v7291_v44 = vand.u32 2147483647, %v17508_v31  ;;  %v7292_v41 = vand.u32 2147483647, %v17515_v54  ;;  %v17521_v47 = vpop.eup %13708  ;;  %v8323_v53 = vrot.slane %v8119_v4, 1  ;;  %v7774_v29 = vmul.f32 %v7742_v56, %v17457_v14 }
 0x942   : > { %v8139_v59 = vrot.slane %v8137_v34, 7  ;;  %v8056_v24 = vmul.f32 %v8024_v18, %v7224_v52  ;;  %v7815_v16 = vmul.f32 1.442695, %v7773_v25  ;;  %v7453_v61 = vmul.f32 1.0614054, %v17521_v47 }
 0x943   : > { %v7323_v2 = vmul.f32 0.3275911, %v7291_v44  ;;  %v7324_v37 = vmul.f32 0.3275911, %v7292_v41  ;;  %v7739_v13 = vsub.f32 0.0, %v7291_v44  ;;  %v17535_v11 = vadd.f32 %v17280_v30, %v7162_v10 }
 0x944   : > { %v8142_v5 = vor.u32 %v8140_v17, %v8139_v59  ;;  %v17523_v63 = vpack.c.bf16 %v8056_v24, %v8055_v36  ;;  %v17525_v62 = vpop.eup %13710  ;;  %v7485_v55 = vadd.f32 -1.4531521, %v7453_v61  ;;  %v7740_v4 = vsub.f32 0.0, %v7292_v41 }
 0x945   : > { %v7454_v51 = vmul.f32 1.0614054, %v17525_v62  ;;  %v7355_v15 = vadd.f32 1.0, %v7323_v2  ;;  %v7356_v6 = vadd.f32 1.0, %v7324_v37  ;;  %v17538_v27 = vadd.f32 %v17280_v30, %v7163_v8 }
 0x946   : > { %8233 = vrot.lane.b32.xlu0 %v8142_v5, %s19202_s17  ;;  %v8130_v35 = vshrl.u32 %v17523_v63, 16  ;;  %8101 = vst.msk [vmem:[#allocation3 + $0x18] sm:$0xff] %vm900_vm2, %v17523_v63  ;;  %v8133_v19 = vshll.u32 %v17523_v63, 16  ;;  %v17545_v45 = vmul.f32 0.5, %v17365_v1  ;;  %v7517_v50 = vmul.f32 %v17521_v47, %v7485_v55 }
 0x947   : > { %v7486_v28 = vadd.f32 -1.4531521, %v7454_v51  ;;  %13712 = vrcp.f32 %v7355_v15  ;;  %v7817_v26 = vmul.f32 1.442695, %v7774_v29  ;;  %v17549_v38 = vmul.f32 0.5, %v17375_v22 }
 0x948   : > { %v8132_v14 = vrot.slane %v8130_v35, 7  ;;  %13714 = vrcp.f32 %v7356_v6  ;;  %v7771_v32 = vmul.f32 %v7739_v13, %v7291_v44  ;;  %v8324_v42 = vor.u32 %v8323_v53, %v8116_v48 }
 0x949   : > { %v7518_v21 = vmul.f32 %v17525_v62, %v7486_v28  ;;  %v7549_v0 = vadd.f32 1.4214138, %v7517_v50  ;;  %13716 = vpow2.f32 %v7815_v16  ;;  %v17555_v1 = vmul.f32 0.70710677, %v17535_v11 }
 0x94a   : > { %8357 = vrot.lane.b32.xlu0 %v8326_v43, %s19203_s16  ;;  %v8135_v12 = vor.u32 %v8133_v19, %v8132_v14  ;;  %v7772_v57 = vmul.f32 %v7740_v4, %v7292_v41  ;;  %v8329_v40 = vrot.slane %v8140_v17, 1  ;;  %v17559_v22 = vmul.f32 0.70710677, %v17538_v27 }
 0x94b   : > { %v7550_v49 = vadd.f32 1.4214138, %v7518_v21  ;;  %v7581_v52 = vmul.f32 %v17521_v47, %v7549_v0  ;;  %13718 = vpow2.f32 %v7817_v26  ;;  %v7297_v20 = vand.u32 2147483647, %v17555_v1 }
 0x94c   : > { %8231 = vrot.lane.b32.xlu1 %v8135_v12, %s19202_s17  ;;  %v17564_v48 = vadd.f32 %v17280_v30, %v7160_v46  ;;  %v7811_v25 = vmul.f32 1.442695, %v7771_v32  ;;  %v7298_v59 = vand.u32 2147483647, %v17559_v22  ;;  %v17569_v56 = vadd.f32 %v17280_v30, %v7161_v60  ;;  %v7166_v60 = vld [vmem:[#allocation2 + $0x90] sm:$0xff] }
 0x94d   : > { %v7582_v18 = vmul.f32 %v17525_v62, %v7550_v49  ;;  %v7613_v17 = vadd.f32 -0.28449672, %v7581_v52  ;;  %v17572_v36 = vmul.f32 0.5, %v17491_v33  ;;  %v17575_v24 = vmul.f32 0.5, %v17498_v39 }
 0x94e   : > { %v7329_v44 = vmul.f32 0.3275911, %v7297_v20  ;;  %v7813_v43 = vmul.f32 1.442695, %v7772_v57  ;;  %v17580_v41 = vor.u32 %v8329_v40, %v8137_v34  ;;  %v7330_v10 = vmul.f32 0.3275911, %v7298_v59 }
 0x94f   : > { %v7614_v5 = vadd.f32 -0.28449672, %v7582_v18  ;;  %v7645_v53 = vmul.f32 %v17521_v47, %v7613_v17  ;;  %v7745_v2 = vsub.f32 0.0, %v7297_v20  ;;  %v17584_v33 = vmul.f32 0.70710677, %v17564_v48 }
 0x950   : > { %8355 = vrot.lane.b32.xlu1 %v8324_v42, %s19203_s16  ;;  %v7361_v16 = vadd.f32 1.0, %v7329_v44  ;;  %13720 = vpow2.f32 %v7811_v25  ;;  %v7362_v61 = vadd.f32 1.0, %v7330_v10  ;;  %v17590_v29 = vmul.f32 0.70710677, %v17569_v56 }
 0x951   : > { %v17586_v8 = vpop.eup %13712  ;;  %v7646_v39 = vmul.f32 %v17525_v62, %v7614_v5  ;;  %v7677_v34 = vadd.f32 0.2548296, %v7645_v53  ;;  %v7746_v13 = vsub.f32 0.0, %v7298_v59  ;;  %v17597_v55 = vrot.slane %v8133_v19, 1 }
 0x952   : > { %v17592_v7 = vpop.eup %13714  ;;  %v7451_v37 = vmul.f32 1.0614054, %v17586_v8  ;;  %13722 = vrcp.f32 %v7361_v16  ;;  %vm7934_vm12 = vcmp.lt.f32.partialorder %v17400_v58, 0.0  ;;  %v7777_v28 = vmul.f32 %v7745_v2, %v7297_v20 }
 0x953   : > { %v7678_v51 = vadd.f32 0.2548296, %v7646_v39  ;;  %v7452_v15 = vmul.f32 1.0614054, %v17592_v7  ;;  %13724 = vrcp.f32 %v7362_v61  ;;  %v13717_v6 = vpop.eup %13716  ;;  %v7709_v4 = vmul.f32 %v17521_v47, %v7677_v34 }
 0x954   : > { %v7483_v14 = vadd.f32 -1.4531521, %v7451_v37  ;;  %v7295_v50 = vand.u32 2147483647, %v17584_v33  ;;  %13726 = vpow2.f32 %v7813_v43  ;;  %v7296_v21 = vand.u32 2147483647, %v17590_v29 }
 0x955   : > { %v7710_v26 = vmul.f32 %v17525_v62, %v7678_v51  ;;  %v7484_v12 = vadd.f32 -1.4531521, %v7452_v15  ;;  %v13719_v32 = vpop.eup %13718  ;;  %v7869_v46 = vmul.f32 %v13717_v6, %v7709_v4  ;;  %v7778_v42 = vmul.f32 %v7746_v13, %v7298_v59 }
 0x956   : > { %v7515_v19 = vmul.f32 %v17586_v8, %v7483_v14  ;;  %v7327_v0 = vmul.f32 0.3275911, %v7295_v50  ;;  %v7328_v57 = vmul.f32 0.3275911, %v7296_v21  ;;  %v7743_v40 = vsub.f32 0.0, %v7295_v50 }
 0x957   : > { %v7870_v47 = vmul.f32 %v13719_v32, %v7710_v26  ;;  %v7516_v49 = vmul.f32 %v17592_v7, %v7484_v12  ;;  %v7901_v52 = vsub.f32 1.0, %v7869_v46  ;;  %v7823_v18 = vmul.f32 1.442695, %v7777_v28  ;;  %v7167_v28 = vld [vmem:[#allocation2 + $0x98] sm:$0xff] }
 0x958   : > { %v7547_v20 = vadd.f32 1.4214138, %v7515_v19  ;;  %v7359_v62 = vadd.f32 1.0, %v7327_v0  ;;  %v7360_v44 = vadd.f32 1.0, %v7328_v57  ;;  %v17607_v5 = vadd.f32 %v17280_v30, %v7166_v60 }
 0x959   : > { %v7902_v25 = vsub.f32 1.0, %v7870_v47  ;;  %v7548_v17 = vadd.f32 1.4214138, %v7516_v49  ;;  %v7965_v43 = vsub.f32 0.0, %v7901_v52  ;;  %v7744_v10 = vsub.f32 0.0, %v7296_v21 }
 0x95a   : > { %v7579_v59 = vmul.f32 %v17586_v8, %v7547_v20  ;;  %13728 = vrcp.f32 %v7359_v62  ;;  %v13721_v53 = vpop.eup %13720  ;;  %v7775_v39 = vmul.f32 %v7743_v40, %v7295_v50  ;;  %v7825_v13 = vmul.f32 1.442695, %v7778_v42 }
 0x95b   : > { %v7966_v16 = vsub.f32 0.0, %v7902_v25  ;;  %v7580_v2 = vmul.f32 %v17592_v7, %v7548_v17  ;;  %13730 = vrcp.f32 %v7360_v44  ;;  %v7997_v34 = vsel %vm7933_vm10, %v7965_v43, %v7901_v52 }
 0x95c   : > { %v17611_v61 = vpop.eup %13722  ;;  %v7611_v37 = vadd.f32 -0.28449672, %v7579_v59  ;;  %13732 = vpow2.f32 %v7823_v18  ;;  %v8029_v6 = vadd.f32 1.0, %v7997_v34  ;;  %v7776_v23 = vmul.f32 %v7744_v10, %v7296_v21 }
 0x95d   : > { %v17615_v51 = vpop.eup %13724  ;;  %v7998_v15 = vsel %vm7934_vm12, %v7966_v16, %v7902_v25  ;;  %v7612_v4 = vadd.f32 -0.28449672, %v7580_v2  ;;  %v7457_v14 = vmul.f32 1.0614054, %v17611_v61  ;;  %v7819_v0 = vmul.f32 1.442695, %v7775_v39 }
 0x95e   : > { %v8030_v26 = vadd.f32 1.0, %v7998_v15  ;;  %v7643_v50 = vmul.f32 %v17586_v8, %v7611_v37  ;;  %v7458_v12 = vmul.f32 1.0614054, %v17615_v51  ;;  %v13727_v32 = vpop.eup %13726  ;;  %v8061_v46 = vmul.f32 %v8029_v6, %v17545_v45 }
 0x95f   : > { %v7644_v19 = vmul.f32 %v17592_v7, %v7612_v4  ;;  %v7489_v42 = vadd.f32 -1.4531521, %v7457_v14  ;;  %v17626_v49 = vadd.f32 %v17280_v30, %v7167_v28  ;;  %vm7931_vm13 = vcmp.lt.f32.partialorder %v17508_v31, 0.0 }
 0x960   : > { %v8062_v58 = vmul.f32 %v8030_v26, %v17549_v38  ;;  %v7675_v60 = vadd.f32 0.2548296, %v7643_v50  ;;  %v7490_v47 = vadd.f32 -1.4531521, %v7458_v12  ;;  %13734 = vpow2.f32 %v7825_v13 }
 0x961   : > { %v7676_v57 = vadd.f32 0.2548296, %v7644_v19  ;;  %v7521_v40 = vmul.f32 %v17611_v61, %v7489_v42  ;;  %v17631_v21 = vmul.f32 0.70710677, %v17607_v5  ;;  %vm7932_vm14 = vcmp.lt.f32.partialorder %v17515_v54, 0.0 }
 0x962   : > { %v17633_v45 = vpack.c.bf16 %v8062_v58, %v8061_v46  ;;  %v7707_v52 = vmul.f32 %v17586_v8, %v7675_v60  ;;  %v7522_v38 = vmul.f32 %v17615_v51, %v7490_v47  ;;  %v7821_v20 = vmul.f32 1.442695, %v7776_v23 }
 0x963   : > { %v7708_v30 = vmul.f32 %v17592_v7, %v7676_v57  ;;  %v7553_v18 = vadd.f32 1.4214138, %v7521_v40  ;;  %13736 = vpow2.f32 %v7819_v0  ;;  %v17640_v62 = vmul.f32 0.70710677, %v17626_v49 }
 0x964   : > { %v17642_v25 = vpop.eup %13728  ;;  %v8151_v17 = vshrl.u32 %v17633_v45, 16  ;;  %8104 = vst.msk [vmem:[#allocation3 + $0x30] sm:$0xff] %vm900_vm2, %v17633_v45  ;;  %v7867_v8 = vmul.f32 %v13721_v53, %v7707_v52  ;;  %v7554_v44 = vadd.f32 1.4214138, %v7522_v38  ;;  %v17648_v43 = vand.u32 2147483647, %v17631_v21 }
 0x965   : > { %v17650_v59 = vpop.eup %13730  ;;  %v8154_v7 = vshll.u32 %v17633_v45, 16  ;;  %v7868_v10 = vmul.f32 %v13727_v32, %v7708_v30  ;;  %v7585_v16 = vmul.f32 %v17611_v61, %v7553_v18  ;;  %v7455_v2 = vmul.f32 1.0614054, %v17642_v25 }
 0x966   : > { %v13733_v39 = vpop.eup %13732  ;;  %v8153_v34 = vrot.slane %v8151_v17, 7  ;;  %v7899_v37 = vsub.f32 1.0, %v7867_v8  ;;  %v7586_v53 = vmul.f32 %v17615_v51, %v7554_v44  ;;  %v7456_v13 = vmul.f32 1.0614054, %v17650_v59 }
 0x967   : > { %v7900_v15 = vsub.f32 1.0, %v7868_v10  ;;  %v7617_v6 = vadd.f32 -0.28449672, %v7585_v16  ;;  %v7487_v4 = vadd.f32 -1.4531521, %v7455_v2  ;;  %13738 = vpow2.f32 %v7821_v20 }
 0x968   : > { %v8156_v14 = vor.u32 %v8154_v7, %v8153_v34  ;;  %v7963_v28 = vsub.f32 0.0, %v7899_v37  ;;  %v7618_v26 = vadd.f32 -0.28449672, %v7586_v53  ;;  %v7488_v50 = vadd.f32 -1.4531521, %v7456_v13 }
 0x969   : > { %v7964_v12 = vsub.f32 0.0, %v7900_v15  ;;  %v7649_v23 = vmul.f32 %v17611_v61, %v7617_v6  ;;  %v7519_v32 = vmul.f32 %v17642_v25, %v7487_v4  ;;  %v17664_v46 = vand.u32 2147483647, %v17640_v62 }
 0x96a   : > { %8237 = vrot.lane.b32.xlu0 %v8156_v14, %s19202_s17  ;;  %v7995_v19 = vsel %vm7931_vm13, %v7963_v28, %v7899_v37  ;;  %v7650_v42 = vmul.f32 %v17615_v51, %v7618_v26  ;;  %v7520_v0 = vmul.f32 %v17650_v59, %v7488_v50  ;;  %v7333_v58 = vmul.f32 0.3275911, %v17648_v43  ;;  %v13735_v60 = vpop.eup %13734 }
 0x96b   : > { %v7996_v47 = vsel %vm7932_vm14, %v7964_v12, %v7900_v15  ;;  %v8027_v57 = vadd.f32 1.0, %v7995_v19  ;;  %v7681_v40 = vadd.f32 0.2548296, %v7649_v23  ;;  %v7551_v52 = vadd.f32 1.4214138, %v7519_v32 }
 0x96c   : > { %v8028_v38 = vadd.f32 1.0, %v7996_v47  ;;  %v7682_v20 = vadd.f32 0.2548296, %v7650_v42  ;;  %v7552_v30 = vadd.f32 1.4214138, %v7520_v0  ;;  %v7365_v18 = vadd.f32 1.0, %v7333_v58 }
 0x96d   : > { %v13737_v8 = vpop.eup %13736  ;;  %v8059_v31 = vmul.f32 %v8027_v57, %v17572_v36  ;;  %v7713_v44 = vmul.f32 %v17611_v61, %v7681_v40  ;;  %v7583_v10 = vmul.f32 %v17642_v25, %v7551_v52  ;;  %v7334_v16 = vmul.f32 0.3275911, %v17664_v46  ;;  %v7164_v47 = vld [vmem:[#allocation2 + $0x80] sm:$0xff] }
 0x96e   : > { %v8060_v2 = vmul.f32 %v8028_v38, %v17575_v24  ;;  %8361 = vrot.lane.b32.xlu0 %v17580_v41, %s19203_s16  ;;  %v7714_v54 = vmul.f32 %v17615_v51, %v7682_v20  ;;  %v7584_v34 = vmul.f32 %v17650_v59, %v7552_v30  ;;  %13740 = vrcp.f32 %v7365_v18 }
 0x96f   : > { %v8328_v36 = vor.u32 %v17597_v55, %v8130_v35  ;;  %v7873_v37 = vmul.f32 %v13733_v39, %v7713_v44  ;;  %v7615_v61 = vadd.f32 -0.28449672, %v7583_v10  ;;  %v7366_v53 = vadd.f32 1.0, %v7334_v16 }
 0x970   : > { %v17686_v13 = vpack.c.bf16 %v8060_v2, %v8059_v31  ;;  %v7233_v15 = vmul.f32 0.5, %v17535_v11  ;;  %v7874_v24 = vmul.f32 %v13735_v60, %v7714_v54  ;;  %v7616_v6 = vadd.f32 -0.28449672, %v7584_v34 }
 0x971   : > { %v13739_v4 = vpop.eup %13738  ;;  %v7905_v41 = vsub.f32 1.0, %v7873_v37  ;;  %v7647_v51 = vmul.f32 %v17642_v25, %v7615_v61  ;;  %13742 = vrcp.f32 %v7366_v53  ;;  %v7749_v14 = vsub.f32 0.0, %v17648_v43 }
 0x972   : > { %v8144_v63 = vshrl.u32 %v17686_v13, 16  ;;  %8103 = vst.msk [vmem:[#allocation3 + $0x28] sm:$0xff] %vm900_vm2, %v17686_v13  ;;  %v7234_v35 = vmul.f32 0.5, %v17538_v27  ;;  %v7906_v55 = vsub.f32 1.0, %v7874_v24  ;;  %v7648_v39 = vmul.f32 %v17650_v59, %v7616_v6 }
 0x973   : > { %vm7937_vm15 = vcmp.lt.f32.partialorder %v17555_v1, 0.0  ;;  %v7969_v11 = vsub.f32 0.0, %v7905_v41  ;;  %v7679_v28 = vadd.f32 0.2548296, %v7647_v51  ;;  %v7750_v26 = vsub.f32 0.0, %v17664_v46 }
 0x974   : > { %v8146_v50 = vrot.slane %v8144_v63, 7  ;;  %v8147_v12 = vshll.u32 %v17686_v13, 16  ;;  %v7970_v23 = vsub.f32 0.0, %v7906_v55  ;;  %v7680_v32 = vadd.f32 0.2548296, %v7648_v39 }
 0x975   : > { %vm7938_vm4 = vcmp.lt.f32.partialorder %v17559_v22, 0.0  ;;  %v8001_v19 = vsel %vm7937_vm15, %v7969_v11, %v7905_v41  ;;  %v7711_v27 = vmul.f32 %v17642_v25, %v7679_v28  ;;  %v7781_v42 = vmul.f32 %v7749_v14, %v17648_v43  ;;  %v7165_v22 = vld [vmem:[#allocation2 + $0x88] sm:$0xff] }
 0x976   : > { %v8149_v1 = vor.u32 %v8147_v12, %v8146_v50  ;;  %v8002_v0 = vsel %vm7938_vm4, %v7970_v23, %v7906_v55  ;;  %v8033_v58 = vadd.f32 1.0, %v8001_v19  ;;  %v7712_v60 = vmul.f32 %v17650_v59, %v7680_v32 }
 0x977   : > { %v8034_v57 = vadd.f32 1.0, %v8002_v0  ;;  %v7231_v40 = vmul.f32 0.5, %v17564_v48  ;;  %v7871_v52 = vmul.f32 %v13737_v8, %v7711_v27  ;;  %v7782_v38 = vmul.f32 %v7750_v26, %v17664_v46  ;;  %v17718_v48 = vld [vmem:[%s19169_s8] ss:$0 sm:$0xff] }
 0x978   : > { %v17709_v20 = vpop.eup %13740  ;;  %8235 = vrot.lane.b32.xlu1 %v8149_v1, %s19202_s17  ;;  %v8065_v25 = vmul.f32 %v8033_v58, %v7233_v15  ;;  %v7232_v43 = vmul.f32 0.5, %v17569_v56  ;;  %v7872_v30 = vmul.f32 %v13739_v4, %v7712_v60  ;;  %vm7935_vm5 = vcmp.lt.f32.partialorder %v17584_v33, 0.0  ;;  %v7170_v58 = vld [vmem:[#allocation2 + $0xb0] sm:$0xff]  ;;  %v7171_v60 = vld [vmem:[#allocation2 + $0xb8] sm:$0xff] }
 0x979   : > { %v8066_v18 = vmul.f32 %v8034_v57, %v7234_v35  ;;  %v7903_v59 = vsub.f32 1.0, %v7871_v52  ;;  %v7461_v31 = vmul.f32 1.0614054, %v17709_v20  ;;  %v17721_v46 = vadd.f32 %v17718_v48, %v7164_v47 }
 0x97a   : > { %v7904_v8 = vsub.f32 1.0, %v7872_v30  ;;  %vm7936_vm6 = vcmp.lt.f32.partialorder %v17590_v29, 0.0  ;;  %v7831_v44 = vmul.f32 1.442695, %v7781_v42  ;;  %v17725_v56 = vadd.f32 %v17718_v48, %v7165_v22 }
 0x97b   : > { %v17727_v10 = vpop.eup %13742  ;;  %v17729_v16 = vpack.c.bf16 %v8066_v18, %v8065_v25  ;;  %v7967_v2 = vsub.f32 0.0, %v7903_v59  ;;  %v7493_v54 = vadd.f32 -1.4531521, %v7461_v31  ;;  %v7833_v34 = vmul.f32 1.442695, %v7782_v38 }
 0x97c   : > { %8359 = vrot.lane.b32.xlu1 %v8328_v36, %s19203_s16  ;;  %v7968_v37 = vsub.f32 0.0, %v7904_v8  ;;  %v8333_v61 = vrot.slane %v8154_v7, 1  ;;  %v7462_v53 = vmul.f32 1.0614054, %v17727_v10  ;;  %v17736_v15 = vmul.f32 0.70710677, %v17721_v46 }
 0x97d   : > { %v8165_v24 = vshrl.u32 %v17729_v16, 16  ;;  %v8168_v6 = vshll.u32 %v17729_v16, 16  ;;  %8106 = vst.msk [vmem:[#allocation3 + $0x40] sm:$0xff] %vm900_vm2, %v17729_v16  ;;  %v7999_v4 = vsel %vm7935_vm5, %v7967_v2, %v7903_v59  ;;  %v7525_v36 = vmul.f32 %v17709_v20, %v7493_v54 }
 0x97e   : > { %v8000_v7 = vsel %vm7936_vm6, %v7968_v37, %v7904_v8  ;;  %v8031_v41 = vadd.f32 1.0, %v7999_v4  ;;  %v7494_v51 = vadd.f32 -1.4531521, %v7462_v53  ;;  %v17748_v14 = vmul.f32 0.70710677, %v17725_v56 }
 0x97f   : > { %v8167_v35 = vrot.slane %v8165_v24, 7  ;;  %v8032_v55 = vadd.f32 1.0, %v8000_v7  ;;  %v7557_v39 = vadd.f32 1.4214138, %v7525_v36  ;;  %v7299_v11 = vand.u32 2147483647, %v17736_v15 }
 0x980   : > { %v8063_v28 = vmul.f32 %v8031_v41, %v7231_v40  ;;  %v7526_v33 = vmul.f32 %v17727_v10, %v7494_v51  ;;  %13744 = vpow2.f32 %v7831_v44  ;;  %v7300_v26 = vand.u32 2147483647, %v17748_v14  ;;  %v7168_v44 = vld [vmem:[#allocation2 + $0xa0] sm:$0xff] }
 0x981   : > { %v8170_v29 = vor.u32 %v8168_v6, %v8167_v35  ;;  %v8064_v50 = vmul.f32 %v8032_v55, %v7232_v43  ;;  %v7589_v23 = vmul.f32 %v17709_v20, %v7557_v39  ;;  %v7331_v32 = vmul.f32 0.3275911, %v7299_v11 }
 0x982   : > { %v7558_v19 = vadd.f32 1.4214138, %v7526_v33  ;;  %v7332_v27 = vmul.f32 0.3275911, %v7300_v26  ;;  %13746 = vpow2.f32 %v7833_v34  ;;  %v8334_v47 = vor.u32 %v8333_v61, %v8151_v17  ;;  %v7169_v61 = vld [vmem:[#allocation2 + $0xa8] sm:$0xff] }
 0x983   : > { %8241 = vrot.lane.b32.xlu0 %v8170_v29, %s19202_s17  ;;  %v17759_v42 = vpack.c.bf16 %v8064_v50, %v8063_v28  ;;  %v7621_v1 = vadd.f32 -0.28449672, %v7589_v23  ;;  %v7363_v0 = vadd.f32 1.0, %v7331_v32  ;;  %v8331_v57 = vrot.slane %v8147_v12, 1 }
 0x984   : > { %v7590_v40 = vmul.f32 %v17727_v10, %v7558_v19  ;;  %v7364_v52 = vadd.f32 1.0, %v7332_v27  ;;  %v7747_v25 = vsub.f32 0.0, %v7299_v11  ;;  %v17771_v45 = vadd.f32 %v17718_v48, %v7170_v58 }
 0x985   : > { %v8158_v38 = vshrl.u32 %v17759_v42, 16  ;;  %8105 = vst.msk [vmem:[#allocation3 + $0x38] sm:$0xff] %vm900_vm2, %v17759_v42  ;;  %v7653_v22 = vmul.f32 %v17709_v20, %v7621_v1  ;;  %13748 = vrcp.f32 %v7363_v0  ;;  %v17774_v17 = vadd.f32 %v17718_v48, %v7171_v60 }
 0x986   : > { %v7622_v43 = vadd.f32 -0.28449672, %v7590_v40  ;;  %13750 = vrcp.f32 %v7364_v52  ;;  %v8161_v30 = vshll.u32 %v17759_v42, 16  ;;  %v7748_v59 = vsub.f32 0.0, %v7300_v26 }
 0x987   : > { %v8160_v12 = vrot.slane %v8158_v38, 7  ;;  %8365 = vrot.lane.b32.xlu0 %v8334_v47, %s19203_s16  ;;  %v7685_v18 = vadd.f32 0.2548296, %v7653_v22  ;;  %v17781_v31 = vmul.f32 0.5, %v17607_v5  ;;  %v17785_v54 = vmul.f32 0.5, %v17626_v49 }
 0x988   : > { %v7654_v8 = vmul.f32 %v17727_v10, %v7622_v43  ;;  %v7779_v37 = vmul.f32 %v7747_v25, %v7299_v11  ;;  %v8332_v4 = vor.u32 %v8331_v57, %v8144_v63  ;;  %v17791_v7 = vmul.f32 0.70710677, %v17771_v45 }
 0x989   : > { %v8163_v2 = vor.u32 %v8161_v30, %v8160_v12  ;;  %v7717_v34 = vmul.f32 %v17709_v20, %v7685_v18  ;;  %v17794_v5 = vmul.f32 0.70710677, %v17774_v17  ;;  %vm7941_vm3 = vcmp.lt.f32.partialorder %v17631_v21, 0.0 }
 0x98a   : > { %v13745_v53 = vpop.eup %13744  ;;  %v7686_v36 = vadd.f32 0.2548296, %v7654_v8  ;;  %v7780_v49 = vmul.f32 %v7748_v59, %v7300_v26  ;;  %v17799_v20 = vadd.f32 %v17718_v48, %v7168_v44  ;;  %vm7942_vm7 = vcmp.lt.f32.partialorder %v17640_v62, 0.0 }
 0x98b   : > { %8239 = vrot.lane.b32.xlu1 %v8163_v2, %s19202_s17  ;;  %v7877_v41 = vmul.f32 %v13745_v53, %v7717_v34  ;;  %v7305_v13 = vand.u32 2147483647, %v17791_v7  ;;  %v7306_v63 = vand.u32 2147483647, %v17794_v5  ;;  %v17806_v39 = vmul.f32 0.5, %v17721_v46 }
 0x98c   : > { %v7718_v51 = vmul.f32 %v17727_v10, %v7686_v36  ;;  %v13747_v35 = vpop.eup %13746  ;;  %v7827_v11 = vmul.f32 1.442695, %v7779_v37  ;;  %v17809_v28 = vadd.f32 %v17718_v48, %v7169_v61  ;;  %v17812_v26 = vmul.f32 0.5, %v17725_v56 }
 0x98d   : > { %v7909_v55 = vsub.f32 1.0, %v7877_v41  ;;  %v7337_v10 = vmul.f32 0.3275911, %v7305_v13  ;;  %v7338_v29 = vmul.f32 0.3275911, %v7306_v63  ;;  %v8337_v46 = vrot.slane %v8168_v6, 1 }
 0x98e   : > { %v7878_v33 = vmul.f32 %v13747_v35, %v7718_v51  ;;  %v7829_v32 = vmul.f32 1.442695, %v7780_v49  ;;  %v17820_v19 = vmul.f32 0.70710677, %v17799_v20  ;;  %13752 = vpow2.f32 %v7827_v11  ;;  %v7174_v41 = vld [vmem:[#allocation2 + $0xd0] sm:$0xff] }
 0x98f   : > { %v17814_v50 = vpop.eup %13748  ;;  %8363 = vrot.lane.b32.xlu1 %v8332_v4, %s19203_s16  ;;  %v7973_v23 = vsub.f32 0.0, %v7909_v55  ;;  %v7369_v0 = vadd.f32 1.0, %v7337_v10  ;;  %v7370_v58 = vadd.f32 1.0, %v7338_v29  ;;  %v17829_v57 = vmul.f32 0.70710677, %v17809_v28  ;;  %v7175_v29 = vld [vmem:[#allocation2 + $0xd8] sm:$0xff] }
 0x990   : > { %v17822_v27 = vpop.eup %13750  ;;  %v7910_v1 = vsub.f32 1.0, %v7878_v33  ;;  %v7459_v56 = vmul.f32 1.0614054, %v17814_v50  ;;  %v8335_v52 = vrot.slane %v8161_v30, 1  ;;  %v7753_v43 = vsub.f32 0.0, %v7305_v13 }
 0x991   : > { %v8005_v60 = vsel %vm7941_vm3, %v7973_v23, %v7909_v55  ;;  %v7460_v47 = vmul.f32 1.0614054, %v17822_v27  ;;  %13754 = vrcp.f32 %v7369_v0  ;;  %v7754_v18 = vsub.f32 0.0, %v7306_v63  ;;  %v13384_v55 = vld [vmem:[%s19170_s9 + $0x30] sm:$0xff]  }
 0x992   : > { %v7974_v6 = vsub.f32 0.0, %v7910_v1  ;;  %v7491_v40 = vadd.f32 -1.4531521, %v7459_v56  ;;  %v8037_v22 = vadd.f32 1.0, %v8005_v60  ;;  %13756 = vrcp.f32 %v7370_v58  ;;  %12681 = vmatprep.subr.bf16.mxu0 %v13384_v55 }
 0x993   : > { %v7492_v25 = vadd.f32 -1.4531521, %v7460_v47  ;;  %v7303_v59 = vand.u32 2147483647, %v17820_v19  ;;  %v17837_v2 = vmul.f32 0.5, %v17771_v45  ;;  %13758 = vpow2.f32 %v7829_v32  ;;  %12682 = vmatpush3.bf16.msra.mxu0 %v13384_v55 }
 0x994   : > { %v8006_v12 = vsel %vm7942_vm7, %v7974_v6, %v7910_v1  ;;  %v7523_v21 = vmul.f32 %v17814_v50, %v7491_v40  ;;  %v7304_v30 = vand.u32 2147483647, %v17829_v57  ;;  %v17841_v37 = vmul.f32 0.5, %v17774_v17 }
 0x995   : > { %v8038_v8 = vadd.f32 1.0, %v8006_v12  ;;  %v7524_v44 = vmul.f32 %v17822_v27, %v7492_v25  ;;  %v7335_v62 = vmul.f32 0.3275911, %v7303_v59  ;;  %v8069_v61 = vmul.f32 %v8037_v22, %v17781_v31 }
 0x996   : > { %v7555_v34 = vadd.f32 1.4214138, %v7523_v21  ;;  %v7336_v36 = vmul.f32 0.3275911, %v7304_v30  ;;  %v7785_v51 = vmul.f32 %v7753_v43, %v7305_v13  ;;  %v7786_v45 = vmul.f32 %v7754_v18, %v7306_v63 }
 0x997   : > { %v8070_v53 = vmul.f32 %v8038_v8, %v17785_v54  ;;  %v7556_v4 = vadd.f32 1.4214138, %v7524_v44  ;;  %v7367_v35 = vadd.f32 1.0, %v7335_v62  ;;  %v8338_v31 = vor.u32 %v8337_v46, %v8165_v24 }
 0x998   : > { %v7587_v49 = vmul.f32 %v17814_v50, %v7555_v34  ;;  %v7368_v54 = vadd.f32 1.0, %v7336_v36  ;;  %v7751_v10 = vsub.f32 0.0, %v7303_v59  ;;  %v17855_v13 = vadd.f32 %v17718_v48, %v7174_v41  ;;  %v13753_v63 = vpop.eup %13752 }
 0x999   : > { %v17849_v11 = vpack.c.bf16 %v8070_v53, %v8069_v61  ;;  %v7588_v17 = vmul.f32 %v17822_v27, %v7556_v4  ;;  %13760 = vrcp.f32 %v7367_v35  ;;  %v7752_v1 = vsub.f32 0.0, %v7304_v30 }
 0x99a   : > { %v7619_v33 = vadd.f32 -0.28449672, %v7587_v49  ;;  %13762 = vrcp.f32 %v7368_v54  ;;  %v7839_v56 = vmul.f32 1.442695, %v7785_v51  ;;  %v7841_v0 = vmul.f32 1.442695, %v7786_v45 }
 0x99b   : > { %v8179_v23 = vshrl.u32 %v17849_v11, 16  ;;  %8108 = vst.msk [vmem:[#allocation3 + $0x50] sm:$0xff] %vm900_vm2, %v17849_v11  ;;  %v7620_v32 = vadd.f32 -0.28449672, %v7588_v17  ;;  %v17860_v16 = vpop.eup %13754  ;;  %v8182_v24 = vshll.u32 %v17849_v11, 16  ;;  %v17871_v40 = vadd.f32 %v17718_v48, %v7175_v29 }
 0x99c   : > { %v7651_v46 = vmul.f32 %v17814_v50, %v7619_v33  ;;  %v17864_v58 = vpop.eup %13756  ;;  %v7465_v6 = vmul.f32 1.0614054, %v17860_v16  ;;  %v17875_v25 = vor.u32 %v8335_v52, %v8158_v38  ;;  %v7783_v12 = vmul.f32 %v7751_v10, %v7303_v59 }
 0x99d   : > { %v8181_v60 = vrot.slane %v8179_v23, 7  ;;  %v7652_v47 = vmul.f32 %v17822_v27, %v7620_v32  ;;  %v7466_v43 = vmul.f32 1.0614054, %v17864_v58  ;;  %vm7939_vm8 = vcmp.lt.f32.partialorder %v17736_v15, 0.0  ;;  %v13759_v34 = vpop.eup %13758  ;;  %v13385_v32 = vld [vmem:[%s19170_s9 + $0x38] sm:$0xff]  }
 0x99e   : > { %v7683_v22 = vadd.f32 0.2548296, %v7651_v46  ;;  %v7497_v8 = vadd.f32 -1.4531521, %v7465_v6  ;;  %v7784_v44 = vmul.f32 %v7752_v1, %v7304_v30  ;;  %vm7940_vm9 = vcmp.lt.f32.partialorder %v17748_v14, 0.0  ;;  %12683 = vmatprep.subr.bf16.mxu0 %v13385_v32 }
 0x99f   : > { %v8184_v21 = vor.u32 %v8182_v24, %v8181_v60  ;;  %v7684_v18 = vadd.f32 0.2548296, %v7652_v47  ;;  %v7498_v61 = vadd.f32 -1.4531521, %v7466_v43  ;;  %13764 = vpow2.f32 %v7839_v56  ;;  %12684 = vmatpush3.bf16.msra.mxu0 %v13385_v32 }
 0x9a0   : > { %v7715_v62 = vmul.f32 %v17814_v50, %v7683_v22  ;;  %v17884_v42 = vmul.f32 0.70710677, %v17855_v13  ;;  %v7529_v52 = vmul.f32 %v17860_v16, %v7497_v8  ;;  %13766 = vpow2.f32 %v7841_v0 }
 0x9a1   : > { %8245 = vrot.lane.b32.xlu0 %v8184_v21, %s19202_s17  ;;  %v7716_v38 = vmul.f32 %v17822_v27, %v7684_v18  ;;  %v17890_v59 = vmul.f32 0.70710677, %v17871_v40  ;;  %v7530_v50 = vmul.f32 %v17864_v58, %v7498_v61  ;;  %v7835_v53 = vmul.f32 1.442695, %v7783_v12 }
 0x9a2   : > { %v7875_v30 = vmul.f32 %v13753_v63, %v7715_v62  ;;  %v7309_v4 = vand.u32 2147483647, %v17884_v42  ;;  %v7561_v41 = vadd.f32 1.4214138, %v7529_v52  ;;  %v7837_v49 = vmul.f32 1.442695, %v7784_v44 }
 0x9a3   : > { %v7876_v36 = vmul.f32 %v13759_v34, %v7716_v38  ;;  %v17895_v51 = vand.u32 2147483647, %v17890_v59  ;;  %v17897_v45 = vpop.eup %13760  ;;  %v7562_v35 = vadd.f32 1.4214138, %v7530_v50  ;;  %vm7945_vm10 = vcmp.lt.f32.partialorder %v17791_v7, 0.0 }
 0x9a4   : > { %v7907_v27 = vsub.f32 1.0, %v7875_v30  ;;  %v7341_v55 = vmul.f32 0.3275911, %v7309_v4  ;;  %v7757_v17 = vsub.f32 0.0, %v7309_v4  ;;  %v17899_v54 = vpop.eup %13762  ;;  %v7593_v10 = vmul.f32 %v17860_v16, %v7561_v41 }
 0x9a5   : > { %v7908_v33 = vsub.f32 1.0, %v7876_v36  ;;  %8369 = vrot.lane.b32.xlu0 %v8338_v31, %s19203_s16  ;;  %v7463_v29 = vmul.f32 1.0614054, %v17897_v45  ;;  %v7342_v63 = vmul.f32 0.3275911, %v17895_v51  ;;  %v7594_v46 = vmul.f32 %v17864_v58, %v7562_v35 }
 0x9a6   : > { %v7971_v1 = vsub.f32 0.0, %v7907_v27  ;;  %v7464_v56 = vmul.f32 1.0614054, %v17899_v54  ;;  %v7373_v0 = vadd.f32 1.0, %v7341_v55  ;;  %v7625_v47 = vadd.f32 -0.28449672, %v7593_v10 }
 0x9a7   : > { %v7972_v60 = vsub.f32 0.0, %v7908_v33  ;;  %v7495_v6 = vadd.f32 -1.4531521, %v7463_v29  ;;  %v7374_v31 = vadd.f32 1.0, %v7342_v63  ;;  %v7626_v43 = vadd.f32 -0.28449672, %v7594_v46 }
 0x9a8   : > { %v8003_v22 = vsel %vm7939_vm8, %v7971_v1, %v7907_v27  ;;  %v7496_v12 = vadd.f32 -1.4531521, %v7464_v56  ;;  %13768 = vrcp.f32 %v7373_v0  ;;  %v7657_v8 = vmul.f32 %v17860_v16, %v7625_v47  ;;  %v7173_v1 = vld [vmem:[#allocation2 + $0xc8] sm:$0xff]  ;;  %v13386_v46 = vld [vmem:[%s19170_s9 + $0x40] sm:$0xff]  }
 0x9a9   : > { %v8004_v21 = vsel %vm7940_vm9, %v7972_v60, %v7908_v33  ;;  %v8035_v18 = vadd.f32 1.0, %v8003_v22  ;;  %v7527_v44 = vmul.f32 %v17897_v45, %v7495_v6  ;;  %v13765_v34 = vpop.eup %13764  ;;  %v7658_v61 = vmul.f32 %v17864_v58, %v7626_v43  ;;  %12685 = vmatprep.subr.bf16.mxu0 %v13386_v46 }
 0x9aa   : > { %v8036_v62 = vadd.f32 1.0, %v8004_v21  ;;  %v7528_v38 = vmul.f32 %v17899_v54, %v7496_v12  ;;  %13770 = vrcp.f32 %v7374_v31  ;;  %v13767_v15 = vpop.eup %13766  ;;  %v7689_v30 = vadd.f32 0.2548296, %v7657_v8  ;;  %12686 = vmatpush3.bf16.msra.mxu0 %v13386_v46 }
 0x9ab   : > { %v8067_v52 = vmul.f32 %v8035_v18, %v17806_v39  ;;  %v7559_v50 = vadd.f32 1.4214138, %v7527_v44  ;;  %13772 = vpow2.f32 %v7835_v53  ;;  %v7690_v36 = vadd.f32 0.2548296, %v7658_v61  ;;  %v7172_v53 = vld [vmem:[#allocation2 + $0xc0] sm:$0xff] }
 0x9ac   : > { %v8068_v14 = vmul.f32 %v8036_v62, %v17812_v26  ;;  %v7560_v41 = vadd.f32 1.4214138, %v7528_v38  ;;  %v7758_v27 = vsub.f32 0.0, %v17895_v51  ;;  %v7721_v35 = vmul.f32 %v17860_v16, %v7689_v30 }
 0x9ad   : > { %v7591_v55 = vmul.f32 %v17897_v45, %v7559_v50  ;;  %13774 = vpow2.f32 %v7837_v49  ;;  %v7789_v33 = vmul.f32 %v7757_v17, %v7309_v4  ;;  %v7722_v39 = vmul.f32 %v17864_v58, %v7690_v36 }
 0x9ae   : > { %v17924_v10 = vpack.c.bf16 %v8068_v14, %v8067_v52  ;;  %vm7946_vm12 = vcmp.lt.f32.partialorder %v17794_v5, 0.0  ;;  %v7592_v26 = vmul.f32 %v17899_v54, %v7560_v41  ;;  %v7881_v29 = vmul.f32 %v13765_v34, %v7721_v35 }
 0x9af   : > { %v17930_v63 = vmul.f32 0.5, %v17799_v20  ;;  %v17933_v32 = vmul.f32 0.5, %v17809_v28  ;;  %v7623_v16 = vadd.f32 -0.28449672, %v7591_v55  ;;  %v7882_v4 = vmul.f32 %v13767_v15, %v7722_v39 }
 0x9b0   : > { %v8172_v49 = vshrl.u32 %v17924_v10, 16  ;;  %8107 = vst.msk [vmem:[#allocation3 + $0x48] sm:$0xff] %vm900_vm2, %v17924_v10  ;;  %v7624_v58 = vadd.f32 -0.28449672, %v7592_v26  ;;  %v7790_v17 = vmul.f32 %v7758_v27, %v17895_v51  ;;  %v7913_v20 = vsub.f32 1.0, %v7881_v29 }
 0x9b1   : > { %v7655_v56 = vmul.f32 %v17897_v45, %v7623_v16  ;;  %v7847_v28 = vmul.f32 1.442695, %v7789_v33  ;;  %v17944_v0 = vadd.f32 %v17718_v48, %v7172_v53  ;;  %v8175_v6 = vshll.u32 %v17924_v10, 16 }
 0x9b2   : > { %v17946_v60 = vpop.eup %13768  ;;  %v8174_v47 = vrot.slane %v8172_v49, 7  ;;  %v7914_v51 = vsub.f32 1.0, %v7882_v4  ;;  %v7656_v31 = vmul.f32 %v17899_v54, %v7624_v58  ;;  %v7977_v22 = vsub.f32 0.0, %v7913_v20 }
 0x9b3   : > { %v7687_v43 = vadd.f32 0.2548296, %v7655_v56  ;;  %v7469_v12 = vmul.f32 1.0614054, %v17946_v60  ;;  %v17954_v21 = vadd.f32 %v17718_v48, %v7173_v1  ;;  %vm7943_vm13 = vcmp.lt.f32.partialorder %v17820_v19, 0.0 }
 0x9b4   : > { %v17956_v18 = vpop.eup %13770  ;;  %v8177_v8 = vor.u32 %v8175_v6, %v8174_v47  ;;  %v7978_v44 = vsub.f32 0.0, %v7914_v51  ;;  %v7688_v34 = vadd.f32 0.2548296, %v7656_v31  ;;  %v7849_v62 = vmul.f32 1.442695, %v7790_v17 }
 0x9b5   : > { %v13773_v61 = vpop.eup %13772  ;;  %v8009_v38 = vsel %vm7945_vm10, %v7977_v22, %v7913_v20  ;;  %v7719_v15 = vmul.f32 %v17897_v45, %v7687_v43  ;;  %vm7944_vm14 = vcmp.lt.f32.partialorder %v17829_v57, 0.0  ;;  %v7470_v52 = vmul.f32 1.0614054, %v17956_v18 }
 0x9b6   : > { %v7501_v30 = vadd.f32 -1.4531521, %v7469_v12  ;;  %8243 = vrot.lane.b32.xlu1 %v8177_v8, %s19202_s17  ;;  %v8010_v50 = vsel %vm7946_vm12, %v7978_v44, %v7914_v51  ;;  %v8041_v14 = vadd.f32 1.0, %v8009_v38  ;;  %v7720_v36 = vmul.f32 %v17899_v54, %v7688_v34  ;;  %v13387_v54 = vld [vmem:[%s19170_s9 + $0x48] sm:$0xff]  }
 0x9b7   : > { %v17971_v41 = vmul.f32 0.70710677, %v17944_v0  ;;  %v13775_v7 = vpop.eup %13774  ;;  %v8042_v27 = vadd.f32 1.0, %v8010_v50  ;;  %v7879_v35 = vmul.f32 %v13773_v61, %v7719_v15  ;;  %v7502_v45 = vadd.f32 -1.4531521, %v7470_v52  ;;  %12687 = vmatprep.subr.bf16.mxu0 %v13387_v54  ;;  %v7178_v50 = vld [vmem:[#allocation2 + $0xf0] sm:$0xff] }
 0x9b8   : > { %v7533_v55 = vmul.f32 %v17946_v60, %v7501_v30  ;;  %v8073_v33 = vmul.f32 %v8041_v14, %v17837_v2  ;;  %v7880_v39 = vmul.f32 %v13775_v7, %v7720_v36  ;;  %v17976_v26 = vmul.f32 0.70710677, %v17954_v21  ;;  %12688 = vmatpush3.bf16.msra.mxu0 %v13387_v54  ;;  %v7179_v14 = vld [vmem:[#allocation2 + $0xf8] sm:$0xff] }
 0x9b9   : > { %v17979_v5 = vand.u32 2147483647, %v17971_v41  ;;  %v8074_v53 = vmul.f32 %v8042_v27, %v17841_v37  ;;  %v7911_v29 = vsub.f32 1.0, %v7879_v35  ;;  %v7534_v16 = vmul.f32 %v17956_v18, %v7502_v45 }
 0x9ba   : > { %v7565_v4 = vadd.f32 1.4214138, %v7533_v55  ;;  %8367 = vrot.lane.b32.xlu1 %v17875_v25, %s19203_s16  ;;  %v7912_v2 = vsub.f32 1.0, %v7880_v39  ;;  %13776 = vpow2.f32 %v7847_v28  ;;  %v17989_v58 = vand.u32 2147483647, %v17976_v26 }
 0x9bb   : > { %v7339_v17 = vmul.f32 0.3275911, %v17979_v5  ;;  %v17992_v1 = vpack.c.bf16 %v8074_v53, %v8073_v33  ;;  %v7975_v46 = vsub.f32 0.0, %v7911_v29  ;;  %v7566_v20 = vadd.f32 1.4214138, %v7534_v16 }
 0x9bc   : > { %v7597_v37 = vmul.f32 %v17946_v60, %v7565_v4  ;;  %v7976_v56 = vsub.f32 0.0, %v7912_v2  ;;  %13778 = vpow2.f32 %v7849_v62  ;;  %v7340_v47 = vmul.f32 0.3275911, %v17989_v58 }
 0x9bd   : > { %v7371_v25 = vadd.f32 1.0, %v7339_v17  ;;  %v8193_v28 = vshrl.u32 %v17992_v1, 16  ;;  %v8196_v51 = vshll.u32 %v17992_v1, 16  ;;  %8110 = vst.msk [vmem:[#allocation3 + $0x60] sm:$0xff] %vm900_vm2, %v17992_v1  ;;  %v8007_v31 = vsel %vm7943_vm13, %v7975_v46, %v7911_v29 }
 0x9be   : > { %v7598_v22 = vmul.f32 %v17956_v18, %v7566_v20  ;;  %v8008_v43 = vsel %vm7944_vm14, %v7976_v56, %v7912_v2  ;;  %v8039_v12 = vadd.f32 1.0, %v8007_v31  ;;  %v7629_v8 = vadd.f32 -0.28449672, %v7597_v37 }
 0x9bf   : > { %v7372_v44 = vadd.f32 1.0, %v7340_v47  ;;  %v8195_v34 = vrot.slane %v8193_v28, 7  ;;  %v8040_v62 = vadd.f32 1.0, %v8008_v43  ;;  %13780 = vrcp.f32 %v7371_v25  ;;  %v7176_v43 = vld [vmem:[#allocation2 + $0xe0] sm:$0xff] }
 0x9c0   : > { %v7630_v61 = vadd.f32 -0.28449672, %v7598_v22  ;;  %v8341_v38 = vrot.slane %v8182_v24, 1  ;;  %v7661_v19 = vmul.f32 %v17946_v60, %v7629_v8  ;;  %v8071_v57 = vmul.f32 %v8039_v12, %v17930_v63 }
 0x9c1   : > { %13782 = vrcp.f32 %v7372_v44  ;;  %v8198_v15 = vor.u32 %v8196_v51, %v8195_v34  ;;  %v8072_v52 = vmul.f32 %v8040_v62, %v17933_v32  ;;  %v7755_v45 = vsub.f32 0.0, %v17979_v5  ;;  %v13388_v32 = vld [vmem:[%s19170_s9 + $0x50] sm:$0xff]   ;;  %v7177_v62 = vld [vmem:[#allocation2 + $0xe8] sm:$0xff] }
 0x9c2   : > { %v7662_v30 = vmul.f32 %v17956_v18, %v7630_v61  ;;  %v7693_v36 = vadd.f32 0.2548296, %v7661_v19  ;;  %v18021_v55 = vadd.f32 %v17718_v48, %v7178_v50  ;;  %v18024_v63 = vadd.f32 %v17718_v48, %v7179_v14  ;;  %12689 = vmatprep.subr.bf16.mxu0 %v13388_v32 }
 0x9c3   : > { %8249 = vrot.lane.b32.xlu0 %v8198_v15, %s19202_s17  ;;  %v18016_v7 = vpack.c.bf16 %v8072_v52, %v8071_v57  ;;  %v7245_v39 = vmul.f32 0.5, %v17855_v13  ;;  %v8339_v29 = vrot.slane %v8175_v6, 1  ;;  %v7246_v16 = vmul.f32 0.5, %v17871_v40  ;;  %12690 = vmatpush3.bf16.msra.mxu0 %v13388_v32  ;;  %v18075_v15 = vpop.permute.xlu0 %8229 }
 0x9c4   : > { %v7694_v24 = vadd.f32 0.2548296, %v7662_v30  ;;  %v13777_v27 = vpop.eup %13776  ;;  %v7725_v35 = vmul.f32 %v17946_v60, %v7693_v36  ;;  %v8342_v60 = vor.u32 %v8341_v38, %v8179_v23  ;;  %v7756_v2 = vsub.f32 0.0, %v17989_v58 }
 0x9c5   : > { %v8186_v33 = vshrl.u32 %v18016_v7, 16  ;;  %8109 = vst.msk [vmem:[#allocation3 + $0x58] sm:$0xff] %vm900_vm2, %v18016_v7  ;;  %v8189_v11 = vshll.u32 %v18016_v7, 16  ;;  %v18045_v23 = vmul.f32 0.70710677, %v18021_v55  ;;  %vm7949_vm15 = vcmp.lt.f32.partialorder %v17884_v42, 0.0 }
 0x9c6   : > { %v7726_v54 = vmul.f32 %v17956_v18, %v7694_v24  ;;  %v13779_v53 = vpop.eup %13778  ;;  %v7885_v4 = vmul.f32 %v13777_v27, %v7725_v35  ;;  %v7787_v40 = vmul.f32 %v7755_v45, %v17979_v5  ;;  %v18050_v6 = vmul.f32 0.70710677, %v18024_v63 }
 0x9c7   : > { %v8188_v17 = vrot.slane %v8186_v33, 7  ;;  %8373 = vrot.lane.b32.xlu0 %v8342_v60, %s19203_s16  ;;  %vm7950_vm4 = vcmp.lt.f32.partialorder %v17890_v59, 0.0  ;;  %v18058_v56 = vand.u32 2147483647, %v18045_v23  ;;  %v7788_v5 = vmul.f32 %v7756_v2, %v17989_v58  ;;  %v18088_v32 = vpop.permute.xlu0 %8233  ;;  %v13389_v60 = vld [vmem:[%s19170_s9 + $0x58] sm:$0xff]  }
 0x9c8   : > { %v7886_v13 = vmul.f32 %v13779_v53, %v7726_v54  ;;  %v7917_v18 = vsub.f32 1.0, %v7885_v4  ;;  %v18065_v22 = vand.u32 2147483647, %v18050_v6  ;;  %v8340_v12 = vor.u32 %v8339_v29, %v8172_v49  ;;  %v18096_v4 = vpop.permute.xlu1 %8227  ;;  %12691 = vmatprep.subr.bf16.mxu0 %v13389_v60 }
 0x9c9   : > { %v18052_v46 = vpop.eup %13780  ;;  %v8191_v20 = vor.u32 %v8189_v11, %v8188_v17  ;;  %v7345_v34 = vmul.f32 0.3275911, %v18058_v56  ;;  %v7843_v58 = vmul.f32 1.442695, %v7787_v40  ;;  %v7845_v14 = vmul.f32 1.442695, %v7788_v5  ;;  %12692 = vmatpush3.bf16.msra.mxu0 %v13389_v60 }
 0x9ca   : > { %v7918_v37 = vsub.f32 1.0, %v7886_v13  ;;  %v7981_v25 = vsub.f32 0.0, %v7917_v18  ;;  %v7467_v31 = vmul.f32 1.0614054, %v18052_v46  ;;  %v7346_v19 = vmul.f32 0.3275911, %v18065_v22 }
 0x9cb   : > { %v18060_v47 = vpop.eup %13782  ;;  %8247 = vrot.lane.b32.xlu1 %v8191_v20, %s19202_s17  ;;  %v7377_v52 = vadd.f32 1.0, %v7345_v34  ;;  %v18083_v24 = vadd.f32 %v17718_v48, %v7176_v43  ;;  %v18086_v27 = vadd.f32 %v17718_v48, %v7177_v62  ;;  %v7761_v13 = vsub.f32 0.0, %v18058_v56  ;;  %v18113_v40 = vld [vmem:[%s19170_s9] sm:$0xff]  }
 0x9cc   : > { %v7982_v8 = vsub.f32 0.0, %v7918_v37  ;;  %v7468_v44 = vmul.f32 1.0614054, %v18060_v47  ;;  %v8013_v61 = vsel %vm7949_vm15, %v7981_v25, %v7917_v18  ;;  %v7499_v38 = vadd.f32 -1.4531521, %v7467_v31  ;;  %12725 = vmatprep.subr.bf16.mxu0 %v18113_v40 }
 0x9cd   : > { %v8045_v10 = vadd.f32 1.0, %v8013_v61  ;;  %v7378_v36 = vadd.f32 1.0, %v7346_v19  ;;  %13784 = vrcp.f32 %v7377_v52  ;;  %v7762_v18 = vsub.f32 0.0, %v18065_v22 }
 0x9ce   : > { %v8014_v57 = vsel %vm7950_vm4, %v7982_v8, %v7918_v37  ;;  %v7500_v49 = vadd.f32 -1.4531521, %v7468_v44  ;;  %v7531_v50 = vmul.f32 %v18052_v46, %v7499_v38  ;;  %v8358_v8 = vpop.permute.xlu0 %8357  ;;  %v8345_v34 = vrot.slane %v8196_v51, 1 }
 0x9cf   : > { %v8046_v30 = vadd.f32 1.0, %v8014_v57  ;;  %8371 = vrot.lane.b32.xlu1 %v8340_v12, %s19203_s16  ;;  %v8077_v59 = vmul.f32 %v8045_v10, %v7245_v39  ;;  %13786 = vrcp.f32 %v7378_v36  ;;  %v18100_v39 = vmul.f32 0.70710677, %v18083_v24  ;;  %v18125_v12 = vpop.permute.xlu1 %8231 }
 0x9d0   : > { %v7532_v42 = vmul.f32 %v18060_v47, %v7500_v49  ;;  %v7563_v45 = vadd.f32 1.4214138, %v7531_v50  ;;  %13788 = vpow2.f32 %v7843_v58  ;;  %v7793_v19 = vmul.f32 %v7761_v13, %v18058_v56 }
 0x9d1   : > { %v8078_v35 = vmul.f32 %v8046_v30, %v7246_v16  ;;  %13790 = vpow2.f32 %v7845_v14  ;;  %v18103_v16 = vmul.f32 0.70710677, %v18086_v27  ;;  %v18116_v37 = vand.u32 2147483647, %v18100_v39 }
 0x9d2   : > { %v7564_v54 = vadd.f32 1.4214138, %v7532_v42  ;;  %v7595_v29 = vmul.f32 %v18052_v46, %v7563_v45  ;;  %v7794_v49 = vmul.f32 %v7762_v18, %v18065_v22  ;;  %vm7947_vm5 = vcmp.lt.f32.partialorder %v17971_v41, 0.0 }
 0x9d3   : > { %v18093_v53 = vpack.c.bf16 %v8078_v35, %v8077_v59  ;;  %v18119_v25 = vand.u32 2147483647, %v18103_v16  ;;  %v7343_v62 = vmul.f32 0.3275911, %v18116_v37  ;;  %v8346_v42 = vor.u32 %v8345_v34, %v8193_v28  ;;  %v8275_v28 = vld [vmem:[#allocation3 + $0x8] sm:$0xff]  ;;  %v8284_v34 = vld [vmem:[#allocation3 + $0x20] sm:$0xff] }
 0x9d4   : > { %v7596_v48 = vmul.f32 %v18060_v47, %v7564_v54  ;;  %v7627_v17 = vadd.f32 -0.28449672, %v7595_v29  ;;  %v7855_v60 = vmul.f32 1.442695, %v7793_v19  ;;  %v8278_v54 = vld [vmem:[#allocation3 + $0x10] sm:$0xff]  ;;  %vm7948_vm6 = vcmp.lt.f32.partialorder %v17976_v26, 0.0 }
 0x9d5   : > { %v8207_v2 = vshrl.u32 %v18093_v53, 16  ;;  %8112 = vst.msk [vmem:[#allocation3 + $0x70] sm:$0xff] %vm900_vm2, %v18093_v53  ;;  %v8210_v5 = vshll.u32 %v18093_v53, 16  ;;  %v7344_v61 = vmul.f32 0.3275911, %v18119_v25  ;;  %v7375_v52 = vadd.f32 1.0, %v7343_v62 }
 0x9d6   : > { %v7628_v20 = vadd.f32 -0.28449672, %v7596_v48  ;;  %v7659_v43 = vmul.f32 %v18052_v46, %v7627_v17  ;;  %v7857_v13 = vmul.f32 1.442695, %v7794_v49  ;;  %v8279_v1 = vsel %vm15230_vm0, %v18075_v15, %v8278_v54  ;;  %v13392_v26 = vld [vmem:[%s19170_s9 + $0x10] sm:$0xff]  }
 0x9d7   : > { %v8209_v31 = vrot.slane %v8207_v2, 7  ;;  %v18136_v57 = vpop.eup %13784  ;;  %v7376_v30 = vadd.f32 1.0, %v7344_v61  ;;  %13792 = vrcp.f32 %v7375_v52  ;;  %v18163_v62 = vsel %vm15234_vm1, %v8358_v8, %v8279_v1  ;;  %v13391_v61 = vld [vmem:[%s19170_s9 + $0x8] sm:$0xff]  }
 0x9d8   : > { %v7660_v44 = vmul.f32 %v18060_v47, %v7628_v20  ;;  %v7691_v58 = vadd.f32 0.2548296, %v7659_v43  ;;  %v7473_v14 = vmul.f32 1.0614054, %v18136_v57  ;;  %v7759_v20 = vsub.f32 0.0, %v18116_v37  ;;  %8408 = vst [vmem:[#allocation3 + $0x10] sm:$0xff] %v18163_v62 }
 0x9d9   : > { %v8212_v38 = vor.u32 %v8210_v5, %v8209_v31  ;;  %v18139_v50 = vpop.eup %13786  ;;  %13794 = vrcp.f32 %v7376_v30  ;;  %v8276_v31 = vsel %vm15230_vm0, %v18096_v4, %v8275_v28  ;;  %v8285_v4 = vsel %vm15230_vm0, %v18088_v32, %v8284_v34 }
 0x9da   : > { %v7692_v10 = vadd.f32 0.2548296, %v7660_v44  ;;  %v7723_v51 = vmul.f32 %v18052_v46, %v7691_v58  ;;  %v13789_v36 = vpop.eup %13788  ;;  %v7474_v22 = vmul.f32 1.0614054, %v18139_v50  ;;  %v7505_v45 = vadd.f32 -1.4531521, %v7473_v14  ;;  %v8356_v46 = vpop.permute.xlu1 %8355 }
 0x9db   : > { %8253 = vrot.lane.b32.xlu0 %v8212_v38, %s19202_s17  ;;  %v13791_v59 = vpop.eup %13790  ;;  %v18167_v15 = vsel %vm15234_vm1, %v8356_v46, %v8276_v31  ;;  %13796 = vpow2.f32 %v7855_v60  ;;  %v7760_v49 = vsub.f32 0.0, %v18119_v25  ;;  %v7243_v41 = vmul.f32 0.5, %v17944_v0 }
 0x9dc   : > { %v7724_v56 = vmul.f32 %v18060_v47, %v7692_v10  ;;  %v7883_v35 = vmul.f32 %v13789_v36, %v7723_v51  ;;  %v18149_v29 = vpop.permute.xlu0 %8237  ;;  %v7506_v17 = vadd.f32 -1.4531521, %v7474_v22  ;;  %v7537_v18 = vmul.f32 %v18136_v57, %v7505_v45  ;;  %8405 = vst [vmem:[#allocation3 + $0x8] sm:$0xff] %v18167_v15  ;;  %12693 = vmatprep.mubr.msk.bf16.mxu0 %vm440_vm11, %v18167_v15 }
 0x9dd   : > { %12694 = vmatmul.mubr.msk.bf16.vlgmr.msra.gmra.mrb[96].mxu0 %vm440_vm11, %v18163_v62  ;;  %13798 = vpow2.f32 %v7857_v13  ;;  %v7792_v45 = vmul.f32 %v7760_v49, %v18119_v25  ;;  %v13393_v25 = vld [vmem:[%s19170_s9 + $0x18] sm:$0xff]   ;;  %vm7953_vm3 = vcmp.lt.f32.partialorder %v18045_v23, 0.0  ;;  %vm7954_vm7 = vcmp.lt.f32.partialorder %v18050_v6, 0.0 }
 0x9de   : > { %v7884_v48 = vmul.f32 %v13791_v59, %v7724_v56  ;;  %v7915_v47 = vsub.f32 1.0, %v7883_v35  ;;  %v7538_v44 = vmul.f32 %v18139_v50, %v7506_v17  ;;  %v7569_v58 = vadd.f32 1.4214138, %v7537_v18  ;;  %12726 = vmatpush3.bf16.msra.mxu0 %v18113_v40 }
 0x9df   : > { %8377 = vrot.lane.b32.xlu0 %v8346_v42, %s19203_s16  ;;  %v7791_v56 = vmul.f32 %v7759_v20, %v18116_v37  ;;  %12727 = vmatprep.subr.bf16.mxu0 %v13391_v61  ;;  %v7244_v42 = vmul.f32 0.5, %v17954_v21  ;;  %v7853_v20 = vmul.f32 1.442695, %v7792_v45  ;;  %v7249_v23 = vmul.f32 0.5, %v18021_v55 }
 0x9e0   : > { %v7916_v43 = vsub.f32 1.0, %v7884_v48  ;;  %v7979_v38 = vsub.f32 0.0, %v7915_v47  ;;  %v8362_v8 = vpop.permute.xlu0 %8361  ;;  %v7570_v10 = vadd.f32 1.4214138, %v7538_v44  ;;  %v7601_v30 = vmul.f32 %v18136_v57, %v7569_v58 }
 0x9e1   : > { %v18182_v52 = vsel %vm15234_vm1, %v8362_v8, %v8285_v4  ;;  %v18199_v35 = vpop.eup %13792  ;;  %v7851_v17 = vmul.f32 1.442695, %v7791_v56  ;;  %vm7951_vm8 = vcmp.lt.f32.partialorder %v18100_v39, 0.0  ;;  %vm7952_vm9 = vcmp.lt.f32.partialorder %v18103_v16, 0.0  ;;  %v8287_v39 = vld [vmem:[#allocation3 + $0x28] sm:$0xff] }
 0x9e2   : > { %v7980_v19 = vsub.f32 0.0, %v7916_v43  ;;  %v8011_v32 = vsel %vm7947_vm5, %v7979_v38, %v7915_v47  ;;  %8414 = vst [vmem:[#allocation3 + $0x20] sm:$0xff] %v18182_v52  ;;  %v7602_v36 = vmul.f32 %v18139_v50, %v7570_v10  ;;  %v7633_v59 = vadd.f32 -0.28449672, %v7601_v30  ;;  %12728 = vmatpush3.bf16.msra.mxu0 %v13391_v61 }
 0x9e3   : > { %v8043_v14 = vadd.f32 1.0, %v8011_v32  ;;  %v18202_v60 = vpop.eup %13794  ;;  %v7471_v48 = vmul.f32 1.0614054, %v18199_v35  ;;  %12729 = vmatprep.subr.bf16.mxu0 %v13392_v26  ;;  %13800 = vpow2.f32 %v7851_v17 }
 0x9e4   : > { %v8012_v51 = vsel %vm7948_vm6, %v7980_v19, %v7916_v43  ;;  %v7634_v40 = vadd.f32 -0.28449672, %v7602_v36  ;;  %v7665_v46 = vmul.f32 %v18136_v57, %v7633_v59  ;;  %v7472_v21 = vmul.f32 1.0614054, %v18202_v60 }
 0x9e5   : > { %v8044_v22 = vadd.f32 1.0, %v8012_v51  ;;  %v8075_v54 = vmul.f32 %v8043_v14, %v7243_v41  ;;  %v7503_v28 = vadd.f32 -1.4531521, %v7471_v48  ;;  %v13797_v31 = vpop.eup %13796  ;;  %13802 = vpow2.f32 %v7853_v20  ;;  %v8281_v51 = vld [vmem:[#allocation3 + $0x18] sm:$0xff] }
 0x9e6   : > { %v7666_v0 = vmul.f32 %v18139_v50, %v7634_v40  ;;  %v7697_v1 = vadd.f32 0.2548296, %v7665_v46  ;;  %v7504_v18 = vadd.f32 -1.4531521, %v7472_v21  ;;  %12730 = vmatpush3.bf16.msra.mxu0 %v13392_v26  ;;  %v8282_v56 = vsel %vm15230_vm0, %v18125_v12, %v8281_v51 }
 0x9e7   : > { %v8076_v37 = vmul.f32 %v8044_v22, %v7244_v42  ;;  %v7535_v34 = vmul.f32 %v18199_v35, %v7503_v28  ;;  %12731 = vmatprep.subr.bf16.mxu0 %v13393_v25  ;;  %v13799_v4 = vpop.eup %13798  ;;  %v7250_v21 = vmul.f32 0.5, %v18024_v63 }
 0x9e8   : > { %v7698_v47 = vadd.f32 0.2548296, %v7666_v0  ;;  %v7729_v44 = vmul.f32 %v18136_v57, %v7697_v1  ;;  %v7536_v58 = vmul.f32 %v18202_v60, %v7504_v18  ;;  %v8343_v57 = vrot.slane %v8189_v11, 1 }
 0x9e9   : > { %v18208_v13 = vpack.c.bf16 %v8076_v37, %v8075_v54  ;;  %v7567_v49 = vadd.f32 1.4214138, %v7535_v34  ;;  %v8290_v34 = vld [vmem:[#allocation3 + $0x30] sm:$0xff] }
 0x9ea   : > { %v18218_v61 = vpop.permute.xlu1 %8235  ;;  %v7730_v38 = vmul.f32 %v18139_v50, %v7698_v47  ;;  %v7889_v10 = vmul.f32 %v13797_v31, %v7729_v44  ;;  %v7568_v30 = vadd.f32 1.4214138, %v7536_v58  ;;  %12732 = vmatpush3.bf16.msra.mxu0 %v13393_v25  ;;  %v8344_v45 = vor.u32 %v8343_v57, %v8186_v33 }
 0x9eb   : > { %v8200_v43 = vshrl.u32 %v18208_v13, 16  ;;  %8111 = vst.msk [vmem:[#allocation3 + $0x68] sm:$0xff] %vm900_vm2, %v18208_v13  ;;  %v8203_v19 = vshll.u32 %v18208_v13, 16  ;;  %v7599_v36 = vmul.f32 %v18199_v35, %v7567_v49  ;;  %v8291_v55 = vsel %vm15230_vm0, %v18149_v29, %v8290_v34  ;;  %v11799_v13 = vld [vmem:[%s19171_s10] ss:$0 sm:$0xff]  ;;  %v9544_v34 = vld [vmem:[#allocation5 + $0x38] sm:$0xff] }
 0x9ec   : > { %v7890_v32 = vmul.f32 %v13799_v4, %v7730_v38  ;;  %v7921_v14 = vsub.f32 1.0, %v7889_v10  ;;  %v7600_v42 = vmul.f32 %v18202_v60, %v7568_v30  ;;  %v8349_v29 = vrot.slane %v8210_v5, 1 }
 0x9ed   : > { %v8202_v8 = vrot.slane %v8200_v43, 7  ;;  %v7631_v59 = vadd.f32 -0.28449672, %v7599_v36  ;;  %v13801_v28 = vpop.eup %13800  ;;  %v7247_v36 = vmul.f32 0.5, %v18083_v24  ;;  %v8288_v5 = vsel %vm15230_vm0, %v18218_v61, %v8287_v39  ;;  %v9554_v39 = vld [vmem:[#allocation5 + $0x88] sm:$0xff] }
 0x9ee   : > { %v8360_v26 = vpop.permute.xlu1 %8359  ;;  %v7922_v41 = vsub.f32 1.0, %v7890_v32  ;;  %v7985_v22 = vsub.f32 0.0, %v7921_v14  ;;  %v7632_v40 = vadd.f32 -0.28449672, %v7600_v42 }
 0x9ef   : > { %v8205_v50 = vor.u32 %v8203_v19, %v8202_v8  ;;  %v18236_v11 = vsel %vm15234_vm1, %v8360_v26, %v8282_v56  ;;  %v7663_v37 = vmul.f32 %v18199_v35, %v7631_v59  ;;  %v13803_v18 = vpop.eup %13802  ;;  %v7248_v56 = vmul.f32 0.5, %v18086_v27 }
 0x9f0   : > { %8411 = vst [vmem:[#allocation3 + $0x18] sm:$0xff] %v18236_v11  ;;  %12697 = vmatprep.mubr.msk.bf16.mxu0 %vm440_vm11, %v18236_v11  ;;  %v7986_v12 = vsub.f32 0.0, %v7922_v41  ;;  %v8017_v54 = vsel %vm7953_vm3, %v7985_v22, %v7921_v14  ;;  %v7664_v0 = vmul.f32 %v18202_v60, %v7632_v40  ;;  %v13394_v40 = vld [vmem:[%s19170_s9 + $0x20] sm:$0xff]  }
 0x9f1   : > { %8251 = vrot.lane.b32.xlu1 %v8205_v50, %s19202_s17  ;;  %12698 = vmatmul.mubr.msk.bf16.gmra.mrb[100].mxu0 %vm440_vm11, %v18182_v52  ;;  %v8049_v48 = vadd.f32 1.0, %v8017_v54  ;;  %v7695_v1 = vadd.f32 0.2548296, %v7663_v37  ;;  %v8347_v54 = vrot.slane %v8203_v19, 1  ;;  %v9537_v37 = vld [vmem:[#allocation5] sm:$0xff] }
 0x9f2   : > { %v8018_v46 = vsel %vm7954_vm7, %v7986_v12, %v7922_v41  ;;  %v7696_v7 = vadd.f32 0.2548296, %v7664_v0  ;;  %v8350_v41 = vor.u32 %v8349_v29, %v8207_v2  ;;  %12733 = vmatprep.subr.bf16.mxu0 %v13394_v40  ;;  %v13395_v0 = vld [vmem:[%s19170_s9 + $0x28] sm:$0xff]   ;;  %v9550_v29 = vld [vmem:[#allocation5 + $0x68] sm:$0xff] }
 0x9f3   : > { %v8050_v17 = vadd.f32 1.0, %v8018_v46  ;;  %v8081_v6 = vmul.f32 %v8049_v48, %v7249_v23  ;;  %v7727_v47 = vmul.f32 %v18199_v35, %v7695_v1  ;;  %12734 = vmatpush3.bf16.msra.mxu0 %v13394_v40  ;;  %v8348_v46 = vor.u32 %v8347_v54, %v8200_v43  ;;  %v9539_v23 = vld [vmem:[#allocation5 + $0x10] sm:$0xff]  ;;  %v9562_v40 = vld [vmem:[#allocation5 + $0xc8] sm:$0xff]  ;;  %v9564_v54 = vld [vmem:[#allocation5 + $0xd8] sm:$0xff] }
 0x9f4   : > { %v7728_v20 = vmul.f32 %v18202_v60, %v7696_v7  ;;  %12735 = vmatprep.subr.bf16.mxu0 %v13395_v0  ;;  %v8296_v43 = vld [vmem:[#allocation3 + $0x40] sm:$0xff] }
 0x9f5   : > { %8375 = vrot.lane.b32.xlu1 %v8344_v45, %s19203_s16  ;;  %v18253_v33 = vpop.permute.xlu0 %8241  ;;  %v8082_v25 = vmul.f32 %v8050_v17, %v7250_v21  ;;  %v7887_v44 = vmul.f32 %v13801_v28, %v7727_v47  ;;  %v9541_v21 = vld [vmem:[#allocation5 + $0x20] sm:$0xff]  ;;  %v9543_v1 = vld [vmem:[#allocation5 + $0x30] sm:$0xff]  ;;  %v9538_v47 = vld [vmem:[#allocation5 + $0x8] sm:$0xff] }
 0x9f6   : > { %v7888_v38 = vmul.f32 %v13803_v18, %v7728_v20  ;;  %v8297_v28 = vsel %vm15230_vm0, %v18253_v33, %v8296_v43  ;;  %v9545_v18 = vld [vmem:[#allocation5 + $0x40] sm:$0xff]  ;;  %v9540_v33 = vld [vmem:[#allocation5 + $0x18] sm:$0xff]  ;;  %v9547_v20 = vld [vmem:[#allocation5 + $0x50] sm:$0xff] }
 0x9f7   : > { %v8098_v31 = vpack.c.bf16 %v8082_v25, %v8081_v6  ;;  %v7919_v4 = vsub.f32 1.0, %v7887_v44  ;;  %12736 = vmatpush3.bf16.msra.mxu0 %v13395_v0  ;;  %v18324_v25 = vld [vmem:[%s19170_s9 + $0x60] sm:$0xff]   ;;  %v9549_v44 = vld [vmem:[#allocation5 + $0x60] sm:$0xff] }
 0x9f8   : > { %v7920_v35 = vsub.f32 1.0, %v7888_v38  ;;  %12769 = vmatprep.subr.bf16.mxu0 %v18324_v25  ;;  %v9551_v38 = vld [vmem:[#allocation5 + $0x70] sm:$0xff] }
 0x9f9   : > { %v8366_v63 = vpop.permute.xlu0 %8365  ;;  %v8221_v58 = vshrl.u32 %v8098_v31, 16  ;;  %8114 = vst.msk [vmem:[#allocation3 + $0x80] sm:$0xff] %vm900_vm2, %v8098_v31  ;;  %v8224_v10 = vshll.u32 %v8098_v31, 16  ;;  %v7983_v49 = vsub.f32 0.0, %v7919_v4  ;;  %v9542_v31 = vld [vmem:[#allocation5 + $0x28] sm:$0xff] }
 0x9fa   : > { %v18263_v8 = vsel %vm15234_vm1, %v8366_v63, %v8291_v55  ;;  %v7984_v57 = vsub.f32 0.0, %v7920_v35  ;;  %v9546_v63 = vld [vmem:[#allocation5 + $0x48] sm:$0xff] }
 0x9fb   : > { %8420 = vst [vmem:[#allocation3 + $0x30] sm:$0xff] %v18263_v8  ;;  %v8223_v60 = vrot.slane %v8221_v58, 7  ;;  %v8015_v51 = vsel %vm7951_vm8, %v7983_v49, %v7919_v4  ;;  %v8353_v59 = vrot.slane %v8224_v10, 1  ;;  %v8293_v4 = vld [vmem:[#allocation3 + $0x38] sm:$0xff]  ;;  %v9548_v49 = vld [vmem:[#allocation5 + $0x58] sm:$0xff] }
 0x9fc   : > { %v8016_v50 = vsel %vm7952_vm9, %v7984_v57, %v7920_v35  ;;  %v8047_v14 = vadd.f32 1.0, %v8015_v51  ;;  %v9555_v57 = vld [vmem:[#allocation5 + $0x90] sm:$0xff]  ;;  %v9552_v51 = vld [vmem:[#allocation5 + $0x78] sm:$0xff] }
 0x9fd   : > { %v18269_v32 = vpop.permute.xlu1 %8239  ;;  %v8226_v30 = vor.u32 %v8224_v10, %v8223_v60  ;;  %v8048_v26 = vadd.f32 1.0, %v8016_v50  ;;  %v8354_v53 = vor.u32 %v8353_v59, %v8221_v58  ;;  %v9553_v58 = vld [vmem:[#allocation5 + $0x80] sm:$0xff]  ;;  %v9559_v50 = vld [vmem:[#allocation5 + $0xb0] sm:$0xff] }
 0x9fe   : > { %v8079_v16 = vmul.f32 %v8047_v14, %v7247_v36  ;;  %v8294_v35 = vsel %vm15230_vm0, %v18269_v32, %v8293_v4  ;;  %v9557_v32 = vld [vmem:[#allocation5 + $0xa0] sm:$0xff] }
 0x9ff   : > { %8257 = vrot.lane.b32.xlu0 %v8226_v30, %s19202_s17  ;;  %v8080_v22 = vmul.f32 %v8048_v26, %v7248_v56  ;;  %v8302_v14 = vld [vmem:[#allocation3 + $0x50] sm:$0xff] }
 0xa01   : > { %v8364_v42 = vpop.permute.xlu1 %8363  ;;  %v8097_v24 = vpack.c.bf16 %v8080_v22, %v8079_v16  ;;  %v9563_v16 = vld [vmem:[#allocation5 + $0xd0] sm:$0xff]  ;;  %v8299_v22 = vld [vmem:[#allocation3 + $0x48] sm:$0xff] }
 0xa02   : > { %v18282_v12 = vsel %vm15234_vm1, %v8364_v42, %v8288_v5  ;;  %v9556_v42 = vld [vmem:[#allocation5 + $0x98] sm:$0xff] }
 0xa03   : > { %8417 = vst [vmem:[#allocation3 + $0x28] sm:$0xff] %v18282_v12  ;;  %12701 = vmatprep.mubr.msk.bf16.mxu0 %vm440_vm11, %v18282_v12  ;;  %8381 = vrot.lane.b32.xlu0 %v8350_v41, %s19203_s16  ;;  %v8214_v27 = vshrl.u32 %v8097_v24, 16  ;;  %8113 = vst.msk [vmem:[#allocation3 + $0x78] sm:$0xff] %vm900_vm2, %v8097_v24  ;;  %v8217_v61 = vshll.u32 %v8097_v24, 16  ;;  %v9561_v41 = vld [vmem:[#allocation5 + $0xc0] sm:$0xff] }
 0xa04   : > { %12702 = vmatmul.mubr.msk.bf16.gmra.mrb[104].mxu0 %vm440_vm11, %v18263_v8 }
 0xa05   : > { %v8216_v2 = vrot.slane %v8214_v27, 7  ;;  %v8351_v48 = vrot.slane %v8217_v61, 1 }
 0xa07   : > { %8385 = vrot.lane.b32.xlu0 %v8354_v53, %s19203_s16  ;;  %v8219_v45 = vor.u32 %v8217_v61, %v8216_v2  ;;  %v8352_v19 = vor.u32 %v8351_v48, %v8214_v27  ;;  %v9558_v53 = vld [vmem:[#allocation5 + $0xa8] sm:$0xff]  ;;  %v9565_v2 = vld [vmem:[#allocation5 + $0xe0] sm:$0xff]  ;;  %v9560_v61 = vld [vmem:[#allocation5 + $0xb8] sm:$0xff] }
 0xa09   : > { %8255 = vrot.lane.b32.xlu1 %v8219_v45, %s19202_s17 }
 0xa0a   : > { %v8317_v4 = vld [vmem:[#allocation3 + $0x78] sm:$0xff] }
 0xa0b   : > { %9601 = vrot.lane.b32.xlu0 %v9537_v37, %s19202_s17  ;;  %v8308_v37 = vld [vmem:[#allocation3 + $0x60] sm:$0xff] }
 0xa0d   : > { %8379 = vrot.lane.b32.xlu1 %v8348_v46, %s19203_s16 }
 0xa0f   : > { %9605 = vrot.lane.b32.xlu0 %v9539_v23, %s19202_s17  ;;  %v9566_v23 = vld [vmem:[#allocation5 + $0xe8] sm:$0xff] }
 0xa11   : > { %8383 = vrot.lane.b32.xlu1 %v8352_v19, %s19203_s16 }
 0xa13   : > { %v8246_v17 = vpop.permute.xlu0 %8245  ;;  %9609 = vrot.lane.b32.xlu0 %v9541_v21, %s19202_s17  ;;  %v8305_v21 = vld [vmem:[#allocation3 + $0x58] sm:$0xff] }
 0xa14   : > { %v8303_v36 = vsel %vm15230_vm0, %v8246_v17, %v8302_v14 }
 0xa15   : > { %9502 = vrot.lane.b32.xlu1 %v11799_v13, %s19202_s17 }
 0xa17   : > { %v8370_v7 = vpop.permute.xlu0 %8369  ;;  %9613 = vrot.lane.b32.xlu0 %v9543_v1, %s19202_s17 }
 0xa18   : > { %v18318_v6 = vsel %vm15234_vm1, %v8370_v7, %v8297_v28  ;;  %v8314_v28 = vld [vmem:[#allocation3 + $0x70] sm:$0xff] }
 0xa19   : > { %8426 = vst [vmem:[#allocation3 + $0x40] sm:$0xff] %v18318_v6  ;;  %9603 = vrot.lane.b32.xlu1 %v9538_v47, %s19202_s17 }
 0xa1b   : > { %9617 = vrot.lane.b32.xlu0 %v9545_v18, %s19202_s17 }
 0xa1d   : > { %9607 = vrot.lane.b32.xlu1 %v9540_v33, %s19202_s17  ;;  %v8320_v33 = vld [vmem:[#allocation3 + $0x80] sm:$0xff] }
 0xa1f   : > { %9621 = vrot.lane.b32.xlu0 %v9547_v20, %s19202_s17 }
 0xa21   : > { %9611 = vrot.lane.b32.xlu1 %v9542_v31, %s19202_s17 }
 0xa23   : > { %9625 = vrot.lane.b32.xlu0 %v9549_v44, %s19202_s17 }
 0xa25   : > { %9615 = vrot.lane.b32.xlu1 %v9544_v34, %s19202_s17 }
 0xa27   : > { %9629 = vrot.lane.b32.xlu0 %v9551_v38, %s19202_s17  ;;  %v8311_v38 = vld [vmem:[#allocation3 + $0x68] sm:$0xff] }
 0xa28   : > { %v8244_v55 = vpop.permute.xlu1 %8243 }
 0xa29   : > { %9619 = vrot.lane.b32.xlu1 %v9546_v63, %s19202_s17  ;;  %v8300_v59 = vsel %vm15230_vm0, %v8244_v55, %v8299_v22 }
 0xa2b   : > { %9633 = vrot.lane.b32.xlu0 %v9553_v58, %s19202_s17 }
 0xa2c   : > { %v8368_v60 = vpop.permute.xlu1 %8367 }
 0xa2d   : > { %v18342_v10 = vsel %vm15234_vm1, %v8368_v60, %v8294_v35  ;;  %9623 = vrot.lane.b32.xlu1 %v9548_v49, %s19202_s17 }
 0xa2e   : > { %8423 = vst [vmem:[#allocation3 + $0x38] sm:$0xff] %v18342_v10  ;;  %12705 = vmatprep.mubr.msk.bf16.mxu0 %vm440_vm11, %v18342_v10 }
 0xa2f   : > { %12706 = vmatmul.mubr.msk.bf16.gmra.mrb[108].mxu0 %vm440_vm11, %v18318_v6  ;;  %9637 = vrot.lane.b32.xlu0 %v9555_v57, %s19202_s17  ;;  %v8451_v57 = vld [vmem:[#allocation3] sm:$0xff] }
 0xa31   : > { %9627 = vrot.lane.b32.xlu1 %v9550_v29, %s19202_s17  ;;  %v13397_v29 = vld [vmem:[%s19170_s9 + $0x68] sm:$0xff]  }
 0xa33   : > { %9641 = vrot.lane.b32.xlu0 %v9557_v32, %s19202_s17  ;;  %v13398_v32 = vld [vmem:[%s19170_s9 + $0x70] sm:$0xff]  }
 0xa35   : > { %v8250_v30 = vpop.permute.xlu0 %8249  ;;  %9631 = vrot.lane.b32.xlu1 %v9552_v51, %s19202_s17 }
 0xa36   : > { %v8309_v46 = vsel %vm15230_vm0, %v8250_v30, %v8308_v37  ;;  %v13399_v30 = vld [vmem:[%s19170_s9 + $0x78] sm:$0xff]  }
 0xa37   : > { %9645 = vrot.lane.b32.xlu0 %v9559_v50, %s19202_s17 }
 0xa39   : > { %v8374_v56 = vpop.permute.xlu0 %8373  ;;  %9635 = vrot.lane.b32.xlu1 %v9554_v39, %s19202_s17 }
 0xa3a   : > { %v18359_v26 = vsel %vm15234_vm1, %v8374_v56, %v8303_v36 }
 0xa3b   : > { %8432 = vst [vmem:[#allocation3 + $0x50] sm:$0xff] %v18359_v26  ;;  %9649 = vrot.lane.b32.xlu0 %v9561_v41, %s19202_s17 }
 0xa3d   : > { %v8248_v5 = vpop.permute.xlu1 %8247  ;;  %9639 = vrot.lane.b32.xlu1 %v9556_v42, %s19202_s17 }
 0xa3e   : > { %v8306_v17 = vsel %vm15230_vm0, %v8248_v5, %v8305_v21 }
 0xa3f   : > { %9653 = vrot.lane.b32.xlu0 %v9563_v16, %s19202_s17 }
 0xa41   : > { %v8372_v24 = vpop.permute.xlu1 %8371  ;;  %9643 = vrot.lane.b32.xlu1 %v9558_v53, %s19202_s17 }
 0xa42   : > { %v18370_v27 = vsel %vm15234_vm1, %v8372_v24, %v8300_v59 }
 0xa43   : > { %8429 = vst [vmem:[#allocation3 + $0x48] sm:$0xff] %v18370_v27  ;;  %12709 = vmatprep.mubr.msk.bf16.mxu0 %vm440_vm11, %v18370_v27  ;;  %9657 = vrot.lane.b32.xlu0 %v9565_v2, %s19202_s17 }
 0xa44   : > { %12710 = vmatmul.mubr.msk.bf16.gmra.mrb[112].mxu0 %vm440_vm11, %v18359_v26 }
 0xa45   : > { %9647 = vrot.lane.b32.xlu1 %v9560_v61, %s19202_s17 }
 0xa49   : > { %9651 = vrot.lane.b32.xlu1 %v9562_v40, %s19202_s17 }
 0xa4d   : > { %v8254_v45 = vpop.permute.xlu0 %8253  ;;  %9655 = vrot.lane.b32.xlu1 %v9564_v54, %s19202_s17 }
 0xa4e   : > { %v8315_v7 = vsel %vm15230_vm0, %v8254_v45, %v8314_v28 }
 0xa51   : > { %v8378_v48 = vpop.permute.xlu0 %8377  ;;  %9659 = vrot.lane.b32.xlu1 %v9566_v23, %s19202_s17 }
 0xa52   : > { %v18386_v0 = vsel %vm15234_vm1, %v8378_v48, %v8309_v46 }
 0xa53   : > { %8438 = vst [vmem:[#allocation3 + $0x60] sm:$0xff] %v18386_v0 }
 0xa63   : > { %v8252_v19 = vpop.permute.xlu1 %8251 }
 0xa64   : > { %v8312_v55 = vsel %vm15230_vm0, %v8252_v19, %v8311_v38  ;;  %v9567_v38 = vld [vmem:[#allocation5 + $0xf0] sm:$0xff] }
 0xa67   : > { %v8376_v13 = vpop.permute.xlu1 %8375 }
 0xa68   : > { %v18394_v43 = vsel %vm15234_vm1, %v8376_v13, %v8306_v17 }
 0xa69   : > { %8435 = vst [vmem:[#allocation3 + $0x58] sm:$0xff] %v18394_v43  ;;  %12713 = vmatprep.mubr.msk.bf16.mxu0 %vm440_vm11, %v18394_v43 }
 0xa6a   : > { %12714 = vmatmul.mubr.msk.bf16.gmra.mrb[116].mxu0 %vm440_vm11, %v18386_v0 }
 0xa71   : > { %v8258_v1 = vpop.permute.xlu0 %8257 }
 0xa72   : > { %v8321_v20 = vsel %vm15230_vm0, %v8258_v1, %v8320_v33 }
 0xa75   : > { %v8382_v47 = vpop.permute.xlu0 %8381 }
 0xa76   : > { %v18405_v18 = vsel %vm15234_vm1, %v8382_v47, %v8315_v7 }
 0xa77   : > { %8444 = vst [vmem:[#allocation3 + $0x70] sm:$0xff] %v18405_v18 }
 0xa79   : > { %v8386_v31 = vpop.permute.xlu0 %8385 }
 0xa7a   : > { %v18412_v44 = vsel %vm15234_vm1, %v8386_v31, %v8321_v20 }
 0xa7b   : > { %8450 = vst [vmem:[#allocation3 + $0x80] sm:$0xff] %v18412_v44  ;;  %v8256_v34 = vpop.permute.xlu1 %8255 }
 0xa7c   : > { %v8318_v35 = vsel %vm15230_vm0, %v8256_v34, %v8317_v4 }
 0xa7d   : > { %v18521_v59 = vpop.permute.xlu0 %9601 }
 0xa7f   : > { %v8380_v63 = vpop.permute.xlu1 %8379 }
 0xa80   : > { %v8440_v58 = vsel %vm15234_vm1, %v8380_v63, %v8312_v55  ;;  %v9568_v55 = vld [vmem:[#allocation5 + $0xf8] sm:$0xff] }
 0xa81   : > { %8441 = vst [vmem:[#allocation3 + $0x68] sm:$0xff] %v8440_v58  ;;  %12717 = vmatprep.mubr.msk.bf16.mxu0 %vm440_vm11, %v8440_v58  ;;  %v18527_v61 = vpop.permute.xlu0 %9605 }
 0xa82   : > { %12718 = vmatmul.mubr.msk.bf16.gmra.mrb[120].mxu0 %vm440_vm11, %v18405_v18 }
 0xa83   : > { %v8384_v60 = vpop.permute.xlu1 %8383 }
 0xa84   : > { %v8446_v49 = vsel %vm15234_vm1, %v8384_v60, %v8318_v35 }
 0xa85   : > { %8447 = vst [vmem:[#allocation3 + $0x78] sm:$0xff] %v8446_v49  ;;  %12721 = vmatprep.mubr.msk.bf16.mxu0 %vm440_vm11, %v8446_v49  ;;  %v18535_v37 = vpop.permute.xlu0 %9609 }
 0xa87   : > { %v18513_v39 = vpop.permute.xlu1 %9502 }
 0xa89   : > { %v18541_v19 = vpop.permute.xlu0 %9613 }
 0xa8a   : > { %12722 = vmatmul.mubr.msk.bf16.gmra.mrb[124].mxu0 %vm440_vm11, %v18412_v44 }
 0xa8b   : > { %12737 = vmatprep.mubr.msk.bf16.mxu0 %vm440_vm11, %v8451_v57  ;;  %v18517_v16 = vpop.permute.xlu1 %9603 }
 0xa8d   : > { %v18549_v28 = vpop.permute.xlu0 %9617 }
 0xa91   : > { %v18555_v20 = vpop.permute.xlu0 %9621 }
 0xa92   : > { %12738 = vmatmul.mubr.msk.bf16.vlgmr.msra.gmra.mrb[96].mxu0 %vm440_vm11, %v18167_v15  ;;  %v13400_v15 = vld [vmem:[%s19170_s9 + $0x80] sm:$0xff]  }
 0xa93   : > { %12770 = vmatpush3.bf16.msra.mxu0 %v18324_v25  ;;  %12741 = vmatprep.mubr.msk.bf16.mxu0 %vm440_vm11, %v18163_v62  ;;  %v13401_v25 = vld [vmem:[%s19170_s9 + $0x88] sm:$0xff]  }
 0xa94   : > { %12771 = vmatprep.subr.bf16.mxu0 %v13397_v29 }
 0xa95   : > { %v18563_v34 = vpop.permute.xlu0 %9625 }
 0xa97   : > { %12772 = vmatpush3.bf16.msra.mxu0 %v13397_v29 }
 0xa98   : > { %12773 = vmatprep.subr.bf16.mxu0 %v13398_v32 }
 0xa9a   : > { %12742 = vmatmul.mubr.msk.bf16.gmra.mrb[100].mxu0 %vm440_vm11, %v18236_v11 }
 0xa9b   : > { %12745 = vmatprep.mubr.msk.bf16.mxu0 %vm440_vm11, %v18182_v52  ;;  %12774 = vmatpush3.bf16.msra.mxu0 %v13398_v32 }
 0xa9c   : > { %12775 = vmatprep.subr.bf16.mxu0 %v13399_v30 }
 0xa9f   : > { %12776 = vmatpush3.bf16.msra.mxu0 %v13399_v30 }
 0xaa0   : > { %12777 = vmatprep.subr.bf16.mxu0 %v13400_v15 }
 0xaa2   : > { %12746 = vmatmul.mubr.msk.bf16.gmra.mrb[104].mxu0 %vm440_vm11, %v18282_v12 }
 0xaa3   : > { %12749 = vmatprep.mubr.msk.bf16.mxu0 %vm440_vm11, %v18263_v8  ;;  %12778 = vmatpush3.bf16.msra.mxu0 %v13400_v15 }
 0xaa4   : > { %12779 = vmatprep.subr.bf16.mxu0 %v13401_v25 }
 0xaa7   : > { %12780 = vmatpush3.bf16.msra.mxu0 %v13401_v25 }
 0xaaa   : > { %12750 = vmatmul.mubr.msk.bf16.gmra.mrb[108].mxu0 %vm440_vm11, %v18342_v10 }
 0xaab   : > { %12753 = vmatprep.mubr.msk.bf16.mxu0 %vm440_vm11, %v18318_v6 }
 0xab2   : > { %12754 = vmatmul.mubr.msk.bf16.gmra.mrb[112].mxu0 %vm440_vm11, %v18370_v27 }
 0xab3   : > { %12757 = vmatprep.mubr.msk.bf16.mxu0 %vm440_vm11, %v18359_v26 }
 0xaba   : > { %12758 = vmatmul.mubr.msk.bf16.gmra.mrb[116].mxu0 %vm440_vm11, %v18394_v43 }
 0xabb   : > { %12761 = vmatprep.mubr.msk.bf16.mxu0 %vm440_vm11, %v18386_v0 }
 0xac2   : > { %12762 = vmatmul.mubr.msk.bf16.gmra.mrb[120].mxu0 %vm440_vm11, %v8440_v58 }
 0xac3   : > { %12765 = vmatprep.mubr.msk.bf16.mxu0 %vm440_vm11, %v18405_v18 }
 0xaca   : > { %12766 = vmatmul.mubr.msk.bf16.gmra.mrb[124].mxu0 %vm440_vm11, %v8446_v49 }
 0xacb   : > { %12781 = vmatprep.mubr.msk.bf16.mxu0 %vm440_vm11, %v18163_v62  ;;  %v9013_v62 = vld [vmem:[#allocation3 + $0x88] sm:$0xff] }
 0xad2   : > { %12782 = vmatmul.mubr.msk.bf16.vlgmr.msra.gmra.mrb[96].mxu0 %vm440_vm11, %v18236_v11 }
 0xad3   : > { %12785 = vmatprep.mubr.msk.bf16.mxu0 %vm440_vm11, %v18182_v52 }
 0xada   : > { %12786 = vmatmul.mubr.msk.bf16.gmra.mrb[100].mxu0 %vm440_vm11, %v18282_v12 }
 0xadb   : > { %12789 = vmatprep.mubr.msk.bf16.mxu0 %vm440_vm11, %v18263_v8 }
 0xae2   : > { %12790 = vmatmul.mubr.msk.bf16.gmra.mrb[104].mxu0 %vm440_vm11, %v18342_v10 }
 0xae3   : > { %12793 = vmatprep.mubr.msk.bf16.mxu0 %vm440_vm11, %v18318_v6 }
 0xaea   : > { %12794 = vmatmul.mubr.msk.bf16.gmra.mrb[108].mxu0 %vm440_vm11, %v18370_v27  ;;  %v18525_v27 = vpop.permute.xlu1 %9607 }
 0xaeb   : > { %12797 = vmatprep.mubr.msk.bf16.mxu0 %vm440_vm11, %v18359_v26 }
 0xaee   : > { %v18531_v45 = vpop.permute.xlu1 %9611 }
 0xaf2   : > { %12798 = vmatmul.mubr.msk.bf16.gmra.mrb[112].mxu0 %vm440_vm11, %v18394_v43  ;;  %v18539_v23 = vpop.permute.xlu1 %9615 }
 0xaf3   : > { %12801 = vmatprep.mubr.msk.bf16.mxu0 %vm440_vm11, %v18386_v0 }
 0xaf6   : > { %v18545_v43 = vpop.permute.xlu1 %9619 }
 0xafa   : > { %12802 = vmatmul.mubr.msk.bf16.gmra.mrb[116].mxu0 %vm440_vm11, %v8440_v58  ;;  %v18553_v47 = vpop.permute.xlu1 %9623  ;;  %v18569_v58 = vpop.permute.xlu0 %9629 }
 0xafb   : > { %12805 = vmatprep.mubr.msk.bf16.mxu0 %vm440_vm11, %v18405_v18 }
 0xafe   : > { %v18573_v35 = vpop.permute.xlu0 %9633 }
 0xb02   : > { %12806 = vmatmul.mubr.msk.bf16.gmra.mrb[120].mxu0 %vm440_vm11, %v8446_v49  ;;  %v18577_v49 = vpop.permute.xlu0 %9637 }
 0xb03   : > { %12809 = vmatprep.mubr.msk.bf16.mxu0 %vm440_vm11, %v18412_v44  ;;  %v18559_v44 = vpop.permute.xlu1 %9627 }
 0xb06   : > { %v18581_v29 = vpop.permute.xlu0 %9641 }
 0xb07   : > { %v18567_v63 = vpop.permute.xlu1 %9631 }
 0xb0a   : > { %12810 = vmatmul.mubr.msk.bf16.gmra.mrb[124].mxu0 %vm440_vm11, %v9013_v62  ;;  %v18585_v30 = vpop.permute.xlu0 %9645 }
 0xb0b   : > { %v18571_v4 = vpop.permute.xlu1 %9635 }
 0xb0e   : > { %v18589_v25 = vpop.permute.xlu0 %9649 }
 0xb0f   : > { %v18575_v60 = vpop.permute.xlu1 %9639 }
 0xb13   : > { %v18579_v57 = vpop.permute.xlu1 %9643 }
 0xb17   : > { %v18583_v32 = vpop.permute.xlu1 %9647 }
 0xb1b   : > { %v18587_v15 = vpop.permute.xlu1 %9651 }
 0xb1f   : > { %v18591_v62 = vpop.permute.xlu1 %9655 }
 0xba5   : > { %v12783_v52 = vpop.f32.mrb[96].mxu0 }
 0xba6   : > { %9372 = vrot.lane.b32.xlu1 %v12783_v52, %s19202_s17  ;;  %v9145_v11 = vpop.f32.mrb[97].mxu0  ;;  %v18593_v52 = vpop.permute.xlu0 %9653 }
 0xba7   : > { %v12784_v8 = vpop.f32.mrb[98].mxu0 }
 0xba8   : > { %9374 = vrot.lane.b32.xlu0 %v12784_v8, %s19202_s17  ;;  %v9148_v12 = vpop.f32.mrb[99].mxu0 }
 0xbaa   : > { %9368 = vrot.lane.b32.xlu1 %v9145_v11, %s19202_s17  ;;  %v18595_v11 = vpop.permute.xlu1 %9659  ;;  %v18597_v8 = vpop.permute.xlu0 %9657 }
 0xbac   : > { %9370 = vrot.lane.b32.xlu0 %v9148_v12, %s19202_s17 }
 0xbad   : > { %v12787_v6 = vpop.f32.mrb[100].mxu0 }
 0xbae   : > { %v9161_v10 = vpop.f32.mrb[101].mxu0 }
 0xbaf   : > { %v12788_v51 = vpop.f32.mrb[102].mxu0 }
 0xbb0   : > { %9380 = vrot.lane.b32.xlu0 %v12787_v6, %s19202_s17  ;;  %9382 = vrot.lane.b32.xlu1 %v12788_v51, %s19202_s17  ;;  %v9164_v50 = vpop.f32.mrb[103].mxu0  ;;  %v9304_v51 = vld [vmem:[#allocation2] sm:$0xff] }
 0xbb4   : > { %9376 = vrot.lane.b32.xlu0 %v9161_v10, %s19202_s17  ;;  %9378 = vrot.lane.b32.xlu1 %v9164_v50, %s19202_s17  ;;  %v9306_v10 = vld [vmem:[#allocation2 + $0x10] sm:$0xff] }
 0xbb5   : > { %v12791_v14 = vpop.f32.mrb[104].mxu0 }
 0xbb6   : > { %v9177_v36 = vpop.f32.mrb[105].mxu0 }
 0xbb7   : > { %v12792_v56 = vpop.f32.mrb[106].mxu0 }
 0xbb8   : > { %9388 = vrot.lane.b32.xlu0 %v12791_v14, %s19202_s17  ;;  %9390 = vrot.lane.b32.xlu1 %v12792_v56, %s19202_s17  ;;  %v9180_v26 = vpop.f32.mrb[107].mxu0  ;;  %v9307_v56 = vld [vmem:[#allocation2 + $0x18] sm:$0xff] }
 0xbbc   : > { %9384 = vrot.lane.b32.xlu0 %v9177_v36, %s19202_s17  ;;  %9386 = vrot.lane.b32.xlu1 %v9180_v26, %s19202_s17  ;;  %v9305_v26 = vld [vmem:[#allocation2 + $0x8] sm:$0xff] }
 0xbbd   : > { %v12795_v41 = vpop.f32.mrb[108].mxu0 }
 0xbbe   : > { %v9193_v5 = vpop.f32.mrb[109].mxu0 }
 0xbbf   : > { %v12796_v42 = vpop.f32.mrb[110].mxu0 }
 0xbc0   : > { %9396 = vrot.lane.b32.xlu0 %v12795_v41, %s19202_s17  ;;  %9398 = vrot.lane.b32.xlu1 %v12796_v42, %s19202_s17  ;;  %v9196_v22 = vpop.f32.mrb[111].mxu0 }
 0xbc4   : > { %9392 = vrot.lane.b32.xlu0 %v9193_v5, %s19202_s17  ;;  %9394 = vrot.lane.b32.xlu1 %v9196_v22, %s19202_s17 }
 0xbc5   : > { %v12799_v24 = vpop.f32.mrb[112].mxu0 }
 0xbc6   : > { %v9209_v53 = vpop.f32.mrb[113].mxu0 }
 0xbc7   : > { %v12800_v2 = vpop.f32.mrb[114].mxu0 }
 0xbc8   : > { %9404 = vrot.lane.b32.xlu0 %v12799_v24, %s19202_s17  ;;  %9406 = vrot.lane.b32.xlu1 %v12800_v2, %s19202_s17  ;;  %v9212_v40 = vpop.f32.mrb[115].mxu0 }
 0xbcc   : > { %9400 = vrot.lane.b32.xlu0 %v9209_v53, %s19202_s17  ;;  %9402 = vrot.lane.b32.xlu1 %v9212_v40, %s19202_s17 }
 0xbcd   : > { %v12803_v54 = vpop.f32.mrb[116].mxu0 }
 0xbce   : > { %v9225_v46 = vpop.f32.mrb[117].mxu0 }
 0xbcf   : > { %v12804_v48 = vpop.f32.mrb[118].mxu0 }
 0xbd0   : > { %9412 = vrot.lane.b32.xlu0 %v12803_v54, %s19202_s17  ;;  %9414 = vrot.lane.b32.xlu1 %v12804_v48, %s19202_s17  ;;  %v9228_v0 = vpop.f32.mrb[119].mxu0 }
 0xbd4   : > { %9408 = vrot.lane.b32.xlu0 %v9225_v46, %s19202_s17  ;;  %9410 = vrot.lane.b32.xlu1 %v9228_v0, %s19202_s17 }
 0xbd5   : > { %v12807_v21 = vpop.f32.mrb[120].mxu0 }
 0xbd6   : > { %v9241_v17 = vpop.f32.mrb[121].mxu0 }
 0xbd7   : > { %v12808_v13 = vpop.f32.mrb[122].mxu0 }
 0xbd8   : > { %9420 = vrot.lane.b32.xlu0 %v12807_v21, %s19202_s17  ;;  %9422 = vrot.lane.b32.xlu1 %v12808_v13, %s19202_s17  ;;  %v9244_v1 = vpop.f32.mrb[123].mxu0  ;;  %v9310_v21 = vld [vmem:[#allocation2 + $0x30] sm:$0xff] }
 0xbdc   : > { %9416 = vrot.lane.b32.xlu0 %v9241_v17, %s19202_s17  ;;  %9418 = vrot.lane.b32.xlu1 %v9244_v1, %s19202_s17  ;;  %v9311_v17 = vld [vmem:[#allocation2 + $0x38] sm:$0xff] }
 0xbdd   : > { %v12811_v7 = vpop.f32.mrb[124].mxu0 }
 0xbde   : > { %v9257_v18 = vpop.f32.mrb[125].mxu0 }
 0xbdf   : > { %v12812_v33 = vpop.f32.mrb[126].mxu0 }
 0xbe0   : > { %9428 = vrot.lane.b32.xlu0 %v12811_v7, %s19202_s17  ;;  %9430 = vrot.lane.b32.xlu1 %v12812_v33, %s19202_s17  ;;  %v9260_v31 = vpop.f32.mrb[127].mxu0  ;;  %v9308_v7 = vld [vmem:[#allocation2 + $0x20] sm:$0xff] }
 0xbe4   : > { %9424 = vrot.lane.b32.xlu0 %v9257_v18, %s19202_s17  ;;  %9426 = vrot.lane.b32.xlu1 %v9260_v31, %s19202_s17  ;;  %v9309_v18 = vld [vmem:[#allocation2 + $0x28] sm:$0xff] }
 0xbe8   : > { %9661 = vrot.lane.b32.xlu0 %v9567_v38, %s19202_s17  ;;  %9663 = vrot.lane.b32.xlu1 %v9568_v55, %s19202_s17 }
 0xc18   : > { %v9373_v12 = vpop.permute.xlu1 %9372 }
 0xc19   : > { %v9466_v14 = vadd.f32 %v9373_v12, %v9306_v10 }
 0xc1a   : > { %v9375_v6 = vpop.permute.xlu0 %9374 }
 0xc1b   : > { %v9467_v5 = vadd.f32 %v9375_v6, %v9307_v56  ;;  %v9507_v24 = vadd.f32 %v18513_v39, %v9466_v14  ;;  %v9314_v14 = vld [vmem:[#allocation2 + $0x50] sm:$0xff] }
 0xc1c   : > { %v9369_v50 = vpop.permute.xlu1 %9368 }
 0xc1d   : > { %v9464_v36 = vadd.f32 %v9369_v50, %v9304_v51  ;;  %v9508_v46 = vadd.f32 %v18513_v39, %v9467_v5  ;;  %v9699_v0 = vadd.f32 %v18527_v61, %v9507_v24 }
 0xc1e   : > { %v9371_v41 = vpop.permute.xlu0 %9370 }
 0xc1f   : > { %v9505_v42 = vadd.f32 %v18513_v39, %v9464_v36  ;;  %v9465_v22 = vadd.f32 %v9371_v41, %v9305_v26  ;;  %v9700_v31 = vadd.f32 %v18525_v27, %v9508_v46  ;;  %v9315_v26 = vld [vmem:[#allocation2 + $0x58] sm:$0xff]  ;;  %v9312_v41 = vld [vmem:[#allocation2 + $0x40] sm:$0xff] }
 0xc21   : > { %v9697_v53 = vadd.f32 %v18521_v59, %v9505_v42  ;;  %v9506_v2 = vadd.f32 %v18513_v39, %v9465_v22  ;;  %v9313_v42 = vld [vmem:[#allocation2 + $0x48] sm:$0xff] }
 0xc22   : > { %v9381_v40 = vpop.permute.xlu0 %9380  ;;  %v9383_v54 = vpop.permute.xlu1 %9382 }
 0xc23   : > { %v9698_v48 = vadd.f32 %v18517_v16, %v9506_v2  ;;  %9761 = vrot.lane.b32.xlu0 %v9697_v53, %s13874_s22  ;;  %v9470_v13 = vadd.f32 %v9381_v40, %v9310_v21  ;;  %v9471_v1 = vadd.f32 %v9383_v54, %v9311_v17  ;;  %v9318_v21 = vld [vmem:[#allocation2 + $0x70] sm:$0xff]  ;;  %v9319_v17 = vld [vmem:[#allocation2 + $0x78] sm:$0xff] }
 0xc25   : > { %9763 = vrot.lane.b32.xlu1 %v9698_v48, %s13874_s22  ;;  %v9511_v12 = vadd.f32 %v18513_v39, %v9470_v13  ;;  %v9512_v6 = vadd.f32 %v18513_v39, %v9471_v1 }
 0xc26   : > { %v9377_v59 = vpop.permute.xlu0 %9376  ;;  %v9379_v33 = vpop.permute.xlu1 %9378 }
 0xc27   : > { %v9468_v38 = vadd.f32 %v9377_v59, %v9308_v7  ;;  %v9469_v55 = vadd.f32 %v9379_v33, %v9309_v18  ;;  %9765 = vrot.lane.b32.xlu0 %v9699_v0, %s13874_s22  ;;  %v9703_v36 = vadd.f32 %v18541_v19, %v9511_v12  ;;  %v9704_v56 = vadd.f32 %v18539_v23, %v9512_v6  ;;  %v9316_v7 = vld [vmem:[#allocation2 + $0x60] sm:$0xff]  ;;  %v9317_v18 = vld [vmem:[#allocation2 + $0x68] sm:$0xff] }
 0xc29   : > { %v9509_v16 = vadd.f32 %v18513_v39, %v9468_v38  ;;  %v9510_v61 = vadd.f32 %v18513_v39, %v9469_v55  ;;  %9767 = vrot.lane.b32.xlu1 %v9700_v31, %s13874_s22 }
 0xc2a   : > { %v9389_v10 = vpop.permute.xlu0 %9388  ;;  %v9391_v51 = vpop.permute.xlu1 %9390 }
 0xc2b   : > { %v9701_v50 = vadd.f32 %v18535_v37, %v9509_v16  ;;  %v9702_v27 = vadd.f32 %v18531_v45, %v9510_v61  ;;  %v9474_v24 = vadd.f32 %v9389_v10, %v9314_v14  ;;  %v9475_v53 = vadd.f32 %v9391_v51, %v9315_v26  ;;  %v9322_v51 = vld [vmem:[#allocation2 + $0x90] sm:$0xff]  ;;  %v9323_v14 = vld [vmem:[#allocation2 + $0x98] sm:$0xff]  ;;  %v9321_v26 = vld [vmem:[#allocation2 + $0x88] sm:$0xff] }
 0xc2d   : > { %9769 = vrot.lane.b32.xlu0 %v9701_v50, %s13874_s22  ;;  %9771 = vrot.lane.b32.xlu1 %v9702_v27, %s13874_s22  ;;  %v9515_v23 = vadd.f32 %v18513_v39, %v9474_v24  ;;  %v9516_v46 = vadd.f32 %v18513_v39, %v9475_v53 }
 0xc2e   : > { %v9385_v5 = vpop.permute.xlu0 %9384  ;;  %v9387_v22 = vpop.permute.xlu1 %9386 }
 0xc2f   : > { %v9472_v2 = vadd.f32 %v9385_v5, %v9312_v41  ;;  %v9473_v37 = vadd.f32 %v9387_v22, %v9313_v42  ;;  %v9707_v31 = vadd.f32 %v18555_v20, %v9515_v23  ;;  %v9708_v38 = vadd.f32 %v18553_v47, %v9516_v46  ;;  %v9324_v46 = vld [vmem:[#allocation2 + $0xa0] sm:$0xff] }
 0xc31   : > { %v9513_v45 = vadd.f32 %v18513_v39, %v9472_v2  ;;  %v9514_v40 = vadd.f32 %v18513_v39, %v9473_v37  ;;  %9773 = vrot.lane.b32.xlu0 %v9703_v36, %s13874_s22  ;;  %9775 = vrot.lane.b32.xlu1 %v9704_v56, %s13874_s22  ;;  %v9320_v36 = vld [vmem:[#allocation2 + $0x80] sm:$0xff] }
 0xc32   : > { %v9397_v19 = vpop.permute.xlu0 %9396  ;;  %v9399_v54 = vpop.permute.xlu1 %9398 }
 0xc33   : > { %v9705_v48 = vadd.f32 %v18549_v28, %v9513_v45  ;;  %v9706_v0 = vadd.f32 %v18545_v43, %v9514_v40  ;;  %v9478_v13 = vadd.f32 %v9397_v19, %v9318_v21  ;;  %v9479_v1 = vadd.f32 %v9399_v54, %v9319_v17  ;;  %v9326_v40 = vld [vmem:[#allocation2 + $0xb0] sm:$0xff]  ;;  %v9327_v19 = vld [vmem:[#allocation2 + $0xb8] sm:$0xff] }
 0xc35   : > { %9777 = vrot.lane.b32.xlu0 %v9705_v48, %s13874_s22  ;;  %9779 = vrot.lane.b32.xlu1 %v9706_v0, %s13874_s22  ;;  %v9519_v61 = vadd.f32 %v18513_v39, %v9478_v13  ;;  %v9520_v12 = vadd.f32 %v18513_v39, %v9479_v1  ;;  %v9325_v0 = vld [vmem:[#allocation2 + $0xa8] sm:$0xff] }
 0xc36   : > { %v9393_v59 = vpop.permute.xlu0 %9392  ;;  %v9395_v33 = vpop.permute.xlu1 %9394 }
 0xc37   : > { %v9476_v55 = vadd.f32 %v9393_v59, %v9316_v7  ;;  %v9477_v28 = vadd.f32 %v9395_v33, %v9317_v18  ;;  %v9711_v50 = vadd.f32 %v18569_v58, %v9519_v61  ;;  %v9712_v27 = vadd.f32 %v18567_v63, %v9520_v12  ;;  %v9329_v12 = vld [vmem:[#allocation2 + $0xc8] sm:$0xff] }
 0xc39   : > { %v9517_v43 = vadd.f32 %v18513_v39, %v9476_v55  ;;  %v9518_v16 = vadd.f32 %v18513_v39, %v9477_v28  ;;  %9781 = vrot.lane.b32.xlu0 %v9707_v31, %s13874_s22  ;;  %9783 = vrot.lane.b32.xlu1 %v9708_v38, %s13874_s22  ;;  %v9330_v38 = vld [vmem:[#allocation2 + $0xd0] sm:$0xff] }
 0xc3a   : > { %v9405_v6 = vpop.permute.xlu0 %9404  ;;  %v9407_v10 = vpop.permute.xlu1 %9406 }
 0xc3b   : > { %v9709_v20 = vadd.f32 %v18563_v34, %v9517_v43  ;;  %v9710_v47 = vadd.f32 %v18559_v44, %v9518_v16  ;;  %v9482_v5 = vadd.f32 %v9405_v6, %v9322_v51  ;;  %v9483_v42 = vadd.f32 %v9407_v10, %v9323_v14  ;;  %v9331_v43 = vld [vmem:[#allocation2 + $0xd8] sm:$0xff]  ;;  %v9328_v16 = vld [vmem:[#allocation2 + $0xc0] sm:$0xff] }
 0xc3d   : > { %9785 = vrot.lane.b32.xlu0 %v9709_v20, %s13874_s22  ;;  %9787 = vrot.lane.b32.xlu1 %v9710_v47, %s13874_s22  ;;  %v9523_v63 = vadd.f32 %v18513_v39, %v9482_v5  ;;  %v9524_v2 = vadd.f32 %v18513_v39, %v9483_v42 }
 0xc3e   : > { %v9401_v56 = vpop.permute.xlu0 %9400  ;;  %v9403_v41 = vpop.permute.xlu1 %9402 }
 0xc3f   : > { %v9480_v22 = vadd.f32 %v9401_v56, %v9320_v36  ;;  %v9481_v34 = vadd.f32 %v9403_v41, %v9321_v26  ;;  %v9715_v17 = vadd.f32 %v18577_v49, %v9523_v63  ;;  %v9716_v13 = vadd.f32 %v18575_v60, %v9524_v2  ;;  %v9332_v56 = vld [vmem:[#allocation2 + $0xe0] sm:$0xff]  ;;  %v9333_v41 = vld [vmem:[#allocation2 + $0xe8] sm:$0xff] }
 0xc41   : > { %v9521_v44 = vadd.f32 %v18513_v39, %v9480_v22  ;;  %v9522_v24 = vadd.f32 %v18513_v39, %v9481_v34  ;;  %9789 = vrot.lane.b32.xlu0 %v9711_v50, %s13874_s22  ;;  %9791 = vrot.lane.b32.xlu1 %v9712_v27, %s13874_s22  ;;  %v9334_v34 = vld [vmem:[#allocation2 + $0xf0] sm:$0xff] }
 0xc42   : > { %v9413_v58 = vpop.permute.xlu0 %9412  ;;  %v9415_v53 = vpop.permute.xlu1 %9414 }
 0xc43   : > { %v9713_v37 = vadd.f32 %v18573_v35, %v9521_v44  ;;  %v9714_v45 = vadd.f32 %v18571_v4, %v9522_v24  ;;  %v9486_v54 = vadd.f32 %v9413_v58, %v9326_v40  ;;  %v9487_v23 = vadd.f32 %v9415_v53, %v9327_v19  ;;  %v9335_v53 = vld [vmem:[#allocation2 + $0xf8] sm:$0xff] }
 0xc45   : > { %9793 = vrot.lane.b32.xlu0 %v9713_v37, %s13874_s22  ;;  %9795 = vrot.lane.b32.xlu1 %v9714_v45, %s13874_s22  ;;  %v9527_v59 = vadd.f32 %v18513_v39, %v9486_v54  ;;  %v9528_v18 = vadd.f32 %v18513_v39, %v9487_v23  ;;  %v13405_v23 = vld [vmem:[%s19172_s11 + $0x48] sm:$0xff]  }
 0xc46   : > { %v9409_v48 = vpop.permute.xlu0 %9408  ;;  %v9411_v21 = vpop.permute.xlu1 %9410 }
 0xc47   : > { %v9484_v1 = vadd.f32 %v9409_v48, %v9324_v46  ;;  %v9485_v35 = vadd.f32 %v9411_v21, %v9325_v0  ;;  %v9719_v55 = vadd.f32 %v18585_v30, %v9527_v59  ;;  %v9720_v28 = vadd.f32 %v18583_v32, %v9528_v18 }
 0xc49   : > { %v9525_v4 = vadd.f32 %v18513_v39, %v9484_v1  ;;  %v9526_v7 = vadd.f32 %v18513_v39, %v9485_v35  ;;  %9797 = vrot.lane.b32.xlu0 %v9715_v17, %s13874_s22  ;;  %9799 = vrot.lane.b32.xlu1 %v9716_v13, %s13874_s22  ;;  %v13406_v17 = vld [vmem:[%s19172_s11 + $0x50] sm:$0xff]  }
 0xc4a   : > { %v9421_v33 = vpop.permute.xlu0 %9420  ;;  %v9423_v31 = vpop.permute.xlu1 %9422 }
 0xc4b   : > { %v9717_v49 = vadd.f32 %v18581_v29, %v9525_v4  ;;  %v9718_v60 = vadd.f32 %v18579_v57, %v9526_v7  ;;  %v9490_v10 = vadd.f32 %v9421_v33, %v9330_v38  ;;  %v9491_v20 = vadd.f32 %v9423_v31, %v9331_v43 }
 0xc4d   : > { %9801 = vrot.lane.b32.xlu0 %v9717_v49, %s13874_s22  ;;  %9803 = vrot.lane.b32.xlu1 %v9718_v60, %s13874_s22  ;;  %v9531_v32 = vadd.f32 %v18513_v39, %v9490_v10  ;;  %v9532_v27 = vadd.f32 %v18513_v39, %v9491_v20 }
 0xc4e   : > { %v9417_v61 = vpop.permute.xlu0 %9416  ;;  %v9419_v6 = vpop.permute.xlu1 %9418 }
 0xc4f   : > { %v9488_v47 = vadd.f32 %v9417_v61, %v9328_v16  ;;  %v9489_v29 = vadd.f32 %v9419_v6, %v9329_v12  ;;  %v9723_v42 = vadd.f32 %v18593_v52, %v9531_v32  ;;  %v9724_v22 = vadd.f32 %v18591_v62, %v9532_v27 }
 0xc51   : > { %v9529_v57 = vadd.f32 %v18513_v39, %v9488_v47  ;;  %v9530_v51 = vadd.f32 %v18513_v39, %v9489_v29  ;;  %9805 = vrot.lane.b32.xlu0 %v9719_v55, %s13874_s22  ;;  %9807 = vrot.lane.b32.xlu1 %v9720_v28, %s13874_s22  ;;  %v13407_v29 = vld [vmem:[%s19172_s11 + $0x58] sm:$0xff]  }
 0xc52   : > { %v9429_v30 = vpop.permute.xlu0 %9428  ;;  %v9431_v50 = vpop.permute.xlu1 %9430 }
 0xc53   : > { %v9721_v14 = vadd.f32 %v18589_v25, %v9529_v57  ;;  %v9722_v36 = vadd.f32 %v18587_v15, %v9530_v51  ;;  %v9494_v58 = vadd.f32 %v9429_v30, %v9334_v34  ;;  %v9495_v25 = vadd.f32 %v9431_v50, %v9335_v53 }
 0xc55   : > { %9809 = vrot.lane.b32.xlu0 %v9721_v14, %s13874_s22  ;;  %9811 = vrot.lane.b32.xlu1 %v9722_v36, %s13874_s22  ;;  %v9535_v45 = vadd.f32 %v18513_v39, %v9494_v58  ;;  %v9536_v40 = vadd.f32 %v18513_v39, %v9495_v25 }
 0xc56   : > { %v9425_v26 = vpop.permute.xlu0 %9424  ;;  %v9427_v5 = vpop.permute.xlu1 %9426 }
 0xc57   : > { %v9492_v44 = vadd.f32 %v9425_v26, %v9332_v56  ;;  %v9493_v24 = vadd.f32 %v9427_v5, %v9333_v41 }
 0xc59   : > { %v9533_v15 = vadd.f32 %v18513_v39, %v9492_v44  ;;  %v9534_v63 = vadd.f32 %v18513_v39, %v9493_v24  ;;  %9813 = vrot.lane.b32.xlu0 %v9723_v42, %s13874_s22  ;;  %9815 = vrot.lane.b32.xlu1 %v9724_v22, %s13874_s22  ;;  %v13404_v39 = vld [vmem:[%s19172_s11 + $0x40] sm:$0xff]  }
 0xc5a   : > { %v9662_v37 = vpop.permute.xlu0 %9661  ;;  %v9664_v62 = vpop.permute.xlu1 %9663 }
 0xc5b   : > { %v9725_v2 = vadd.f32 %v18597_v8, %v9533_v15  ;;  %v9726_v52 = vadd.f32 %v18595_v11, %v9534_v63  ;;  %v9727_v19 = vadd.f32 %v9662_v37, %v9535_v45  ;;  %v9728_v54 = vadd.f32 %v9664_v62, %v9536_v40  ;;  %v13402_v11 = vld [vmem:[%s19172_s11 + $0x30] sm:$0xff]   ;;  %v13403_v8 = vld [vmem:[%s19172_s11 + $0x38] sm:$0xff]  }
 0xc5c   : > { %12813 = vmatprep.subr.bf16.mxu1 %v13402_v11 }
 0xc5d   : > { %9817 = vrot.lane.b32.xlu0 %v9725_v2, %s13874_s22  ;;  %9819 = vrot.lane.b32.xlu1 %v9726_v52, %s13874_s22 }
 0xc5e   : > { %12814 = vmatpush3.bf16.msra.mxu1 %v13402_v11  ;;  %v18759_v11 = vld [vmem:[%s19172_s11] sm:$0xff]  }
 0xc5f   : > { %12815 = vmatprep.subr.bf16.mxu1 %v13403_v8 }
 0xc61   : > { %9821 = vrot.lane.b32.xlu0 %v9727_v19, %s13874_s22  ;;  %9823 = vrot.lane.b32.xlu1 %v9728_v54, %s13874_s22  ;;  %s11331_s22 = sshll.u32 %s433_s30, 4  ;;  %s19113_s22 = int_to_ptr.vmem [resolvable:$true] %s11331_s22 }
 0xc62   : > { %12816 = vmatpush3.bf16.msra.mxu1 %v13403_v8 }
 0xc63   : > { %12817 = vmatprep.subr.bf16.mxu1 %v13404_v39 }
 0xc66   : > { %12818 = vmatpush3.bf16.msra.mxu1 %v13404_v39 }
 0xc67   : > { %12819 = vmatprep.subr.bf16.mxu1 %v13405_v23 }
 0xc6a   : > { %12820 = vmatpush3.bf16.msra.mxu1 %v13405_v23 }
 0xc6b   : > { %12821 = vmatprep.subr.bf16.mxu1 %v13406_v17 }
 0xc6e   : > { %12822 = vmatpush3.bf16.msra.mxu1 %v13406_v17 }
 0xc6f   : > { %12823 = vmatprep.subr.bf16.mxu1 %v13407_v29 }
 0xc72   : > { %12824 = vmatpush3.bf16.msra.mxu1 %v13407_v29 }
 0xc73   : > { %12857 = vmatprep.subr.bf16.mxu1 %v18759_v11 }
 0xc95   : > { %v9762_v46 = vpop.permute.xlu0 %9761 }
 0xc96   : > { %9857 = vst.msk [vmem:[#allocation5] sm:$0xff] %vm900_vm2, %v9762_v46 }
 0xc97   : > { %v9764_v48 = vpop.permute.xlu1 %9763 }
 0xc98   : > { %9858 = vst.msk [vmem:[#allocation5 + $0x8] sm:$0xff] %vm900_vm2, %v9764_v48 }
 0xc99   : > { %v9766_v0 = vpop.permute.xlu0 %9765 }
 0xc9a   : > { %9859 = vst.msk [vmem:[#allocation5 + $0x10] sm:$0xff] %vm900_vm2, %v9766_v0 }
 0xc9b   : > { %v9768_v21 = vpop.permute.xlu1 %9767 }
 0xc9c   : > { %9860 = vst.msk [vmem:[#allocation5 + $0x18] sm:$0xff] %vm900_vm2, %v9768_v21 }
 0xc9d   : > { %v9889_v35 = vld [vmem:[#allocation5] sm:$0xff] }
 0xc9f   : > { %v9770_v13 = vpop.permute.xlu0 %9769  ;;  %v9772_v1 = vpop.permute.xlu1 %9771  ;;  %v9890_v4 = vld [vmem:[#allocation5 + $0x8] sm:$0xff] }
 0xca0   : > { %9861 = vst.msk [vmem:[#allocation5 + $0x20] sm:$0xff] %vm900_vm2, %v9770_v13  ;;  %9862 = vst.msk [vmem:[#allocation5 + $0x28] sm:$0xff] %vm900_vm2, %v9772_v1  ;;  %v9921_v7 = vpack.c.bf16 %v9890_v4, %v9889_v35 }
 0xca1   : > { %v9891_v31 = vld [vmem:[#allocation5 + $0x10] sm:$0xff] }
 0xca2   : > { %v9954_v59 = vshrl.u32 %v9921_v7, 16  ;;  %9937 = vst.msk [vmem:[#allocation3 + $0x8] sm:$0xff] %vm900_vm2, %v9921_v7  ;;  %v9957_v38 = vshll.u32 %v9921_v7, 16 }
 0xca3   : > { %v9774_v18 = vpop.permute.xlu0 %9773  ;;  %v9776_v33 = vpop.permute.xlu1 %9775  ;;  %v9892_v49 = vld [vmem:[#allocation5 + $0x18] sm:$0xff] }
 0xca4   : > { %9863 = vst.msk [vmem:[#allocation5 + $0x30] sm:$0xff] %vm900_vm2, %v9774_v18  ;;  %9864 = vst.msk [vmem:[#allocation5 + $0x38] sm:$0xff] %vm900_vm2, %v9776_v33  ;;  %v9956_v60 = vrot.slane %v9954_v59, 7  ;;  %v9922_v55 = vpack.c.bf16 %v9892_v49, %v9891_v31  ;;  %v10161_v41 = vrot.slane %v9957_v38, 1 }
 0xca6   : > { %v9959_v28 = vor.u32 %v9957_v38, %v9956_v60  ;;  %v9961_v43 = vshrl.u32 %v9922_v55, 16  ;;  %9938 = vst.msk [vmem:[#allocation3 + $0x10] sm:$0xff] %vm900_vm2, %v9922_v55  ;;  %v9964_v20 = vshll.u32 %v9922_v55, 16  ;;  %v10162_v25 = vor.u32 %v10161_v41, %v9954_v59 }
 0xca7   : > { %v9778_v16 = vpop.permute.xlu0 %9777  ;;  %v9780_v61 = vpop.permute.xlu1 %9779  ;;  %v9893_v12 = vld [vmem:[#allocation5 + $0x20] sm:$0xff]  ;;  %v9894_v6 = vld [vmem:[#allocation5 + $0x28] sm:$0xff] }
 0xca8   : > { %9865 = vst.msk [vmem:[#allocation5 + $0x40] sm:$0xff] %vm900_vm2, %v9778_v16  ;;  %9866 = vst.msk [vmem:[#allocation5 + $0x48] sm:$0xff] %vm900_vm2, %v9780_v61  ;;  %10065 = vrot.lane.b32.xlu0 %v9959_v28, %s19202_s17  ;;  %v9963_v10 = vrot.slane %v9961_v43, 7  ;;  %v18721_v47 = vpack.c.bf16 %v9894_v6, %v9893_v12  ;;  %v10163_v63 = vrot.slane %v9964_v20, 1 }
 0xcaa   : > { %v9966_v57 = vor.u32 %v9964_v20, %v9963_v10  ;;  %v9968_v51 = vshrl.u32 %v18721_v47, 16  ;;  %9939 = vst.msk [vmem:[#allocation3 + $0x18] sm:$0xff] %vm900_vm2, %v18721_v47  ;;  %v9971_v36 = vshll.u32 %v18721_v47, 16  ;;  %v10164_v8 = vor.u32 %v10163_v63, %v9961_v43 }
 0xcab   : > { %v9782_v30 = vpop.permute.xlu0 %9781  ;;  %v9784_v50 = vpop.permute.xlu1 %9783  ;;  %v9895_v32 = vld [vmem:[#allocation5 + $0x30] sm:$0xff]  ;;  %v9896_v27 = vld [vmem:[#allocation5 + $0x38] sm:$0xff] }
 0xcac   : > { %9867 = vst.msk [vmem:[#allocation5 + $0x50] sm:$0xff] %vm900_vm2, %v9782_v30  ;;  %9868 = vst.msk [vmem:[#allocation5 + $0x58] sm:$0xff] %vm900_vm2, %v9784_v50  ;;  %10067 = vrot.lane.b32.xlu1 %v9966_v57, %s19202_s17  ;;  %v9970_v14 = vrot.slane %v9968_v51, 7  ;;  %v18733_v56 = vpack.c.bf16 %v9896_v27, %v9895_v32  ;;  %v10165_v23 = vrot.slane %v9971_v36, 1 }
 0xcae   : > { %v9973_v26 = vor.u32 %v9971_v36, %v9970_v14  ;;  %v9975_v5 = vshrl.u32 %v18733_v56, 16  ;;  %9940 = vst.msk [vmem:[#allocation3 + $0x20] sm:$0xff] %vm900_vm2, %v18733_v56  ;;  %v9978_v58 = vshll.u32 %v18733_v56, 16  ;;  %v10166_v4 = vor.u32 %v10165_v23, %v9968_v51 }
 0xcaf   : > { %v9786_v42 = vpop.permute.xlu0 %9785  ;;  %v9788_v22 = vpop.permute.xlu1 %9787  ;;  %v9897_v34 = vld [vmem:[#allocation5 + $0x40] sm:$0xff]  ;;  %v9898_v44 = vld [vmem:[#allocation5 + $0x48] sm:$0xff] }
 0xcb0   : > { %9869 = vst.msk [vmem:[#allocation5 + $0x60] sm:$0xff] %vm900_vm2, %v9786_v42  ;;  %9870 = vst.msk [vmem:[#allocation5 + $0x68] sm:$0xff] %vm900_vm2, %v9788_v22  ;;  %10069 = vrot.lane.b32.xlu0 %v9973_v26, %s19202_s17  ;;  %v9977_v24 = vrot.slane %v9975_v5, 7  ;;  %v18742_v53 = vpack.c.bf16 %v9898_v44, %v9897_v34  ;;  %v10167_v59 = vrot.slane %v9978_v58, 1 }
 0xcb2   : > { %v9980_v15 = vor.u32 %v9978_v58, %v9977_v24  ;;  %v9982_v2 = vshrl.u32 %v18742_v53, 16  ;;  %9941 = vst.msk [vmem:[#allocation3 + $0x28] sm:$0xff] %vm900_vm2, %v18742_v53  ;;  %v9985_v19 = vshll.u32 %v18742_v53, 16  ;;  %v10168_v43 = vor.u32 %v10167_v59, %v9975_v5 }
 0xcb3   : > { %v9790_v52 = vpop.permute.xlu0 %9789  ;;  %v9792_v37 = vpop.permute.xlu1 %9791  ;;  %v9899_v62 = vld [vmem:[#allocation5 + $0x50] sm:$0xff]  ;;  %v9900_v45 = vld [vmem:[#allocation5 + $0x58] sm:$0xff] }
 0xcb4   : > { %9871 = vst.msk [vmem:[#allocation5 + $0x70] sm:$0xff] %vm900_vm2, %v9790_v52  ;;  %9872 = vst.msk [vmem:[#allocation5 + $0x78] sm:$0xff] %vm900_vm2, %v9792_v37  ;;  %10193 = vrot.lane.b32.xlu0 %v10162_v25, %s19203_s16  ;;  %10071 = vrot.lane.b32.xlu1 %v9980_v15, %s19202_s17  ;;  %v9984_v40 = vrot.slane %v9982_v2, 7  ;;  %v18754_v54 = vpack.c.bf16 %v9900_v45, %v9899_v62  ;;  %v10169_v61 = vrot.slane %v9985_v19, 1 }
 0xcb6   : > { %v9987_v39 = vor.u32 %v9985_v19, %v9984_v40  ;;  %v9989_v46 = vshrl.u32 %v18754_v54, 16  ;;  %9942 = vst.msk [vmem:[#allocation3 + $0x30] sm:$0xff] %vm900_vm2, %v18754_v54  ;;  %v9992_v1 = vshll.u32 %v18754_v54, 16  ;;  %v10170_v30 = vor.u32 %v10169_v61, %v9982_v2 }
 0xcb7   : > { %v9794_v48 = vpop.permute.xlu0 %9793  ;;  %v9796_v0 = vpop.permute.xlu1 %9795  ;;  %v9901_v21 = vld [vmem:[#allocation5 + $0x60] sm:$0xff]  ;;  %v9902_v17 = vld [vmem:[#allocation5 + $0x68] sm:$0xff] }
 0xcb8   : > { %9873 = vst.msk [vmem:[#allocation5 + $0x80] sm:$0xff] %vm900_vm2, %v9794_v48  ;;  %9874 = vst.msk [vmem:[#allocation5 + $0x88] sm:$0xff] %vm900_vm2, %v9796_v0  ;;  %10195 = vrot.lane.b32.xlu1 %v10164_v8, %s19203_s16  ;;  %10073 = vrot.lane.b32.xlu0 %v9987_v39, %s19202_s17  ;;  %v9991_v13 = vrot.slane %v9989_v46, 7  ;;  %v18770_v35 = vpack.c.bf16 %v9902_v17, %v9901_v21  ;;  %v10171_v32 = vrot.slane %v9992_v1, 1 }
 0xcba   : > { %v9994_v7 = vor.u32 %v9992_v1, %v9991_v13  ;;  %v9996_v18 = vshrl.u32 %v18770_v35, 16  ;;  %9943 = vst.msk [vmem:[#allocation3 + $0x38] sm:$0xff] %vm900_vm2, %v18770_v35  ;;  %v9999_v55 = vshll.u32 %v18770_v35, 16  ;;  %v10172_v22 = vor.u32 %v10171_v32, %v9989_v46 }
 0xcbb   : > { %v9798_v33 = vpop.permute.xlu0 %9797  ;;  %v9800_v31 = vpop.permute.xlu1 %9799  ;;  %v9903_v49 = vld [vmem:[#allocation5 + $0x70] sm:$0xff]  ;;  %v9904_v60 = vld [vmem:[#allocation5 + $0x78] sm:$0xff] }
 0xcbc   : > { %9875 = vst.msk [vmem:[#allocation5 + $0x90] sm:$0xff] %vm900_vm2, %v9798_v33  ;;  %9876 = vst.msk [vmem:[#allocation5 + $0x98] sm:$0xff] %vm900_vm2, %v9800_v31  ;;  %10197 = vrot.lane.b32.xlu0 %v10166_v4, %s19203_s16  ;;  %10075 = vrot.lane.b32.xlu1 %v9994_v7, %s19202_s17  ;;  %v9998_v38 = vrot.slane %v9996_v18, 7  ;;  %v18780_v28 = vpack.c.bf16 %v9904_v60, %v9903_v49  ;;  %v10173_v44 = vrot.slane %v9999_v55, 1 }
 0xcbe   : > { %v10001_v16 = vor.u32 %v9999_v55, %v9998_v38  ;;  %v10003_v12 = vshrl.u32 %v18780_v28, 16  ;;  %9944 = vst.msk [vmem:[#allocation3 + $0x40] sm:$0xff] %vm900_vm2, %v18780_v28  ;;  %v10006_v57 = vshll.u32 %v18780_v28, 16  ;;  %v10174_v37 = vor.u32 %v10173_v44, %v9996_v18 }
 0xcbf   : > { %v9802_v6 = vpop.permute.xlu0 %9801  ;;  %v9804_v10 = vpop.permute.xlu1 %9803  ;;  %v9905_v20 = vld [vmem:[#allocation5 + $0x80] sm:$0xff]  ;;  %v9906_v47 = vld [vmem:[#allocation5 + $0x88] sm:$0xff] }
 0xcc0   : > { %9877 = vst.msk [vmem:[#allocation5 + $0xa0] sm:$0xff] %vm900_vm2, %v9802_v6  ;;  %9878 = vst.msk [vmem:[#allocation5 + $0xa8] sm:$0xff] %vm900_vm2, %v9804_v10  ;;  %10199 = vrot.lane.b32.xlu1 %v10168_v43, %s19203_s16  ;;  %10077 = vrot.lane.b32.xlu0 %v10001_v16, %s19202_s17  ;;  %v10005_v29 = vrot.slane %v10003_v12, 7  ;;  %v18790_v51 = vpack.c.bf16 %v9906_v47, %v9905_v20  ;;  %v10175_v45 = vrot.slane %v10006_v57, 1 }
 0xcc2   : > { %v10008_v50 = vor.u32 %v10006_v57, %v10005_v29  ;;  %v10010_v27 = vshrl.u32 %v18790_v51, 16  ;;  %9945 = vst.msk [vmem:[#allocation3 + $0x48] sm:$0xff] %vm900_vm2, %v18790_v51  ;;  %v10013_v5 = vshll.u32 %v18790_v51, 16  ;;  %v10176_v0 = vor.u32 %v10175_v45, %v10003_v12 }
 0xcc3   : > { %v9806_v14 = vpop.permute.xlu0 %9805  ;;  %v9808_v36 = vpop.permute.xlu1 %9807  ;;  %v9907_v56 = vld [vmem:[#allocation5 + $0x90] sm:$0xff]  ;;  %v9908_v26 = vld [vmem:[#allocation5 + $0x98] sm:$0xff] }
 0xcc4   : > { %9879 = vst.msk [vmem:[#allocation5 + $0xb0] sm:$0xff] %vm900_vm2, %v9806_v14  ;;  %9880 = vst.msk [vmem:[#allocation5 + $0xb8] sm:$0xff] %vm900_vm2, %v9808_v36  ;;  %10201 = vrot.lane.b32.xlu0 %v10170_v30, %s19203_s16  ;;  %10079 = vrot.lane.b32.xlu1 %v10008_v50, %s19202_s17  ;;  %v10012_v41 = vrot.slane %v10010_v27, 7  ;;  %v18802_v42 = vpack.c.bf16 %v9908_v26, %v9907_v56  ;;  %v10177_v17 = vrot.slane %v10013_v5, 1 }
 0xcc6   : > { %v10015_v34 = vor.u32 %v10013_v5, %v10012_v41  ;;  %v10017_v24 = vshrl.u32 %v18802_v42, 16  ;;  %9946 = vst.msk [vmem:[#allocation3 + $0x50] sm:$0xff] %vm900_vm2, %v18802_v42  ;;  %v10020_v2 = vshll.u32 %v18802_v42, 16  ;;  %v10178_v31 = vor.u32 %v10177_v17, %v10010_v27 }
 0xcc7   : > { %v9810_v58 = vpop.permute.xlu0 %9809  ;;  %v9812_v53 = vpop.permute.xlu1 %9811  ;;  %v9909_v25 = vld [vmem:[#allocation5 + $0xa0] sm:$0xff]  ;;  %v9910_v15 = vld [vmem:[#allocation5 + $0xa8] sm:$0xff] }
 0xcc8   : > { %9881 = vst.msk [vmem:[#allocation5 + $0xc0] sm:$0xff] %vm900_vm2, %v9810_v58  ;;  %9882 = vst.msk [vmem:[#allocation5 + $0xc8] sm:$0xff] %vm900_vm2, %v9812_v53  ;;  %10203 = vrot.lane.b32.xlu1 %v10172_v22, %s19203_s16  ;;  %10081 = vrot.lane.b32.xlu0 %v10015_v34, %s19202_s17  ;;  %v10019_v63 = vrot.slane %v10017_v24, 7  ;;  %v9931_v52 = vpack.c.bf16 %v9910_v15, %v9909_v25  ;;  %v10179_v60 = vrot.slane %v10020_v2, 1 }
 0xcca   : > { %v10022_v62 = vor.u32 %v10020_v2, %v10019_v63  ;;  %v10024_v40 = vshrl.u32 %v9931_v52, 16  ;;  %9947 = vst.msk [vmem:[#allocation3 + $0x58] sm:$0xff] %vm900_vm2, %v9931_v52  ;;  %v10027_v46 = vshll.u32 %v9931_v52, 16  ;;  %v10180_v10 = vor.u32 %v10179_v60, %v10017_v24 }
 0xccb   : > { %v9814_v19 = vpop.permute.xlu0 %9813  ;;  %v9816_v54 = vpop.permute.xlu1 %9815  ;;  %v9911_v8 = vld [vmem:[#allocation5 + $0xb0] sm:$0xff]  ;;  %v9912_v39 = vld [vmem:[#allocation5 + $0xb8] sm:$0xff] }
 0xccc   : > { %9883 = vst.msk [vmem:[#allocation5 + $0xd0] sm:$0xff] %vm900_vm2, %v9814_v19  ;;  %9884 = vst.msk [vmem:[#allocation5 + $0xd8] sm:$0xff] %vm900_vm2, %v9816_v54  ;;  %10205 = vrot.lane.b32.xlu0 %v10174_v37, %s19203_s16  ;;  %10083 = vrot.lane.b32.xlu1 %v10022_v62, %s19202_s17  ;;  %v10026_v23 = vrot.slane %v10024_v40, 7  ;;  %v9932_v48 = vpack.c.bf16 %v9912_v39, %v9911_v8  ;;  %v10181_v47 = vrot.slane %v10027_v46, 1  ;;  %v10113_v39 = vld [vmem:[#allocation3 + $0x8] sm:$0xff] }
 0xcce   : > { %v10029_v21 = vor.u32 %v10027_v46, %v10026_v23  ;;  %v10031_v13 = vshrl.u32 %v9932_v48, 16  ;;  %9948 = vst.msk [vmem:[#allocation3 + $0x60] sm:$0xff] %vm900_vm2, %v9932_v48  ;;  %v10034_v18 = vshll.u32 %v9932_v48, 16  ;;  %v10182_v27 = vor.u32 %v10181_v47, %v10024_v40  ;;  %v10128_v47 = vld [vmem:[#allocation3 + $0x30] sm:$0xff] }
 0xccf   : > { %v9818_v1 = vpop.permute.xlu0 %9817  ;;  %v9820_v35 = vpop.permute.xlu1 %9819  ;;  %v9913_v4 = vld [vmem:[#allocation5 + $0xc0] sm:$0xff]  ;;  %v9914_v7 = vld [vmem:[#allocation5 + $0xc8] sm:$0xff] }
 0xcd0   : > { %9885 = vst.msk [vmem:[#allocation5 + $0xe0] sm:$0xff] %vm900_vm2, %v9818_v1  ;;  %9886 = vst.msk [vmem:[#allocation5 + $0xe8] sm:$0xff] %vm900_vm2, %v9820_v35  ;;  %10207 = vrot.lane.b32.xlu1 %v10176_v0, %s19203_s16  ;;  %10085 = vrot.lane.b32.xlu0 %v10029_v21, %s19202_s17  ;;  %v10033_v59 = vrot.slane %v10031_v13, 7  ;;  %v9933_v33 = vpack.c.bf16 %v9914_v7, %v9913_v4  ;;  %v10183_v36 = vrot.slane %v10034_v18, 1  ;;  %v10116_v21 = vld [vmem:[#allocation3 + $0x10] sm:$0xff]  ;;  %v13409_v35 = vld [vmem:[%s19172_s11 + $0x8] sm:$0xff]  }
 0xcd1   : > { %v10119_v7 = vld [vmem:[#allocation3 + $0x18] sm:$0xff] }
 0xcd2   : > { %v10036_v49 = vor.u32 %v10034_v18, %v10033_v59  ;;  %v10038_v38 = vshrl.u32 %v9933_v33, 16  ;;  %9949 = vst.msk [vmem:[#allocation3 + $0x68] sm:$0xff] %vm900_vm2, %v9933_v33  ;;  %v10041_v12 = vshll.u32 %v9933_v33, 16  ;;  %v10184_v34 = vor.u32 %v10183_v36, %v10031_v13 }
 0xcd3   : > { %v9822_v55 = vpop.permute.xlu0 %9821  ;;  %v9824_v28 = vpop.permute.xlu1 %9823  ;;  %v9915_v43 = vld [vmem:[#allocation5 + $0xd0] sm:$0xff]  ;;  %v9916_v16 = vld [vmem:[#allocation5 + $0xd8] sm:$0xff] }
 0xcd4   : > { %9887 = vst.msk [vmem:[#allocation5 + $0xf0] sm:$0xff] %vm900_vm2, %v9822_v55  ;;  %9888 = vst.msk [vmem:[#allocation5 + $0xf8] sm:$0xff] %vm900_vm2, %v9824_v28  ;;  %10209 = vrot.lane.b32.xlu0 %v10178_v31, %s19203_s16  ;;  %10087 = vrot.lane.b32.xlu1 %v10036_v49, %s19202_s17  ;;  %v10040_v61 = vrot.slane %v10038_v38, 7  ;;  %v9934_v6 = vpack.c.bf16 %v9916_v16, %v9915_v43  ;;  %v10185_v24 = vrot.slane %v10041_v12, 1  ;;  %v13410_v31 = vld [vmem:[%s19172_s11 + $0x10] sm:$0xff]   ;;  %v13411_v28 = vld [vmem:[%s19172_s11 + $0x18] sm:$0xff]  }
 0xcd5   : > { %v10125_v16 = vld [vmem:[#allocation3 + $0x28] sm:$0xff] }
 0xcd6   : > { %v10043_v20 = vor.u32 %v10041_v12, %v10040_v61  ;;  %v10045_v29 = vshrl.u32 %v9934_v6, 16  ;;  %9950 = vst.msk [vmem:[#allocation3 + $0x70] sm:$0xff] %vm900_vm2, %v9934_v6  ;;  %v10048_v50 = vshll.u32 %v9934_v6, 16  ;;  %v10186_v15 = vor.u32 %v10185_v24, %v10038_v38 }
 0xcd7   : > { %v9917_v57 = vld [vmem:[#allocation5 + $0xe0] sm:$0xff]  ;;  %v9918_v51 = vld [vmem:[#allocation5 + $0xe8] sm:$0xff] }
 0xcd8   : > { %10211 = vrot.lane.b32.xlu1 %v10180_v10, %s19203_s16  ;;  %10089 = vrot.lane.b32.xlu0 %v10043_v20, %s19202_s17  ;;  %v10047_v30 = vrot.slane %v10045_v29, 7  ;;  %v9935_v32 = vpack.c.bf16 %v9918_v51, %v9917_v57  ;;  %v10187_v52 = vrot.slane %v10048_v50, 1  ;;  %v13412_v10 = vld [vmem:[%s19172_s11 + $0x20] sm:$0xff]  }
 0xcda   : > { %v10050_v14 = vor.u32 %v10048_v50, %v10047_v30  ;;  %v10052_v56 = vshrl.u32 %v9935_v32, 16  ;;  %9951 = vst.msk [vmem:[#allocation3 + $0x78] sm:$0xff] %vm900_vm2, %v9935_v32  ;;  %v10055_v42 = vshll.u32 %v9935_v32, 16  ;;  %v10188_v62 = vor.u32 %v10187_v52, %v10045_v29  ;;  %v13413_v30 = vld [vmem:[%s19172_s11 + $0x28] sm:$0xff]   ;;  %v10131_v32 = vld [vmem:[#allocation3 + $0x38] sm:$0xff] }
 0xcdb   : > { %v9919_v26 = vld [vmem:[#allocation5 + $0xf0] sm:$0xff]  ;;  %v9920_v41 = vld [vmem:[#allocation5 + $0xf8] sm:$0xff] }
 0xcdc   : > { %10213 = vrot.lane.b32.xlu0 %v10182_v27, %s19203_s16  ;;  %10091 = vrot.lane.b32.xlu1 %v10050_v14, %s19202_s17  ;;  %v10054_v5 = vrot.slane %v10052_v56, 7  ;;  %v9936_v22 = vpack.c.bf16 %v9920_v41, %v9919_v26  ;;  %v10189_v2 = vrot.slane %v10055_v42, 1  ;;  %v10134_v41 = vld [vmem:[#allocation3 + $0x40] sm:$0xff] }
 0xcde   : > { %v10057_v44 = vor.u32 %v10055_v42, %v10054_v5  ;;  %v10059_v58 = vshrl.u32 %v9936_v22, 16  ;;  %9952 = vst.msk [vmem:[#allocation3 + $0x80] sm:$0xff] %vm900_vm2, %v9936_v22  ;;  %v10062_v25 = vshll.u32 %v9936_v22, 16  ;;  %v10190_v37 = vor.u32 %v10189_v2, %v10052_v56  ;;  %v18916_v56 = vld [vmem:[%s19172_s11 + $0x60] sm:$0xff]  }
 0xce0   : > { %10215 = vrot.lane.b32.xlu1 %v10184_v34, %s19203_s16  ;;  %10093 = vrot.lane.b32.xlu0 %v10057_v44, %s19202_s17  ;;  %v10061_v53 = vrot.slane %v10059_v58, 7  ;;  %v10191_v45 = vrot.slane %v10062_v25, 1  ;;  %v10137_v44 = vld [vmem:[#allocation3 + $0x48] sm:$0xff] }
 0xce2   : > { %v10064_v63 = vor.u32 %v10062_v25, %v10061_v53  ;;  %v10192_v40 = vor.u32 %v10191_v45, %v10059_v58 }
 0xce4   : > { %10217 = vrot.lane.b32.xlu0 %v10186_v15, %s19203_s16  ;;  %10095 = vrot.lane.b32.xlu1 %v10064_v63, %s19202_s17  ;;  %v10140_v15 = vld [vmem:[#allocation3 + $0x50] sm:$0xff]  ;;  %s13807_s17 = scalar_lea.vmem %s19113_s22, 1024 }
 0xce5   : > { %p13808_p11 = scmp.ne.s32.totalorder %s19113_s22, %s13807_s17 }
 0xce7   : > { %p13809_p12 = pnand %p13808_p11, %p13986_p5 }
 0xce8   : > { %10221 = vrot.lane.b32.xlu0 %v10190_v37, %s19203_s16  ;;  %10219 = vrot.lane.b32.xlu1 %v10188_v62, %s19203_s16  ;;  %v10143_v62 = vld [vmem:[#allocation3 + $0x58] sm:$0xff] }
 0xce9   : > { %p13810_p13 = pneg %p13809_p12 }
 0xcec   : > { %10223 = vrot.lane.b32.xlu1 %v10192_v40, %s19203_s16  ;;  %s13811_s16 = sshll.u32 %s13875_s29, 4  ;;  %s13812_s16 = int_to_ptr.vmem [resolvable:$false] %s13811_s16 }
 0xced   : > { %s13813_s15 = scalar_lea.vmem %s13812_s16, 2048  ;;  %p13814_p0 = scmp.lt.s32.totalorder %s19113_s22, %s13812_s16 }
 0xcee   : > { %p13815_p1 = scmp.lt.s32.totalorder %s13813_s15, %s13807_s17 }
 0xcf0   : > { %p13816_p2 = por %p13815_p1, %p13814_p0 }
 0xcf2   : > { %p13817_p3 = pnand %p13816_p2, %p13810_p13 }
 0xd1a   : > { %v10066_v19 = vpop.permute.xlu0 %10065 }
 0xd1b   : > { %v10114_v23 = vsel %vm15230_vm0, %v10066_v19, %v10113_v39 }
 0xd1e   : > { %v10068_v54 = vpop.permute.xlu1 %10067 }
 0xd1f   : > { %v10117_v17 = vsel %vm15230_vm0, %v10068_v54, %v10116_v21  ;;  %v10149_v21 = vld [vmem:[#allocation3 + $0x68] sm:$0xff] }
 0xd22   : > { %v10070_v8 = vpop.permute.xlu0 %10069 }
 0xd23   : > { %v10120_v59 = vsel %vm15230_vm0, %v10070_v8, %v10119_v7  ;;  %v10146_v8 = vld [vmem:[#allocation3 + $0x60] sm:$0xff]  ;;  %v10152_v7 = vld [vmem:[#allocation3 + $0x70] sm:$0xff] }
 0xd26   : > { %v10194_v46 = vpop.permute.xlu0 %10193  ;;  %v10072_v48 = vpop.permute.xlu1 %10071 }
 0xd27   : > { %v18845_v0 = vsel %vm15234_vm1, %v10194_v46, %v10114_v23 }
 0xd28   : > { %10243 = vst [vmem:[#allocation3 + $0x8] sm:$0xff] %v18845_v0  ;;  %12825 = vmatprep.mubr.msk.bf16.mxu1 %vm440_vm11, %v18845_v0 }
 0xd2a   : > { %v10074_v13 = vpop.permute.xlu0 %10073  ;;  %v10196_v1 = vpop.permute.xlu1 %10195 }
 0xd2b   : > { %v18857_v4 = vsel %vm15234_vm1, %v10196_v1, %v10117_v17  ;;  %v10126_v61 = vsel %vm15230_vm0, %v10074_v13, %v10125_v16 }
 0xd2c   : > { %10246 = vst [vmem:[#allocation3 + $0x10] sm:$0xff] %v18857_v4  ;;  %12826 = vmatmul.mubr.msk.bf16.vlgmr.msra.gmra.mrb[64].mxu1 %vm440_vm11, %v18857_v4 }
 0xd2d   : > { %12858 = vmatpush3.bf16.msra.mxu1 %v18759_v11  ;;  %v10122_v11 = vld [vmem:[#allocation3 + $0x20] sm:$0xff] }
 0xd2e   : > { %v10198_v18 = vpop.permute.xlu0 %10197  ;;  %v10076_v33 = vpop.permute.xlu1 %10075  ;;  %12859 = vmatprep.subr.bf16.mxu1 %v13409_v35  ;;  %v10123_v60 = vsel %vm15230_vm0, %v10072_v48, %v10122_v11 }
 0xd2f   : > { %v18870_v49 = vsel %vm15234_vm1, %v10198_v18, %v10120_v59  ;;  %v10129_v29 = vsel %vm15230_vm0, %v10076_v33, %v10128_v47  ;;  %v10155_v59 = vld [vmem:[#allocation3 + $0x78] sm:$0xff] }
 0xd30   : > { %10249 = vst [vmem:[#allocation3 + $0x18] sm:$0xff] %v18870_v49  ;;  %12829 = vmatprep.mubr.msk.bf16.mxu1 %vm440_vm11, %v18870_v49 }
 0xd31   : > { %12860 = vmatpush3.bf16.msra.mxu1 %v13409_v35 }
 0xd32   : > { %v10078_v38 = vpop.permute.xlu0 %10077  ;;  %v10200_v55 = vpop.permute.xlu1 %10199  ;;  %12861 = vmatprep.subr.bf16.mxu1 %v13410_v31 }
 0xd33   : > { %v18882_v43 = vsel %vm15234_vm1, %v10200_v55, %v10123_v60  ;;  %v10132_v27 = vsel %vm15230_vm0, %v10078_v38, %v10131_v32  ;;  %v10158_v55 = vld [vmem:[#allocation3 + $0x80] sm:$0xff]  ;;  %v11182_v32 = vld [vmem:[#allocation4 + $0x8] sm:$0xff] }
 0xd34   : > { %10252 = vst [vmem:[#allocation3 + $0x20] sm:$0xff] %v18882_v43  ;;  %12830 = vmatmul.mubr.msk.bf16.gmra.mrb[68].mxu1 %vm440_vm11, %v18882_v43 }
 0xd35   : > { %12862 = vmatpush3.bf16.msra.mxu1 %v13410_v31 }
 0xd36   : > { %v10202_v12 = vpop.permute.xlu0 %10201  ;;  %v10080_v6 = vpop.permute.xlu1 %10079  ;;  %12863 = vmatprep.subr.bf16.mxu1 %v13411_v28 }
 0xd37   : > { %v18894_v20 = vsel %vm15234_vm1, %v10202_v12, %v10126_v61  ;;  %v10135_v5 = vsel %vm15230_vm0, %v10080_v6, %v10134_v41  ;;  %v10289_v12 = vld [vmem:[#allocation3] sm:$0xff]  ;;  %v13415_v6 = vld [vmem:[%s19172_s11 + $0x68] sm:$0xff]  }
 0xd38   : > { %10255 = vst [vmem:[#allocation3 + $0x28] sm:$0xff] %v18894_v20  ;;  %12833 = vmatprep.mubr.msk.bf16.mxu1 %vm440_vm11, %v18894_v20  ;;  %v11183_v41 = vld [vmem:[#allocation4 + $0x10] sm:$0xff] }
 0xd39   : > { %12864 = vmatpush3.bf16.msra.mxu1 %v13411_v28 }
 0xd3a   : > { %v10082_v57 = vpop.permute.xlu0 %10081  ;;  %v10204_v51 = vpop.permute.xlu1 %10203  ;;  %12865 = vmatprep.subr.bf16.mxu1 %v13412_v10 }
 0xd3b   : > { %v18906_v50 = vsel %vm15234_vm1, %v10204_v51, %v10129_v29  ;;  %v10138_v24 = vsel %vm15230_vm0, %v10082_v57, %v10137_v44  ;;  %v11181_v57 = vld [vmem:[#allocation4] sm:$0xff] }
 0xd3c   : > { %10258 = vst [vmem:[#allocation3 + $0x30] sm:$0xff] %v18906_v50  ;;  %12834 = vmatmul.mubr.msk.bf16.gmra.mrb[72].mxu1 %vm440_vm11, %v18906_v50 }
 0xd3d   : > { %12866 = vmatpush3.bf16.msra.mxu1 %v13412_v10  ;;  %v13419_v10 = vld [vmem:[%s19172_s11 + $0x88] sm:$0xff]  }
 0xd3e   : > { %v10206_v14 = vpop.permute.xlu0 %10205  ;;  %v10084_v36 = vpop.permute.xlu1 %10083  ;;  %12867 = vmatprep.subr.bf16.mxu1 %v13413_v30 }
 0xd3f   : > { %v18920_v26 = vsel %vm15234_vm1, %v10206_v14, %v10132_v27  ;;  %v10141_v63 = vsel %vm15230_vm0, %v10084_v36, %v10140_v15  ;;  %v11185_v15 = vld [vmem:[#allocation4 + $0x20] sm:$0xff] }
 0xd40   : > { %10261 = vst [vmem:[#allocation3 + $0x38] sm:$0xff] %v18920_v26  ;;  %12837 = vmatprep.mubr.msk.bf16.mxu1 %vm440_vm11, %v18920_v26 }
 0xd41   : > { %12868 = vmatpush3.bf16.msra.mxu1 %v13413_v30 }
 0xd42   : > { %v10086_v42 = vpop.permute.xlu0 %10085  ;;  %v10208_v22 = vpop.permute.xlu1 %10207  ;;  %12901 = vmatprep.subr.bf16.mxu1 %v18916_v56 }
 0xd43   : > { %v18930_v34 = vsel %vm15234_vm1, %v10208_v22, %v10135_v5  ;;  %v10144_v45 = vsel %vm15230_vm0, %v10086_v42, %v10143_v62 }
 0xd44   : > { %10264 = vst [vmem:[#allocation3 + $0x40] sm:$0xff] %v18930_v34  ;;  %12838 = vmatmul.mubr.msk.bf16.gmra.mrb[76].mxu1 %vm440_vm11, %v18930_v34 }
 0xd46   : > { %v10210_v58 = vpop.permute.xlu0 %10209  ;;  %v10088_v53 = vpop.permute.xlu1 %10087 }
 0xd47   : > { %v18939_v25 = vsel %vm15234_vm1, %v10210_v58, %v10138_v24  ;;  %v10147_v39 = vsel %vm15230_vm0, %v10088_v53, %v10146_v8  ;;  %v11187_v8 = vld [vmem:[#allocation4 + $0x30] sm:$0xff] }
 0xd48   : > { %10267 = vst [vmem:[#allocation3 + $0x48] sm:$0xff] %v18939_v25  ;;  %12841 = vmatprep.mubr.msk.bf16.mxu1 %vm440_vm11, %v18939_v25 }
 0xd4a   : > { %v10090_v2 = vpop.permute.xlu0 %10089  ;;  %v10212_v52 = vpop.permute.xlu1 %10211 }
 0xd4b   : > { %v18948_v37 = vsel %vm15234_vm1, %v10212_v52, %v10141_v63  ;;  %v10150_v17 = vsel %vm15230_vm0, %v10090_v2, %v10149_v21 }
 0xd4c   : > { %10270 = vst [vmem:[#allocation3 + $0x50] sm:$0xff] %v18948_v37  ;;  %12842 = vmatmul.mubr.msk.bf16.gmra.mrb[80].mxu1 %vm440_vm11, %v18948_v37 }
 0xd4e   : > { %v10214_v40 = vpop.permute.xlu0 %10213  ;;  %v10092_v19 = vpop.permute.xlu1 %10091 }
 0xd4f   : > { %v18957_v54 = vsel %vm15234_vm1, %v10214_v40, %v10144_v45  ;;  %v10153_v18 = vsel %vm15230_vm0, %v10092_v19, %v10152_v7 }
 0xd50   : > { %10273 = vst [vmem:[#allocation3 + $0x58] sm:$0xff] %v18957_v54  ;;  %12845 = vmatprep.mubr.msk.bf16.mxu1 %vm440_vm11, %v18957_v54 }
 0xd52   : > { %v10094_v23 = vpop.permute.xlu0 %10093  ;;  %v10216_v46 = vpop.permute.xlu1 %10215 }
 0xd53   : > { %v18966_v48 = vsel %vm15234_vm1, %v10216_v46, %v10147_v39  ;;  %v10156_v33 = vsel %vm15230_vm0, %v10094_v23, %v10155_v59  ;;  %v11189_v59 = vld [vmem:[#allocation4 + $0x40] sm:$0xff] }
 0xd54   : > { %10276 = vst [vmem:[#allocation3 + $0x60] sm:$0xff] %v18966_v48  ;;  %12846 = vmatmul.mubr.msk.bf16.gmra.mrb[84].mxu1 %vm440_vm11, %v18966_v48 }
 0xd56   : > { %v10218_v13 = vpop.permute.xlu0 %10217  ;;  %v10096_v1 = vpop.permute.xlu1 %10095 }
 0xd57   : > { %v18975_v35 = vsel %vm15234_vm1, %v10218_v13, %v10150_v17  ;;  %v10159_v28 = vsel %vm15230_vm0, %v10096_v1, %v10158_v55  ;;  %v11190_v55 = vld [vmem:[#allocation4 + $0x48] sm:$0xff] }
 0xd58   : > { %10279 = vst [vmem:[#allocation3 + $0x68] sm:$0xff] %v18975_v35  ;;  %12849 = vmatprep.mubr.msk.bf16.mxu1 %vm440_vm11, %v18975_v35 }
 0xd5a   : > { %v10222_v31 = vpop.permute.xlu0 %10221  ;;  %v10220_v11 = vpop.permute.xlu1 %10219 }
 0xd5b   : > { %v10284_v60 = vsel %vm15234_vm1, %v10222_v31, %v10156_v33  ;;  %v10281_v38 = vsel %vm15234_vm1, %v10220_v11, %v10153_v18  ;;  %v11197_v18 = vld [vmem:[#allocation4 + $0x80] sm:$0xff] }
 0xd5c   : > { %10285 = vst [vmem:[#allocation3 + $0x78] sm:$0xff] %v10284_v60  ;;  %10282 = vst [vmem:[#allocation3 + $0x70] sm:$0xff] %v10281_v38  ;;  %12850 = vmatmul.mubr.msk.bf16.gmra.mrb[88].mxu1 %vm440_vm11, %v10281_v38 }
 0xd5d   : > { %12853 = vmatprep.mubr.msk.bf16.mxu1 %vm440_vm11, %v10284_v60 }
 0xd5e   : > { %v10224_v16 = vpop.permute.xlu1 %10223 }
 0xd5f   : > { %v10287_v61 = vsel %vm15234_vm1, %v10224_v16, %v10159_v28  ;;  %v11198_v28 = vld [vmem:[#allocation4 + $0x88] sm:$0xff] }
 0xd60   : > { %10288 = vst [vmem:[#allocation3 + $0x80] sm:$0xff] %v10287_v61 }
 0xd64   : > { %12854 = vmatmul.mubr.msk.bf16.gmra.mrb[92].mxu1 %vm440_vm11, %v10287_v61 }
 0xd65   : > { %12869 = vmatprep.mubr.msk.bf16.mxu1 %vm440_vm11, %v10289_v12 }
 0xd6c   : > { %12870 = vmatmul.mubr.msk.bf16.vlgmr.msra.gmra.mrb[64].mxu1 %vm440_vm11, %v18845_v0  ;;  %v13418_v0 = vld [vmem:[%s19172_s11 + $0x80] sm:$0xff]  }
 0xd6d   : > { %12902 = vmatpush3.bf16.msra.mxu1 %v18916_v56  ;;  %12873 = vmatprep.mubr.msk.bf16.mxu1 %vm440_vm11, %v18857_v4 }
 0xd6e   : > { %12903 = vmatprep.subr.bf16.mxu1 %v13415_v6 }
 0xd71   : > { %12904 = vmatpush3.bf16.msra.mxu1 %v13415_v6 }
 0xd72   : > { %12905 = vmatprep.subr.bf16.mxu1 %v13416_v9 }
 0xd74   : > { %12874 = vmatmul.mubr.msk.bf16.gmra.mrb[68].mxu1 %vm440_vm11, %v18870_v49 }
 0xd75   : > { %12877 = vmatprep.mubr.msk.bf16.mxu1 %vm440_vm11, %v18882_v43  ;;  %12906 = vmatpush3.bf16.msra.mxu1 %v13416_v9 }
 0xd76   : > { %12907 = vmatprep.subr.bf16.mxu1 %v13417_v3 }
 0xd79   : > { %12908 = vmatpush3.bf16.msra.mxu1 %v13417_v3 }
 0xd7a   : > { %12909 = vmatprep.subr.bf16.mxu1 %v13418_v0 }
 0xd7c   : > { %12878 = vmatmul.mubr.msk.bf16.gmra.mrb[72].mxu1 %vm440_vm11, %v18894_v20 }
 0xd7d   : > { %12881 = vmatprep.mubr.msk.bf16.mxu1 %vm440_vm11, %v18906_v50  ;;  %12910 = vmatpush3.bf16.msra.mxu1 %v13418_v0 }
 0xd7e   : > { %12911 = vmatprep.subr.bf16.mxu1 %v13419_v10 }
 0xd81   : > { %12912 = vmatpush3.bf16.msra.mxu1 %v13419_v10  ;;  %v11191_v10 = vld [vmem:[#allocation4 + $0x50] sm:$0xff] }
 0xd84   : > { %12882 = vmatmul.mubr.msk.bf16.gmra.mrb[76].mxu1 %vm440_vm11, %v18920_v26 }
 0xd85   : > { %12885 = vmatprep.mubr.msk.bf16.mxu1 %vm440_vm11, %v18930_v34 }
 0xd8c   : > { %12886 = vmatmul.mubr.msk.bf16.gmra.mrb[80].mxu1 %vm440_vm11, %v18939_v25 }
 0xd8d   : > { %12889 = vmatprep.mubr.msk.bf16.mxu1 %vm440_vm11, %v18948_v37 }
 0xd94   : > { %12890 = vmatmul.mubr.msk.bf16.gmra.mrb[84].mxu1 %vm440_vm11, %v18957_v54 }
 0xd95   : > { %12893 = vmatprep.mubr.msk.bf16.mxu1 %vm440_vm11, %v18966_v48 }
 0xd9c   : > { %12894 = vmatmul.mubr.msk.bf16.gmra.mrb[88].mxu1 %vm440_vm11, %v18975_v35 }
 0xd9d   : > { %12897 = vmatprep.mubr.msk.bf16.mxu1 %vm440_vm11, %v10281_v38 }
 0xda4   : > { %12898 = vmatmul.mubr.msk.bf16.gmra.mrb[92].mxu1 %vm440_vm11, %v10284_v60 }
 0xda5   : > { %12913 = vmatprep.mubr.msk.bf16.mxu1 %vm440_vm11, %v18857_v4  ;;  %v10851_v4 = vld [vmem:[#allocation3 + $0x88] sm:$0xff] }
 0xdac   : > { %12914 = vmatmul.mubr.msk.bf16.vlgmr.msra.gmra.mrb[64].mxu1 %vm440_vm11, %v18870_v49  ;;  %v19071_v49 = vld [vmem:[%s19173_s12] ss:$0 sm:$0xff] }
 0xdad   : > { %12917 = vmatprep.mubr.msk.bf16.mxu1 %vm440_vm11, %v18882_v43 }
 0xdb4   : > { %12918 = vmatmul.mubr.msk.bf16.gmra.mrb[68].mxu1 %vm440_vm11, %v18894_v20 }
 0xdb5   : > { %12921 = vmatprep.mubr.msk.bf16.mxu1 %vm440_vm11, %v18906_v50 }
 0xdbc   : > { %12922 = vmatmul.mubr.msk.bf16.gmra.mrb[72].mxu1 %vm440_vm11, %v18920_v26 }
 0xdbd   : > { %12925 = vmatprep.mubr.msk.bf16.mxu1 %vm440_vm11, %v18930_v34  ;;  %v11184_v34 = vld [vmem:[#allocation4 + $0x18] sm:$0xff] }
 0xdc4   : > { %12926 = vmatmul.mubr.msk.bf16.gmra.mrb[76].mxu1 %vm440_vm11, %v18939_v25 }
 0xdc5   : > { %12929 = vmatprep.mubr.msk.bf16.mxu1 %vm440_vm11, %v18948_v37  ;;  %v11186_v37 = vld [vmem:[#allocation4 + $0x28] sm:$0xff] }
 0xdcc   : > { %12930 = vmatmul.mubr.msk.bf16.gmra.mrb[80].mxu1 %vm440_vm11, %v18957_v54 }
 0xdcd   : > { %12933 = vmatprep.mubr.msk.bf16.mxu1 %vm440_vm11, %v18966_v48  ;;  %v11188_v48 = vld [vmem:[#allocation4 + $0x38] sm:$0xff] }
 0xdd4   : > { %12934 = vmatmul.mubr.msk.bf16.gmra.mrb[84].mxu1 %vm440_vm11, %v18975_v35 }
 0xdd5   : > { %12937 = vmatprep.mubr.msk.bf16.mxu1 %vm440_vm11, %v10281_v38 }
 0xddc   : > { %12938 = vmatmul.mubr.msk.bf16.gmra.mrb[88].mxu1 %vm440_vm11, %v10284_v60 }
 0xddd   : > { %12941 = vmatprep.mubr.msk.bf16.mxu1 %vm440_vm11, %v10287_v61 }
 0xde4   : > { %12942 = vmatmul.mubr.msk.bf16.gmra.mrb[92].mxu1 %vm440_vm11, %v10851_v4  ;;  %v11199_v4 = vld [vmem:[#allocation4 + $0x90] sm:$0xff] }
 0xe7f   : > { %v12915_v43 = vpop.f32.mrb[64].mxu1 }
 0xe80   : > { %v10983_v20 = vpop.f32.mrb[65].mxu1  ;;  %v11151_v27 = vadd.f32 %v12915_v43, %v19071_v49 }
 0xe81   : > { %v11149_v47 = vadd.f32 %v19071_v49, %v10983_v20  ;;  %v12916_v29 = vpop.f32.mrb[66].mxu1 }
 0xe82   : > { %v10986_v51 = vpop.f32.mrb[67].mxu1  ;;  %v11215_v42 = vadd.f32 %v11183_v41, %v11151_v27  ;;  %v11152_v22 = vadd.f32 %v12916_v29, %v19071_v49  ;;  %v11193_v41 = vld [vmem:[#allocation4 + $0x60] sm:$0xff] }
 0xe83   : > { %v11213_v30 = vadd.f32 %v11181_v57, %v11149_v47  ;;  %v11150_v50 = vadd.f32 %v19071_v49, %v10986_v51  ;;  %v11192_v51 = vld [vmem:[#allocation4 + $0x58] sm:$0xff] }
 0xe84   : > { %v11216_v44 = vadd.f32 %v11184_v34, %v11152_v22  ;;  %v11201_v34 = vld [vmem:[#allocation4 + $0xa0] sm:$0xff] }
 0xe85   : > { %11245 = vxpose.xlu0.b32.start [1/16] (narrow) %v11213_v30, 32  ;;  %v11214_v14 = vadd.f32 %v11182_v32, %v11150_v50  ;;  %v11200_v50 = vld [vmem:[#allocation4 + $0x98] sm:$0xff] }
 0xe87   : > { %v12919_v36 = vpop.f32.mrb[68].mxu1 }
 0xe88   : > { %v10999_v56 = vpop.f32.mrb[69].mxu1  ;;  %v11155_v62 = vadd.f32 %v12919_v36, %v19071_v49 }
 0xe89   : > { %v12920_v26 = vpop.f32.mrb[70].mxu1  ;;  %11246 = vxpose.xlu0.b32.cont [2/16] (narrow) %v11214_v14, 32  ;;  %v11153_v24 = vadd.f32 %v19071_v49, %v10999_v56 }
 0xe8a   : > { %v11002_v5 = vpop.f32.mrb[71].mxu1  ;;  %v11219_v23 = vadd.f32 %v11187_v8, %v11155_v62  ;;  %v11156_v46 = vadd.f32 %v12920_v26, %v19071_v49 }
 0xe8b   : > { %v11217_v2 = vadd.f32 %v11185_v15, %v11153_v24  ;;  %v11154_v52 = vadd.f32 %v19071_v49, %v11002_v5 }
 0xe8c   : > { %v11220_v21 = vadd.f32 %v11188_v48, %v11156_v46 }
 0xe8d   : > { %11247 = vxpose.xlu0.b32.cont [3/16] (narrow) %v11215_v42, 32  ;;  %v11218_v45 = vadd.f32 %v11186_v37, %v11154_v52  ;;  %v11202_v52 = vld [vmem:[#allocation4 + $0xa8] sm:$0xff] }
 0xe8f   : > { %v12923_v58 = vpop.f32.mrb[72].mxu1 }
 0xe90   : > { %v11015_v53 = vpop.f32.mrb[73].mxu1  ;;  %v11159_v16 = vadd.f32 %v12923_v58, %v19071_v49 }
 0xe91   : > { %v12924_v25 = vpop.f32.mrb[74].mxu1  ;;  %11248 = vxpose.xlu0.b32.cont [4/16] (narrow) %v11216_v44, 32  ;;  %v11157_v17 = vadd.f32 %v19071_v49, %v11015_v53 }
 0xe92   : > { %v11018_v63 = vpop.f32.mrb[75].mxu1  ;;  %v11223_v20 = vadd.f32 %v11191_v10, %v11159_v16  ;;  %v11160_v47 = vadd.f32 %v12924_v25, %v19071_v49 }
 0xe93   : > { %v11221_v31 = vadd.f32 %v11189_v59, %v11157_v17  ;;  %v11158_v11 = vadd.f32 %v19071_v49, %v11018_v63  ;;  %v11203_v17 = vld [vmem:[#allocation4 + $0xb0] sm:$0xff] }
 0xe94   : > { %v11224_v32 = vadd.f32 %v11192_v51, %v11160_v47 }
 0xe95   : > { %11249 = vxpose.xlu0.b32.cont [5/16] (narrow) %v11217_v2, 32  ;;  %v11222_v61 = vadd.f32 %v11190_v55, %v11158_v11  ;;  %v11194_v2 = vld [vmem:[#allocation4 + $0x68] sm:$0xff] }
 0xe96   : > { %v11206_v55 = vld [vmem:[#allocation4 + $0xc8] sm:$0xff] }
 0xe97   : > { %v19080_v40 = vpop.f32.mrb[76].mxu1 }
 0xe98   : > { %v11031_v19 = vpop.f32.mrb[77].mxu1  ;;  %v11163_v63 = vadd.f32 %v19080_v40, %v19071_v49 }
 0xe99   : > { %v19082_v54 = vpop.f32.mrb[78].mxu1  ;;  %11250 = vxpose.xlu0.b32.cont [6/16] (narrow) %v11218_v45, 32  ;;  %v11161_v30 = vadd.f32 %v19071_v49, %v11031_v19 }
 0xe9a   : > { %v11034_v39 = vpop.f32.mrb[79].mxu1 }
 0xe9b   : > { %v11225_v22 = vadd.f32 %v11193_v41, %v11161_v30  ;;  %v11162_v58 = vadd.f32 %v19071_v49, %v11034_v39 }
 0xe9d   : > { %11251 = vxpose.xlu0.b32.cont [7/16] (narrow) %v11219_v23, 32  ;;  %v11226_v37 = vadd.f32 %v11194_v2, %v11162_v58  ;;  %v11195_v23 = vld [vmem:[#allocation4 + $0x70] sm:$0xff] }
 0xe9f   : > { %v12931_v13 = vpop.f32.mrb[80].mxu1 }
 0xea0   : > { %v11047_v1 = vpop.f32.mrb[81].mxu1  ;;  %v11167_v12 = vadd.f32 %v12931_v13, %v19071_v49 }
 0xea1   : > { %v11165_v35 = vadd.f32 %v19071_v49, %v11047_v1  ;;  %v12932_v7 = vpop.f32.mrb[82].mxu1  ;;  %11252 = vxpose.xlu0.b32.cont [8/16] (narrow) %v11220_v21, 32  ;;  %v11227_v21 = vadd.f32 %v11195_v23, %v11163_v63  ;;  %v11164_v1 = vadd.f32 %v19082_v54, %v19071_v49  ;;  %v11207_v54 = vld [vmem:[#allocation4 + $0xd0] sm:$0xff] }
 0xea2   : > { %v11050_v33 = vpop.f32.mrb[83].mxu1  ;;  %v11231_v29 = vadd.f32 %v11199_v4, %v11167_v12  ;;  %v11168_v57 = vadd.f32 %v12932_v7, %v19071_v49  ;;  %v11209_v12 = vld [vmem:[#allocation4 + $0xe0] sm:$0xff]  ;;  %v11212_v4 = vld [vmem:[#allocation4 + $0xf8] sm:$0xff] }
 0xea3   : > { %v11229_v60 = vadd.f32 %v11197_v18, %v11165_v35  ;;  %v11166_v38 = vadd.f32 %v19071_v49, %v11050_v33  ;;  %v11196_v18 = vld [vmem:[#allocation4 + $0x78] sm:$0xff] }
 0xea4   : > { %v11232_v27 = vadd.f32 %v11200_v50, %v11168_v57  ;;  %v11204_v33 = vld [vmem:[#allocation4 + $0xb8] sm:$0xff] }
 0xea5   : > { %11277 = vxpose.xlu1.b32.start [1/16] (narrow) %v11229_v60, 32  ;;  %11253 = vxpose.xlu0.b32.cont [9/16] (narrow) %v11221_v31, 32  ;;  %v11230_v6 = vadd.f32 %v11198_v28, %v11166_v38  ;;  %v11228_v31 = vadd.f32 %v11196_v18, %v11164_v1  ;;  %v11205_v60 = vld [vmem:[#allocation4 + $0xc0] sm:$0xff] }
 0xea7   : > { %v12935_v9 = vpop.f32.mrb[84].mxu1 }
 0xea8   : > { %v11063_v3 = vpop.f32.mrb[85].mxu1  ;;  %v11171_v62 = vadd.f32 %v12935_v9, %v19071_v49  ;;  %v11210_v9 = vld [vmem:[#allocation4 + $0xe8] sm:$0xff] }
 0xea9   : > { %11278 = vxpose.xlu1.b32.cont [2/16] (narrow) %v11230_v6, 32  ;;  %v12936_v0 = vpop.f32.mrb[86].mxu1  ;;  %11254 = vxpose.xlu0.b32.cont [10/16] (narrow) %v11222_v61, 32  ;;  %v11169_v14 = vadd.f32 %v19071_v49, %v11063_v3  ;;  %v11208_v61 = vld [vmem:[#allocation4 + $0xd8] sm:$0xff] }
 0xeaa   : > { %v11066_v43 = vpop.f32.mrb[87].mxu1  ;;  %v11235_v35 = vadd.f32 %v11203_v17, %v11171_v62  ;;  %v11172_v7 = vadd.f32 %v12936_v0, %v19071_v49  ;;  %v11211_v0 = vld [vmem:[#allocation4 + $0xf0] sm:$0xff] }
 0xeab   : > { %v11233_v53 = vadd.f32 %v11201_v34, %v11169_v14  ;;  %v11170_v25 = vadd.f32 %v19071_v49, %v11066_v43 }
 0xeac   : > { %v11236_v11 = vadd.f32 %v11204_v33, %v11172_v7 }
 0xead   : > { %11279 = vxpose.xlu1.b32.cont [3/16] (narrow) %v11231_v29, 32  ;;  %11255 = vxpose.xlu0.b32.cont [11/16] (narrow) %v11223_v20, 32  ;;  %v11234_v45 = vadd.f32 %v11202_v52, %v11170_v25 }
 0xeaf   : > { %v12939_v36 = vpop.f32.mrb[88].mxu1 }
 0xeb0   : > { %v11175_v56 = vadd.f32 %v12939_v36, %v19071_v49  ;;  %v11079_v26 = vpop.f32.mrb[89].mxu1 }
 0xeb1   : > { %v11173_v5 = vadd.f32 %v19071_v49, %v11079_v26  ;;  %11280 = vxpose.xlu1.b32.cont [4/16] (narrow) %v11232_v27, 32  ;;  %v12940_v42 = vpop.f32.mrb[90].mxu1  ;;  %11256 = vxpose.xlu0.b32.cont [12/16] (narrow) %v11224_v32, 32 }
 0xeb2   : > { %v11176_v44 = vadd.f32 %v12940_v42, %v19071_v49  ;;  %v11082_v24 = vpop.f32.mrb[91].mxu1  ;;  %v11239_v16 = vadd.f32 %v11207_v54, %v11175_v56 }
 0xeb3   : > { %v11174_v15 = vadd.f32 %v19071_v49, %v11082_v24  ;;  %v11237_v38 = vadd.f32 %v11205_v60, %v11173_v5 }
 0xeb5   : > { %11281 = vxpose.xlu1.b32.cont [5/16] (narrow) %v11233_v53, 32  ;;  %11257 = vxpose.xlu0.b32.cont [13/16] (narrow) %v11225_v22, 32  ;;  %v11238_v28 = vadd.f32 %v11206_v55, %v11174_v15 }
 0xeb7   : > { %v12943_v19 = vpop.f32.mrb[92].mxu1 }
 0xeb8   : > { %v11179_v8 = vadd.f32 %v12943_v19, %v19071_v49  ;;  %v11095_v39 = vpop.f32.mrb[93].mxu1 }
 0xeb9   : > { %v11177_v46 = vadd.f32 %v19071_v49, %v11095_v39  ;;  %11282 = vxpose.xlu1.b32.cont [6/16] (narrow) %v11234_v45, 32  ;;  %v12944_v48 = vpop.f32.mrb[94].mxu1  ;;  %11258 = vxpose.xlu0.b32.cont [14/16] (narrow) %v11226_v37, 32 }
 0xeba   : > { %v11180_v40 = vadd.f32 %v12944_v48, %v19071_v49  ;;  %v11098_v13 = vpop.f32.mrb[95].mxu1  ;;  %v11243_v10 = vadd.f32 %v11211_v0, %v11179_v8 }
 0xebb   : > { %v11178_v59 = vadd.f32 %v19071_v49, %v11098_v13  ;;  %v11240_v49 = vadd.f32 %v11208_v61, %v11176_v44  ;;  %v11241_v6 = vadd.f32 %v11209_v12, %v11177_v46 }
 0xebc   : > { %v11244_v43 = vadd.f32 %v11212_v4, %v11180_v40 }
 0xebd   : > { %11283 = vxpose.xlu1.b32.cont [7/16] (narrow) %v11235_v35, 32  ;;  %11259 = vxpose.xlu0.b32.cont [15/16] (narrow) %v11227_v21, 32  ;;  %v11242_v3 = vadd.f32 %v11210_v9, %v11178_v59 }
 0xec1   : > { %11284 = vxpose.xlu1.b32.cont [8/16] (narrow) %v11236_v11, 32  ;;  %11260 = vxpose.xlu0.b32.end [16/16] (narrow) %v11228_v31, 32 }
 0xec5   : > { %11285 = vxpose.xlu1.b32.cont [9/16] (narrow) %v11237_v38, 32 }
 0xec9   : > { %11286 = vxpose.xlu1.b32.cont [10/16] (narrow) %v11238_v28, 32 }
 0xecd   : > { %11287 = vxpose.xlu1.b32.cont [11/16] (narrow) %v11239_v16, 32 }
 0xed1   : > { %11288 = vxpose.xlu1.b32.cont [12/16] (narrow) %v11240_v49, 32 }
 0xed5   : > { %11289 = vxpose.xlu1.b32.cont [13/16] (narrow) %v11241_v6, 32 }
 0xed9   : > { %11290 = vxpose.xlu1.b32.cont [14/16] (narrow) %v11242_v3, 32 }
 0xedd   : > { %11291 = vxpose.xlu1.b32.cont [15/16] (narrow) %v11243_v10, 32 }
 0xee1   : > { %11292 = vxpose.xlu1.b32.end [16/16] (narrow) %v11244_v43, 32 }
 0xf05   : > { %v11261_v20 = vpop.trf.xlu0 }
 0xf06   : > { %11309 = vst [vmem:[%s433_s30] sm:$0xff] %v11261_v20 }
 0xf09   : > { %v11262_v47 = vpop.trf.xlu0 }
 0xf0a   : > { %11311 = vst [vmem:[%s433_s30 + $0x10] sm:$0xff] %v11262_v47 }
 0xf0d   : > { %v11263_v29 = vpop.trf.xlu0 }
 0xf0e   : > { %11313 = vst [vmem:[%s433_s30 + $0x20] sm:$0xff] %v11263_v29 }
 0xf11   : > { %v11264_v57 = vpop.trf.xlu0 }
 0xf12   : > { %11315 = vst [vmem:[%s433_s30 + $0x30] sm:$0xff] %v11264_v57 }
 0xf25   : > { %v11293_v51 = vpop.trf.xlu1 }
 0xf26   : > { %11310 = vst [vmem:[%s433_s30 + $0x8] sm:$0xff] %v11293_v51 }
 0xf29   : > { %v11294_v30 = vpop.trf.xlu1 }
 0xf2a   : > { %11312 = vst [vmem:[%s433_s30 + $0x18] sm:$0xff] %v11294_v30 }
 0xf2d   : > { %v11295_v50 = vpop.trf.xlu1 }
 0xf2e   : > { %11314 = vst [vmem:[%s433_s30 + $0x28] sm:$0xff] %v11295_v50 }
 0xf31   : > { %v11296_v32 = vpop.trf.xlu1 }
 0xf32   : > { %11316 = vst [vmem:[%s433_s30 + $0x38] sm:$0xff] %v11296_v32 }
 0xf33   : > { %13820 = shalt.err (!%p13817_p3)
}
 0xf34   : > { %s13821_s24 = scalar_lea.hbm %s19118_s21, 1024  ;;  %s13825_s0 = scalar_lea.hbm %s19174_s13, 2048 }
 0xf35   : > { %p13822_p4 = scmp.ne.s32.totalorder %s19118_s21, %s13821_s24  ;;  %p13826_p9 = scmp.lt.u32.totalorder %s19118_s21, %s19174_s13 }
 0xf36   : > { %p13827_p10 = scmp.lt.u32.totalorder %s13825_s0, %s13821_s24  ;;  %p13829_p12 = scmp.lt.u32.totalorder %s13821_s24, %s19118_s21 }
 0xf37   : > { %p13823_p7 = pnand %p13822_p4, %p13986_p5 }
 0xf38   : > { %p13828_p11 = por %p13827_p10, %p13826_p9 }
 0xf39   : > { %p13824_p8 = pneg %p13823_p7 }
 0xf3a   : > { %p13830_p13 = por %p13829_p12, %p13828_p11 }
 0xf3c   : > { %p13831_p0 = pnand %p13830_p13, %p13824_p8 }
 0xf3e   : > { %13834 = shalt.err (!%p13831_p0)
}
 0xf3f   : > { %s13876_s17 = smov 256   ;;  %s13877_s16 = smov 16  }
 0xf40   : > { %13266 = dma.vmem_to_hbm [thread:$0]  (%p13986_p5), %s19113_s22, 1024, %s19118_s21, %s19120_s23, %s13876_s17, %s13876_s17, %s13877_s16  }
 0xf41 PF: > { %p13272_p1 = scmp.ge.s32.totalorder %s13869_s28, 2  ;;  %s11346_s15 = sand.u32 1, %s13857_s25  }
 0xf42   : > { %s11347_s24 = scalar_lea.sflag [#allocation7], %s11346_s15 }
 0xf43   : > { %p13269_p2 = pnand %p13272_p1, %p13990_p6 }
 0xf45   : > { %13852 = dma.done.wait (!%p13269_p2), %s11347_s24, 1024  }
 0xf46   : > { %13854 = vsyncadd (!%p13269_p2), %s11347_s24, 4294966272  ;;  %s19204_s30 = sld [smem:[#allocation9_spill]]  ;;  %p23_p3 = scmp.ge.s32.totalorder %s13973_s14, 4  }
 0xf47   : > { %s19205_s25 = smov %s13861_s26  ;;  %s19206_s26 = smov %s13865_s27 }
 0xf48   : > { %s19208_s28 = smov %s13973_s14  ;;  %25 = sbr.rel (!%p23_p3) target bundleno = 6 (0x6), region = 120 }
 0xf4c   : > { %s19207_s27 = smov %s19204_s30 }
 0xf4f   :  { %11352 = vsyncpa [#allocation7], 1 }
 0xf50   :  { %11354 = vsyncpa [#allocation7 + $0x1], 1 }

</bundles_post_ra>
